<compile_context>
chip_gen: v7x
topology: tpu7x:2x2x1
jax: 0.10.0
libtpu: 0.0.40
codegen_flags: <defaults>
</compile_context>

<pallas_src>
import functools

import jax
import jax.numpy as jnp
import numpy as np
from jax.experimental import pallas as pl
from jax.experimental.pallas import tpu as pltpu


def _round_up(v, m):
    return (v + m - 1) // m * m


# ------------------------------ fused kernel --------------------------------

def _seg_block_kernel(xp_ref, w1_ref, b1_ref, w2_ref, wsc_ref, b2_ref, mask_ref,
                      o_ref, h1p_ref, *, wp, mxu_dtype):
    """Fused  conv1(relu(x)) -> conv2(relu(.)) + conv_sc(x)  for one batch element.

    xp_ref : (1, (H+3)*Wp, Cin_p)   zero-padded input slab, rows = h*Wp + w
    w1_ref : (3, 3*Cin_p, Cmid_p)   conv1 weights; K axis = kx-concat of channels
    b1_ref : (1, Cmid_p)            conv1 bias (f32)
    w2_ref : (3, 3*Cmid_p, Cout_p)  conv2 weights (same K-concat layout)
    wsc_ref: (Cin_p, Cout_p)        1x1 shortcut weights
    b2_ref : (1, Cout_p)            combined bias b2 + bsc (f32)
    mask_ref:(M, 1)                 1.0 on valid columns (w < W), 0.0 on junk cols
    o_ref  : (1, M, Cout_p)         output slab (f32), M = H*Wp
    h1p_ref: (M + 2*Wp + 16, Cmid_p) VMEM scratch: zero-padded relu(h1) slab
    """
    m = o_ref.shape[1]
    big = m + 2 * wp                 # rows needed to cover all 3 ky offsets
    cmid = h1p_ref.shape[1]
    mp2 = h1p_ref.shape[0]
    s0 = wp + 8                      # 8-aligned offset of pixel (0,0) in h1p_ref

    # ---------------- conv1: 3x3 over relu(x) -------------------------------
    x_raw = xp_ref[0]
    x = jnp.maximum(x_raw, 0).astype(mxu_dtype)          # relu once per batch elem
    # kx-shift concat: tap (ky,kx) becomes lanes [kx*Cin_p:(kx+1)*Cin_p) of a
    # single K=3*Cin_p matmul per ky, with every per-ky row slice 8-aligned.
    xcat = jnp.concatenate([x[0:big, :], x[1:1 + big, :], x[2:2 + big, :]],
                           axis=-1)
    acc1 = jnp.zeros((m, cmid), jnp.float32)
    for ky in range(3):
        acc1 = acc1 + jnp.dot(xcat[ky * wp:ky * wp + m, :], w1_ref[ky],
                              preferred_element_type=jnp.float32)
    # relu + zero junk columns (w >= W) so they act as conv2's zero padding.
    h1 = jnp.maximum(acc1 + b1_ref[...], 0.0) * mask_ref[...]

    # Stash relu(h1) in the zero-padded VMEM slab (no HBM round trip).
    h1p_ref[0:s0, :] = jnp.zeros((s0, cmid), h1p_ref.dtype)
    h1p_ref[s0 + m:mp2, :] = jnp.zeros((mp2 - s0 - m, cmid), h1p_ref.dtype)
    h1p_ref[s0:s0 + m, :] = h1.astype(h1p_ref.dtype)

    # ---------------- 1x1 shortcut on pre-ReLU x + combined bias ------------
    xf = x_raw[wp + 1:wp + 1 + m, :].astype(mxu_dtype)   # same slab, shifted rows
    acc = jnp.dot(xf, wsc_ref[...], preferred_element_type=jnp.float32)
    acc = acc + b2_ref[...]

    # ---------------- conv2: 3x3 over relu(h1) from the VMEM slab -----------
    hp = h1p_ref[...]
    d0 = s0 - wp - 1
    hcat = jnp.concatenate([hp[d0:d0 + big, :],
                            hp[d0 + 1:d0 + 1 + big, :],
                            hp[d0 + 2:d0 + 2 + big, :]], axis=-1)
    for ky in range(3):
        acc = acc + jnp.dot(hcat[ky * wp:ky * wp + m, :], w2_ref[ky],
                            preferred_element_type=jnp.float32)
    o_ref[0] = acc.astype(o_ref.dtype)


# ------------------------------- forward glue -------------------------------

def seg_block_forward(x_nchw, y, params, *, mxu_dtype=jnp.bfloat16):
    # ccbn.forward(x, y) == x: the conditioning input is unused in the forward.
    del y
    N, Cin, H, W = x_nchw.shape
    Cout = params["w1"].shape[0]
    Cinp = _round_up(Cin, 128)           # lane-dense channel padding
    Cmidp = _round_up(Cout, 128)
    Coutp = _round_up(Cout, 128)
    Wp = _round_up(W + 2, 8)             # padded width (1 left halo, >=1 right)
    M = H * Wp
    MP = (H + 3) * Wp
    MP2 = M + 2 * Wp + 16                # VMEM h1 slab rows (8-aligned halos)

    # NHWC, pad channels to a lane multiple, add spatial halos, flatten rows.
    x_nhwc = jnp.transpose(x_nchw, (0, 2, 3, 1))
    x_c = jnp.pad(x_nhwc, ((0, 0), (0, 0), (0, 0), (0, Cinp - Cin)))
    xp_flat = jnp.pad(x_c, ((0, 0), (1, 2), (1, Wp - 1 - W), (0, 0))
                      ).reshape(N, MP, Cinp).astype(mxu_dtype)

    def prep3x3(w, cin_p, cout_p):
        cout, cin = w.shape[0], w.shape[1]
        wt = jnp.transpose(w, (2, 3, 1, 0))              # (ky, kx, cin, cout)
        wt = jnp.pad(wt, ((0, 0), (0, 0), (0, cin_p - cin), (0, cout_p - cout)))
        return wt.reshape(3, 3 * cin_p, cout_p).astype(mxu_dtype)

    w1c = prep3x3(params["w1"], Cinp, Cmidp)             # (3, 3*Cinp, Cmidp)
    w2c = prep3x3(params["w2"], Cmidp, Coutp)            # (3, 3*Cmidp, Coutp)
    wscp = jnp.pad(params["wsc"][:, :, 0, 0].T,
                   ((0, Cinp - Cin), (0, Coutp - Cout))).astype(mxu_dtype)
    b1p = jnp.pad(params["b1"], (0, Cmidp - Cout)).astype(jnp.float32).reshape(1, Cmidp)
    # conv2 bias + shortcut bias just add together -> fold into one vector.
    b2scp = jnp.pad(params["b2"] + params["bsc"],
                    (0, Coutp - Cout)).astype(jnp.float32).reshape(1, Coutp)

    # 1.0 on valid columns (w < W), 0.0 on the junk columns of each padded row.
    col = jnp.arange(M, dtype=jnp.int32) % Wp
    mask = (col < W).astype(jnp.float32).reshape(M, 1)

    kernel = functools.partial(_seg_block_kernel, wp=Wp, mxu_dtype=mxu_dtype)
    out = pl.pallas_call(
        kernel,
        out_shape=jax.ShapeDtypeStruct((N, M, Coutp), jnp.float32),
        grid_spec=pltpu.PrefetchScalarGridSpec(
            num_scalar_prefetch=0,
            grid=(N,),
            in_specs=[
                pl.BlockSpec((1, MP, Cinp), lambda i: (i, 0, 0)),
                pl.BlockSpec((3, 3 * Cinp, Cmidp), lambda i: (0, 0, 0)),
                pl.BlockSpec((1, Cmidp), lambda i: (0, 0)),
                pl.BlockSpec((3, 3 * Cmidp, Coutp), lambda i: (0, 0, 0)),
                pl.BlockSpec((Cinp, Coutp), lambda i: (0, 0)),
                pl.BlockSpec((1, Coutp), lambda i: (0, 0)),
                pl.BlockSpec((M, 1), lambda i: (0, 0)),
            ],
            out_specs=pl.BlockSpec((1, M, Coutp), lambda i: (i, 0, 0)),
            scratch_shapes=[pltpu.VMEM((MP2, Cmidp), mxu_dtype)],
        ),
        compiler_params=pltpu.CompilerParams(
            dimension_semantics=("parallel",)),
    )(xp_flat, w1c, b1p, w2c, wscp, b2scp, mask)

    out = out.reshape(N, H, Wp, Coutp)[:, :, :W, :Cout]
    return jnp.transpose(out, (0, 3, 1, 2)).astype(x_nchw.dtype)


def reference_forward(x_nchw, params):
    """Pure-JAX f32 reference (mirrors the PyTorch forward with ReLU activation)."""
    def conv(x, w, b, pad):
        o = jax.lax.conv_general_dilated(
            x, w, window_strides=(1, 1), padding=pad,
            dimension_numbers=("NCHW", "OIHW", "NCHW"))
        return o + b.reshape(1, -1, 1, 1)
    h = jnp.maximum(x_nchw, 0.0)
    h = conv(h, params["w1"], params["b1"], ((1, 1), (1, 1)))
    h = jnp.maximum(h, 0.0)
    h = conv(h, params["w2"], params["b2"], ((1, 1), (1, 1)))
    sc = conv(x_nchw, params["wsc"], params["bsc"], ((0, 0), (0, 0)))
    return h + sc


# --------------------------------- main ------------------------------------

if __name__ == "__main__":
    key = jax.random.PRNGKey(0)
    N, Cin, Cout, H, W, CON = 2, 4, 8, 16, 16, 4   # in_ch=4, out_ch=8, con_ch=4

    ks = jax.random.split(key, 10)
    x = jax.random.normal(ks[0], (N, Cin, H, W), jnp.float32)
    y = jax.random.normal(ks[1], (N, CON), jnp.float32)          # unused (ccbn is identity)

    params = {
        "w1": 0.1 * jax.random.normal(ks[2], (Cout, Cin, 3, 3), jnp.float32),
        "b1": 0.1 * jax.random.normal(ks[3], (Cout,), jnp.float32),
        "w2": 0.1 * jax.random.normal(ks[4], (Cout, Cout, 3, 3), jnp.float32),
        "b2": 0.1 * jax.random.normal(ks[5], (Cout,), jnp.float32),
        "wsc": 0.1 * jax.random.normal(ks[6], (Cout, Cin, 1, 1), jnp.float32),
        "bsc": 0.1 * jax.random.normal(ks[7], (Cout,), jnp.float32),
        # ccbn gain/bias linears exist in the module but are never used in forward:
        "ccbn1_gain": jnp.zeros((Cin, CON), jnp.float32),
        "ccbn2_gain": jnp.zeros((Cout, CON), jnp.float32),
    }

    fwd = jax.jit(seg_block_forward)
    out = jax.block_until_ready(fwd(x, y, params))
    ref = jax.block_until_ready(reference_forward(x, params))

    assert out.shape == (N, Cout, H, W)
    # bf16 MXU operands -> tolerance relaxed vs the f32 reference (review guidance).
    np.testing.assert_allclose(np.asarray(out), np.asarray(ref), rtol=4e-2, atol=4e-2)
    print("KERNEL_OK")
</pallas_src>

<mosaic_0001>
module attributes {stable_mosaic.version = 11 : i64} {
  func.func @_seg_block_kernel(%arg0: i32, %arg1: memref<1x456x128xbf16, #tpu.memory_space<vmem>>, %arg2: memref<3x384x128xbf16, #tpu.memory_space<vmem>>, %arg3: memref<1x128xf32, #tpu.memory_space<vmem>>, %arg4: memref<3x384x128xbf16, #tpu.memory_space<vmem>>, %arg5: memref<128x128xbf16, #tpu.memory_space<vmem>>, %arg6: memref<1x128xf32, #tpu.memory_space<vmem>>, %arg7: memref<384x1xf32, #tpu.memory_space<vmem>>, %arg8: memref<1x384x128xf32, #tpu.memory_space<vmem>>, %arg9: memref<448x128xbf16, #tpu.memory_space<vmem>>) attributes {dimension_semantics = [#tpu.dimension_semantics<parallel>], iteration_bounds = array<i64: 2>, scalar_prefetch = 0 : i64, scratch_operands = 1 : i64, tpu.core_type = #tpu.core_type<tc>, window_params = [{transform_indices = @transform_0, window_bounds = array<i64: 1, 456, 128>}, {pipeline_mode = #tpu.pipeline_mode<synchronous>, transform_indices = @transform_1, window_bounds = array<i64: 3, 384, 128>}, {pipeline_mode = #tpu.pipeline_mode<synchronous>, transform_indices = @transform_2, window_bounds = array<i64: 1, 128>}, {pipeline_mode = #tpu.pipeline_mode<synchronous>, transform_indices = @transform_3, window_bounds = array<i64: 3, 384, 128>}, {pipeline_mode = #tpu.pipeline_mode<synchronous>, transform_indices = @transform_4, window_bounds = array<i64: 128, 128>}, {pipeline_mode = #tpu.pipeline_mode<synchronous>, transform_indices = @transform_5, window_bounds = array<i64: 1, 128>}, {pipeline_mode = #tpu.pipeline_mode<synchronous>, transform_indices = @transform_6, window_bounds = array<i64: 384, 1>}, {transform_indices = @transform_7, window_bounds = array<i64: 1, 384, 128>}]} {
    %c0 = arith.constant 0 : index
    %c0_0 = arith.constant 0 : index
    %c0_1 = arith.constant 0 : index
    %0 = vector.load %arg1[%c0, %c0_0, %c0_1] : memref<1x456x128xbf16, #tpu.memory_space<vmem>>, vector<1x456x128xbf16>
    %1 = vector.shape_cast %0 : vector<1x456x128xbf16> to vector<456x128xbf16>
    %cst = arith.constant 0.000000e+00 : bf16
    %2 = vector.broadcast %cst : bf16 to vector<456x128xbf16>
    %3 = arith.maximumf %1, %2 : vector<456x128xbf16>
    %4 = vector.extract_strided_slice %3 {offsets = [0, 0], sizes = [432, 128], strides = [1, 1]} : vector<456x128xbf16> to vector<432x128xbf16>
    %5 = vector.extract_strided_slice %3 {offsets = [1, 0], sizes = [432, 128], strides = [1, 1]} : vector<456x128xbf16> to vector<432x128xbf16>
    %6 = vector.extract_strided_slice %3 {offsets = [2, 0], sizes = [432, 128], strides = [1, 1]} : vector<456x128xbf16> to vector<432x128xbf16>
    %7 = tpu.concatenate %4, %5, %6 in 1 : vector<432x128xbf16>, vector<432x128xbf16>, vector<432x128xbf16> -> vector<432x384xbf16>
    %cst_2 = arith.constant 0.000000e+00 : f32
    %8 = vector.broadcast %cst_2 : f32 to vector<384x128xf32>
    %9 = vector.extract_strided_slice %7 {offsets = [0, 0], sizes = [384, 384], strides = [1, 1]} : vector<432x384xbf16> to vector<384x384xbf16>
    %c0_3 = arith.constant 0 : index
    %c0_4 = arith.constant 0 : index
    %c0_5 = arith.constant 0 : index
    %10 = vector.load %arg2[%c0_3, %c0_4, %c0_5] : memref<3x384x128xbf16, #tpu.memory_space<vmem>>, vector<1x384x128xbf16>
    %11 = vector.shape_cast %10 : vector<1x384x128xbf16> to vector<384x128xbf16>
    %cst_6 = arith.constant dense<0.000000e+00> : vector<384x128xf32>
    %12 = tpu.matmul %9, %11, %cst_6 {dimension_numbers = #tpu.dot_dimension_numbers<[1], [0], [0], [1], [0, 0, 1, 1], [], []>} : vector<384x384xbf16>, vector<384x128xbf16>, vector<384x128xf32> -> vector<384x128xf32>
    %13 = arith.addf %8, %12 : vector<384x128xf32>
    %14 = vector.extract_strided_slice %7 {offsets = [24, 0], sizes = [384, 384], strides = [1, 1]} : vector<432x384xbf16> to vector<384x384xbf16>
    %c1 = arith.constant 1 : index
    %c0_7 = arith.constant 0 : index
    %c0_8 = arith.constant 0 : index
    %15 = vector.load %arg2[%c1, %c0_7, %c0_8] : memref<3x384x128xbf16, #tpu.memory_space<vmem>>, vector<1x384x128xbf16>
    %16 = vector.shape_cast %15 : vector<1x384x128xbf16> to vector<384x128xbf16>
    %cst_9 = arith.constant dense<0.000000e+00> : vector<384x128xf32>
    %17 = tpu.matmul %14, %16, %cst_9 {dimension_numbers = #tpu.dot_dimension_numbers<[1], [0], [0], [1], [0, 0, 1, 1], [], []>} : vector<384x384xbf16>, vector<384x128xbf16>, vector<384x128xf32> -> vector<384x128xf32>
    %18 = arith.addf %13, %17 : vector<384x128xf32>
    %19 = vector.extract_strided_slice %7 {offsets = [48, 0], sizes = [384, 384], strides = [1, 1]} : vector<432x384xbf16> to vector<384x384xbf16>
    %c2 = arith.constant 2 : index
    %c0_10 = arith.constant 0 : index
    %c0_11 = arith.constant 0 : index
    %20 = vector.load %arg2[%c2, %c0_10, %c0_11] : memref<3x384x128xbf16, #tpu.memory_space<vmem>>, vector<1x384x128xbf16>
    %21 = vector.shape_cast %20 : vector<1x384x128xbf16> to vector<384x128xbf16>
    %cst_12 = arith.constant dense<0.000000e+00> : vector<384x128xf32>
    %22 = tpu.matmul %19, %21, %cst_12 {dimension_numbers = #tpu.dot_dimension_numbers<[1], [0], [0], [1], [0, 0, 1, 1], [], []>} : vector<384x384xbf16>, vector<384x128xbf16>, vector<384x128xf32> -> vector<384x128xf32>
    %23 = arith.addf %18, %22 : vector<384x128xf32>
    %c0_13 = arith.constant 0 : index
    %c0_14 = arith.constant 0 : index
    %24 = vector.load %arg3[%c0_13, %c0_14] : memref<1x128xf32, #tpu.memory_space<vmem>>, vector<1x128xf32>
    %25 = vector.broadcast %24 : vector<1x128xf32> to vector<384x128xf32>
    %26 = arith.addf %23, %25 : vector<384x128xf32>
    %cst_15 = arith.constant 0.000000e+00 : f32
    %27 = vector.broadcast %cst_15 : f32 to vector<384x128xf32>
    %28 = arith.maximumf %26, %27 : vector<384x128xf32>
    %c0_16 = arith.constant 0 : index
    %c0_17 = arith.constant 0 : index
    %29 = vector.load %arg7[%c0_16, %c0_17] : memref<384x1xf32, #tpu.memory_space<vmem>>, vector<384x1xf32>
    %30 = vector.broadcast %29 : vector<384x1xf32> to vector<384x128xf32>
    %31 = arith.mulf %28, %30 : vector<384x128xf32>
    %cst_18 = arith.constant 0.000000e+00 : bf16
    %32 = vector.broadcast %cst_18 : bf16 to vector<32x128xbf16>
    %c0_19 = arith.constant 0 : index
    %c0_20 = arith.constant 0 : index
    %33 = vector.load %arg9[%c0_19, %c0_20] : memref<448x128xbf16, #tpu.memory_space<vmem>>, vector<32x128xbf16>
    tpu.vector_store %arg9[%c0_19, %c0_20], %32 {strides = array<i32>} : memref<448x128xbf16, #tpu.memory_space<vmem>>, vector<32x128xbf16>,
    %cst_21 = arith.constant 0.000000e+00 : bf16
    %34 = vector.broadcast %cst_21 : bf16 to vector<32x128xbf16>
    %c416 = arith.constant 416 : index
    %c0_22 = arith.constant 0 : index
    %35 = vector.load %arg9[%c416, %c0_22] : memref<448x128xbf16, #tpu.memory_space<vmem>>, vector<32x128xbf16>
    tpu.vector_store %arg9[%c416, %c0_22], %34 {strides = array<i32>} : memref<448x128xbf16, #tpu.memory_space<vmem>>, vector<32x128xbf16>,
    %36 = arith.truncf %31 : vector<384x128xf32> to vector<384x128xbf16>
    %c32 = arith.constant 32 : index
    %c0_23 = arith.constant 0 : index
    %37 = vector.load %arg9[%c32, %c0_23] : memref<448x128xbf16, #tpu.memory_space<vmem>>, vector<384x128xbf16>
    tpu.vector_store %arg9[%c32, %c0_23], %36 {strides = array<i32>} : memref<448x128xbf16, #tpu.memory_space<vmem>>, vector<384x128xbf16>,
    %38 = vector.extract_strided_slice %1 {offsets = [25, 0], sizes = [384, 128], strides = [1, 1]} : vector<456x128xbf16> to vector<384x128xbf16>
    %c0_24 = arith.constant 0 : index
    %c0_25 = arith.constant 0 : index
    %39 = vector.load %arg5[%c0_24, %c0_25] : memref<128x128xbf16, #tpu.memory_space<vmem>>, vector<128x128xbf16>
    %cst_26 = arith.constant dense<0.000000e+00> : vector<384x128xf32>
    %40 = tpu.matmul %38, %39, %cst_26 {dimension_numbers = #tpu.dot_dimension_numbers<[1], [0], [0], [1], [0, 0, 1, 1], [], []>} : vector<384x128xbf16>, vector<128x128xbf16>, vector<384x128xf32> -> vector<384x128xf32>
    %c0_27 = arith.constant 0 : index
    %c0_28 = arith.constant 0 : index
    %41 = vector.load %arg6[%c0_27, %c0_28] : memref<1x128xf32, #tpu.memory_space<vmem>>, vector<1x128xf32>
    %42 = vector.broadcast %41 : vector<1x128xf32> to vector<384x128xf32>
    %43 = arith.addf %40, %42 : vector<384x128xf32>
    %c0_29 = arith.constant 0 : index
    %c0_30 = arith.constant 0 : index
    %44 = vector.load %arg9[%c0_29, %c0_30] : memref<448x128xbf16, #tpu.memory_space<vmem>>, vector<448x128xbf16>
    %45 = vector.extract_strided_slice %44 {offsets = [7, 0], sizes = [432, 128], strides = [1, 1]} : vector<448x128xbf16> to vector<432x128xbf16>
    %46 = vector.extract_strided_slice %44 {offsets = [8, 0], sizes = [432, 128], strides = [1, 1]} : vector<448x128xbf16> to vector<432x128xbf16>
    %47 = vector.extract_strided_slice %44 {offsets = [9, 0], sizes = [432, 128], strides = [1, 1]} : vector<448x128xbf16> to vector<432x128xbf16>
    %48 = tpu.concatenate %45, %46, %47 in 1 : vector<432x128xbf16>, vector<432x128xbf16>, vector<432x128xbf16> -> vector<432x384xbf16>
    %49 = vector.extract_strided_slice %48 {offsets = [0, 0], sizes = [384, 384], strides = [1, 1]} : vector<432x384xbf16> to vector<384x384xbf16>
    %c0_31 = arith.constant 0 : index
    %c0_32 = arith.constant 0 : index
    %c0_33 = arith.constant 0 : index
    %50 = vector.load %arg4[%c0_31, %c0_32, %c0_33] : memref<3x384x128xbf16, #tpu.memory_space<vmem>>, vector<1x384x128xbf16>
    %51 = vector.shape_cast %50 : vector<1x384x128xbf16> to vector<384x128xbf16>
    %cst_34 = arith.constant dense<0.000000e+00> : vector<384x128xf32>
    %52 = tpu.matmul %49, %51, %cst_34 {dimension_numbers = #tpu.dot_dimension_numbers<[1], [0], [0], [1], [0, 0, 1, 1], [], []>} : vector<384x384xbf16>, vector<384x128xbf16>, vector<384x128xf32> -> vector<384x128xf32>
    %53 = arith.addf %43, %52 : vector<384x128xf32>
    %54 = vector.extract_strided_slice %48 {offsets = [24, 0], sizes = [384, 384], strides = [1, 1]} : vector<432x384xbf16> to vector<384x384xbf16>
    %c1_35 = arith.constant 1 : index
    %c0_36 = arith.constant 0 : index
    %c0_37 = arith.constant 0 : index
    %55 = vector.load %arg4[%c1_35, %c0_36, %c0_37] : memref<3x384x128xbf16, #tpu.memory_space<vmem>>, vector<1x384x128xbf16>
    %56 = vector.shape_cast %55 : vector<1x384x128xbf16> to vector<384x128xbf16>
    %cst_38 = arith.constant dense<0.000000e+00> : vector<384x128xf32>
    %57 = tpu.matmul %54, %56, %cst_38 {dimension_numbers = #tpu.dot_dimension_numbers<[1], [0], [0], [1], [0, 0, 1, 1], [], []>} : vector<384x384xbf16>, vector<384x128xbf16>, vector<384x128xf32> -> vector<384x128xf32>
    %58 = arith.addf %53, %57 : vector<384x128xf32>
    %59 = vector.extract_strided_slice %48 {offsets = [48, 0], sizes = [384, 384], strides = [1, 1]} : vector<432x384xbf16> to vector<384x384xbf16>
    %c2_39 = arith.constant 2 : index
    %c0_40 = arith.constant 0 : index
    %c0_41 = arith.constant 0 : index
    %60 = vector.load %arg4[%c2_39, %c0_40, %c0_41] : memref<3x384x128xbf16, #tpu.memory_space<vmem>>, vector<1x384x128xbf16>
    %61 = vector.shape_cast %60 : vector<1x384x128xbf16> to vector<384x128xbf16>
    %cst_42 = arith.constant dense<0.000000e+00> : vector<384x128xf32>
    %62 = tpu.matmul %59, %61, %cst_42 {dimension_numbers = #tpu.dot_dimension_numbers<[1], [0], [0], [1], [0, 0, 1, 1], [], []>} : vector<384x384xbf16>, vector<384x128xbf16>, vector<384x128xf32> -> vector<384x128xf32>
    %63 = arith.addf %58, %62 : vector<384x128xf32>
    %c0_43 = arith.constant 0 : index
    %c0_44 = arith.constant 0 : index
    %c0_45 = arith.constant 0 : index
    %64 = vector.load %arg8[%c0_43, %c0_44, %c0_45] : memref<1x384x128xf32, #tpu.memory_space<vmem>>, vector<1x384x128xf32>
    %65 = vector.shape_cast %64 : vector<1x384x128xf32> to vector<384x128xf32>
    %66 = vector.shape_cast %63 : vector<384x128xf32> to vector<1x384x128xf32>
    tpu.vector_store %arg8[%c0_43, %c0_44, %c0_45], %66 {strides = array<i32>} : memref<1x384x128xf32, #tpu.memory_space<vmem>>, vector<1x384x128xf32>,
    return
  }
  func.func @transform_0(%arg0: i32) -> (i32, i32, i32) {
    %c0_i32 = arith.constant 0 : i32
    %c0_i32_0 = arith.constant 0 : i32
    %c0_i32_1 = arith.constant 0 : i32
    return %arg0, %c0_i32, %c0_i32_0 : i32, i32, i32
  }
  func.func @transform_1(%arg0: i32) -> (i32, i32, i32) {
    %c0_i32 = arith.constant 0 : i32
    %c0_i32_0 = arith.constant 0 : i32
    %c0_i32_1 = arith.constant 0 : i32
    %c0_i32_2 = arith.constant 0 : i32
    return %c0_i32, %c0_i32_0, %c0_i32_1 : i32, i32, i32
  }
  func.func @transform_2(%arg0: i32) -> (i32, i32) {
    %c0_i32 = arith.constant 0 : i32
    %c0_i32_0 = arith.constant 0 : i32
    %c0_i32_1 = arith.constant 0 : i32
    return %c0_i32, %c0_i32_0 : i32, i32
  }
  func.func @transform_3(%arg0: i32) -> (i32, i32, i32) {
    %c0_i32 = arith.constant 0 : i32
    %c0_i32_0 = arith.constant 0 : i32
    %c0_i32_1 = arith.constant 0 : i32
    %c0_i32_2 = arith.constant 0 : i32
    return %c0_i32, %c0_i32_0, %c0_i32_1 : i32, i32, i32
  }
  func.func @transform_4(%arg0: i32) -> (i32, i32) {
    %c0_i32 = arith.constant 0 : i32
    %c0_i32_0 = arith.constant 0 : i32
    %c0_i32_1 = arith.constant 0 : i32
    return %c0_i32, %c0_i32_0 : i32, i32
  }
  func.func @transform_5(%arg0: i32) -> (i32, i32) {
    %c0_i32 = arith.constant 0 : i32
    %c0_i32_0 = arith.constant 0 : i32
    %c0_i32_1 = arith.constant 0 : i32
    return %c0_i32, %c0_i32_0 : i32, i32
  }
  func.func @transform_6(%arg0: i32) -> (i32, i32) {
    %c0_i32 = arith.constant 0 : i32
    %c0_i32_0 = arith.constant 0 : i32
    %c0_i32_1 = arith.constant 0 : i32
    return %c0_i32, %c0_i32_0 : i32, i32
  }
  func.func @transform_7(%arg0: i32) -> (i32, i32, i32) {
    %c0_i32 = arith.constant 0 : i32
    %c0_i32_0 = arith.constant 0 : i32
    %c0_i32_1 = arith.constant 0 : i32
    return %arg0, %c0_i32, %c0_i32_0 : i32, i32, i32
  }
}

</mosaic_0001>

<bundles_post_ra>
// kernel: seg_block_forward.1
= control target key start
LH: loop header
LB: loop body
LE: loop exit
PB: predicated region body
PF: predicated region fallthrough
CT: control target
= control target key end

     0   :  { %s9093_s24 = smov 0   ;;  %s14370_s0 = inlined_call_operand.vmem [shape: bf16[2,456,128], index: 0, kind: input, shape index: {}]   ;;  %s14371_s1 = inlined_call_operand.vmem [shape: bf16[3,384,128], index: 1, kind: input, shape index: {}]   ;;  %s14372_s2 = inlined_call_operand.vmem [shape: f32[1,128], index: 2, kind: input, shape index: {}]   ;;  %s14373_s3 = inlined_call_operand.vmem [shape: bf16[3,384,128], index: 3, kind: input, shape index: {}]   ;;  %s14374_s4 = inlined_call_operand.vmem [shape: bf16[128,128], index: 4, kind: input, shape index: {}]   ;;  %s14375_s5 = inlined_call_operand.vmem [shape: f32[1,128], index: 5, kind: input, shape index: {}]   ;;  %s14376_s6 = inlined_call_operand.vmem [shape: f32[384,1], index: 6, kind: input, shape index: {}]   ;;  %s14377_s7 = inlined_call_operand.vmem [shape: f32[2,384,128], index: 7, kind: output, shape index: {}]  }
   0x1 LB: > { %s7708_s25 = sadd.s32 4294967295, %s9050_s24   ;;  %p7712_p0 = scmp.ge.s32.totalorder %s9050_s24, 1  ;;  %s9050_s24 = sphi %s9093_s24, %s17_s24  }
   0x2   : > { %p237_p1 = scmp.lt.s32.totalorder %s9050_s24, 3 }
   0x4   : > { %p238_p2 = pnand %p7712_p0, %p237_p1 }
   0x6   : > { %241 = sbr.rel (%p238_p2) target bundleno = 1409 (0x581), region = 48 }
   0xd   : > { %v8817_v0 = vld [vmem:[%s14371_s1 + $0xc0] sm:$0xff]   ;;  %v14391_v1 = vmov 0   ;;  %p269_p3 = scmp.lt.s32.totalorder %s7708_s25, 1  ;;  %v8819_v3 = vld [vmem:[%s14371_s1 + $0xc8] sm:$0xff]   ;;  %v9127_v5 = vld [vmem:[%s14371_s1 + $0x150] sm:$0xff]   ;;  %vm803_vm0 = vcmask 1046528  }
   0xe   : > { %1347 = vmatprep.subr.bf16.mxu0 %v14391_v1  ;;  %v9108_v2 = vld [vmem:[%s14371_s1 + $0x140] sm:$0xff]   ;;  %8815 = vset.pattern.permute.xlu0 %v14391_v1  ;;  %v9120_v4 = vld [vmem:[%s14371_s1 + $0x148] sm:$0xff]   ;;  %v8821_v6 = vld [vmem:[%s14371_s1 + $0xd0] sm:$0xff]   ;;  %vm983_vm1 = vcmask 1043456   ;;  %vm555_vm2 = vsmask.f32 7424 }
   0xf   : > { %1348 = vmatpush1.bf16.msra.mxu0 %v8817_v0  ;;  %8816 = vset.pattern.permute.xlu1 %v14391_v1  ;;  %s15575_s25 = smov (!%p269_p3, %s7708_s25), 1  ;;  %v9140_v7 = vld [vmem:[%s14371_s1 + $0x158] sm:$0xff]   ;;  %v9152_v9 = vld [vmem:[%s14371_s1 + $0x160] sm:$0xff]   ;;  %v9166_v11 = vld [vmem:[%s14371_s1 + $0x168] sm:$0xff]   ;;  %vm4594_vm3 = vsmask.f32 4352 }
  0x10   : > { %8788 = vmatprep.subr.bf16.mxu1 %v9108_v2  ;;  %1349 = vmatprep.subr.bf16.mxu0 %v14391_v1  ;;  %s8804_s17 = smul.u32 228, %s15575_s25  ;;  %v8823_v8 = vld [vmem:[%s14371_s1 + $0xd8] sm:$0xff]   ;;  %v8825_v10 = vld [vmem:[%s14371_s1 + $0xe0] sm:$0xff]   ;;  %v8827_v21 = vld [vmem:[%s14371_s1 + $0xe8] sm:$0xff]   ;;  %vm5905_vm4 = vsmask.f32 256 }
  0x11   : > { %8796 = vmatpush3.bf16.msra.mxu1 %v9108_v2  ;;  %v9201_v32 = vld [vmem:[%s14371_s1 + $0x170] sm:$0xff]   ;;  %v8831_v40 = vld [vmem:[%s14371_s1 + $0xf8] sm:$0xff]   ;;  %v8833_v63 = vld [vmem:[%s14371_s1 + $0x100] sm:$0xff]   ;;  %s8805_s30 = smul.u32 384, %s15575_s25 }
  0x12   : > { %8789 = vmatprep.subr.bf16.mxu1 %v9120_v4  ;;  %s9157_s26 = scalar_lea.vmem %s14370_s0, %s8804_s17  ;;  %v8829_v34 = vld [vmem:[%s14371_s1 + $0xf0] sm:$0xff]   ;;  %v9221_v41 = vld [vmem:[%s14371_s1 + $0x178] sm:$0xff]  }
  0x13   : > { %1350 = vmatpush1.bf16.msra.mxu0 %v8819_v3  ;;  %v298_v12 = vld [vmem:[%s9157_s26 + $0x48] sm:$0xf]  ;;  %v299_v13 = vld [vmem:[%s9157_s26 + $0x4c] sm:$0xf]  ;;  %v300_v14 = vld [vmem:[%s9157_s26 + $0x50] sm:$0xf]  ;;  %s14179_s10 = scalar_lea.vmem %s14377_s7, %s8805_s30 }
  0x14   : > { %1351 = vmatprep.subr.bf16.mxu0 %v14391_v1  ;;  %v301_v15 = vld [vmem:[%s9157_s26 + $0x54] sm:$0xf]  ;;  %v302_v16 = vld [vmem:[%s9157_s26 + $0x58] sm:$0xf]  ;;  %v303_v17 = vld [vmem:[%s9157_s26 + $0x5c] sm:$0xf]  ;;  %v353_v18 = vmax.bf16 %v14391_v1, %v298_v12  ;;  %v354_v19 = vmax.bf16 %v14391_v1, %v299_v13  ;;  %v355_v20 = vmax.bf16 %v14391_v1, %v300_v14 }
  0x15   : > { %8797 = vmatpush3.bf16.msra.mxu1 %v9120_v4  ;;  %v356_v22 = vmax.bf16 %v14391_v1, %v301_v15  ;;  %v357_v23 = vmax.bf16 %v14391_v1, %v302_v16  ;;  %v358_v24 = vmax.bf16 %v14391_v1, %v303_v17  ;;  %v304_v26 = vld [vmem:[%s9157_s26 + $0x60] sm:$0xf]  ;;  %v305_v27 = vld [vmem:[%s9157_s26 + $0x64] sm:$0xf]  ;;  %v306_v38 = vld [vmem:[%s9157_s26 + $0x68] sm:$0xf] }
  0x16   : > { %8790 = vmatprep.subr.bf16.mxu1 %v9127_v5  ;;  %v9186_v25 = vcombine.low %v353_v18, %v354_v19  ;;  %v359_v30 = vmax.bf16 %v14391_v1, %v304_v26  ;;  %v360_v31 = vmax.bf16 %v14391_v1, %v305_v27  ;;  %v307_v39 = vld [vmem:[%s9157_s26 + $0x6c] sm:$0xf]  ;;  %v361_v45 = vmax.bf16 %v14391_v1, %v306_v38  ;;  %v308_v46 = vld [vmem:[%s9157_s26 + $0x70] sm:$0xf]  ;;  %v309_v50 = vld [vmem:[%s9157_s26 + $0x74] sm:$0xf] }
  0x17   : > { %1352 = vmatpush1.bf16.msra.mxu0 %v8821_v6  ;;  %v9191_v28 = vcombine.low %v355_v20, %v356_v22  ;;  %v9193_v29 = vcombine.low %v357_v23, %v358_v24  ;;  %v362_v49 = vmax.bf16 %v14391_v1, %v307_v39  ;;  %v363_v51 = vmax.bf16 %v14391_v1, %v308_v46  ;;  %v310_v58 = vld [vmem:[%s9157_s26 + $0x78] sm:$0xf]  ;;  %v311_v59 = vld [vmem:[%s9157_s26 + $0x7c] sm:$0xf]  ;;  %v312_v3 = vld [vmem:[%s9157_s26 + $0x80] sm:$0xf] }
  0x18   : > { %1353 = vmatprep.subr.bf16.mxu0 %v14391_v1  ;;  %v14379_v33 = vrot.slane %v9186_v25, 1  ;;  %v9209_v37 = vcombine.low %v359_v30, %v360_v31  ;;  %v364_v53 = vmax.bf16 %v14391_v1, %v309_v50  ;;  %v365_v61 = vmax.bf16 %v14391_v1, %v310_v58  ;;  %v313_v6 = vld [vmem:[%s9157_s26 + $0x84] sm:$0xf]  ;;  %v8835_v18 = vld [vmem:[%s14371_s1 + $0x108] sm:$0xff]   ;;  %v317_v39 = vld [vmem:[%s9157_s26 + $0x94] sm:$0xf] }
  0x19   : > { %8798 = vmatpush3.bf16.msra.mxu1 %v9127_v5  ;;  %v823_v35 = vrot.slane %v9191_v28, 1  ;;  %v825_v36 = vrot.slane %v9193_v29, 1  ;;  %v9248_v55 = vcombine.low %v361_v45, %v362_v49  ;;  %v366_v62 = vmax.bf16 %v14391_v1, %v311_v59  ;;  %v8834_v15 = vld [vmem:[%s14371_s1] sm:$0xff]   ;;  %v314_v23 = vld [vmem:[%s9157_s26 + $0x88] sm:$0xf]  ;;  %v8838_v46 = vld [vmem:[%s14371_s1 + $0x10] sm:$0xff]  }
  0x1a   : > { %8791 = vmatprep.subr.bf16.mxu1 %v9140_v7  ;;  %v827_v44 = vrot.slane %v9209_v37, 1  ;;  %v9252_v57 = vcombine.low %v363_v51, %v364_v53  ;;  %v367_v12 = vmax.bf16 %v14391_v1, %v312_v3  ;;  %v368_v13 = vmax.bf16 %v14391_v1, %v313_v6  ;;  %v315_v24 = vld [vmem:[%s9157_s26 + $0x8c] sm:$0xf]  ;;  %v282_v53 = vld [vmem:[%s9157_s26 + $0x8] sm:$0xf] }
  0x1b   : > { %1354 = vmatpush1.bf16.msra.mxu0 %v8823_v8  ;;  %v9226_v42 = vsel %vm803_vm0, %v14379_v33, %v823_v35  ;;  %v9229_v43 = vsel %vm803_vm0, %v823_v35, %v825_v36  ;;  %v829_v60 = vrot.slane %v9248_v55, 1  ;;  %v369_v31 = vmax.bf16 %v14391_v1, %v314_v23  ;;  %v8837_v35 = vld [vmem:[%s14371_s1 + $0x110] sm:$0xff]   ;;  %v287_v3 = vld [vmem:[%s9157_s26 + $0x1c] sm:$0xf] }
  0x1c   : > { %1355 = vmatprep.subr.bf16.mxu0 %v14391_v1  ;;  %14655 = vst [vmem:[#allocation3_spill] sm:$0xff] %v9229_v43  ;;  %v14378_v47 = vrot.slane %v9226_v42, 4  ;;  %v1039_v48 = vrot.slane %v9229_v43, 4  ;;  %v9241_v52 = vsel %vm803_vm0, %v825_v36, %v827_v44  ;;  %14657 = vst [vmem:[#allocation5_spill] sm:$0xff] %v9252_v57  ;;  %v831_v0 = vrot.slane %v9252_v57, 1 }
  0x1d   : > { %8799 = vmatpush3.bf16.msra.mxu1 %v9140_v7  ;;  %14656 = vst [vmem:[#allocation4_spill] sm:$0xff] %v9241_v52  ;;  %v1045_v56 = vrot.slane %v9241_v52, 4  ;;  %v9268_v8 = vsel %vm803_vm0, %v827_v44, %v829_v60  ;;  %v9288_v20 = vcombine.low %v367_v12, %v368_v13  ;;  %v370_v38 = vmax.bf16 %v14391_v1, %v315_v24  ;;  %v319_v24 = vld [vmem:[%s9157_s26 + $0x9c] sm:$0xf]  ;;  %v296_v52 = vld [vmem:[%s9157_s26 + $0x40] sm:$0xf] }
  0x1e   : > { %8792 = vmatprep.subr.bf16.mxu1 %v9152_v9  ;;  %v1040_v54 = vsel %vm983_vm1, %v14378_v47, %v1039_v48  ;;  %14658 = vst [vmem:[#allocation6_spill] sm:$0xff] %v9268_v8  ;;  %v1051_v16 = vrot.slane %v9268_v8, 4  ;;  %v9281_v17 = vsel %vm803_vm0, %v829_v60, %v831_v0  ;;  %v372_v45 = vmax.bf16 %v14391_v1, %v317_v39  ;;  %v285_v60 = vld [vmem:[%s9157_s26 + $0x14] sm:$0xf]  ;;  %v297_v43 = vld [vmem:[%s9157_s26 + $0x44] sm:$0xf] }
  0x1f   : > { %1356 = vmatpush1.bf16.msra.mxu0 %v8825_v10  ;;  %8372 = vmatprep.mubr.bf16.mxu1 %v1040_v54  ;;  %v9270_v10 = vcombine.low %v365_v61, %v366_v62  ;;  %v1046_v14 = vsel %vm983_vm1, %v1039_v48, %v1045_v56  ;;  %14660 = vst [vmem:[#allocation8_spill] sm:$0xff] %v9281_v17  ;;  %14661 = vst [vmem:[#allocation9_spill] sm:$0xff] %v9288_v20  ;;  %v1057_v26 = vrot.slane %v9281_v17, 4  ;;  %v283_v54 = vld [vmem:[%s9157_s26 + $0xc] sm:$0xf] }
  0x20   : > { %1357 = vmatprep.subr.bf16.mxu0 %v14391_v1  ;;  %v1052_v22 = vsel %vm983_vm1, %v1045_v56, %v1051_v16  ;;  %v835_v30 = vrot.slane %v9288_v20, 1  ;;  %v9319_v48 = vcombine.low %v369_v31, %v370_v38  ;;  %v284_v56 = vld [vmem:[%s9157_s26 + $0x10] sm:$0xf]  ;;  %v286_v61 = vld [vmem:[%s9157_s26 + $0x18] sm:$0xf]  ;;  %v337_v62 = vmax.bf16 %v14391_v1, %v282_v53 }
  0x21   : > { %8800 = vmatpush3.bf16.msra.mxu1 %v9152_v9  ;;  %14659 = vst [vmem:[#allocation7_spill] sm:$0xff] %v9270_v10  ;;  %v833_v19 = vrot.slane %v9270_v10, 1  ;;  %v1058_v49 = vsel %vm983_vm1, %v1051_v16, %v1057_v26  ;;  %v339_v6 = vmax.bf16 %v14391_v1, %v284_v56  ;;  %v340_v12 = vmax.bf16 %v14391_v1, %v285_v60  ;;  %v327_v56 = vld [vmem:[%s9157_s26 + $0xbc] sm:$0xf] }
  0x22   : > { %8793 = vmatprep.subr.bf16.mxu1 %v9166_v11  ;;  %14664 = vst [vmem:[#allocation12_spill] sm:$0xff] %v9319_v48  ;;  %v837_v59 = vrot.slane %v9319_v48, 1  ;;  %v341_v13 = vmax.bf16 %v14391_v1, %v286_v61  ;;  %v374_v60 = vmax.bf16 %v14391_v1, %v319_v24 }
  0x23   : > { %1358 = vmatpush1.bf16.msra.mxu0 %v8827_v21  ;;  %v8836_v21 = vld [vmem:[%s14371_s1 + $0x8] sm:$0xff]   ;;  %v9299_v27 = vsel %vm803_vm0, %v831_v0, %v833_v19  ;;  %v9313_v44 = vsel %vm803_vm0, %v833_v19, %v835_v30  ;;  %v9360_v23 = vcombine.low %v339_v6, %v340_v12 }
  0x24   : > { %1359 = vmatprep.subr.bf16.mxu0 %v14391_v1  ;;  %14662 = vst [vmem:[#allocation10_spill] sm:$0xff] %v9299_v27  ;;  %v1063_v36 = vrot.slane %v9299_v27, 4  ;;  %14663 = vst [vmem:[#allocation11_spill] sm:$0xff] %v9313_v44  ;;  %v1069_v58 = vrot.slane %v9313_v44, 4  ;;  %v9348_v16 = vsel %vm803_vm0, %v835_v30, %v837_v59  ;;  %v8841_v30 = vld [vmem:[%s14371_s1 + $0x120] sm:$0xff]   ;;  %v8843_v6 = vld [vmem:[%s14371_s1 + $0x128] sm:$0xff]  }
  0x25   : > { %8801 = vmatpush3.bf16.msra.mxu1 %v9166_v11  ;;  %14666 = vst [vmem:[#allocation14_spill] sm:$0xff] %v9348_v16  ;;  %v1075_v31 = vrot.slane %v9348_v16, 4  ;;  %v330_v44 = vld [vmem:[%s9157_s26 + $0xc8] sm:$0xf] }
  0x26   : > { %8794 = vmatprep.subr.bf16.mxu1 %v9201_v32  ;;  %v1064_v50 = vsel %vm983_vm1, %v1057_v26, %v1063_v36  ;;  %v320_v26 = vld [vmem:[%s9157_s26 + $0xa0] sm:$0xf]  ;;  %v1070_v39 = vsel %vm983_vm1, %v1063_v36, %v1069_v58 }
  0x27   : > { %1360 = vmatpush1.bf16.msra.mxu0 %v8829_v34  ;;  %v316_v34 = vld [vmem:[%s9157_s26 + $0x90] sm:$0xf]  ;;  %v375_v61 = vmax.bf16 %v14391_v1, %v320_v26 }
  0x28   : > { %1361 = vmatprep.subr.bf16.mxu0 %v14391_v1 }
  0x29   : > { %8802 = vmatpush3.bf16.msra.mxu1 %v9201_v32 }
  0x2a   : > { %8795 = vmatprep.subr.bf16.mxu1 %v9221_v41 }
  0x2b   : > { %1362 = vmatpush1.bf16.msra.mxu0 %v8831_v40  ;;  %v371_v40 = vmax.bf16 %v14391_v1, %v316_v34 }
  0x2c   : > { %1363 = vmatprep.subr.bf16.mxu0 %v14391_v1 }
  0x2d   : > { %8803 = vmatpush3.bf16.msra.mxu1 %v9221_v41  ;;  %v9324_v51 = vcombine.low %v371_v40, %v372_v45  ;;  %v572_v40 = vshll.u32 %v9360_v23, 16  ;;  %v576_v45 = vshrl.u32 %v9360_v23, 16 }
  0x2e   : > { %1941 = vmatprep.subr.bf16.mxu1 %v14391_v1 }
  0x2f   : > { %1364 = vmatpush1.bf16.msra.mxu0 %v8833_v63  ;;  %14665 = vst [vmem:[#allocation13_spill] sm:$0xff] %v9324_v51  ;;  %v338_v63 = vmax.bf16 %v14391_v1, %v283_v54  ;;  %v839_v0 = vrot.slane %v9324_v51, 1  ;;  %v574_v36 = vrot.slane %v572_v40, 1  ;;  %v323_v40 = vld [vmem:[%s9157_s26 + $0xac] sm:$0xf] }
  0x30   : > { %8373 = vmatmul.mubr.bf16.vlgmr.msra.gmra.mrb[0].mxu1 %v1046_v14  ;;  %1365 = vmatprep.subr.bf16.mxu0 %v14391_v1  ;;  %v8839_v14 = vld [vmem:[%s14371_s1 + $0x118] sm:$0xff]  }
  0x31   : > { %1942 = vmatpush1.bf16.msra.mxu1 %v8834_v15  ;;  %8376 = vmatprep.mubr.bf16.mxu1 %v1052_v22  ;;  %v8840_v15 = vld [vmem:[%s14371_s1 + $0x18] sm:$0xff]   ;;  %v9351_v19 = vcombine.low %v337_v62, %v338_v63  ;;  %v9358_v22 = vsel %vm803_vm0, %v837_v59, %v839_v0  ;;  %v288_v62 = vld [vmem:[%s9157_s26 + $0x20] sm:$0xf]  ;;  %v289_v63 = vld [vmem:[%s9157_s26 + $0x24] sm:$0xf] }
  0x32   : > { %1943 = vmatprep.subr.bf16.mxu1 %v14391_v1  ;;  %14667 = vst [vmem:[#allocation15_spill] sm:$0xff] %v9358_v22  ;;  %v344_v26 = vmax.bf16 %v14391_v1, %v289_v63 }
  0x33   : > { %1366 = vmatpush1.bf16.msra.mxu0 %v8835_v18  ;;  %v342_v18 = vmax.bf16 %v14391_v1, %v287_v3  ;;  %v568_v38 = vshrl.u32 %v9351_v19, 16  ;;  %v8842_v3 = vld [vmem:[%s14371_s1 + $0x20] sm:$0xff]  }
  0x34   : > { %1367 = vmatprep.subr.bf16.mxu0 %v14391_v1 }
  0x35   : > { %1944 = vmatpush1.bf16.msra.mxu1 %v8836_v21  ;;  %v318_v21 = vld [vmem:[%s9157_s26 + $0x98] sm:$0xf]  ;;  %v9368_v34 = vcombine.low %v341_v13, %v342_v18  ;;  %v343_v18 = vmax.bf16 %v14391_v1, %v288_v62 }
  0x36   : > { %1945 = vmatprep.subr.bf16.mxu1 %v14391_v1 }
  0x37   : > { %1368 = vmatpush1.bf16.msra.mxu0 %v8837_v35  ;;  %v564_v35 = vshll.u32 %v9351_v19, 16  ;;  %v580_v54 = vshll.u32 %v9368_v34, 16  ;;  %v584_v59 = vshrl.u32 %v9368_v34, 16 }
  0x38   : > { %8377 = vmatmul.mubr.bf16.gmra.mrb[4].mxu1 %v1058_v49  ;;  %1369 = vmatprep.subr.bf16.mxu0 %v14391_v1  ;;  %v321_v49 = vld [vmem:[%s9157_s26 + $0xa4] sm:$0xf] }
  0x39   : > { %1946 = vmatpush1.bf16.msra.mxu1 %v8838_v46  ;;  %8380 = vmatprep.mubr.bf16.mxu1 %v1064_v50  ;;  %v373_v46 = vmax.bf16 %v14391_v1, %v318_v21  ;;  %v1081_v50 = vrot.slane %v9358_v22, 4  ;;  %v9379_v53 = vrot.slane %v564_v35, 1  ;;  %v582_v13 = vrot.slane %v580_v54, 1  ;;  %v322_v35 = vld [vmem:[%s9157_s26 + $0xa8] sm:$0xf] }
  0x3a   : > { %1947 = vmatprep.subr.bf16.mxu1 %v14391_v1  ;;  %v578_v21 = vor.u32 %v576_v45, %v574_v36  ;;  %v324_v54 = vld [vmem:[%s9157_s26 + $0xb0] sm:$0xf]  ;;  %v377_v63 = vmax.bf16 %v14391_v1, %v322_v35 }
  0x3b   : > { %1370 = vmatpush1.bf16.msra.mxu0 %v8839_v14  ;;  %v570_v12 = vor.u32 %v568_v38, %v9379_v53  ;;  %v376_v14 = vmax.bf16 %v14391_v1, %v321_v49  ;;  %v9402_v24 = vcombine.low %v373_v46, %v374_v60  ;;  %v9419_v60 = vcombine.low %v343_v18, %v344_v26 }
  0x3c   : > { %1371 = vmatprep.subr.bf16.mxu0 %v14391_v1  ;;  %v378_v18 = vmax.bf16 %v14391_v1, %v323_v40  ;;  %v8846_v40 = vld [vmem:[%s14371_s1 + $0x30] sm:$0xff]  }
  0x3d   : > { %1948 = vmatpush1.bf16.msra.mxu1 %v8840_v15  ;;  %v1076_v15 = vsel %vm983_vm1, %v1069_v58, %v1075_v31  ;;  %14668 = vst [vmem:[#allocation16_spill] sm:$0xff] %v9402_v24  ;;  %v9408_v38 = vsel %vm555_vm2, %v570_v12, %v574_v36  ;;  %v9410_v49 = vcombine.low %v375_v61, %v376_v14  ;;  %v841_v46 = vrot.slane %v9402_v24, 1  ;;  %v8844_v36 = vld [vmem:[%s14371_s1 + $0x28] sm:$0xff]  }
  0x3e   : > { %1949 = vmatprep.subr.bf16.mxu1 %v14391_v1  ;;  %v9415_v58 = vsel %vm555_vm2, %v578_v21, %v582_v13  ;;  %v987_v45 = vrot.slane %v9408_v38, 4  ;;  %v290_v12 = vld [vmem:[%s9157_s26 + $0x28] sm:$0xf]  ;;  %v588_v14 = vshll.u32 %v9419_v60, 16  ;;  %v1082_v21 = vsel %vm983_vm1, %v1075_v31, %v1081_v50 }
  0x3f   : > { %1372 = vmatpush1.bf16.msra.mxu0 %v8841_v30  ;;  %14669 = vst [vmem:[#allocation17_spill] sm:$0xff] %v9410_v49  ;;  %v325_v30 = vld [vmem:[%s9157_s26 + $0xb4] sm:$0xf]  ;;  %v14380_v61 = vrot.slane %v9415_v58, 4  ;;  %v843_v62 = vrot.slane %v9410_v49, 1  ;;  %v345_v47 = vmax.bf16 %v14391_v1, %v290_v12 }
  0x40   : > { %8381 = vmatmul.mubr.bf16.gmra.mrb[8].mxu1 %v1070_v39  ;;  %1373 = vmatprep.subr.bf16.mxu0 %v14391_v1  ;;  %v586_v39 = vor.u32 %v584_v59, %v582_v13  ;;  %v379_v59 = vmax.bf16 %v14391_v1, %v324_v54  ;;  %v291_v13 = vld [vmem:[%s9157_s26 + $0x2c] sm:$0xf]  ;;  %v380_v35 = vmax.bf16 %v14391_v1, %v325_v30  ;;  %v590_v54 = vrot.slane %v588_v14, 1  ;;  %v328_v12 = vld [vmem:[%s9157_s26 + $0xc0] sm:$0xf] }
  0x41   : > { %1950 = vmatpush1.bf16.msra.mxu1 %v8842_v3  ;;  %8384 = vmatprep.mubr.bf16.mxu1 %v1076_v15  ;;  %v9433_v3 = vsel %vm803_vm0, %v839_v0, %v841_v46  ;;  %v8845_v15 = vld [vmem:[%s14371_s1 + $0x130] sm:$0xff]   ;;  %v989_v0 = vsel %vm983_vm1, %v987_v45, %v14380_v61  ;;  %v9458_v31 = vsel %vm803_vm0, %v841_v46, %v843_v62  ;;  %v329_v14 = vld [vmem:[%s9157_s26 + $0xc4] sm:$0xf] }
  0x42   : > { %1951 = vmatprep.subr.bf16.mxu1 %v14391_v1  ;;  %14670 = vst [vmem:[#allocation18_spill] sm:$0xff] %v9433_v3  ;;  %v1087_v26 = vrot.slane %v9433_v3, 4  ;;  %1379 = vmatprep.mubr.bf16.mxu0 %v989_v0  ;;  %14671 = vst [vmem:[#allocation19_spill] sm:$0xff] %v9458_v31  ;;  %v9460_v45 = vcombine.low %v377_v63, %v378_v18  ;;  %v9464_v33 = vcombine.low %v379_v59, %v380_v35  ;;  %v8847_v18 = vld [vmem:[%s14371_s1 + $0x138] sm:$0xff]   ;;  %v292_v35 = vld [vmem:[%s9157_s26 + $0x30] sm:$0xf] }
  0x43   : > { %1374 = vmatpush1.bf16.msra.mxu0 %v8843_v6  ;;  %v326_v6 = vld [vmem:[%s9157_s26 + $0xb8] sm:$0xf]  ;;  %v346_v61 = vmax.bf16 %v14391_v1, %v291_v13  ;;  %v592_v0 = vshrl.u32 %v9419_v60, 16  ;;  %v9474_v63 = vsel %vm555_vm2, %v586_v39, %v590_v54  ;;  %v1093_v59 = vrot.slane %v9458_v31, 4  ;;  %v293_v30 = vld [vmem:[%s9157_s26 + $0x34] sm:$0xf] }
  0x44   : > { %1375 = vmatprep.subr.bf16.mxu0 %v14391_v1  ;;  %14672 = vst [vmem:[#allocation20_spill] sm:$0xff] %v9460_v45  ;;  %14673 = vst [vmem:[#allocation21_spill] sm:$0xff] %v9464_v33  ;;  %v1088_v46 = vsel %vm983_vm1, %v1081_v50, %v1087_v26  ;;  %v381_v3 = vmax.bf16 %v14391_v1, %v326_v6  ;;  %v383_v22 = vmax.bf16 %v14391_v1, %v328_v12 }
  0x45   : > { %1952 = vmatpush1.bf16.msra.mxu1 %v8844_v36  ;;  %v845_v36 = vrot.slane %v9460_v45, 1  ;;  %v9483_v13 = vcombine.low %v345_v47, %v346_v61  ;;  %v8848_v47 = vld [vmem:[%s14371_s1 + $0x38] sm:$0xff]   ;;  %v14675_v61 = vrot.slane %v9360_v23, 4  ;;  %v594_v50 = vor.u32 %v592_v0, %v590_v54 }
  0x46   : > { %1953 = vmatprep.subr.bf16.mxu1 %v14391_v1  ;;  %v384_v16 = vmax.bf16 %v14391_v1, %v329_v14  ;;  %v347_v54 = vmax.bf16 %v14391_v1, %v292_v35  ;;  %v348_v0 = vmax.bf16 %v14391_v1, %v293_v30  ;;  %v331_v35 = vld [vmem:[%s9157_s26 + $0xcc] sm:$0xf]  ;;  %v8849_v30 = vld [vmem:[%s14371_s1 + $0x40] sm:$0xff]  }
  0x47   : > { %1376 = vmatpush1.bf16.msra.mxu0 %v8845_v15  ;;  %v9490_v39 = vsel %vm803_vm0, %v843_v62, %v845_v36  ;;  %v847_v15 = vrot.slane %v9464_v33, 1  ;;  %v596_v62 = vshll.u32 %v9483_v13, 16 }
  0x48   : > { %8385 = vmatmul.mubr.bf16.gmra.mrb[12].mxu1 %v1082_v21  ;;  %1377 = vmatprep.subr.bf16.mxu0 %v14391_v1  ;;  %14674 = vst [vmem:[#allocation22_spill] sm:$0xff] %v9490_v39  ;;  %v14676_v21 = vrot.slane %v9351_v19, 4  ;;  %v1099_v6 = vrot.slane %v9490_v39, 4  ;;  %v9533_v39 = vcombine.low %v347_v54, %v348_v0  ;;  %v281_v0 = vld [vmem:[%s9157_s26 + $0x4] sm:$0xf] }
  0x49   : > { %1954 = vmatpush1.bf16.msra.mxu1 %v8846_v40  ;;  %8388 = vmatprep.mubr.bf16.mxu1 %v1088_v46  ;;  %v382_v40 = vmax.bf16 %v14391_v1, %v327_v56  ;;  %v598_v46 = vrot.slane %v596_v62, 1  ;;  %v14678_v56 = vrot.slane %v9415_v58, 4  ;;  %v9519_v14 = vsel %vm803_vm0, %v845_v36, %v847_v15  ;;  %v332_v62 = vld [vmem:[%s9157_s26 + $0xd0] sm:$0xf] }
  0x4a   : > { %v986_v31 = vsel %vm983_vm1, %v14676_v21, %v14675_v61  ;;  %1955 = vmatprep.subr.bf16.mxu1 %v14391_v1  ;;  %v1094_v61 = vsel %vm983_vm1, %v1087_v26, %v1093_v59  ;;  %v14677_v21 = vrot.slane %v9474_v63, 4  ;;  %14679 = vst [vmem:[#allocation23_spill] sm:$0xff] %v9519_v14  ;;  %v9523_v26 = vcombine.low %v383_v22, %v384_v16  ;;  %v294_v16 = vld [vmem:[%s9157_s26 + $0x38] sm:$0xf] }
  0x4b   : > { %1378 = vmatpush1.bf16.msra.mxu0 %v8847_v18  ;;  %v9521_v18 = vcombine.low %v381_v3, %v382_v40  ;;  %v9531_v1 = vsel %vm555_vm2, %v594_v50, %v598_v46  ;;  %v600_v36 = vshrl.u32 %v9483_v13, 16  ;;  %v333_v40 = vld [vmem:[%s9157_s26 + $0xd4] sm:$0xf]  ;;  %v295_v50 = vld [vmem:[%s9157_s26 + $0x3c] sm:$0xf]  ;;  %v1105_v54 = vrot.slane %v9519_v14, 4 }
  0x4c   : > { %8340 = vmatprep.subr.bf16.mxu0 %v9108_v2  ;;  %v996_v12 = vsel %vm983_vm1, %v14678_v56, %v14677_v21  ;;  %14681 = vst [vmem:[#allocation25_spill] sm:$0xff] %v9523_v26  ;;  %v14682_v21 = vmov 0  }
  0x4d   : > { %14680 = vst [vmem:[#allocation24_spill] sm:$0xff] %v9521_v18  ;;  %1956 = vmatpush1.bf16.msra.mxu1 %v8848_v47  ;;  %v385_v3 = vmax.bf16 %v14682_v21, %v330_v44  ;;  %v1100_v47 = vsel %vm983_vm1, %v1093_v59, %v1099_v6  ;;  %v849_v56 = vrot.slane %v9521_v18, 1  ;;  %v604_v44 = vshll.u32 %v9533_v39, 16 }
  0x4e   : > { %1380 = vmatmul.mubr.bf16.vlgmr.msra.gmra.mrb[0].mxu0 %v986_v31  ;;  %1957 = vmatprep.subr.bf16.mxu1 %v14682_v21  ;;  %v386_v31 = vmax.bf16 %v14682_v21, %v331_v35  ;;  %v851_v59 = vrot.slane %v9523_v26, 1  ;;  %v602_v35 = vor.u32 %v600_v36, %v598_v46  ;;  %v388_v17 = vmax.bf16 %v14682_v21, %v333_v40  ;;  %v8851_v40 = vld [vmem:[%s14371_s1 + $0x50] sm:$0xff]  }
  0x4f   : > { %8341 = vmatpush3.bf16.msra.mxu0 %v9108_v2  ;;  %1387 = vmatprep.mubr.bf16.mxu0 %v996_v12  ;;  %v9550_v22 = vsel %vm803_vm0, %v847_v15, %v849_v56  ;;  %v280_v2 = vld [vmem:[%s9157_s26] sm:$0xf]  ;;  %v8850_v12 = vld [vmem:[%s14371_s1 + $0x48] sm:$0xff]   ;;  %v387_v15 = vmax.bf16 %v14682_v21, %v332_v62  ;;  %v350_v8 = vmax.bf16 %v14682_v21, %v295_v50  ;;  %v14685_v46 = vrot.slane %v9368_v34, 4 }
  0x50   : > { %8389 = vmatmul.mubr.bf16.gmra.mrb[16].mxu1 %v1094_v61  ;;  %14683 = vst [vmem:[#allocation26_spill] sm:$0xff] %v9550_v22  ;;  %8342 = vmatprep.subr.bf16.mxu0 %v9120_v4  ;;  %v606_v61 = vrot.slane %v604_v44, 1  ;;  %v9558_v14 = vcombine.low %v385_v3, %v386_v31  ;;  %v1111_v27 = vrot.slane %v9550_v22, 4  ;;  %v14686_v36 = vrot.slane %v9360_v23, 4 }
  0x51   : > { %1958 = vmatpush1.bf16.msra.mxu1 %v8849_v30  ;;  %8392 = vmatprep.mubr.bf16.mxu1 %v1100_v47  ;;  %v349_v30 = vmax.bf16 %v14682_v21, %v294_v16  ;;  %v1106_v47 = vsel %vm983_vm1, %v1099_v6, %v1105_v54  ;;  %v14687_v16 = vrot.slane %v9531_v1, 4  ;;  %v14688_v50 = vrot.slane %v9474_v63, 4 }
  0x52   : > { %14684 = vst [vmem:[#allocation27_spill] sm:$0xff] %v9558_v14  ;;  %1959 = vmatprep.subr.bf16.mxu1 %v14682_v21  ;;  %v994_v3 = vsel %vm983_vm1, %v14686_v36, %v14685_v46  ;;  %v853_v62 = vrot.slane %v9558_v14, 1  ;;  %v608_v46 = vshrl.u32 %v9533_v39, 16  ;;  %v9593_v6 = vsel %vm555_vm2, %v602_v35, %v606_v61 }
  0x53   : > { %8343 = vmatpush3.bf16.msra.mxu0 %v9120_v4  ;;  %v1002_v44 = vsel %vm983_vm1, %v14688_v50, %v14687_v16  ;;  %v9585_v31 = vcombine.low %v349_v30, %v350_v8  ;;  %v9590_v4 = vsel %vm803_vm0, %v849_v56, %v851_v59  ;;  %v335_v36 = vmax.bf16 %v14682_v21, %v280_v2  ;;  %v8853_v50 = vld [vmem:[%s14371_s1 + $0x60] sm:$0xff]  }
  0x54   : > { %8344 = vmatprep.subr.bf16.mxu0 %v9127_v5  ;;  %14689 = vst [vmem:[#allocation28_spill] sm:$0xff] %v9590_v4  ;;  %v336_v22 = vmax.bf16 %v14682_v21, %v281_v0  ;;  %v1112_v8 = vsel %vm983_vm1, %v1105_v54, %v1111_v27  ;;  %v9600_v30 = vsel %vm803_vm0, %v851_v59, %v853_v62  ;;  %v1117_v54 = vrot.slane %v9590_v4, 4 }
  0x55   : > { %1960 = vmatpush1.bf16.msra.mxu1 %v8850_v12  ;;  %14690 = vst [vmem:[#allocation29_spill] sm:$0xff] %v9600_v30  ;;  %v9602_v16 = vcombine.low %v387_v15, %v388_v17  ;;  %v612_v56 = vshll.u32 %v9585_v31, 16  ;;  %v999_v12 = vrot.slane %v9419_v60, 4  ;;  %v351_v2 = vmax.bf16 %v14682_v21, %v296_v52  ;;  %v8852_v17 = vld [vmem:[%s14371_s1 + $0x58] sm:$0xff]  }
  0x56   : > { %1388 = vmatmul.mubr.bf16.gmra.mrb[4].mxu0 %v994_v3  ;;  %1961 = vmatprep.subr.bf16.mxu1 %v14682_v21  ;;  %v9606_v35 = vcombine.low %v335_v36, %v336_v22  ;;  %v352_v0 = vmax.bf16 %v14682_v21, %v297_v43  ;;  %v1007_v59 = vrot.slane %v9593_v6, 4  ;;  %v1123_v22 = vrot.slane %v9600_v30, 4 }
  0x57   : > { %14691 = vst [vmem:[#allocation30_spill] sm:$0xff] %v9602_v16  ;;  %1395 = vmatprep.mubr.bf16.mxu0 %v1002_v44  ;;  %8345 = vmatpush3.bf16.msra.mxu0 %v9127_v5  ;;  %v610_v52 = vor.u32 %v608_v46, %v606_v61  ;;  %v614_v15 = vrot.slane %v612_v56, 1  ;;  %v14409_v5 = vrot.slane %v9602_v16, 1  ;;  %v14693_v61 = vrot.slane %v9531_v1, 4 }
  0x58   : > { %8393 = vmatmul.mubr.bf16.gmra.mrb[20].mxu1 %v1106_v47  ;;  %8346 = vmatprep.subr.bf16.mxu0 %v9140_v7  ;;  %v9618_v43 = vcombine.low %v351_v2, %v352_v0  ;;  %v559_v3 = vshll.u32 %v9606_v35, 16  ;;  %v14692_v47 = vrot.slane %v9368_v34, 4  ;;  %v1005_v46 = vrot.slane %v9483_v13, 4 }
  0x59   : > { %1962 = vmatpush1.bf16.msra.mxu1 %v8851_v40  ;;  %8396 = vmatprep.mubr.bf16.mxu1 %v1112_v8  ;;  %v1008_v44 = vsel %vm983_vm1, %v14693_v61, %v1007_v59  ;;  %v1118_v36 = vsel %vm983_vm1, %v1111_v27, %v1117_v54  ;;  %v9637_v8 = vsel %vm555_vm2, %v610_v52, %v614_v15  ;;  %v1095_v30 = vrot.slane %v9410_v49, 4 }
  0x5a   : > { %1963 = vmatprep.subr.bf16.mxu1 %v14682_v21  ;;  %v1000_v40 = vsel %vm983_vm1, %v14692_v47, %v999_v12  ;;  %v620_v56 = vshll.u32 %v9618_v43, 16  ;;  %v1124_v2 = vsel %vm983_vm1, %v1117_v54, %v1123_v22  ;;  %v9646_v0 = vsel %vm803_vm0, %v853_v62, %v14409_v5  ;;  %v8854_v47 = vld [vmem:[%s14371_s1 + $0x68] sm:$0xff]  }
  0x5b   : > { %8347 = vmatpush3.bf16.msra.mxu0 %v9140_v7  ;;  %v616_v7 = vshrl.u32 %v9585_v31, 16  ;;  %14694 = vst [vmem:[#allocation31_spill] sm:$0xff] %v9646_v0  ;;  %v561_v27 = vrot.slane %v559_v3, 1  ;;  %v1013_v52 = vrot.slane %v9637_v8, 4  ;;  %v1129_v54 = vrot.slane %v9646_v0, 4 }
  0x5c   : > { %8348 = vmatprep.subr.bf16.mxu0 %v9152_v9  ;;  %v622_v62 = vrot.slane %v620_v56, 1  ;;  %v1006_v3 = vsel %vm983_vm1, %v999_v12, %v1005_v46  ;;  %v1011_v12 = vrot.slane %v9533_v39, 4  ;;  %v1071_v0 = vrot.slane %v9288_v20, 4 }
  0x5d   : > { %1964 = vmatpush1.bf16.msra.mxu1 %v8852_v17  ;;  %v557_v17 = vshrl.u32 %v9606_v35, 16  ;;  %v1101_v4 = vrot.slane %v9460_v45, 4 }
  0x5e   : > { %1396 = vmatmul.mubr.bf16.gmra.mrb[8].mxu0 %v1000_v40  ;;  %1965 = vmatprep.subr.bf16.mxu1 %v14682_v21  ;;  %v618_v40 = vor.u32 %v616_v7, %v614_v15  ;;  %v628_v7 = vshll.u32 %v9186_v25, 16 }
  0x5f   : > { %1403 = vmatprep.mubr.bf16.mxu0 %v1008_v44  ;;  %8349 = vmatpush3.bf16.msra.mxu0 %v9152_v9  ;;  %v562_v61 = vor.u32 %v561_v27, %v557_v17  ;;  %v1014_v44 = vsel %vm983_vm1, %v1007_v59, %v1013_v52  ;;  %v1130_v9 = vsel %vm983_vm1, %v1123_v22, %v1129_v54  ;;  %v8856_v22 = vld [vmem:[%s14371_s1 + $0x78] sm:$0xff]   ;;  %v636_v54 = vshll.u32 %v9191_v28, 16 }
  0x60   : > { %8397 = vmatmul.mubr.bf16.gmra.mrb[24].mxu1 %v1118_v36  ;;  %8350 = vmatprep.subr.bf16.mxu0 %v9166_v11  ;;  %v9665_v15 = vsel %vm555_vm2, %v618_v40, %v622_v62  ;;  %v624_v36 = vshrl.u32 %v9618_v43, 16 }
  0x61   : > { %1966 = vmatpush1.bf16.msra.mxu1 %v8853_v50  ;;  %8400 = vmatprep.mubr.bf16.mxu1 %v1124_v2  ;;  %v8855_v50 = vld [vmem:[%s14371_s1 + $0x70] sm:$0xff]   ;;  %v1019_v59 = vrot.slane %v9665_v15, 4  ;;  %v630_v2 = vrot.slane %v628_v7, 1  ;;  %v638_v40 = vrot.slane %v636_v54, 1 }
  0x62   : > { %1967 = vmatprep.subr.bf16.mxu1 %v14682_v21  ;;  %v626_v56 = vor.u32 %v624_v36, %v622_v62  ;;  %v8858_v62 = vld [vmem:[%s14371_s1 + $0x188] sm:$0xff]   ;;  %v1023_v36 = vrot.slane %v9618_v43, 4 }
  0x63   : > { %8351 = vmatpush3.bf16.msra.mxu0 %v9166_v11  ;;  %v567_v11 = vsel %vm555_vm2, %v562_v61, %v9379_v53  ;;  %v1012_v53 = vsel %vm983_vm1, %v1005_v46, %v1011_v12  ;;  %v1020_v17 = vsel %vm983_vm1, %v1013_v52, %v1019_v59  ;;  %v1017_v46 = vrot.slane %v9585_v31, 4 }
  0x64   : > { %8352 = vmatprep.subr.bf16.mxu0 %v9201_v32  ;;  %v9688_v27 = vsel %vm555_vm2, %v626_v56, %v630_v2 }
  0x65   : > { %1968 = vmatpush1.bf16.msra.mxu1 %v8854_v47  ;;  %v632_v47 = vshrl.u32 %v9186_v25, 16  ;;  %v1025_v52 = vrot.slane %v9688_v27, 4  ;;  %v1018_v61 = vsel %vm983_vm1, %v1011_v12, %v1017_v46 }
  0x66   : > { %1404 = vmatmul.mubr.bf16.gmra.mrb[12].mxu0 %v1006_v3  ;;  %1969 = vmatprep.subr.bf16.mxu1 %v14682_v21 }
  0x67   : > { %1411 = vmatprep.mubr.bf16.mxu0 %v1014_v44  ;;  %8353 = vmatpush3.bf16.msra.mxu0 %v9201_v32  ;;  %v8857_v32 = vld [vmem:[%s14371_s1 + $0x180] sm:$0xff]   ;;  %v1026_v3 = vsel %vm983_vm1, %v1019_v59, %v1025_v52  ;;  %v644_v44 = vshll.u32 %v9193_v29, 16  ;;  %v8860_v59 = vld [vmem:[%s14371_s1 + $0x198] sm:$0xff]  }
  0x68   : > { %8401 = vmatmul.mubr.bf16.gmra.mrb[28].mxu1 %v1130_v9  ;;  %8354 = vmatprep.subr.bf16.mxu0 %v9221_v41 }
  0x69   : > { %1970 = vmatpush1.bf16.msra.mxu1 %v8855_v50  ;;  %1973 = vmatprep.mubr.bf16.mxu1 %v567_v11  ;;  %v8859_v50 = vld [vmem:[%s14371_s1 + $0x190] sm:$0xff]   ;;  %v646_v11 = vrot.slane %v644_v44, 1  ;;  %v1035_v44 = vrot.slane %v9191_v28, 4 }
  0x6a   : > { %1971 = vmatprep.subr.bf16.mxu1 %v14682_v21 }
  0x6b   : > { %8355 = vmatpush3.bf16.msra.mxu0 %v9221_v41  ;;  %v634_v41 = vor.u32 %v632_v47, %v630_v2 }
  0x6d   : > { %1972 = vmatpush1.bf16.msra.mxu1 %v8856_v22  ;;  %v9705_v9 = vsel %vm555_vm2, %v634_v41, %v638_v40  ;;  %v1024_v22 = vsel %vm983_vm1, %v1017_v46, %v1023_v36 }
  0x6e   : > { %1412 = vmatmul.mubr.bf16.gmra.mrb[16].mxu0 %v1012_v53  ;;  %2584 = vmatprep.subr.bf16.mxu1 %v14682_v21  ;;  %v1031_v7 = vrot.slane %v9705_v9, 4  ;;  %v648_v53 = vshrl.u32 %v9193_v29, 16 }
  0x6f   : > { %1419 = vmatprep.mubr.bf16.mxu0 %v1020_v17  ;;  %v652_v17 = vshll.u32 %v9209_v37, 16 }
  0x70   : > { %1974 = vmatmul.mubr.bf16.vlgmr.msra.gmra.mrb[32].mxu1 %v9606_v35  ;;  %v1032_v56 = vsel %vm983_vm1, %v1025_v52, %v1031_v7  ;;  %v650_v54 = vor.u32 %v648_v53, %v646_v11  ;;  %v8862_v52 = vld [vmem:[%s14371_s1 + $0x1a8] sm:$0xff]   ;;  %v668_v53 = vshll.u32 %v9252_v57, 16 }
  0x71   : > { %1981 = vmatprep.mubr.bf16.mxu1 %v9408_v38  ;;  %2585 = vmatpush1.bf16.msra.mxu1 %v8857_v32  ;;  %v640_v38 = vshrl.u32 %v9191_v28, 16  ;;  %v8861_v32 = vld [vmem:[%s14371_s1 + $0x1a0] sm:$0xff]   ;;  %v654_v46 = vrot.slane %v652_v17, 1 }
  0x72   : > { %2586 = vmatprep.subr.bf16.mxu1 %v14682_v21  ;;  %v9768_v17 = vld [vmem:[%s14371_s1 + $0x80] sm:$0xff]  }
  0x73   : > { %v642_v12 = vor.u32 %v640_v38, %v638_v40  ;;  %v8863_v38 = vld [vmem:[%s14371_s1 + $0x1b0] sm:$0xff]   ;;  %8404 = vmatprep.subr.bf16.mxu0 %v9768_v17 }
  0x75   : > { %2587 = vmatpush1.bf16.msra.mxu1 %v8858_v62  ;;  %v9723_v2 = vsel %vm555_vm2, %v642_v12, %v646_v11  ;;  %v9742_v62 = vsel %vm555_vm2, %v650_v54, %v654_v46  ;;  %v8864_v11 = vld [vmem:[%s14371_s1 + $0x1b8] sm:$0xff]  }
  0x76   : > { %1420 = vmatmul.mubr.bf16.gmra.mrb[20].mxu0 %v1018_v61  ;;  %2588 = vmatprep.subr.bf16.mxu1 %v14682_v21  ;;  %v1037_v47 = vrot.slane %v9723_v2, 4  ;;  %v656_v61 = vshrl.u32 %v9209_v37, 16 }
  0x77   : > { %1427 = vmatprep.mubr.bf16.mxu0 %v1026_v3  ;;  %v660_v3 = vshll.u32 %v9248_v55, 16 }
  0x78   : > { %1982 = vmatmul.mubr.bf16.gmra.mrb[36].mxu1 %v9351_v19  ;;  %v1038_v40 = vsel %vm983_vm1, %v1031_v7, %v1037_v47 }
  0x79   : > { %1989 = vmatprep.mubr.bf16.mxu1 %v9415_v58  ;;  %2589 = vmatpush1.bf16.msra.mxu1 %v8859_v50  ;;  %v1029_v58 = vrot.slane %v9186_v25, 4  ;;  %v1043_v50 = vrot.slane %v9742_v62, 4  ;;  %v662_v7 = vrot.slane %v660_v3, 1  ;;  %v676_v3 = vshll.u32 %v9270_v10, 16 }
  0x7a   : > { %2590 = vmatprep.subr.bf16.mxu1 %v14682_v21 }
  0x7b   : > { %v1030_v41 = vsel %vm983_vm1, %v1023_v36, %v1029_v58  ;;  %v658_v36 = vor.u32 %v656_v61, %v654_v46  ;;  %v1036_v12 = vsel %vm983_vm1, %v1029_v58, %v1035_v44  ;;  %v1041_v58 = vrot.slane %v9193_v29, 4 }
  0x7c   : > { %v670_v46 = vrot.slane %v668_v53, 1  ;;  %v672_v61 = vshrl.u32 %v9252_v57, 16 }
  0x7d   : > { %2591 = vmatpush1.bf16.msra.mxu1 %v8860_v59  ;;  %v1044_v59 = vsel %vm983_vm1, %v1037_v47, %v1043_v50 }
  0x7e   : > { %1428 = vmatmul.mubr.bf16.gmra.mrb[24].mxu0 %v1024_v22  ;;  %2592 = vmatprep.subr.bf16.mxu1 %v14682_v21  ;;  %v664_v22 = vshrl.u32 %v9248_v55, 16 }
  0x7f   : > { %1435 = vmatprep.mubr.bf16.mxu0 %v1032_v56  ;;  %v9762_v56 = vsel %vm555_vm2, %v658_v36, %v662_v7 }
  0x80   : > { %1990 = vmatmul.mubr.bf16.gmra.mrb[40].mxu1 %v9360_v23  ;;  %v1049_v47 = vrot.slane %v9762_v56, 4  ;;  %v666_v54 = vor.u32 %v664_v22, %v662_v7  ;;  %v684_v22 = vshll.u32 %v9288_v20, 16 }
  0x81   : > { %1997 = vmatprep.mubr.bf16.mxu1 %v9474_v63  ;;  %2593 = vmatpush1.bf16.msra.mxu1 %v8861_v32  ;;  %v8866_v32 = vld [vmem:[%s14371_s1 + $0x1c0] sm:$0xff]  }
  0x82   : > { %2594 = vmatprep.subr.bf16.mxu1 %v14682_v21  ;;  %v9789_v36 = vsel %vm555_vm2, %v666_v54, %v670_v46  ;;  %v8872_v54 = vld [vmem:[%s14371_s1 + $0x1d8] sm:$0xff]  }
  0x83   : > { %v1055_v7 = vrot.slane %v9789_v36, 4 }
  0x85   : > { %2595 = vmatpush1.bf16.msra.mxu1 %v8862_v52  ;;  %v1042_v52 = vsel %vm983_vm1, %v1035_v44, %v1041_v58  ;;  %v1053_v44 = vrot.slane %v9248_v55, 4 }
  0x86   : > { %1436 = vmatmul.mubr.bf16.gmra.mrb[28].mxu0 %v1030_v41  ;;  %2596 = vmatprep.subr.bf16.mxu1 %v14682_v21  ;;  %v8868_v41 = vld [vmem:[%s14371_s1 + $0x1c8] sm:$0xff]  }
  0x87   : > { %1443 = vmatprep.mubr.bf16.mxu0 %v1038_v40  ;;  %v1050_v40 = vsel %vm983_vm1, %v1043_v50, %v1049_v47  ;;  %v8870_v50 = vld [vmem:[%s14371_s1 + $0x1d0] sm:$0xff]  }
  0x88   : > { %1998 = vmatmul.mubr.bf16.gmra.mrb[44].mxu1 %v9368_v34 }
  0x89   : > { %2005 = vmatprep.mubr.bf16.mxu1 %v9531_v1  ;;  %2597 = vmatpush1.bf16.msra.mxu1 %v8863_v38  ;;  %v1047_v38 = vrot.slane %v9209_v37, 4 }
  0x8a   : > { %2598 = vmatprep.subr.bf16.mxu1 %v14682_v21 }
  0x8b   : > { %v1048_v53 = vsel %vm983_vm1, %v1041_v58, %v1047_v38  ;;  %v692_v58 = vshll.u32 %v9319_v48, 16 }
  0x8d   : > { %2599 = vmatpush1.bf16.msra.mxu1 %v8864_v11  ;;  %v674_v11 = vor.u32 %v672_v61, %v670_v46  ;;  %v1056_v46 = vsel %vm983_vm1, %v1049_v47, %v1055_v7  ;;  %v686_v61 = vrot.slane %v684_v22, 1  ;;  %v8874_v47 = vld [vmem:[%s14371_s1 + $0x1e0] sm:$0xff]   ;;  %v696_v22 = vshrl.u32 %v9319_v48, 16 }
  0x8e   : > { %1444 = vmatmul.mubr.bf16.gmra.mrb[32].mxu0 %v1036_v12  ;;  %2600 = vmatprep.subr.bf16.mxu1 %v14682_v21  ;;  %v678_v12 = vrot.slane %v676_v3, 1 }
  0x8f   : > { %1451 = vmatprep.mubr.bf16.mxu0 %v1044_v59  ;;  %v680_v59 = vshrl.u32 %v9270_v10, 16 }
  0x90   : > { %2006 = vmatmul.mubr.bf16.gmra.mrb[48].mxu1 %v9419_v60 }
  0x91   : > { %2013 = vmatprep.mubr.bf16.mxu1 %v9593_v6  ;;  %2601 = vmatpush1.bf16.msra.mxu1 %v8866_v32  ;;  %v1059_v32 = vrot.slane %v9252_v57, 4  ;;  %v682_v3 = vor.u32 %v680_v59, %v678_v12  ;;  %v700_v59 = vshll.u32 %v9324_v51, 16 }
  0x92   : > { %2602 = vmatprep.subr.bf16.mxu1 %v14682_v21 }
  0x95   : > { %2603 = vmatpush1.bf16.msra.mxu1 %v8868_v41  ;;  %v1065_v41 = vrot.slane %v9270_v10, 4 }
  0x96   : > { %1452 = vmatmul.mubr.bf16.gmra.mrb[36].mxu0 %v1042_v52  ;;  %2604 = vmatprep.subr.bf16.mxu1 %v14682_v21  ;;  %v9809_v52 = vsel %vm555_vm2, %v674_v11, %v678_v12  ;;  %v694_v11 = vrot.slane %v692_v58, 1  ;;  %v1054_v12 = vsel %vm983_vm1, %v1047_v38, %v1053_v44  ;;  %v702_v38 = vrot.slane %v700_v59, 1 }
  0x97   : > { %1459 = vmatprep.mubr.bf16.mxu0 %v1050_v40  ;;  %v688_v40 = vshrl.u32 %v9288_v20, 16 }
  0x98   : > { %2014 = vmatmul.mubr.bf16.gmra.mrb[52].mxu1 %v9483_v13 }
  0x99   : > { %2021 = vmatprep.mubr.bf16.mxu1 %v9637_v8  ;;  %2605 = vmatpush1.bf16.msra.mxu1 %v8870_v50  ;;  %v1061_v50 = vrot.slane %v9809_v52, 4  ;;  %v690_v5 = vor.u32 %v688_v40, %v686_v61  ;;  %v704_v40 = vshrl.u32 %v9324_v51, 16 }
  0x9a   : > { %2606 = vmatprep.subr.bf16.mxu1 %v14682_v21 }
  0x9d   : > { %2607 = vmatpush1.bf16.msra.mxu1 %v8872_v54  ;;  %v8876_v54 = vld [vmem:[%s14371_s1 + $0x1e8] sm:$0xff]  }
  0x9e   : > { %1460 = vmatmul.mubr.bf16.gmra.mrb[40].mxu0 %v1048_v53  ;;  %2608 = vmatprep.subr.bf16.mxu1 %v14682_v21  ;;  %v9823_v53 = vsel %vm555_vm2, %v682_v3, %v686_v61  ;;  %v698_v3 = vor.u32 %v696_v22, %v694_v11  ;;  %v708_v61 = vshll.u32 %v9402_v24, 16  ;;  %v1060_v22 = vsel %vm983_vm1, %v1053_v44, %v1059_v32 }
  0x9f   : > { %1467 = vmatprep.mubr.bf16.mxu0 %v1056_v46  ;;  %v1062_v46 = vsel %vm983_vm1, %v1055_v7, %v1061_v50  ;;  %v1067_v58 = vrot.slane %v9823_v53, 4  ;;  %v9840_v7 = vsel %vm555_vm2, %v690_v5, %v694_v11  ;;  %v8880_v5 = vld [vmem:[%s14371_s1 + $0x1f8] sm:$0xff]   ;;  %v1066_v44 = vsel %vm983_vm1, %v1059_v32, %v1065_v41 }
  0xa0   : > { %2022 = vmatmul.mubr.bf16.gmra.mrb[56].mxu1 %v9533_v39  ;;  %14695 = vst [vmem:[#allocation32_spill] sm:$0xff] %v9840_v7  ;;  %v9848_v59 = vsel %vm555_vm2, %v698_v3, %v702_v38  ;;  %v716_v32 = vshll.u32 %v9410_v49, 16 }
  0xa1   : > { %2029 = vmatprep.mubr.bf16.mxu1 %v9665_v15  ;;  %2609 = vmatpush1.bf16.msra.mxu1 %v8874_v47  ;;  %v8878_v47 = vld [vmem:[%s14371_s1 + $0x1f0] sm:$0xff]   ;;  %14696 = vst [vmem:[#allocation33_spill] sm:$0xff] %v9848_v59  ;;  %v1068_v11 = vsel %vm983_vm1, %v1061_v50, %v1067_v58  ;;  %v706_v50 = vor.u32 %v704_v40, %v702_v38 }
  0xa2   : > { %2610 = vmatprep.subr.bf16.mxu1 %v14682_v21  ;;  %v718_v38 = vrot.slane %v716_v32, 1 }
  0xa5   : > { %2611 = vmatpush1.bf16.msra.mxu1 %v8876_v54  ;;  %v1079_v54 = vrot.slane %v9848_v59, 4 }
  0xa6   : > { %1468 = vmatmul.mubr.bf16.gmra.mrb[44].mxu0 %v1054_v12  ;;  %2612 = vmatprep.subr.bf16.mxu1 %v14682_v21  ;;  %v1073_v12 = vrot.slane %v9840_v7, 4 }
  0xa7   : > { %1475 = vmatprep.mubr.bf16.mxu0 %v1062_v46  ;;  %v710_v46 = vrot.slane %v708_v61, 1 }
  0xa8   : > { %2030 = vmatmul.mubr.bf16.gmra.mrb[60].mxu1 %v9585_v31  ;;  %v1074_v3 = vsel %vm983_vm1, %v1067_v58, %v1073_v12  ;;  %v1080_v61 = vsel %vm983_vm1, %v1073_v12, %v1079_v54  ;;  %v1077_v58 = vrot.slane %v9319_v48, 4 }
  0xa9   : > { %2037 = vmatprep.mubr.bf16.mxu1 %v9688_v27  ;;  %2613 = vmatpush1.bf16.msra.mxu1 %v8878_v47  ;;  %v1072_v47 = vsel %vm983_vm1, %v1065_v41, %v1071_v0 }
  0xaa   : > { %2614 = vmatprep.subr.bf16.mxu1 %v14682_v21  ;;  %v1078_v40 = vsel %vm983_vm1, %v1071_v0, %v1077_v58 }
  0xad   : > { %2615 = vmatpush1.bf16.msra.mxu1 %v8880_v5  ;;  %v712_v5 = vshrl.u32 %v9402_v24, 16 }
  0xae   : > { %1476 = vmatmul.mubr.bf16.gmra.mrb[48].mxu0 %v1060_v22  ;;  %5358 = vmatprep.subr.bf16.mxu1 %v14682_v21  ;;  %v9866_v22 = vsel %vm555_vm2, %v706_v50, %v710_v46  ;;  %v724_v50 = vshll.u32 %v9460_v45, 16 }
  0xaf   : > { %1483 = vmatprep.mubr.bf16.mxu0 %v1068_v11  ;;  %14697 = vst [vmem:[#allocation34_spill] sm:$0xff] %v9866_v22  ;;  %v1085_v11 = vrot.slane %v9866_v22, 4  ;;  %v714_v41 = vor.u32 %v712_v5, %v710_v46 }
  0xb0   : > { %2038 = vmatmul.mubr.bf16.gmra.mrb[64].mxu1 %v9618_v43 }
  0xb1   : > { %2045 = vmatprep.mubr.bf16.mxu1 %v9705_v9  ;;  %v1086_v12 = vsel %vm983_vm1, %v1079_v54, %v1085_v11 }
  0xb6   : > { %1484 = vmatmul.mubr.bf16.gmra.mrb[52].mxu0 %v1066_v44  ;;  %v9877_v44 = vsel %vm555_vm2, %v714_v41, %v718_v38  ;;  %v728_v41 = vshrl.u32 %v9460_v45, 16 }
  0xb7   : > { %1491 = vmatprep.mubr.bf16.mxu0 %v1074_v3  ;;  %14698 = vst [vmem:[#allocation35_spill] sm:$0xff] %v9877_v44  ;;  %v720_v3 = vshrl.u32 %v9410_v49, 16  ;;  %v1091_v46 = vrot.slane %v9877_v44, 4 }
  0xb8   : > { %2046 = vmatmul.mubr.bf16.gmra.mrb[68].mxu1 %v9186_v25 }
  0xb9   : > { %2053 = vmatprep.mubr.bf16.mxu1 %v9723_v2  ;;  %v722_v0 = vor.u32 %v720_v3, %v718_v38  ;;  %v1092_v5 = vsel %vm983_vm1, %v1085_v11, %v1091_v46 }
  0xbe   : > { %1492 = vmatmul.mubr.bf16.gmra.mrb[56].mxu0 %v1072_v47  ;;  %v1083_v47 = vrot.slane %v9324_v51, 4 }
  0xbf   : > { %1499 = vmatprep.mubr.bf16.mxu0 %v1080_v61  ;;  %v726_v61 = vrot.slane %v724_v50, 1 }
  0xc0   : > { %2054 = vmatmul.mubr.bf16.gmra.mrb[72].mxu1 %v9191_v28  ;;  %v1084_v54 = vsel %vm983_vm1, %v1077_v58, %v1083_v47 }
  0xc1   : > { %2061 = vmatprep.mubr.bf16.mxu1 %v9742_v62  ;;  %v9888_v32 = vsel %vm555_vm2, %v722_v0, %v726_v61  ;;  %v730_v58 = vor.u32 %v728_v41, %v726_v61 }
  0xc2   : > { %14699 = vst [vmem:[#allocation36_spill] sm:$0xff] %v9888_v32  ;;  %v1097_v38 = vrot.slane %v9888_v32, 4 }
  0xc4   : > { %v1098_v50 = vsel %vm983_vm1, %v1091_v46, %v1097_v38 }
  0xc6   : > { %1500 = vmatmul.mubr.bf16.gmra.mrb[60].mxu0 %v1078_v40  ;;  %v732_v40 = vshll.u32 %v9464_v33, 16 }
  0xc7   : > { %1507 = vmatprep.mubr.bf16.mxu0 %v1086_v12  ;;  %v1089_v12 = vrot.slane %v9402_v24, 4 }
  0xc8   : > { %2062 = vmatmul.mubr.bf16.gmra.mrb[76].mxu1 %v9193_v29  ;;  %v734_v3 = vrot.slane %v732_v40, 1 }
  0xc9   : > { %2069 = vmatprep.mubr.bf16.mxu1 %v9762_v56  ;;  %v1090_v11 = vsel %vm983_vm1, %v1083_v47, %v1089_v12  ;;  %v1096_v46 = vsel %vm983_vm1, %v1089_v12, %v1095_v30 }
  0xca   : > { %v9899_v0 = vsel %vm555_vm2, %v730_v58, %v734_v3 }
  0xcb   : > { %14700 = vst [vmem:[#allocation37_spill] sm:$0xff] %v9899_v0  ;;  %v1103_v61 = vrot.slane %v9899_v0, 4 }
  0xcd   : > { %v1104_v40 = vsel %vm983_vm1, %v1097_v38, %v1103_v61  ;;  %v1102_v38 = vsel %vm983_vm1, %v1095_v30, %v1101_v4 }
  0xce   : > { %1508 = vmatmul.mubr.bf16.gmra.mrb[64].mxu0 %v1084_v54  ;;  %v736_v54 = vshrl.u32 %v9464_v33, 16 }
  0xcf   : > { %1515 = vmatprep.mubr.bf16.mxu0 %v1092_v5  ;;  %v740_v5 = vshll.u32 %v9521_v18, 16 }
  0xd0   : > { %2070 = vmatmul.mubr.bf16.gmra.mrb[80].mxu1 %v9209_v37  ;;  %v738_v47 = vor.u32 %v736_v54, %v734_v3 }
  0xd1   : > { %2077 = vmatprep.mubr.bf16.mxu1 %v9789_v36  ;;  %v742_v41 = vrot.slane %v740_v5, 1 }
  0xd3   : > { %v9910_v58 = vsel %vm555_vm2, %v738_v47, %v742_v41 }
  0xd4   : > { %14701 = vst [vmem:[#allocation38_spill] sm:$0xff] %v9910_v58  ;;  %v1109_v3 = vrot.slane %v9910_v58, 4 }
  0xd6   : > { %1516 = vmatmul.mubr.bf16.gmra.mrb[68].mxu0 %v1090_v11  ;;  %v744_v11 = vshrl.u32 %v9521_v18, 16  ;;  %v1110_v5 = vsel %vm983_vm1, %v1103_v61, %v1109_v3 }
  0xd7   : > { %1523 = vmatprep.mubr.bf16.mxu0 %v1098_v50  ;;  %v748_v50 = vshll.u32 %v9523_v26, 16 }
  0xd8   : > { %2078 = vmatmul.mubr.bf16.gmra.mrb[84].mxu1 %v9248_v55  ;;  %v746_v12 = vor.u32 %v744_v11, %v742_v41 }
  0xd9   : > { %2085 = vmatprep.mubr.bf16.mxu1 %v9809_v52  ;;  %v750_v54 = vrot.slane %v748_v50, 1 }
  0xdb   : > { %v9921_v47 = vsel %vm555_vm2, %v746_v12, %v750_v54 }
  0xdc   : > { %14702 = vst [vmem:[#allocation39_spill] sm:$0xff] %v9921_v47  ;;  %v1115_v41 = vrot.slane %v9921_v47, 4 }
  0xde   : > { %1524 = vmatmul.mubr.bf16.gmra.mrb[72].mxu0 %v1096_v46  ;;  %v752_v46 = vshrl.u32 %v9523_v26, 16  ;;  %v1116_v50 = vsel %vm983_vm1, %v1109_v3, %v1115_v41 }
  0xdf   : > { %1531 = vmatprep.mubr.bf16.mxu0 %v1104_v40  ;;  %v756_v40 = vshll.u32 %v9558_v14, 16 }
  0xe0   : > { %2086 = vmatmul.mubr.bf16.gmra.mrb[88].mxu1 %v9252_v57  ;;  %v1107_v57 = vrot.slane %v9464_v33, 4  ;;  %v754_v30 = vor.u32 %v752_v46, %v750_v54 }
  0xe1   : > { %2093 = vmatprep.mubr.bf16.mxu1 %v9823_v53  ;;  %v758_v11 = vrot.slane %v756_v40, 1 }
  0xe2   : > { %v1108_v61 = vsel %vm983_vm1, %v1101_v4, %v1107_v57 }
  0xe3   : > { %v9932_v12 = vsel %vm555_vm2, %v754_v30, %v758_v11 }
  0xe4   : > { %14703 = vst [vmem:[#allocation40_spill] sm:$0xff] %v9932_v12  ;;  %v1121_v54 = vrot.slane %v9932_v12, 4 }
  0xe6   : > { %1532 = vmatmul.mubr.bf16.gmra.mrb[76].mxu0 %v1102_v38  ;;  %v760_v38 = vshrl.u32 %v9558_v14, 16  ;;  %v1122_v40 = vsel %vm983_vm1, %v1115_v41, %v1121_v54  ;;  %v809_v41 = vrot.slane %v9368_v34, 1 }
  0xe7   : > { %1539 = vmatprep.mubr.bf16.mxu0 %v1110_v5  ;;  %v764_v5 = vshll.u32 %v9602_v16, 16 }
  0xe8   : > { %2094 = vmatmul.mubr.bf16.gmra.mrb[92].mxu1 %v9270_v10  ;;  %v1113_v10 = vrot.slane %v9521_v18, 4  ;;  %v762_v4 = vor.u32 %v760_v38, %v758_v11  ;;  %v14416_v11 = vrot.slane %v9351_v19, 1 }
  0xe9   : > { %2101 = vmatprep.mubr.bf16.mxu1 %v9840_v7  ;;  %v9940_v46 = vrot.slane %v764_v5, 1 }
  0xea   : > { %v1114_v3 = vsel %vm983_vm1, %v1107_v57, %v1113_v10  ;;  %v807_v57 = vrot.slane %v9360_v23, 1 }
  0xeb   : > { %14704 = vst [vmem:[#allocation41_spill] sm:$0xff] %v9940_v46  ;;  %v9946_v30 = vsel %vm555_vm2, %v762_v4, %v9940_v46 }
  0xec   : > { %14705 = vst [vmem:[#allocation42_spill] sm:$0xff] %v9946_v30  ;;  %v9960_v4 = vsel %vm803_vm0, %v14416_v11, %v807_v57 }
  0xed   : > { %v990_v23 = vrot.slane %v9960_v4, 4 }
  0xee   : > { %1540 = vmatmul.mubr.bf16.gmra.mrb[80].mxu0 %v1108_v61  ;;  %v1119_v61 = vrot.slane %v9523_v26, 4 }
  0xef   : > { %1547 = vmatprep.mubr.bf16.mxu0 %v1116_v50  ;;  %v1127_v50 = vrot.slane %v9946_v30, 4 }
  0xf0   : > { %2102 = vmatmul.mubr.bf16.gmra.mrb[96].mxu1 %v9288_v20  ;;  %v1120_v38 = vsel %vm983_vm1, %v1113_v10, %v1119_v61 }
  0xf1   : > { %2109 = vmatprep.mubr.bf16.mxu1 %v9848_v59  ;;  %v1128_v5 = vsel %vm983_vm1, %v1121_v54, %v1127_v50  ;;  %v811_v54 = vrot.slane %v9419_v60, 1  ;;  %v813_v50 = vrot.slane %v9483_v13, 1  ;;  %v14706_v59 = vrot.slane %v9186_v25, 1 }
  0xf3   : > { %v9982_v46 = vsel %vm803_vm0, %v811_v54, %v813_v50 }
  0xf6   : > { %1548 = vmatmul.mubr.bf16.gmra.mrb[84].mxu0 %v1114_v3  ;;  %v9963_v3 = vsel %vm803_vm0, %v807_v57, %v809_v41 }
  0xf7   : > { %1555 = vmatprep.mubr.bf16.mxu0 %v1122_v40  ;;  %v1125_v40 = vrot.slane %v9558_v14, 4  ;;  %v991_v10 = vrot.slane %v9963_v3, 4 }
  0xf8   : > { %2110 = vmatmul.mubr.bf16.gmra.mrb[100].mxu1 %v9319_v48 }
  0xf9   : > { %2117 = vmatprep.mubr.bf16.mxu1 %v9866_v22  ;;  %v1126_v11 = vsel %vm983_vm1, %v1119_v61, %v1125_v40  ;;  %v1003_v40 = vrot.slane %v9982_v46, 4  ;;  %v819_v22 = vrot.slane %v9618_v43, 1 }
  0xfe   : > { %1556 = vmatmul.mubr.bf16.gmra.mrb[88].mxu0 %v1120_v38  ;;  %v992_v38 = vsel %vm983_vm1, %v990_v23, %v991_v10  ;;  %v817_v23 = vrot.slane %v9585_v31, 1 }
  0xff   : > { %1563 = vmatprep.mubr.bf16.mxu0 %v1128_v5  ;;  %v9977_v5 = vsel %vm803_vm0, %v809_v41, %v811_v54  ;;  %v815_v41 = vrot.slane %v9533_v39, 1 }
 0x100   : > { %2118 = vmatmul.mubr.bf16.gmra.mrb[104].mxu1 %v9324_v51  ;;  %v997_v61 = vrot.slane %v9977_v5, 4  ;;  %v10036_v48 = vsel %vm803_vm0, %v817_v23, %v819_v22 }
 0x101   : > { %2125 = vmatprep.mubr.bf16.mxu1 %v9877_v44  ;;  %v10002_v12 = vsel %vm803_vm0, %v813_v50, %v815_v41  ;;  %v10007_v44 = vsel %vm803_vm0, %v815_v41, %v817_v23  ;;  %v3189_v23 = vld [vmem:[%s14376_s6 + $0x20] sm:$0xff] }
 0x102   : > { %v998_v54 = vsel %vm983_vm1, %v991_v10, %v997_v61  ;;  %v3185_v10 = vld [vmem:[%s14376_s6] sm:$0xff]  ;;  %v1009_v50 = vrot.slane %v10002_v12, 4  ;;  %v1015_v41 = vrot.slane %v10007_v44, 4 }
 0x103   : > { %v9973_v57 = vpop.f32.mrb[0].mxu1  ;;  %3235 = vperm.xlu0 %8815, %v3185_v10   ;;  %v8871_v10 = vld [vmem:[%s14371_s1 + $0x98] sm:$0xff]  }
 0x104   : > { %v9979_v14 = vpop.f32.mrb[1].mxu1 }
 0x105   : > { %v9984_v30 = vpop.f32.mrb[2].mxu1 }
 0x106   : > { %1564 = vmatmul.mubr.bf16.gmra.mrb[92].mxu0 %v1126_v11  ;;  %v9986_v26 = vpop.f32.mrb[3].mxu1  ;;  %v8867_v11 = vld [vmem:[%s14371_s1 + $0x88] sm:$0xff]  }
 0x107   : > { %8356 = vmatprep.mubr.bf16.mxu0 %v992_v38  ;;  %v1004_v38 = vsel %vm983_vm1, %v997_v61, %v1003_v40  ;;  %v8869_v61 = vld [vmem:[%s14371_s1 + $0x90] sm:$0xff]  }
 0x108   : > { %2126 = vmatmul.mubr.bf16.gmra.mrb[108].mxu1 %v9402_v24 }
 0x109   : > { %2133 = vmatprep.mubr.bf16.mxu1 %v9888_v32 }
 0x10b   : > { %v9995_v16 = vpop.f32.mrb[4].mxu1 }
 0x10c   : > { %v10004_v24 = vpop.f32.mrb[5].mxu1 }
 0x10d   : > { %v10009_v32 = vpop.f32.mrb[6].mxu1 }
 0x10e   : > { %8357 = vmatmul.mubr.bf16.vlgmr.msra.gmra.mrb[96].mxu0 %v998_v54  ;;  %v10014_v51 = vpop.f32.mrb[7].mxu1  ;;  %v1010_v54 = vsel %vm983_vm1, %v1003_v40, %v1009_v50 }
 0x10f   : > { %8405 = vmatpush3.bf16.msra.mxu0 %v9768_v17  ;;  %8360 = vmatprep.mubr.bf16.mxu0 %v1004_v38  ;;  %v3186_v17 = vld [vmem:[%s14376_s6 + $0x8] sm:$0xff] }
 0x110   : > { %2134 = vmatmul.mubr.bf16.gmra.mrb[112].mxu1 %v9410_v49  ;;  %8406 = vmatprep.subr.bf16.mxu0 %v8867_v11  ;;  %v1016_v49 = vsel %vm983_vm1, %v1009_v50, %v1015_v41  ;;  %v1021_v50 = vrot.slane %v10036_v48, 4 }
 0x111   : > { %2141 = vmatprep.mubr.bf16.mxu1 %v9899_v0  ;;  %3240 = vperm.xlu0 %8815, %v3186_v17   ;;  %v3187_v17 = vld [vmem:[%s14376_s6 + $0x10] sm:$0xff] }
 0x112   : > { %3245 = vperm.xlu1 %8816, %v3187_v17  }
 0x113   : > { %8407 = vmatpush3.bf16.msra.mxu0 %v8867_v11  ;;  %v10029_v38 = vpop.f32.mrb[8].mxu1  ;;  %v10043_v11 = vsel %vm803_vm0, %v819_v22, %v14706_v59  ;;  %v8873_v59 = vld [vmem:[%s14371_s1 + $0xa0] sm:$0xff]  }
 0x114   : > { %8408 = vmatprep.subr.bf16.mxu0 %v8869_v61  ;;  %v10038_v0 = vpop.f32.mrb[9].mxu1  ;;  %v1027_v22 = vrot.slane %v10043_v11, 4 }
 0x115   : > { %v10045_v40 = vpop.f32.mrb[10].mxu1  ;;  %3255 = vperm.xlu0 %8815, %v3189_v23  }
 0x116   : > { %8361 = vmatmul.mubr.bf16.gmra.mrb[100].mxu0 %v1010_v54  ;;  %v10050_v20 = vpop.f32.mrb[11].mxu1  ;;  %v3188_v54 = vld [vmem:[%s14376_s6 + $0x18] sm:$0xff]  ;;  %v1028_v23 = vsel %vm983_vm1, %v1021_v50, %v1027_v22 }
 0x117   : > { %8409 = vmatpush3.bf16.msra.mxu0 %v8869_v61  ;;  %8364 = vmatprep.mubr.bf16.mxu0 %v1016_v49  ;;  %v3191_v49 = vld [vmem:[%s14376_s6 + $0x30] sm:$0xff]  ;;  %v1022_v61 = vsel %vm983_vm1, %v1015_v41, %v1021_v50 }
 0x118   : > { %2142 = vmatmul.mubr.bf16.gmra.mrb[116].mxu1 %v9460_v45  ;;  %8410 = vmatprep.subr.bf16.mxu0 %v8871_v10  ;;  %v8877_v50 = vld [vmem:[%s14371_s1 + $0xb0] sm:$0xff]  }
 0x119   : > { %2149 = vmatprep.mubr.bf16.mxu1 %v9910_v58  ;;  %3250 = vperm.xlu1 %8816, %v3188_v54   ;;  %v8875_v58 = vld [vmem:[%s14371_s1 + $0xa8] sm:$0xff]   ;;  %v3193_v54 = vld [vmem:[%s14376_s6 + $0x40] sm:$0xff] }
 0x11a   : > { %3265 = vperm.xlu0 %8815, %v3191_v49   ;;  %v804_v49 = vrot.slane %v9606_v35, 1  ;;  %v14711_v35 = vrot.slane %v9226_v42, 4 }
 0x11b   : > { %8411 = vmatpush3.bf16.msra.mxu0 %v8871_v10  ;;  %v10069_v17 = vpop.f32.mrb[12].mxu1  ;;  %v3190_v10 = vld [vmem:[%s14376_s6 + $0x28] sm:$0xff] }
 0x11c   : > { %14707 = vst [vmem:[#allocation43_spill] sm:$0xff] %v10069_v17  ;;  %8412 = vmatprep.subr.bf16.mxu0 %v8873_v59  ;;  %v10075_v45 = vpop.f32.mrb[13].mxu1 }
 0x11d   : > { %v10077_v7 = vpop.f32.mrb[14].mxu1  ;;  %3260 = vperm.xlu1 %8816, %v3190_v10  }
 0x11e   : > { %14708 = vst [vmem:[#allocation44_spill] sm:$0xff] %v10077_v7  ;;  %8365 = vmatmul.mubr.bf16.gmra.mrb[104].mxu0 %v1022_v61  ;;  %v10082_v41 = vpop.f32.mrb[15].mxu1  ;;  %3275 = vperm.xlu0 %8815, %v3193_v54   ;;  %v3192_v61 = vld [vmem:[%s14376_s6 + $0x38] sm:$0xff] }
 0x11f   : > { %8413 = vmatpush3.bf16.msra.mxu0 %v8873_v59  ;;  %8368 = vmatprep.mubr.bf16.mxu0 %v1028_v23  ;;  %v3195_v23 = vld [vmem:[%s14376_s6 + $0x50] sm:$0xff] }
 0x120   : > { %2150 = vmatmul.mubr.bf16.gmra.mrb[120].mxu1 %v9464_v33  ;;  %8414 = vmatprep.subr.bf16.mxu0 %v8875_v58 }
 0x121   : > { %v10092_v7 = vpop.f32.mrb[0].mxu0  ;;  %2157 = vmatprep.mubr.bf16.mxu1 %v9921_v47  ;;  %3270 = vperm.xlu1 %8816, %v3192_v61   ;;  %v14712_v61 = vrot.slane %v9351_v19, 1  ;;  %v8881_v19 = vld [vmem:[%s14371_s1 + $0x200] sm:$0xff]  }
 0x122   : > { %14709 = vst [vmem:[#allocation45_spill] sm:$0xff] %v10092_v7  ;;  %v1383_v59 = vpop.f32.mrb[1].mxu0  ;;  %v1034_v7 = vsel %vm983_vm1, %v1027_v22, %v14711_v35  ;;  %3285 = vperm.xlu0 %8815, %v3195_v23   ;;  %v3197_v35 = vld [vmem:[%s14376_s6 + $0x60] sm:$0xff] }
 0x123   : > { %v10101_v10 = vpop.f32.mrb[2].mxu0  ;;  %8415 = vmatpush3.bf16.msra.mxu0 %v8875_v58  ;;  %v10106_v33 = vpop.f32.mrb[16].mxu1  ;;  %v8879_v59 = vld [vmem:[%s14371_s1 + $0xb8] sm:$0xff]   ;;  %v806_v47 = vsel %vm803_vm0, %v804_v49, %v14712_v61  ;;  %v3194_v58 = vld [vmem:[%s14376_s6 + $0x48] sm:$0xff] }
 0x124   : > { %14710 = vst [vmem:[#allocation46_spill] sm:$0xff] %v10101_v10  ;;  %v1386_v54 = vpop.f32.mrb[3].mxu0  ;;  %8416 = vmatprep.subr.bf16.mxu0 %v8877_v50  ;;  %v10114_v17 = vpop.f32.mrb[17].mxu1 }
 0x125   : > { %v10116_v10 = vpop.f32.mrb[18].mxu1  ;;  %3280 = vperm.xlu1 %8816, %v3194_v58  }
 0x126   : > { %8369 = vmatmul.mubr.bf16.gmra.mrb[108].mxu0 %v1034_v7  ;;  %v10121_v22 = vpop.f32.mrb[19].mxu1  ;;  %3295 = vperm.xlu0 %8815, %v3197_v35   ;;  %v3196_v7 = vld [vmem:[%s14376_s6 + $0x58] sm:$0xff] }
 0x127   : > { %8417 = vmatpush3.bf16.msra.mxu0 %v8877_v50  ;;  %8420 = vmatprep.mubr.bf16.mxu0 %v806_v47  ;;  %v3199_v47 = vld [vmem:[%s14376_s6 + $0x70] sm:$0xff] }
 0x128   : > { %2158 = vmatmul.mubr.bf16.gmra.mrb[124].mxu1 %v9521_v18  ;;  %8418 = vmatprep.subr.bf16.mxu0 %v8879_v59 }
 0x129   : > { %v10130_v49 = vpop.f32.mrb[4].mxu0  ;;  %2616 = vmatprep.mubr.bf16.mxu1 %v9474_v63  ;;  %3290 = vperm.xlu1 %8816, %v3196_v7   ;;  %v8882_v63 = vld [vmem:[%s14371_s1 + $0x208] sm:$0xff]  }
 0x12a   : > { %14713 = vst [vmem:[#allocation47_spill] sm:$0xff] %v10130_v49  ;;  %v1391_v23 = vpop.f32.mrb[5].mxu0  ;;  %3305 = vperm.xlu0 %8815, %v3199_v47   ;;  %v3198_v7 = vld [vmem:[%s14376_s6 + $0x68] sm:$0xff]  ;;  %v8883_v47 = vld [vmem:[%s14371_s1 + $0x210] sm:$0xff]  }
 0x12b   : > { %v10139_v50 = vpop.f32.mrb[6].mxu0  ;;  %8419 = vmatpush3.bf16.msra.mxu0 %v8879_v59  ;;  %v10141_v54 = vpop.f32.mrb[20].mxu1  ;;  %v3201_v23 = vld [vmem:[%s14376_s6 + $0x80] sm:$0xff] }
 0x12c   : > { %14714 = vst [vmem:[#allocation48_spill] sm:$0xff] %v10139_v50  ;;  %v1394_v61 = vpop.f32.mrb[7].mxu0  ;;  %8468 = vmatprep.subr.bf16.mxu0 %v8881_v19  ;;  %v10146_v58 = vpop.f32.mrb[21].mxu1 }
 0x12d   : > { %v10148_v35 = vpop.f32.mrb[22].mxu1  ;;  %3300 = vperm.xlu1 %8816, %v3198_v7  }
 0x12e   : > { %8421 = vmatmul.mubr.bf16.vlgmr.msra.gmra.mrb[112].mxu0 %v9960_v4  ;;  %v10154_v59 = vpop.f32.mrb[23].mxu1  ;;  %3315 = vperm.xlu0 %8815, %v3201_v23   ;;  %v3200_v4 = vld [vmem:[%s14376_s6 + $0x78] sm:$0xff] }
 0x12f   : > { %8469 = vmatpush3.bf16.msra.mxu0 %v8881_v19  ;;  %8424 = vmatprep.mubr.bf16.mxu0 %v9963_v3 }
 0x130   : > { %2617 = vmatmul.mubr.bf16.vlgmr.msra.gmra.mrb[128].mxu1 %v9368_v34  ;;  %8470 = vmatprep.subr.bf16.mxu0 %v8882_v63  ;;  %v3203_v34 = vld [vmem:[%s14376_s6 + $0x90] sm:$0xff] }
 0x131   : > { %v10164_v61 = vpop.f32.mrb[8].mxu0  ;;  %2624 = vmatprep.mubr.bf16.mxu1 %v9531_v1  ;;  %3310 = vperm.xlu1 %8816, %v3200_v4   ;;  %v8884_v1 = vld [vmem:[%s14371_s1 + $0x218] sm:$0xff]   ;;  %v3202_v4 = vld [vmem:[%s14376_s6 + $0x88] sm:$0xff] }
 0x132   : > { %14715 = vst [vmem:[#allocation49_spill] sm:$0xff] %v10164_v61  ;;  %v1399_v7 = vpop.f32.mrb[9].mxu0  ;;  %3325 = vperm.xlu0 %8815, %v3203_v34  }
 0x133   : > { %v10173_v3 = vpop.f32.mrb[10].mxu0  ;;  %8471 = vmatpush3.bf16.msra.mxu0 %v8882_v63  ;;  %v10175_v19 = vpop.f32.mrb[24].mxu1  ;;  %v8885_v7 = vld [vmem:[%s14371_s1 + $0x220] sm:$0xff]  }
 0x134   : > { %14716 = vst [vmem:[#allocation50_spill] sm:$0xff] %v10173_v3  ;;  %v1402_v50 = vpop.f32.mrb[11].mxu0  ;;  %8472 = vmatprep.subr.bf16.mxu0 %v8883_v47  ;;  %v10180_v23 = vpop.f32.mrb[25].mxu1 }
 0x135   : > { %v10182_v61 = vpop.f32.mrb[26].mxu1  ;;  %3320 = vperm.xlu1 %8816, %v3202_v4   ;;  %v3205_v50 = vld [vmem:[%s14376_s6 + $0xa0] sm:$0xff]  ;;  %v3204_v4 = vld [vmem:[%s14376_s6 + $0x98] sm:$0xff] }
 0x136   : > { %8425 = vmatmul.mubr.bf16.gmra.mrb[116].mxu0 %v9977_v5  ;;  %v10188_v63 = vpop.f32.mrb[27].mxu1  ;;  %3335 = vperm.xlu0 %8815, %v3205_v50  }
 0x137   : > { %8428 = vmatprep.mubr.bf16.mxu0 %v9982_v46  ;;  %8473 = vmatpush3.bf16.msra.mxu0 %v8883_v47 }
 0x138   : > { %2625 = vmatmul.mubr.bf16.gmra.mrb[132].mxu1 %v9419_v60  ;;  %8474 = vmatprep.subr.bf16.mxu0 %v8884_v1  ;;  %v3207_v60 = vld [vmem:[%s14376_s6 + $0xb0] sm:$0xff] }
 0x139   : > { %v10198_v34 = vpop.f32.mrb[12].mxu0  ;;  %2632 = vmatprep.mubr.bf16.mxu1 %v9593_v6  ;;  %3330 = vperm.xlu1 %8816, %v3204_v4   ;;  %v8886_v6 = vld [vmem:[%s14371_s1 + $0x228] sm:$0xff]   ;;  %v8887_v4 = vld [vmem:[%s14371_s1 + $0x230] sm:$0xff]  }
 0x13a   : > { %14717 = vst [vmem:[#allocation51_spill] sm:$0xff] %v10198_v34  ;;  %v1407_v3 = vpop.f32.mrb[13].mxu0  ;;  %3345 = vperm.xlu0 %8815, %v3207_v60   ;;  %v8889_v60 = vld [vmem:[%s14373_s3] sm:$0xff]  }
 0x13b   : > { %v10207_v47 = vpop.f32.mrb[14].mxu0  ;;  %8475 = vmatpush3.bf16.msra.mxu0 %v8884_v1  ;;  %v10209_v49 = vpop.f32.mrb[28].mxu1  ;;  %v3206_v3 = vld [vmem:[%s14376_s6 + $0xa8] sm:$0xff]  ;;  %5359 = vmatpush1.bf16.msra.mxu1 %v8889_v60 }
 0x13c   : > { %14718 = vst [vmem:[#allocation52_spill] sm:$0xff] %v10207_v47  ;;  %14719 = vst [vmem:[#allocation53_spill] sm:$0xff] %v10209_v49  ;;  %v1410_v18 = vpop.f32.mrb[15].mxu0  ;;  %8476 = vmatprep.subr.bf16.mxu0 %v8885_v7  ;;  %v10211_v34 = vpop.f32.mrb[29].mxu1  ;;  %5360 = vmatprep.subr.bf16.mxu1 %v14682_v21 }
 0x13d   : > { %v10216_v50 = vpop.f32.mrb[30].mxu1  ;;  %3340 = vperm.xlu1 %8816, %v3206_v3   ;;  %v3209_v18 = vld [vmem:[%s14376_s6 + $0xc0] sm:$0xff] }
 0x13e   : > { %14720 = vst [vmem:[#allocation54_spill] sm:$0xff] %v10216_v50  ;;  %8429 = vmatmul.mubr.bf16.gmra.mrb[120].mxu0 %v10002_v12  ;;  %v10222_v1 = vpop.f32.mrb[31].mxu1  ;;  %3355 = vperm.xlu0 %8815, %v3209_v18  }
 0x13f   : > { %8432 = vmatprep.mubr.bf16.mxu0 %v10007_v44  ;;  %8477 = vmatpush3.bf16.msra.mxu0 %v8885_v7  ;;  %v3208_v7 = vld [vmem:[%s14376_s6 + $0xb8] sm:$0xff] }
 0x140   : > { %2633 = vmatmul.mubr.bf16.gmra.mrb[136].mxu1 %v9483_v13  ;;  %8478 = vmatprep.subr.bf16.mxu0 %v8886_v6  ;;  %v3211_v13 = vld [vmem:[%s14376_s6 + $0xd0] sm:$0xff] }
 0x141   : > { %v10235_v47 = vpop.f32.mrb[16].mxu0  ;;  %2640 = vmatprep.mubr.bf16.mxu1 %v9637_v8  ;;  %3350 = vperm.xlu1 %8816, %v3208_v7   ;;  %v3210_v7 = vld [vmem:[%s14376_s6 + $0xc8] sm:$0xff] }
 0x142   : > { %14721 = vst [vmem:[#allocation55_spill] sm:$0xff] %v10235_v47  ;;  %v1415_v3 = vpop.f32.mrb[17].mxu0  ;;  %3365 = vperm.xlu0 %8815, %v3211_v13  }
 0x143   : > { %v10244_v50 = vpop.f32.mrb[18].mxu0  ;;  %v10246_v49 = vpop.f32.mrb[32].mxu1  ;;  %8479 = vmatpush3.bf16.msra.mxu0 %v8886_v6  ;;  %v8888_v3 = vld [vmem:[%s14371_s1 + $0x238] sm:$0xff]   ;;  %v3213_v6 = vld [vmem:[%s14376_s6 + $0xe0] sm:$0xff] }
 0x144   : > { %14722 = vst [vmem:[#allocation56_spill] sm:$0xff] %v10244_v50  ;;  %14723 = vst [vmem:[#allocation57_spill] sm:$0xff] %v10246_v49  ;;  %v1418_v8 = vpop.f32.mrb[19].mxu0  ;;  %v1977_v18 = vpop.f32.mrb[33].mxu1  ;;  %8480 = vmatprep.subr.bf16.mxu0 %v8887_v4  ;;  %v14752_v49 = vld [vmem:[#allocation22_spill] sm:$0xff] }
 0x145   : > { %v10252_v60 = vpop.f32.mrb[34].mxu1  ;;  %3360 = vperm.xlu1 %8816, %v3210_v7   ;;  %v3215_v18 = vld [vmem:[%s14376_s6 + $0xf0] sm:$0xff] }
 0x146   : > { %14724 = vst [vmem:[#allocation58_spill] sm:$0xff] %v10252_v60  ;;  %8433 = vmatmul.mubr.bf16.gmra.mrb[124].mxu0 %v10036_v48  ;;  %v1980_v50 = vpop.f32.mrb[35].mxu1  ;;  %3375 = vperm.xlu0 %8815, %v3213_v6   ;;  %v3221_v60 = vld [vmem:[%s14376_s6 + $0x120] sm:$0xff] }
 0x147   : > { %8436 = vmatprep.mubr.bf16.mxu0 %v10043_v11  ;;  %8481 = vmatpush3.bf16.msra.mxu0 %v8887_v4  ;;  %v3212_v50 = vld [vmem:[%s14376_s6 + $0xd8] sm:$0xff] }
 0x148   : > { %2641 = vmatmul.mubr.bf16.gmra.mrb[140].mxu1 %v9533_v39  ;;  %8482 = vmatprep.subr.bf16.mxu0 %v8888_v3 }
 0x149   : > { %v10263_v8 = vpop.f32.mrb[20].mxu0  ;;  %2648 = vmatprep.mubr.bf16.mxu1 %v9665_v15  ;;  %3370 = vperm.xlu1 %8816, %v3212_v50   ;;  %v8890_v15 = vld [vmem:[%s14373_s3 + $0x8] sm:$0xff]  }
 0x14a   : > { %14725 = vst [vmem:[#allocation59_spill] sm:$0xff] %v10263_v8  ;;  %v1423_v13 = vpop.f32.mrb[21].mxu0  ;;  %3385 = vperm.xlu0 %8815, %v3215_v18   ;;  %v3214_v50 = vld [vmem:[%s14376_s6 + $0xe8] sm:$0xff]  ;;  %5361 = vmatpush1.bf16.msra.mxu1 %v8890_v15 }
 0x14b   : > { %v10272_v7 = vpop.f32.mrb[22].mxu0  ;;  %v10274_v4 = vpop.f32.mrb[36].mxu1  ;;  %8483 = vmatpush3.bf16.msra.mxu0 %v8888_v3  ;;  %v3217_v3 = vld [vmem:[%s14376_s6 + $0x100] sm:$0xff]  ;;  %5362 = vmatprep.subr.bf16.mxu1 %v14682_v21 }
 0x14c   : > { %14726 = vst [vmem:[#allocation60_spill] sm:$0xff] %v10272_v7  ;;  %v1426_v39 = vpop.f32.mrb[23].mxu0  ;;  %v1985_v47 = vpop.f32.mrb[37].mxu1 }
 0x14d   : > { %v10279_v6 = vpop.f32.mrb[38].mxu1  ;;  %v14728_v47 = vld [vmem:[#allocation3_spill] sm:$0xff]  ;;  %3380 = vperm.xlu1 %8816, %v3214_v50   ;;  %v3216_v39 = vld [vmem:[%s14376_s6 + $0xf8] sm:$0xff] }
 0x14e   : > { %14727 = vst [vmem:[#allocation61_spill] sm:$0xff] %v10279_v6  ;;  %8437 = vmatmul.mubr.bf16.gmra.mrb[128].mxu0 %v9226_v42  ;;  %v1988_v13 = vpop.f32.mrb[39].mxu1  ;;  %3395 = vperm.xlu0 %8815, %v3217_v3   ;;  %v14733_v3 = vld [vmem:[#allocation4_spill] sm:$0xff] }
 0x14f   : > { %8440 = vmatprep.mubr.bf16.mxu0 %v14728_v47  ;;  %v3219_v13 = vld [vmem:[%s14376_s6 + $0x110] sm:$0xff] }
 0x150   : > { %2649 = vmatmul.mubr.bf16.gmra.mrb[144].mxu1 %v9585_v31 }
 0x151   : > { %v10291_v18 = vpop.f32.mrb[24].mxu0  ;;  %2656 = vmatprep.mubr.bf16.mxu1 %v9688_v27  ;;  %3390 = vperm.xlu1 %8816, %v3216_v39   ;;  %v3218_v27 = vld [vmem:[%s14376_s6 + $0x108] sm:$0xff] }
 0x152   : > { %14729 = vst [vmem:[#allocation3_spill] sm:$0xff] %v10291_v18  ;;  %v1431_v15 = vpop.f32.mrb[25].mxu0  ;;  %3405 = vperm.xlu0 %8815, %v3219_v13   ;;  %v3220_v13 = vld [vmem:[%s14376_s6 + $0x118] sm:$0xff] }
 0x153   : > { %v10300_v7 = vpop.f32.mrb[26].mxu0  ;;  %v10302_v50 = vpop.f32.mrb[40].mxu1 }
 0x154   : > { %14730 = vst [vmem:[#allocation62_spill] sm:$0xff] %v10300_v7  ;;  %14731 = vst [vmem:[#allocation63_spill] sm:$0xff] %v10302_v50  ;;  %v1434_v31 = vpop.f32.mrb[27].mxu0  ;;  %v1993_v8 = vpop.f32.mrb[41].mxu1  ;;  %v14734_v7 = vld [vmem:[#allocation6_spill] sm:$0xff] }
 0x155   : > { %v10304_v18 = vpop.f32.mrb[42].mxu1  ;;  %3400 = vperm.xlu1 %8816, %v3218_v27   ;;  %v8891_v8 = vld [vmem:[%s14373_s3 + $0x10] sm:$0xff]   ;;  %v14740_v50 = vld [vmem:[#allocation10_spill] sm:$0xff] }
 0x156   : > { %14732 = vst [vmem:[#allocation64_spill] sm:$0xff] %v10304_v18  ;;  %8441 = vmatmul.mubr.bf16.gmra.mrb[132].mxu0 %v14733_v3  ;;  %v1996_v15 = vpop.f32.mrb[43].mxu1  ;;  %3415 = vperm.xlu0 %8815, %v3221_v60   ;;  %v3223_v27 = vld [vmem:[%s14376_s6 + $0x130] sm:$0xff] }
 0x157   : > { %8444 = vmatprep.mubr.bf16.mxu0 %v14734_v7  ;;  %5363 = vmatpush1.bf16.msra.mxu1 %v8891_v8  ;;  %v3222_v8 = vld [vmem:[%s14376_s6 + $0x128] sm:$0xff] }
 0x158   : > { %2657 = vmatmul.mubr.bf16.gmra.mrb[148].mxu1 %v9618_v43  ;;  %5364 = vmatprep.subr.bf16.mxu1 %v14682_v21 }
 0x159   : > { %v10318_v39 = vpop.f32.mrb[28].mxu0  ;;  %2664 = vmatprep.mubr.bf16.mxu1 %v9705_v9  ;;  %3410 = vperm.xlu1 %8816, %v3220_v13   ;;  %v3224_v13 = vld [vmem:[%s14376_s6 + $0x138] sm:$0xff] }
 0x15a   : > { %14735 = vst [vmem:[#allocation4_spill] sm:$0xff] %v10318_v39  ;;  %v1439_v31 = vpop.f32.mrb[29].mxu0  ;;  %3425 = vperm.xlu0 %8815, %v3223_v27  }
 0x15b   : > { %v10327_v43 = vpop.f32.mrb[30].mxu0  ;;  %v10329_v15 = vpop.f32.mrb[44].mxu1  ;;  %v14739_v31 = vld [vmem:[#allocation8_spill] sm:$0xff] }
 0x15c   : > { %14736 = vst [vmem:[#allocation6_spill] sm:$0xff] %v10327_v43  ;;  %14737 = vst [vmem:[#allocation65_spill] sm:$0xff] %v10329_v15  ;;  %v1442_v39 = vpop.f32.mrb[31].mxu0  ;;  %v2001_v9 = vpop.f32.mrb[45].mxu1  ;;  %v3225_v43 = vld [vmem:[%s14376_s6 + $0x140] sm:$0xff]  ;;  %v8892_v15 = vld [vmem:[%s14373_s3 + $0x18] sm:$0xff]  }
 0x15d   : > { %v10332_v60 = vpop.f32.mrb[46].mxu1  ;;  %3420 = vperm.xlu1 %8816, %v3222_v8   ;;  %v3227_v9 = vld [vmem:[%s14376_s6 + $0x150] sm:$0xff]  ;;  %5365 = vmatpush1.bf16.msra.mxu1 %v8892_v15 }
 0x15e   : > { %14738 = vst [vmem:[#allocation66_spill] sm:$0xff] %v10332_v60  ;;  %8445 = vmatmul.mubr.bf16.gmra.mrb[136].mxu0 %v14739_v31  ;;  %v2004_v18 = vpop.f32.mrb[47].mxu1  ;;  %3435 = vperm.xlu0 %8815, %v3225_v43  }
 0x15f   : > { %8448 = vmatprep.mubr.bf16.mxu0 %v14740_v50  ;;  %5366 = vmatprep.subr.bf16.mxu1 %v14682_v21 }
 0x160   : > { %2665 = vmatmul.mubr.bf16.gmra.mrb[152].mxu1 %v9186_v25 }
 0x161   : > { %v1445_v39 = vpop.f32.mrb[32].mxu0  ;;  %2672 = vmatprep.mubr.bf16.mxu1 %v9723_v2  ;;  %3430 = vperm.xlu1 %8816, %v3224_v13  }
 0x162   : > { %v10348_v27 = vadd.f32 %v9979_v14, %v1445_v39  ;;  %v1447_v18 = vpop.f32.mrb[33].mxu0  ;;  %3445 = vperm.xlu0 %8815, %v3227_v9   ;;  %v3226_v39 = vld [vmem:[%s14376_s6 + $0x148] sm:$0xff]  ;;  %v3228_v9 = vld [vmem:[%s14376_s6 + $0x158] sm:$0xff] }
 0x163   : > { %v1448_v60 = vpop.f32.mrb[34].mxu0  ;;  %v10353_v8 = vpop.f32.mrb[48].mxu1  ;;  %v14743_v18 = vld [vmem:[#allocation11_spill] sm:$0xff] }
 0x164   : > { %14741 = vst [vmem:[#allocation8_spill] sm:$0xff] %v10353_v8  ;;  %v10356_v25 = vadd.f32 %v9986_v26, %v1448_v60  ;;  %v1450_v2 = vpop.f32.mrb[35].mxu0  ;;  %v2009_v43 = vpop.f32.mrb[49].mxu1  ;;  %v3229_v26 = vld [vmem:[%s14376_s6 + $0x160] sm:$0xff]  ;;  %v14744_v60 = vld [vmem:[#allocation14_spill] sm:$0xff] }
 0x165   : > { %v10361_v14 = vpop.f32.mrb[50].mxu1  ;;  %3440 = vperm.xlu1 %8816, %v3226_v39   ;;  %v3231_v2 = vld [vmem:[%s14376_s6 + $0x170] sm:$0xff] }
 0x166   : > { %14742 = vst [vmem:[#allocation10_spill] sm:$0xff] %v10361_v14  ;;  %8449 = vmatmul.mubr.bf16.gmra.mrb[140].mxu0 %v14743_v18  ;;  %v2012_v8 = vpop.f32.mrb[51].mxu1  ;;  %3455 = vperm.xlu0 %8815, %v3229_v26  }
 0x167   : > { %8452 = vmatprep.mubr.bf16.mxu0 %v14744_v60 }
 0x168   : > { %2673 = vmatmul.mubr.bf16.gmra.mrb[156].mxu1 %v9191_v28 }
 0x169   : > { %v1453_v13 = vpop.f32.mrb[36].mxu0  ;;  %2680 = vmatprep.mubr.bf16.mxu1 %v9742_v62  ;;  %3450 = vperm.xlu1 %8816, %v3228_v9   ;;  %v14748_v9 = vld [vmem:[#allocation18_spill] sm:$0xff] }
 0x16a   : > { %v10378_v15 = vadd.f32 %v9973_v57, %v1453_v13  ;;  %v1455_v8 = vpop.f32.mrb[37].mxu0  ;;  %3465 = vperm.xlu0 %8815, %v3231_v2   ;;  %v3230_v57 = vld [vmem:[%s14376_s6 + $0x168] sm:$0xff]  ;;  %v14747_v13 = vld [vmem:[#allocation15_spill] sm:$0xff]  ;;  %v3232_v2 = vld [vmem:[%s14376_s6 + $0x178] sm:$0xff] }
 0x16b   : > { %v1456_v43 = vpop.f32.mrb[38].mxu0  ;;  %v10383_v28 = vpop.f32.mrb[52].mxu1 }
 0x16c   : > { %14745 = vst [vmem:[#allocation11_spill] sm:$0xff] %v10383_v28  ;;  %v10386_v39 = vadd.f32 %v9984_v30, %v1456_v43  ;;  %v1458_v62 = vpop.f32.mrb[39].mxu0  ;;  %v2017_v26 = vpop.f32.mrb[53].mxu1  ;;  %v8893_v28 = vld [vmem:[%s14373_s3 + $0x20] sm:$0xff]  }
 0x16d   : > { %v10388_v14 = vpop.f32.mrb[54].mxu1  ;;  %3460 = vperm.xlu1 %8816, %v3230_v57   ;;  %5367 = vmatpush1.bf16.msra.mxu1 %v8893_v28 }
 0x16e   : > { %14746 = vst [vmem:[#allocation14_spill] sm:$0xff] %v10388_v14  ;;  %8453 = vmatmul.mubr.bf16.gmra.mrb[144].mxu0 %v14747_v13  ;;  %v2020_v8 = vpop.f32.mrb[55].mxu1  ;;  %5368 = vmatprep.subr.bf16.mxu1 %v14682_v21  ;;  %v14751_v14 = vld [vmem:[#allocation19_spill] sm:$0xff] }
 0x16f   : > { %8456 = vmatprep.mubr.bf16.mxu0 %v14748_v9 }
 0x170   : > { %2681 = vmatmul.mubr.bf16.gmra.mrb[160].mxu1 %v9193_v29 }
 0x171   : > { %v1461_v30 = vpop.f32.mrb[40].mxu0  ;;  %2688 = vmatprep.mubr.bf16.mxu1 %v9762_v56  ;;  %3470 = vperm.xlu1 %8816, %v3232_v2  }
 0x172   : > { %v10404_v43 = vadd.f32 %v10004_v24, %v1461_v30  ;;  %v1463_v62 = vpop.f32.mrb[41].mxu0 }
 0x173   : > { %v1464_v26 = vpop.f32.mrb[42].mxu0  ;;  %v10407_v8 = vpop.f32.mrb[56].mxu1 }
 0x174   : > { %14749 = vst [vmem:[#allocation15_spill] sm:$0xff] %v10407_v8  ;;  %v10410_v29 = vadd.f32 %v10014_v51, %v1464_v26  ;;  %v1466_v57 = vpop.f32.mrb[43].mxu0  ;;  %v2025_v56 = vpop.f32.mrb[57].mxu1  ;;  %v8895_v26 = vld [vmem:[%s14374_s4] sm:$0xff]  }
 0x175   : > { %v10412_v28 = vpop.f32.mrb[58].mxu1  ;;  %8532 = vmatprep.subr.bf16.mxu0 %v8895_v26 }
 0x176   : > { %14750 = vst [vmem:[#allocation18_spill] sm:$0xff] %v10412_v28  ;;  %8457 = vmatmul.mubr.bf16.gmra.mrb[148].mxu0 %v14751_v14  ;;  %v2028_v6 = vpop.f32.mrb[59].mxu1 }
 0x177   : > { %8460 = vmatprep.mubr.bf16.mxu0 %v14752_v49 }
 0x178   : > { %2689 = vmatmul.mubr.bf16.gmra.mrb[164].mxu1 %v9209_v37  ;;  %v8894_v37 = vld [vmem:[%s14373_s3 + $0x28] sm:$0xff]  }
 0x179   : > { %v1469_v24 = vpop.f32.mrb[44].mxu0  ;;  %2696 = vmatprep.mubr.bf16.mxu1 %v9789_v36  ;;  %5369 = vmatpush1.bf16.msra.mxu1 %v8894_v37 }
 0x17a   : > { %v10419_v30 = vadd.f32 %v9995_v16, %v1469_v24  ;;  %v1471_v2 = vpop.f32.mrb[45].mxu0  ;;  %v14755_v16 = vld [vmem:[#allocation23_spill] sm:$0xff]  ;;  %5370 = vmatprep.subr.bf16.mxu1 %v14682_v21 }
 0x17b   : > { %v1472_v51 = vpop.f32.mrb[46].mxu0  ;;  %v10421_v62 = vpop.f32.mrb[60].mxu1  ;;  %v14756_v2 = vld [vmem:[#allocation26_spill] sm:$0xff] }
 0x17c   : > { %14753 = vst [vmem:[#allocation19_spill] sm:$0xff] %v10421_v62  ;;  %v10427_v6 = vadd.f32 %v10009_v32, %v1472_v51  ;;  %v1474_v57 = vpop.f32.mrb[47].mxu0  ;;  %v2033_v56 = vpop.f32.mrb[61].mxu1 }
 0x17d   : > { %v10432_v36 = vpop.f32.mrb[62].mxu1 }
 0x17e   : > { %14754 = vst [vmem:[#allocation22_spill] sm:$0xff] %v10432_v36  ;;  %8461 = vmatmul.mubr.bf16.gmra.mrb[152].mxu0 %v14755_v16  ;;  %v2036_v24 = vpop.f32.mrb[63].mxu1 }
 0x17f   : > { %8464 = vmatprep.mubr.bf16.mxu0 %v14756_v2 }
 0x180   : > { %2697 = vmatmul.mubr.bf16.gmra.mrb[168].mxu1 %v9248_v55  ;;  %v8898_v55 = vld [vmem:[%s14373_s3 + $0x30] sm:$0xff]  }
 0x181   : > { %v1477_v32 = vpop.f32.mrb[48].mxu0  ;;  %2704 = vmatprep.mubr.bf16.mxu1 %v9809_v52  ;;  %5371 = vmatpush1.bf16.msra.mxu1 %v8898_v55  ;;  %v8896_v55 = vld [vmem:[%s14374_s4 + $0x8] sm:$0xff]  }
 0x182   : > { %v10440_v51 = vadd.f32 %v10038_v0, %v1477_v32  ;;  %v1479_v57 = vpop.f32.mrb[49].mxu0  ;;  %v14757_v0 = vld [vmem:[#allocation28_spill] sm:$0xff]  ;;  %5372 = vmatprep.subr.bf16.mxu1 %v14682_v21 }
 0x183   : > { %v2039_v56 = vpop.f32.mrb[64].mxu1  ;;  %v1480_v28 = vpop.f32.mrb[50].mxu0 }
 0x184   : > { %v10443_v36 = vadd.f32 %v2039_v56, %v10348_v27  ;;  %v10446_v37 = vadd.f32 %v10050_v20, %v1480_v28  ;;  %v2041_v24 = vpop.f32.mrb[65].mxu1  ;;  %v1482_v8 = vpop.f32.mrb[51].mxu0  ;;  %v14758_v27 = vld [vmem:[#allocation5_spill] sm:$0xff] }
 0x185   : > { %v2042_v62 = vpop.f32.mrb[66].mxu1 }
 0x186   : > { %v10452_v52 = vadd.f32 %v2042_v62, %v10356_v25  ;;  %8465 = vmatmul.mubr.bf16.gmra.mrb[156].mxu0 %v14757_v0  ;;  %v2044_v32 = vpop.f32.mrb[67].mxu1 }
 0x187   : > { %8484 = vmatprep.mubr.bf16.mxu0 %v9977_v5 }
 0x188   : > { %2705 = vmatmul.mubr.bf16.gmra.mrb[172].mxu1 %v14758_v27 }
 0x189   : > { %v1485_v20 = vpop.f32.mrb[52].mxu0  ;;  %2712 = vmatprep.mubr.bf16.mxu1 %v9823_v53 }
 0x18a   : > { %v10460_v8 = vadd.f32 %v10029_v38, %v1485_v20  ;;  %v1487_v28 = vpop.f32.mrb[53].mxu0  ;;  %v14760_v20 = vld [vmem:[#allocation32_spill] sm:$0xff] }
 0x18b   : > { %v2047_v57 = vpop.f32.mrb[68].mxu1  ;;  %v1488_v25 = vpop.f32.mrb[54].mxu0 }
 0x18c   : > { %v10463_v62 = vadd.f32 %v2047_v57, %v10378_v15  ;;  %v10466_v56 = vadd.f32 %v10045_v40, %v1488_v25  ;;  %v2049_v5 = vpop.f32.mrb[69].mxu1  ;;  %v1490_v24 = vpop.f32.mrb[55].mxu0  ;;  %v14759_v15 = vld [vmem:[#allocation7_spill] sm:$0xff]  ;;  %v8897_v40 = vld [vmem:[%s14374_s4 + $0x10] sm:$0xff]  }
 0x18d   : > { %v2050_v32 = vpop.f32.mrb[70].mxu1  ;;  %v8899_v24 = vld [vmem:[%s14374_s4 + $0x18] sm:$0xff]  }
 0x18e   : > { %v10472_v53 = vadd.f32 %v2050_v32, %v10386_v39  ;;  %8485 = vmatmul.mubr.bf16.vlgmr.msra.gmra.mrb[160].mxu0 %v9982_v46  ;;  %v2052_v38 = vpop.f32.mrb[71].mxu1 }
 0x18f   : > { %8488 = vmatprep.mubr.bf16.mxu0 %v10002_v12  ;;  %8533 = vmatpush3.bf16.msra.mxu0 %v8895_v26  ;;  %v8900_v38 = vld [vmem:[%s14374_s4 + $0x20] sm:$0xff]  }
 0x190   : > { %2713 = vmatmul.mubr.bf16.gmra.mrb[176].mxu1 %v14759_v15  ;;  %8534 = vmatprep.subr.bf16.mxu0 %v8896_v55 }
 0x191   : > { %v1493_v27 = vpop.f32.mrb[56].mxu0  ;;  %2720 = vmatprep.mubr.bf16.mxu1 %v14760_v20 }
 0x192   : > { %v10482_v28 = vadd.f32 %v10075_v45, %v1493_v27  ;;  %v1495_v39 = vpop.f32.mrb[57].mxu0  ;;  %v8902_v45 = vld [vmem:[%s14373_s3 + $0x38] sm:$0xff]   ;;  %v14762_v27 = vld [vmem:[#allocation33_spill] sm:$0xff] }
 0x193   : > { %v2055_v57 = vpop.f32.mrb[72].mxu1  ;;  %v1496_v46 = vpop.f32.mrb[58].mxu0  ;;  %8535 = vmatpush3.bf16.msra.mxu0 %v8896_v55  ;;  %5373 = vmatpush1.bf16.msra.mxu1 %v8902_v45  ;;  %v8901_v45 = vld [vmem:[%s14374_s4 + $0x28] sm:$0xff]  }
 0x194   : > { %v10485_v12 = vadd.f32 %v2055_v57, %v10404_v43  ;;  %v10488_v26 = vadd.f32 %v10082_v41, %v1496_v46  ;;  %v2057_v25 = vpop.f32.mrb[73].mxu1  ;;  %v1498_v5 = vpop.f32.mrb[59].mxu0  ;;  %8536 = vmatprep.subr.bf16.mxu0 %v8897_v40  ;;  %v14761_v41 = vld [vmem:[#allocation9_spill] sm:$0xff]  ;;  %5374 = vmatprep.subr.bf16.mxu1 %v14682_v21 }
 0x195   : > { %v2058_v32 = vpop.f32.mrb[74].mxu1 }
 0x196   : > { %v10497_v55 = vadd.f32 %v2058_v32, %v10410_v29  ;;  %8489 = vmatmul.mubr.bf16.gmra.mrb[164].mxu0 %v10007_v44  ;;  %v2060_v43 = vpop.f32.mrb[75].mxu1  ;;  %v14763_v29 = vld [vmem:[#allocation43_spill] sm:$0xff] }
 0x197   : > { %8492 = vmatprep.mubr.bf16.mxu0 %v10036_v48  ;;  %8537 = vmatpush3.bf16.msra.mxu0 %v8897_v40  ;;  %v14764_v40 = vld [vmem:[#allocation44_spill] sm:$0xff]  ;;  %v8908_v43 = vld [vmem:[%s14373_s3 + $0x40] sm:$0xff]  }
 0x198   : > { %2721 = vmatmul.mubr.bf16.gmra.mrb[180].mxu1 %v14761_v41  ;;  %8538 = vmatprep.subr.bf16.mxu0 %v8899_v24  ;;  %v14765_v41 = vld [vmem:[#allocation12_spill] sm:$0xff] }
 0x199   : > { %v1501_v15 = vpop.f32.mrb[60].mxu0  ;;  %2728 = vmatprep.mubr.bf16.mxu1 %v14762_v27  ;;  %5375 = vmatpush1.bf16.msra.mxu1 %v8908_v43 }
 0x19a   : > { %v10508_v20 = vadd.f32 %v14763_v29, %v1501_v15  ;;  %v1503_v44 = vpop.f32.mrb[61].mxu0  ;;  %v8903_v15 = vld [vmem:[%s14374_s4 + $0x30] sm:$0xff]   ;;  %v14766_v29 = vld [vmem:[#allocation34_spill] sm:$0xff]  ;;  %5376 = vmatprep.subr.bf16.mxu1 %v14682_v21 }
 0x19b   : > { %v2063_v39 = vpop.f32.mrb[76].mxu1  ;;  %v1504_v57 = vpop.f32.mrb[62].mxu0  ;;  %8539 = vmatpush3.bf16.msra.mxu0 %v8899_v24 }
 0x19c   : > { %v10511_v48 = vadd.f32 %v2063_v39, %v10419_v30  ;;  %v10514_v46 = vadd.f32 %v14764_v40, %v1504_v57  ;;  %v2065_v25 = vpop.f32.mrb[77].mxu1  ;;  %v1506_v5 = vpop.f32.mrb[63].mxu0  ;;  %8540 = vmatprep.subr.bf16.mxu0 %v8900_v38 }
 0x19d   : > { %v2066_v32 = vpop.f32.mrb[78].mxu1 }
 0x19e   : > { %v10523_v24 = vadd.f32 %v2066_v32, %v10427_v6  ;;  %8493 = vmatmul.mubr.bf16.gmra.mrb[168].mxu0 %v10043_v11  ;;  %v2068_v30 = vpop.f32.mrb[79].mxu1  ;;  %v14768_v32 = vld [vmem:[#allocation35_spill] sm:$0xff] }
 0x19f   : > { %8496 = vmatprep.mubr.bf16.mxu0 %v9226_v42  ;;  %8541 = vmatpush3.bf16.msra.mxu0 %v8900_v38 }
 0x1a0   : > { %2729 = vmatmul.mubr.bf16.gmra.mrb[184].mxu1 %v14765_v41  ;;  %8542 = vmatprep.subr.bf16.mxu0 %v8901_v45 }
 0x1a1   : > { %v1509_v27 = vpop.f32.mrb[64].mxu0  ;;  %2736 = vmatprep.mubr.bf16.mxu1 %v14766_v29  ;;  %v8912_v29 = vld [vmem:[%s14373_s3 + $0x48] sm:$0xff]  }
 0x1a2   : > { %v10533_v6 = vadd.f32 %v10114_v17, %v1509_v27  ;;  %v1511_v44 = vpop.f32.mrb[65].mxu0  ;;  %v8904_v17 = vld [vmem:[%s14374_s4 + $0x38] sm:$0xff]   ;;  %5377 = vmatpush1.bf16.msra.mxu1 %v8912_v29 }
 0x1a3   : > { %v2071_v11 = vpop.f32.mrb[80].mxu1  ;;  %v1512_v42 = vpop.f32.mrb[66].mxu0  ;;  %8543 = vmatpush3.bf16.msra.mxu0 %v8901_v45  ;;  %5378 = vmatprep.subr.bf16.mxu1 %v14682_v21 }
 0x1a4   : > { %v10537_v38 = vadd.f32 %v2071_v11, %v10440_v51  ;;  %v10540_v39 = vadd.f32 %v10121_v22, %v1512_v42  ;;  %v2073_v57 = vpop.f32.mrb[81].mxu1  ;;  %v1514_v40 = vpop.f32.mrb[67].mxu0  ;;  %8544 = vmatprep.subr.bf16.mxu0 %v8903_v15  ;;  %v14767_v51 = vld [vmem:[#allocation13_spill] sm:$0xff]  ;;  %v14770_v42 = vld [vmem:[#allocation36_spill] sm:$0xff] }
 0x1a5   : > { %v2074_v25 = vpop.f32.mrb[82].mxu1 }
 0x1a6   : > { %v10546_v5 = vadd.f32 %v2074_v25, %v10446_v37  ;;  %8497 = vmatmul.mubr.bf16.gmra.mrb[172].mxu0 %v14728_v47  ;;  %v2076_v45 = vpop.f32.mrb[83].mxu1 }
 0x1a7   : > { %8500 = vmatprep.mubr.bf16.mxu0 %v14733_v3  ;;  %8545 = vmatpush3.bf16.msra.mxu0 %v8903_v15 }
 0x1a8   : > { %2737 = vmatmul.mubr.bf16.gmra.mrb[188].mxu1 %v14767_v51  ;;  %8546 = vmatprep.subr.bf16.mxu0 %v8904_v17 }
 0x1a9   : > { %v1517_v22 = vpop.f32.mrb[68].mxu0  ;;  %2744 = vmatprep.mubr.bf16.mxu1 %v14768_v32 }
 0x1aa   : > { %v10553_v43 = vadd.f32 %v10106_v33, %v1517_v22  ;;  %v1519_v30 = vpop.f32.mrb[69].mxu0  ;;  %v8916_v22 = vld [vmem:[%s14373_s3 + $0x50] sm:$0xff]  }
 0x1ab   : > { %v2079_v41 = vpop.f32.mrb[84].mxu1  ;;  %v1520_v27 = vpop.f32.mrb[70].mxu0  ;;  %8547 = vmatpush3.bf16.msra.mxu0 %v8904_v17  ;;  %5379 = vmatpush1.bf16.msra.mxu1 %v8916_v22  ;;  %v14772_v30 = vld [vmem:[#allocation37_spill] sm:$0xff]  ;;  %v14776_v22 = vld [vmem:[#allocation39_spill] sm:$0xff] }
 0x1ac   : > { %v10556_v37 = vadd.f32 %v2079_v41, %v10460_v8  ;;  %v10559_v47 = vadd.f32 %v10116_v10, %v1520_v27  ;;  %v2081_v3 = vpop.f32.mrb[85].mxu1  ;;  %v1522_v15 = vpop.f32.mrb[71].mxu0  ;;  %v14769_v10 = vld [vmem:[#allocation16_spill] sm:$0xff]  ;;  %5380 = vmatprep.subr.bf16.mxu1 %v14682_v21 }
 0x1ad   : > { %v2082_v44 = vpop.f32.mrb[86].mxu1 }
 0x1ae   : > { %v10565_v33 = vadd.f32 %v2082_v44, %v10466_v56  ;;  %8501 = vmatmul.mubr.bf16.gmra.mrb[176].mxu0 %v14734_v7  ;;  %v2084_v11 = vpop.f32.mrb[87].mxu1 }
 0x1af   : > { %8504 = vmatprep.mubr.bf16.mxu0 %v14739_v31 }
 0x1b0   : > { %2745 = vmatmul.mubr.bf16.gmra.mrb[192].mxu1 %v14769_v10 }
 0x1b1   : > { %v1525_v8 = vpop.f32.mrb[72].mxu0  ;;  %2752 = vmatprep.mubr.bf16.mxu1 %v14770_v42  ;;  %v14774_v42 = vld [vmem:[#allocation38_spill] sm:$0xff] }
 0x1b2   : > { %v10573_v57 = vadd.f32 %v10146_v58, %v1525_v8  ;;  %v1527_v40 = vpop.f32.mrb[73].mxu0 }
 0x1b3   : > { %v2087_v17 = vpop.f32.mrb[88].mxu1  ;;  %v1528_v56 = vpop.f32.mrb[74].mxu0 }
 0x1b4   : > { %v10576_v25 = vadd.f32 %v2087_v17, %v10482_v28  ;;  %v10579_v7 = vadd.f32 %v10154_v59, %v1528_v56  ;;  %v2089_v31 = vpop.f32.mrb[89].mxu1  ;;  %v1530_v45 = vpop.f32.mrb[75].mxu0  ;;  %v14771_v28 = vld [vmem:[#allocation17_spill] sm:$0xff] }
 0x1b5   : > { %v2090_v51 = vpop.f32.mrb[90].mxu1 }
 0x1b6   : > { %v10585_v32 = vadd.f32 %v2090_v51, %v10488_v26  ;;  %8505 = vmatmul.mubr.bf16.gmra.mrb[180].mxu0 %v14740_v50  ;;  %v2092_v58 = vpop.f32.mrb[91].mxu1 }
 0x1b7   : > { %8508 = vmatprep.mubr.bf16.mxu0 %v14743_v18 }
 0x1b8   : > { %2753 = vmatmul.mubr.bf16.gmra.mrb[196].mxu1 %v14771_v28 }
 0x1b9   : > { %v1533_v59 = vpop.f32.mrb[76].mxu0  ;;  %2760 = vmatprep.mubr.bf16.mxu1 %v14772_v30  ;;  %v334_v30 = vld [vmem:[%s9157_s26 + $0xd8] sm:$0xf] }
 0x1ba   : > { %v10593_v41 = vadd.f32 %v10141_v54, %v1533_v59  ;;  %v1535_v27 = vpop.f32.mrb[77].mxu0  ;;  %v14773_v54 = vld [vmem:[#allocation20_spill] sm:$0xff] }
 0x1bb   : > { %v2095_v3 = vpop.f32.mrb[92].mxu1  ;;  %v1536_v26 = vpop.f32.mrb[78].mxu0 }
 0x1bc   : > { %v10596_v15 = vadd.f32 %v2095_v3, %v10508_v20  ;;  %v10599_v50 = vadd.f32 %v10148_v35, %v1536_v26  ;;  %v2097_v18 = vpop.f32.mrb[93].mxu1  ;;  %v1538_v29 = vpop.f32.mrb[79].mxu0 }
 0x1bd   : > { %v2098_v44 = vpop.f32.mrb[94].mxu1  ;;  %v8924_v18 = vld [vmem:[%s14373_s3 + $0x60] sm:$0xff]  }
 0x1be   : > { %v10602_v11 = vadd.f32 %v2098_v44, %v10514_v46  ;;  %8509 = vmatmul.mubr.bf16.gmra.mrb[184].mxu0 %v14744_v60  ;;  %v2100_v10 = vpop.f32.mrb[95].mxu1  ;;  %v389_v44 = vmax.bf16 %v14682_v21, %v334_v30 }
 0x1bf   : > { %8512 = vmatprep.mubr.bf16.mxu0 %v14747_v13  ;;  %v8920_v13 = vld [vmem:[%s14373_s3 + $0x58] sm:$0xff]   ;;  %v14778_v10 = vld [vmem:[#allocation40_spill] sm:$0xff] }
 0x1c0   : > { %2761 = vmatmul.mubr.bf16.gmra.mrb[200].mxu1 %v14773_v54 }
 0x1c1   : > { %v1541_v8 = vpop.f32.mrb[80].mxu0  ;;  %2768 = vmatprep.mubr.bf16.mxu1 %v14774_v42  ;;  %5381 = vmatpush1.bf16.msra.mxu1 %v8920_v13 }
 0x1c2   : > { %v10609_v20 = vadd.f32 %v10180_v23, %v1541_v8  ;;  %v1543_v35 = vpop.f32.mrb[81].mxu0  ;;  %5382 = vmatprep.subr.bf16.mxu1 %v14682_v21 }
 0x1c3   : > { %v2103_v40 = vpop.f32.mrb[96].mxu1  ;;  %v1544_v17 = vpop.f32.mrb[82].mxu0 }
 0x1c4   : > { %v10612_v56 = vadd.f32 %v2103_v40, %v10533_v6  ;;  %v10615_v46 = vadd.f32 %v10188_v63, %v1544_v17  ;;  %v2105_v60 = vpop.f32.mrb[97].mxu1  ;;  %v1546_v31 = vpop.f32.mrb[83].mxu0  ;;  %v14775_v63 = vld [vmem:[#allocation21_spill] sm:$0xff] }
 0x1c5   : > { %v2106_v45 = vpop.f32.mrb[98].mxu1  ;;  %5383 = vmatpush1.bf16.msra.mxu1 %v8924_v18  ;;  %v8994_v60 = vld [vmem:[%s9157_s26 + $0xc] sm:$0xf]  ;;  %v8995_v31 = vld [vmem:[%s9157_s26 + $0x10] sm:$0xf] }
 0x1c6   : > { %v10621_v23 = vadd.f32 %v2106_v45, %v10540_v39  ;;  %8513 = vmatmul.mubr.bf16.gmra.mrb[188].mxu0 %v14748_v9  ;;  %v2108_v51 = vpop.f32.mrb[99].mxu1  ;;  %5384 = vmatprep.subr.bf16.mxu1 %v14682_v21  ;;  %v7913_v13 = vcombine.low %v8994_v60, %v8995_v31  ;;  %v8928_v31 = vld [vmem:[%s14373_s3 + $0x68] sm:$0xff]  }
 0x1c7   : > { %8516 = vmatprep.mubr.bf16.mxu0 %v14751_v14 }
 0x1c8   : > { %2769 = vmatmul.mubr.bf16.gmra.mrb[204].mxu1 %v14775_v63  ;;  %v14781_v63 = vld [vmem:[#allocation30_spill] sm:$0xff] }
 0x1c9   : > { %v1549_v6 = vpop.f32.mrb[84].mxu0  ;;  %2776 = vmatprep.mubr.bf16.mxu1 %v14776_v22  ;;  %v8997_v22 = vld [vmem:[%s9157_s26 + $0x18] sm:$0xf]  ;;  %5385 = vmatpush1.bf16.msra.mxu1 %v8928_v31 }
 0x1ca   : > { %v10629_v58 = vadd.f32 %v10175_v19, %v1549_v6  ;;  %v1551_v28 = vpop.f32.mrb[85].mxu0  ;;  %v768_v6 = vshrl.u32 %v14781_v63, 16  ;;  %5386 = vmatprep.subr.bf16.mxu1 %v14682_v21 }
 0x1cb   : > { %v2111_v59 = vpop.f32.mrb[100].mxu1  ;;  %v1552_v39 = vpop.f32.mrb[86].mxu0 }
 0x1cc   : > { %v10633_v9 = vadd.f32 %v2111_v59, %v10553_v43  ;;  %v10636_v27 = vadd.f32 %v10182_v61, %v1552_v39  ;;  %v2113_v14 = vpop.f32.mrb[101].mxu1  ;;  %v1554_v3 = vpop.f32.mrb[87].mxu0  ;;  %v14777_v61 = vld [vmem:[#allocation24_spill] sm:$0xff]  ;;  %v14782_v59 = vld [vmem:[#allocation25_spill] sm:$0xff]  ;;  %v3722_v39 = vshll.u32 %v7913_v13, 16 }
 0x1cd   : > { %v2114_v26 = vpop.f32.mrb[102].mxu1  ;;  %v14783_v14 = vld [vmem:[#allocation42_spill] sm:$0xff] }
 0x1ce   : > { %v10642_v19 = vadd.f32 %v2114_v26, %v10559_v47  ;;  %8517 = vmatmul.mubr.bf16.gmra.mrb[192].mxu0 %v14752_v49  ;;  %v2116_v29 = vpop.f32.mrb[103].mxu1  ;;  %v10653_v49 = vcombine.low %v389_v44, %v389_v44  ;;  %v14785_v26 = vld [vmem:[#allocation41_spill] sm:$0xff]  ;;  %v3724_v60 = vrot.slane %v3722_v39, 1 }
 0x1cf   : > { %8520 = vmatprep.mubr.bf16.mxu0 %v14755_v16  ;;  %v770_v18 = vor.u32 %v768_v6, %v14785_v26  ;;  %v8999_v6 = vld [vmem:[%s9157_s26 + $0x20] sm:$0xf] }
 0x1d0   : > { %2777 = vmatmul.mubr.bf16.gmra.mrb[208].mxu1 %v14777_v61  ;;  %v857_v39 = vrot.slane %v10653_v49, 1 }
 0x1d1   : > { %v1557_v43 = vpop.f32.mrb[88].mxu0  ;;  %2784 = vmatprep.mubr.bf16.mxu1 %v14778_v10 }
 0x1d2   : > { %v10651_v47 = vadd.f32 %v10211_v34, %v1557_v43  ;;  %v1559_v54 = vpop.f32.mrb[89].mxu0  ;;  %v10684_v43 = vld [vmem:[%s14373_s3 + $0x80] sm:$0xff]  }
 0x1d3   : > { %v2119_v8 = vpop.f32.mrb[104].mxu1  ;;  %v1560_v42 = vpop.f32.mrb[90].mxu0  ;;  %v14786_v54 = vld [vmem:[#allocation54_spill] sm:$0xff]  ;;  %8596 = vmatprep.subr.bf16.mxu0 %v10684_v43 }
 0x1d4   : > { %v10656_v16 = vadd.f32 %v2119_v8, %v10573_v57  ;;  %v10659_v35 = vadd.f32 %v10222_v1, %v1560_v42  ;;  %v2121_v40 = vpop.f32.mrb[105].mxu1  ;;  %v1562_v17 = vpop.f32.mrb[91].mxu0  ;;  %v772_v57 = vshll.u32 %v10653_v49, 16  ;;  %v8996_v1 = vld [vmem:[%s9157_s26 + $0x14] sm:$0xf] }
 0x1d5   : > { %v2122_v34 = vpop.f32.mrb[106].mxu1  ;;  %v10672_v28 = vcombine.low %v8996_v1, %v8997_v22  ;;  %v3720_v17 = vshrl.u32 %v7913_v13, 16  ;;  %v14788_v1 = vld [vmem:[#allocation29_spill] sm:$0xff] }
 0x1d6   : > { %14779 = vst [vmem:[#allocation23_spill] sm:$0xff] %v10656_v16  ;;  %v10664_v45 = vadd.f32 %v2122_v34, %v10579_v7  ;;  %8521 = vmatmul.mubr.bf16.gmra.mrb[196].mxu0 %v14756_v2  ;;  %v2124_v51 = vpop.f32.mrb[107].mxu1  ;;  %v14784_v7 = vld [vmem:[#allocation53_spill] sm:$0xff]  ;;  %v774_v29 = vrot.slane %v772_v57, 1 }
 0x1d7   : > { %8524 = vmatprep.mubr.bf16.mxu0 %v14757_v0  ;;  %v3727_v61 = vshll.u32 %v10672_v28, 16  ;;  %v8998_v51 = vld [vmem:[%s9157_s26 + $0x1c] sm:$0xf] }
 0x1d8   : > { %14780 = vst [vmem:[#allocation26_spill] sm:$0xff] %v10664_v45  ;;  %2785 = vmatmul.mubr.bf16.gmra.mrb[212].mxu1 %v14782_v59  ;;  %v7915_v57 = vcombine.low %v8998_v51, %v8999_v6  ;;  %v775_v13 = vsel %vm555_vm2, %v770_v18, %v774_v29  ;;  %v14789_v59 = vld [vmem:[#allocation31_spill] sm:$0xff]  ;;  %v14793_v51 = vrot.slane %v14781_v63, 1  ;;  %v9012_v45 = vld [vmem:[%s9157_s26 + $0x54] sm:$0xf] }
 0x1d9   : > { %v1565_v30 = vpop.f32.mrb[92].mxu0  ;;  %2792 = vmatprep.mubr.bf16.mxu1 %v14783_v14  ;;  %v9001_v14 = vld [vmem:[%s9157_s26 + $0x28] sm:$0xf]  ;;  %v3729_v26 = vrot.slane %v3727_v61, 1 }
 0x1da   : > { %v10677_v3 = vadd.f32 %v14784_v7, %v1565_v30  ;;  %v1567_v2 = vpop.f32.mrb[93].mxu0  ;;  %v9000_v30 = vld [vmem:[%s9157_s26 + $0x24] sm:$0xf]  ;;  %v858_v6 = vsel %vm803_vm0, %v14793_v51, %v857_v39  ;;  %v14797_v39 = vld [vmem:[#allocation57_spill] sm:$0xff]  ;;  %v14800_v51 = vld [vmem:[#allocation58_spill] sm:$0xff] }
 0x1db   : > { %v2127_v0 = vpop.f32.mrb[108].mxu1  ;;  %v1568_v44 = vpop.f32.mrb[94].mxu0  ;;  %v10707_v7 = vcombine.low %v9000_v30, %v9001_v14  ;;  %v14790_v2 = vld [vmem:[#allocation27_spill] sm:$0xff]  ;;  %v14796_v14 = vld [vmem:[#allocation46_spill] sm:$0xff] }
 0x1dc   : > { %v10687_v10 = vadd.f32 %v2127_v0, %v10593_v41  ;;  %v10690_v8 = vadd.f32 %v14786_v54, %v1568_v44  ;;  %v2129_v42 = vpop.f32.mrb[109].mxu1  ;;  %v1570_v40 = vpop.f32.mrb[95].mxu0  ;;  %v3735_v44 = vshll.u32 %v7915_v57, 16  ;;  %v14791_v54 = vld [vmem:[#allocation47_spill] sm:$0xff] }
 0x1dd   : > { %v2130_v34 = vpop.f32.mrb[110].mxu1  ;;  %v3731_v42 = vshrl.u32 %v10672_v28, 16  ;;  %v14792_v40 = vld [vmem:[#allocation45_spill] sm:$0xff] }
 0x1de   : > { %v10699_v41 = vadd.f32 %v2130_v34, %v10599_v50  ;;  %8525 = vmatmul.mubr.bf16.gmra.mrb[200].mxu0 %v14788_v1  ;;  %v2132_v22 = vpop.f32.mrb[111].mxu1  ;;  %v3725_v50 = vor.u32 %v3724_v60, %v3720_v17  ;;  %v3739_v1 = vshrl.u32 %v7915_v57, 16  ;;  %v3743_v17 = vshll.u32 %v10707_v7, 16  ;;  %v14795_v60 = vld [vmem:[#allocation48_spill] sm:$0xff] }
 0x1df   : > { %8528 = vmatprep.mubr.bf16.mxu0 %v14789_v59 }
 0x1e0   : > { %14787 = vst [vmem:[#allocation28_spill] sm:$0xff] %v10699_v41  ;;  %2793 = vmatmul.mubr.bf16.gmra.mrb[216].mxu1 %v14790_v2  ;;  %v3730_v30 = vsel %vm555_vm2, %v3725_v50, %v3729_v26  ;;  %v9003_v50 = vld [vmem:[%s9157_s26 + $0x30] sm:$0xf]  ;;  %v9013_v41 = vld [vmem:[%s9157_s26 + $0x58] sm:$0xf] }
 0x1e1   : > { %v8358_v0 = vpop.f32.mrb[96].mxu0  ;;  %2800 = vmatprep.mubr.bf16.mxu1 %v775_v13  ;;  %v10821_v16 = vcombine.low %v9012_v45, %v9013_v41  ;;  %v8942_v45 = vld [vmem:[%s14373_s3 + $0x78] sm:$0xff]   ;;  %v14822_v41 = vld [vmem:[#allocation3_spill] sm:$0xff] }
 0x1e2   : > { %v1615_v18 = vadd.f32 %v8358_v0, %v14791_v54  ;;  %v1606_v29 = vpop.f32.mrb[97].mxu0 }
 0x1e3   : > { %v1607_v49 = vadd.f32 %v1606_v29, %v14792_v40  ;;  %v2135_v31 = vpop.f32.mrb[112].mxu1  ;;  %v8359_v34 = vpop.f32.mrb[98].mxu0  ;;  %v14799_v40 = vld [vmem:[#allocation61_spill] sm:$0xff] }
 0x1e4   : > { %v10719_v61 = vadd.f32 %v2135_v31, %v10609_v20  ;;  %v1618_v22 = vadd.f32 %v8359_v34, %v14795_v60  ;;  %v2137_v13 = vpop.f32.mrb[113].mxu1  ;;  %v1609_v28 = vpop.f32.mrb[99].mxu0  ;;  %v10723_v59 = vadd.f32 %v10274_v4, %v1615_v18  ;;  %v3737_v20 = vrot.slane %v3735_v44, 1  ;;  %v9002_v18 = vld [vmem:[%s9157_s26 + $0x2c] sm:$0xf] }
 0x1e5   : > { %v1610_v2 = vadd.f32 %v1609_v28, %v14796_v14  ;;  %v2138_v57 = vpop.f32.mrb[114].mxu1  ;;  %v10728_v0 = vadd.f32 %v14797_v39, %v1607_v49  ;;  %v3733_v4 = vor.u32 %v3731_v42, %v3729_v26  ;;  %v7917_v34 = vcombine.low %v9002_v18, %v9003_v50  ;;  %v9004_v28 = vld [vmem:[%s9157_s26 + $0x34] sm:$0xf]  ;;  %v9005_v44 = vld [vmem:[%s9157_s26 + $0x38] sm:$0xf]  ;;  %v14804_v18 = vld [vmem:[#allocation52_spill] sm:$0xff] }
 0x1e6   : > { %14794 = vst [vmem:[#allocation5_spill] sm:$0xff] %v10719_v61  ;;  %v10731_v54 = vadd.f32 %v2138_v57, %v10615_v46  ;;  %8529 = vmatmul.mubr.bf16.gmra.mrb[204].mxu0 %v858_v6  ;;  %v2140_v29 = vpop.f32.mrb[115].mxu1  ;;  %v10734_v31 = vadd.f32 %v14799_v40, %v1618_v22  ;;  %v3741_v13 = vor.u32 %v3739_v1, %v3737_v20  ;;  %v3745_v49 = vrot.slane %v3743_v17, 1  ;;  %v14801_v6 = vld [vmem:[#allocation51_spill] sm:$0xff]  ;;  %v14802_v39 = vld [vmem:[#allocation49_spill] sm:$0xff] }
 0x1e7   : > { %v10739_v60 = vadd.f32 %v14800_v51, %v1610_v2  ;;  %8548 = vmatprep.mubr.bf16.mxu0 %v3730_v30  ;;  %v10743_v14 = vcombine.low %v9004_v28, %v9005_v44  ;;  %v3738_v26 = vsel %vm555_vm2, %v3733_v4, %v3737_v20  ;;  %v3751_v42 = vshll.u32 %v7917_v34, 16  ;;  %v14805_v4 = vld [vmem:[#allocation65_spill] sm:$0xff] }
 0x1e8   : > { %14798 = vst [vmem:[#allocation7_spill] sm:$0xff] %v10731_v54  ;;  %2801 = vmatmul.mubr.bf16.gmra.mrb[220].mxu1 %v14781_v63  ;;  %v3746_v17 = vsel %vm555_vm2, %v3741_v13, %v3745_v49  ;;  %v3747_v30 = vshrl.u32 %v10707_v7, 16  ;;  %v3755_v44 = vshrl.u32 %v7917_v34, 16  ;;  %v8931_v13 = vld [vmem:[%s14373_s3 + $0x88] sm:$0xff]   ;;  %v14809_v34 = vld [vmem:[#allocation66_spill] sm:$0xff] }
 0x1e9   : > { %v8362_v46 = vpop.f32.mrb[100].mxu0  ;;  %v3759_v40 = vshll.u32 %v10743_v14, 16  ;;  %v14810_v54 = vld [vmem:[#allocation64_spill] sm:$0xff] }
 0x1ea   : > { %v1631_v22 = vadd.f32 %v8362_v46, %v14801_v6  ;;  %v1622_v57 = vpop.f32.mrb[101].mxu0  ;;  %v14806_v46 = vld [vmem:[#allocation50_spill] sm:$0xff] }
 0x1eb   : > { %v1623_v29 = vadd.f32 %v1622_v57, %v14802_v39  ;;  %v2143_v2 = vpop.f32.mrb[116].mxu1  ;;  %v8363_v1 = vpop.f32.mrb[102].mxu0  ;;  %v14807_v57 = vld [vmem:[#allocation63_spill] sm:$0xff]  ;;  %v9006_v39 = vld [vmem:[%s9157_s26 + $0x3c] sm:$0xf] }
 0x1ec   : > { %v10753_v63 = vadd.f32 %v2143_v2, %v10629_v58  ;;  %v1634_v50 = vadd.f32 %v8363_v1, %v14804_v18  ;;  %v2145_v51 = vpop.f32.mrb[117].mxu1  ;;  %v1625_v20 = vpop.f32.mrb[103].mxu0  ;;  %v10757_v28 = vadd.f32 %v14805_v4, %v1631_v22  ;;  %v9007_v2 = vld [vmem:[%s9157_s26 + $0x40] sm:$0xf]  ;;  %v3753_v4 = vrot.slane %v3751_v42, 1 }
 0x1ed   : > { %v1626_v7 = vadd.f32 %v1625_v20, %v14806_v46  ;;  %v2146_v6 = vpop.f32.mrb[118].mxu1  ;;  %v10764_v58 = vadd.f32 %v14807_v57, %v1623_v29  ;;  %v7919_v1 = vcombine.low %v9006_v39, %v9007_v2  ;;  %v3749_v20 = vor.u32 %v3747_v30, %v3745_v49  ;;  %v9008_v46 = vld [vmem:[%s9157_s26 + $0x48] sm:$0xf]  ;;  %v9009_v29 = vld [vmem:[%s9157_s26 + $0x44] sm:$0xf] }
 0x1ee   : > { %14803 = vst [vmem:[#allocation32_spill] sm:$0xff] %v10753_v63  ;;  %v10769_v18 = vadd.f32 %v2146_v6, %v10636_v27  ;;  %v2148_v22 = vpop.f32.mrb[119].mxu1  ;;  %v10772_v51 = vadd.f32 %v14809_v34, %v1634_v50  ;;  %8549 = vmatmul.mubr.bf16.vlgmr.msra.gmra.mrb[208].mxu0 %v3738_v26  ;;  %v10779_v57 = vcombine.low %v9009_v29, %v9008_v46  ;;  %v3761_v27 = vrot.slane %v3759_v40, 1  ;;  %v8934_v50 = vld [vmem:[%s14373_s3 + $0x90] sm:$0xff]   ;;  %v14811_v6 = vld [vmem:[#allocation59_spill] sm:$0xff]  ;;  %v14814_v46 = vld [vmem:[#allocation60_spill] sm:$0xff] }
 0x1ef   : > { %v10775_v61 = vadd.f32 %v14810_v54, %v1626_v7  ;;  %8552 = vmatprep.mubr.bf16.mxu0 %v3746_v17  ;;  %8597 = vmatpush3.bf16.msra.mxu0 %v10684_v43  ;;  %v3757_v39 = vor.u32 %v3755_v44, %v3753_v4  ;;  %v3767_v42 = vshll.u32 %v7919_v1, 16  ;;  %v3763_v49 = vshrl.u32 %v10743_v14, 16  ;;  %v14812_v17 = vld [vmem:[#allocation55_spill] sm:$0xff] }
 0x1f0   : > { %14808 = vst [vmem:[#allocation9_spill] sm:$0xff] %v10769_v18  ;;  %8598 = vmatprep.subr.bf16.mxu0 %v8931_v13  ;;  %v3754_v43 = vsel %vm555_vm2, %v3749_v20, %v3753_v4  ;;  %v3771_v44 = vshrl.u32 %v7919_v1, 16  ;;  %v3775_v40 = vshll.u32 %v10779_v57, 16  ;;  %v8936_v1 = vld [vmem:[%s14373_s3 + $0x98] sm:$0xff]   ;;  %v14817_v20 = vld [vmem:[#allocation8_spill] sm:$0xff] }
 0x1f1   : > { %v8366_v26 = vpop.f32.mrb[104].mxu0 }
 0x1f2   : > { %v1647_v54 = vadd.f32 %v8366_v26, %v14811_v6  ;;  %v1638_v7 = vpop.f32.mrb[105].mxu0  ;;  %v14815_v6 = vld [vmem:[#allocation11_spill] sm:$0xff]  ;;  %v3777_v63 = vrot.slane %v3775_v40, 1 }
 0x1f3   : > { %v1639_v30 = vadd.f32 %v1638_v7, %v14812_v17  ;;  %v2151_v2 = vpop.f32.mrb[120].mxu1  ;;  %v8367_v22 = vpop.f32.mrb[106].mxu0  ;;  %8599 = vmatpush3.bf16.msra.mxu0 %v8931_v13  ;;  %v3762_v7 = vsel %vm555_vm2, %v3757_v39, %v3761_v27  ;;  %v14816_v13 = vld [vmem:[#allocation56_spill] sm:$0xff] }
 0x1f4   : > { %v10791_v34 = vadd.f32 %v2151_v2, %v10651_v47  ;;  %v1650_v29 = vadd.f32 %v8367_v22, %v14814_v46  ;;  %v2153_v18 = vpop.f32.mrb[121].mxu1  ;;  %v1641_v26 = vpop.f32.mrb[107].mxu0  ;;  %v10795_v14 = vadd.f32 %v14815_v6, %v1647_v54  ;;  %8600 = vmatprep.subr.bf16.mxu0 %v8934_v50  ;;  %v8935_v54 = vld [vmem:[%s14373_s3 + $0x70] sm:$0xff]   ;;  %v14819_v22 = vld [vmem:[#allocation14_spill] sm:$0xff]  ;;  %v9010_v6 = vld [vmem:[%s9157_s26 + $0x4c] sm:$0xf] }
 0x1f5   : > { %v1642_v4 = vadd.f32 %v1641_v26, %v14816_v13  ;;  %v2154_v47 = vpop.f32.mrb[122].mxu1  ;;  %v10803_v17 = vadd.f32 %v14817_v20, %v1639_v30  ;;  %v3769_v18 = vrot.slane %v3767_v42, 1  ;;  %v3765_v26 = vor.u32 %v3763_v49, %v3761_v27  ;;  %v9011_v13 = vld [vmem:[%s9157_s26 + $0x50] sm:$0xf]  ;;  %v14820_v30 = vld [vmem:[#allocation10_spill] sm:$0xff]  ;;  %5387 = vmatpush1.bf16.msra.mxu1 %v8935_v54  ;;  %v14821_v49 = vld [vmem:[#allocation4_spill] sm:$0xff] }
 0x1f6   : > { %14813 = vst [vmem:[#allocation33_spill] sm:$0xff] %v10791_v34  ;;  %v10809_v39 = vadd.f32 %v2154_v47, %v10659_v35  ;;  %v2156_v2 = vpop.f32.mrb[123].mxu1  ;;  %v10812_v46 = vadd.f32 %v14819_v22, %v1650_v29  ;;  %8553 = vmatmul.mubr.bf16.gmra.mrb[212].mxu0 %v3754_v43  ;;  %v7921_v34 = vcombine.low %v9010_v6, %v9011_v13  ;;  %v8939_v35 = vld [vmem:[%s14373_s3 + $0xa0] sm:$0xff]   ;;  %v3779_v54 = vshrl.u32 %v10779_v57, 16  ;;  %v8940_v57 = vld [vmem:[%s14373_s3 + $0xa8] sm:$0xff]  }
 0x1f7   : > { %v10817_v20 = vadd.f32 %v14820_v30, %v1642_v4  ;;  %8556 = vmatprep.mubr.bf16.mxu0 %v3762_v7  ;;  %v3773_v42 = vor.u32 %v3771_v44, %v3769_v18  ;;  %8601 = vmatpush3.bf16.msra.mxu0 %v8934_v50  ;;  %v3770_v44 = vsel %vm555_vm2, %v3765_v26, %v3769_v18  ;;  %v3791_v2 = vshll.u32 %v10821_v16, 16  ;;  %v14824_v18 = vld [vmem:[#allocation6_spill] sm:$0xff]  ;;  %v14825_v30 = vld [vmem:[#allocation19_spill] sm:$0xff] }
 0x1f8   : > { %14818 = vst [vmem:[#allocation43_spill] sm:$0xff] %v10809_v39  ;;  %8602 = vmatprep.subr.bf16.mxu0 %v8936_v1  ;;  %5388 = vmatprep.subr.bf16.mxu1 %v14682_v21  ;;  %v3783_v40 = vshll.u32 %v7921_v34, 16  ;;  %v14829_v39 = vld [vmem:[#allocation18_spill] sm:$0xff] }
 0x1f9   : > { %v8370_v27 = vpop.f32.mrb[108].mxu0  ;;  %v3778_v47 = vsel %vm555_vm2, %v3773_v42, %v3777_v63  ;;  %5389 = vmatpush1.bf16.msra.mxu1 %v8942_v45 }
 0x1fa   : > { %v1663_v43 = vadd.f32 %v8370_v27, %v14821_v49  ;;  %v1654_v29 = vpop.f32.mrb[109].mxu0  ;;  %v3787_v49 = vshrl.u32 %v7921_v34, 16  ;;  %v3785_v34 = vrot.slane %v3783_v40, 1 }
 0x1fb   : > { %v1655_v50 = vadd.f32 %v1654_v29, %v14822_v41  ;;  %v2159_v7 = vpop.f32.mrb[124].mxu1  ;;  %v8371_v4 = vpop.f32.mrb[110].mxu0  ;;  %8603 = vmatpush3.bf16.msra.mxu0 %v8936_v1  ;;  %v14826_v1 = vld [vmem:[#allocation62_spill] sm:$0xff]  ;;  %v14827_v29 = vld [vmem:[#allocation15_spill] sm:$0xff] }
 0x1fc   : > { %v10837_v22 = vadd.f32 %v2159_v7, %v10677_v3  ;;  %v1666_v26 = vadd.f32 %v8371_v4, %v14824_v18  ;;  %v2161_v6 = vpop.f32.mrb[125].mxu1  ;;  %v1657_v13 = vpop.f32.mrb[111].mxu0  ;;  %v10841_v27 = vadd.f32 %v14825_v30, %v1663_v43  ;;  %8604 = vmatprep.subr.bf16.mxu0 %v8939_v35  ;;  %v14828_v43 = vld [vmem:[#allocation22_spill] sm:$0xff] }
 0x1fd   : > { %v1658_v42 = vadd.f32 %v1657_v13, %v14826_v1  ;;  %v2162_v3 = vpop.f32.mrb[126].mxu1  ;;  %v10848_v41 = vadd.f32 %v14827_v29, %v1655_v50  ;;  %v9014_v18 = vld [vmem:[%s9157_s26 + $0x5c] sm:$0xf]  ;;  %v9015_v6 = vld [vmem:[%s9157_s26 + $0x60] sm:$0xf]  ;;  %v3781_v1 = vor.u32 %v3779_v54, %v3777_v63  ;;  %v3789_v50 = vor.u32 %v3787_v49, %v3785_v34 }
 0x1fe   : > { %14823 = vst [vmem:[#allocation44_spill] sm:$0xff] %v10837_v22  ;;  %v10851_v7 = vadd.f32 %v2162_v3, %v10690_v8  ;;  %v10854_v4 = vadd.f32 %v14828_v43, %v1666_v26  ;;  %8557 = vmatmul.mubr.bf16.gmra.mrb[216].mxu0 %v3770_v44  ;;  %v7923_v30 = vcombine.low %v9014_v18, %v9015_v6  ;;  %v2164_v45 = vpop.f32.mrb[127].mxu1  ;;  %v3793_v29 = vrot.slane %v3791_v2, 1  ;;  %v9016_v22 = vld [vmem:[%s9157_s26 + $0x64] sm:$0xf]  ;;  %v8944_v44 = vld [vmem:[%s14373_s3 + $0xb0] sm:$0xff]  }
 0x1ff   : > { %v10859_v13 = vadd.f32 %v14829_v39, %v1658_v42  ;;  %8560 = vmatprep.mubr.bf16.mxu0 %v3778_v47  ;;  %8605 = vmatpush3.bf16.msra.mxu0 %v8939_v35  ;;  %v9017_v8 = vld [vmem:[%s9157_s26 + $0x68] sm:$0xf]  ;;  %v3786_v47 = vsel %vm555_vm2, %v3781_v1, %v3785_v34  ;;  %v3795_v54 = vshrl.u32 %v10821_v16, 16  ;;  %v8945_v16 = vld [vmem:[%s14373_s3 + $0xb8] sm:$0xff]   ;;  %v9018_v6 = vld [vmem:[%s9157_s26 + $0x6c] sm:$0xf] }
 0x200   : > { %v10863_v3 = vcombine.low %v9016_v22, %v9017_v8  ;;  %8606 = vmatprep.subr.bf16.mxu0 %v8940_v57  ;;  %v3799_v42 = vshll.u32 %v7923_v30, 16  ;;  %v3794_v49 = vsel %vm555_vm2, %v3789_v50, %v3793_v29  ;;  %v3803_v43 = vshrl.u32 %v7923_v30, 16  ;;  %v9019_v45 = vld [vmem:[%s9157_s26 + $0x70] sm:$0xf] }
 0x201   : > { %v8422_v40 = vpop.f32.mrb[112].mxu0  ;;  %v7925_v30 = vcombine.low %v9018_v6, %v9019_v45  ;;  %v3797_v50 = vor.u32 %v3795_v54, %v3793_v29  ;;  %v9022_v45 = vld [vmem:[%s9157_s26 + $0x7c] sm:$0xf] }
 0x202   : > { %v10869_v26 = vadd.f32 %v8422_v40, %v10723_v59  ;;  %v2200_v39 = vpop.f32.mrb[113].mxu0 }
 0x203   : > { %v10872_v63 = vadd.f32 %v2200_v39, %v10728_v0  ;;  %v8423_v35 = vpop.f32.mrb[114].mxu0  ;;  %v10876_v2 = vpop.f32.mrb[128].mxu1  ;;  %8607 = vmatpush3.bf16.msra.mxu0 %v8940_v57  ;;  %v3807_v0 = vshll.u32 %v10863_v3, 16  ;;  %v9020_v39 = vld [vmem:[%s9157_s26 + $0x74] sm:$0xf] }
 0x204   : > { %v10879_v22 = vadd.f32 %v8423_v35, %v10734_v31  ;;  %v2203_v59 = vpop.f32.mrb[115].mxu0  ;;  %v2620_v18 = vpop.f32.mrb[129].mxu1  ;;  %8608 = vmatprep.subr.bf16.mxu0 %v8944_v44  ;;  %v3801_v31 = vrot.slane %v3799_v42, 1  ;;  %v9021_v35 = vld [vmem:[%s9157_s26 + $0x78] sm:$0xf] }
 0x205   : > { %v10887_v34 = vadd.f32 %v2203_v59, %v10739_v60  ;;  %v10889_v57 = vpop.f32.mrb[130].mxu1  ;;  %v3809_v40 = vrot.slane %v3807_v0, 1  ;;  %v7926_v18 = vcombine.low %v9020_v39, %v9021_v35 }
 0x206   : > { %14830 = vst [vmem:[#allocation12_spill] sm:$0xff] %v10879_v22  ;;  %8561 = vmatmul.mubr.bf16.gmra.mrb[220].mxu0 %v3786_v47  ;;  %v2623_v1 = vpop.f32.mrb[131].mxu1  ;;  %v3805_v8 = vor.u32 %v3803_v43, %v3801_v31  ;;  %v3815_v47 = vshll.u32 %v7925_v30, 16  ;;  %v3802_v29 = vsel %vm555_vm2, %v3797_v50, %v3801_v31  ;;  %v3819_v43 = vshrl.u32 %v7925_v30, 16  ;;  %v10920_v30 = vld [vmem:[%s14373_s3 + $0x140] sm:$0xff]  }
 0x207   : > { %8564 = vmatprep.mubr.bf16.mxu0 %v3794_v49  ;;  %8609 = vmatpush3.bf16.msra.mxu0 %v8944_v44  ;;  %v3811_v44 = vshrl.u32 %v10863_v3, 16  ;;  %v3823_v0 = vshll.u32 %v7926_v18, 16  ;;  %14831 = vst [vmem:[#allocation34_spill] sm:$0xff] %v10920_v30 }
 0x208   : > { %8610 = vmatprep.subr.bf16.mxu0 %v8945_v16  ;;  %8660 = vmatprep.subr.bf16.mxu1 %v10920_v30 }
 0x209   : > { %v8426_v22 = vpop.f32.mrb[116].mxu0  ;;  %v3825_v35 = vrot.slane %v3823_v0, 1 }
 0x20a   : > { %v10896_v60 = vadd.f32 %v8426_v22, %v10757_v28  ;;  %v2216_v59 = vpop.f32.mrb[117].mxu0  ;;  %v3810_v22 = vsel %vm555_vm2, %v3805_v8, %v3809_v40  ;;  %v3813_v8 = vor.u32 %v3811_v44, %v3809_v40  ;;  %v3827_v44 = vshrl.u32 %v7926_v18, 16 }
 0x20b   : > { %v10899_v42 = vadd.f32 %v2216_v59, %v10764_v58  ;;  %v8427_v6 = vpop.f32.mrb[118].mxu0  ;;  %v10903_v54 = vpop.f32.mrb[132].mxu1  ;;  %8611 = vmatpush3.bf16.msra.mxu0 %v8945_v16  ;;  %v3817_v16 = vrot.slane %v3815_v47, 1  ;;  %v9024_v59 = vld [vmem:[%s9157_s26 + $0x84] sm:$0xf] }
 0x20c   : > { %v10906_v49 = vadd.f32 %v8427_v6, %v10772_v51  ;;  %v2219_v28 = vpop.f32.mrb[119].mxu0  ;;  %v2628_v58 = vpop.f32.mrb[133].mxu1  ;;  %6351 = vmatprep.subr.bf16.mxu0 %v14682_v21  ;;  %v9023_v51 = vld [vmem:[%s9157_s26 + $0x80] sm:$0xf] }
 0x20d   : > { %v10911_v31 = vadd.f32 %v2219_v28, %v10775_v61  ;;  %v10913_v3 = vpop.f32.mrb[134].mxu1  ;;  %v7927_v1 = vcombine.low %v9022_v45, %v9023_v51  ;;  %v3821_v39 = vor.u32 %v3819_v43, %v3817_v16  ;;  %v9025_v61 = vld [vmem:[%s9157_s26 + $0x88] sm:$0xf]  ;;  %v3818_v40 = vsel %vm555_vm2, %v3813_v8, %v3817_v16  ;;  %v9026_v16 = vld [vmem:[%s9157_s26 + $0x8c] sm:$0xf] }
 0x20e   : > { %8565 = vmatmul.mubr.bf16.gmra.mrb[224].mxu0 %v3802_v29  ;;  %v2631_v50 = vpop.f32.mrb[135].mxu1  ;;  %v7928_v6 = vcombine.low %v9024_v59, %v9025_v61  ;;  %v9027_v8 = vld [vmem:[%s9157_s26 + $0x90] sm:$0xf] }
 0x20f   : > { %8568 = vmatprep.mubr.bf16.mxu0 %v3810_v22  ;;  %v3831_v58 = vshll.u32 %v7927_v1, 16  ;;  %v3835_v50 = vshrl.u32 %v7927_v1, 16  ;;  %v9029_v1 = vld [vmem:[%s9157_s26 + $0x98] sm:$0xf] }
 0x210   : > { %v3839_v59 = vshll.u32 %v7928_v6, 16 }
 0x211   : > { %v8430_v29 = vpop.f32.mrb[120].mxu0  ;;  %v3833_v18 = vrot.slane %v3831_v58, 1 }
 0x212   : > { %v10926_v47 = vadd.f32 %v8430_v29, %v10795_v14  ;;  %v2232_v28 = vpop.f32.mrb[121].mxu0  ;;  %v3826_v14 = vsel %vm555_vm2, %v3821_v39, %v3825_v35  ;;  %v3841_v39 = vrot.slane %v3839_v59, 1 }
 0x213   : > { %v10929_v45 = vadd.f32 %v2232_v28, %v10803_v17  ;;  %v8431_v22 = vpop.f32.mrb[122].mxu0  ;;  %v10932_v43 = vpop.f32.mrb[136].mxu1  ;;  %v7929_v28 = vcombine.low %v9026_v16, %v9027_v8  ;;  %v3837_v30 = vor.u32 %v3835_v50, %v3833_v18 }
 0x214   : > { %14832 = vst [vmem:[#allocation13_spill] sm:$0xff] %v10926_v47  ;;  %v10935_v0 = vadd.f32 %v8431_v22, %v10812_v46  ;;  %v2235_v51 = vpop.f32.mrb[123].mxu0  ;;  %v2636_v61 = vpop.f32.mrb[137].mxu1  ;;  %v3829_v22 = vor.u32 %v3827_v44, %v3825_v35  ;;  %v3843_v35 = vshrl.u32 %v7928_v6, 16 }
 0x215   : > { %14833 = vst [vmem:[#allocation35_spill] sm:$0xff] %v10929_v45  ;;  %v10939_v17 = vadd.f32 %v2235_v51, %v10817_v20  ;;  %v10941_v29 = vpop.f32.mrb[138].mxu1  ;;  %v3847_v51 = vshll.u32 %v7929_v28, 16 }
 0x216   : > { %14834 = vst [vmem:[#allocation16_spill] sm:$0xff] %v10935_v0  ;;  %8569 = vmatmul.mubr.bf16.gmra.mrb[228].mxu0 %v3818_v40  ;;  %v2639_v46 = vpop.f32.mrb[139].mxu1  ;;  %v9028_v0 = vld [vmem:[%s9157_s26 + $0x94] sm:$0xf] }
 0x217   : > { %8572 = vmatprep.mubr.bf16.mxu0 %v3826_v14  ;;  %v7930_v45 = vcombine.low %v9028_v0, %v9029_v1  ;;  %v3834_v14 = vsel %vm555_vm2, %v3829_v22, %v3833_v18  ;;  %v3849_v6 = vrot.slane %v3847_v51, 1  ;;  %v9030_v18 = vld [vmem:[%s9157_s26 + $0x9c] sm:$0xf]  ;;  %v9031_v46 = vld [vmem:[%s9157_s26 + $0xa0] sm:$0xf]  ;;  %v3845_v1 = vor.u32 %v3843_v35, %v3841_v39 }
 0x218   : > { %v7931_v22 = vcombine.low %v9030_v18, %v9031_v46 }
 0x219   : > { %v8434_v47 = vpop.f32.mrb[124].mxu0  ;;  %v3855_v59 = vshll.u32 %v7930_v45, 16 }
 0x21a   : > { %v10948_v61 = vadd.f32 %v8434_v47, %v10841_v27  ;;  %v2248_v20 = vpop.f32.mrb[125].mxu0  ;;  %v3842_v27 = vsel %vm555_vm2, %v3837_v30, %v3841_v39  ;;  %v3851_v47 = vshrl.u32 %v7929_v28, 16  ;;  %v9033_v28 = vld [vmem:[%s9157_s26 + $0xa8] sm:$0xf]  ;;  %v3859_v39 = vshrl.u32 %v7930_v45, 16 }
 0x21b   : > { %v10951_v58 = vadd.f32 %v2248_v20, %v10848_v41  ;;  %v8435_v40 = vpop.f32.mrb[126].mxu0  ;;  %v10954_v44 = vpop.f32.mrb[140].mxu1  ;;  %v3857_v30 = vrot.slane %v3855_v59, 1 }
 0x21c   : > { %v10957_v50 = vadd.f32 %v8435_v40, %v10854_v4  ;;  %v2251_v0 = vpop.f32.mrb[127].mxu0  ;;  %v2644_v16 = vpop.f32.mrb[141].mxu1  ;;  %v3853_v20 = vor.u32 %v3851_v47, %v3849_v6  ;;  %v9032_v40 = vld [vmem:[%s9157_s26 + $0xa4] sm:$0xf] }
 0x21d   : > { %14835 = vst [vmem:[#allocation36_spill] sm:$0xff] %v10951_v58  ;;  %v10961_v41 = vadd.f32 %v2251_v0, %v10859_v13  ;;  %v10963_v8 = vpop.f32.mrb[142].mxu1  ;;  %v3863_v0 = vshll.u32 %v7931_v22, 16 }
 0x21e   : > { %14836 = vst [vmem:[#allocation17_spill] sm:$0xff] %v10957_v50  ;;  %8573 = vmatmul.mubr.bf16.gmra.mrb[232].mxu0 %v3834_v14  ;;  %v2647_v4 = vpop.f32.mrb[143].mxu1  ;;  %v7932_v50 = vcombine.low %v9032_v40, %v9033_v28  ;;  %v3861_v28 = vor.u32 %v3859_v39, %v3857_v30 }
 0x21f   : > { %8576 = vmatprep.mubr.bf16.mxu0 %v3842_v27  ;;  %v3850_v27 = vsel %vm555_vm2, %v3845_v1, %v3849_v6  ;;  %v3865_v45 = vrot.slane %v3863_v0, 1  ;;  %v9034_v6 = vld [vmem:[%s9157_s26 + $0xac] sm:$0xf]  ;;  %v9035_v1 = vld [vmem:[%s9157_s26 + $0xb0] sm:$0xf] }
 0x220   : > { %v3871_v18 = vshll.u32 %v7932_v50, 16  ;;  %v7933_v40 = vcombine.low %v9034_v6, %v9035_v1 }
 0x221   : > { %v8438_v58 = vpop.f32.mrb[128].mxu0 }
 0x222   : > { %v10970_v16 = vadd.f32 %v8438_v58, %v10463_v62  ;;  %v2264_v13 = vpop.f32.mrb[129].mxu0  ;;  %v3858_v62 = vsel %vm555_vm2, %v3853_v20, %v3857_v30  ;;  %v3867_v58 = vshrl.u32 %v7931_v22, 16  ;;  %v3873_v20 = vrot.slane %v3871_v18, 1  ;;  %v9037_v22 = vld [vmem:[%s9157_s26 + $0xb8] sm:$0xf] }
 0x223   : > { %v10973_v51 = vadd.f32 %v2264_v13, %v10443_v36  ;;  %v8439_v14 = vpop.f32.mrb[130].mxu0  ;;  %v10976_v35 = vpop.f32.mrb[144].mxu1  ;;  %v3875_v30 = vshrl.u32 %v7932_v50, 16 }
 0x224   : > { %v10979_v47 = vadd.f32 %v8439_v14, %v10472_v53  ;;  %v2267_v59 = vpop.f32.mrb[131].mxu0  ;;  %v2652_v46 = vpop.f32.mrb[145].mxu1  ;;  %v3869_v13 = vor.u32 %v3867_v58, %v3865_v45  ;;  %v9036_v14 = vld [vmem:[%s9157_s26 + $0xb4] sm:$0xf] }
 0x225   : > { %14837 = vst [vmem:[#allocation37_spill] sm:$0xff] %v10973_v51  ;;  %v10983_v36 = vadd.f32 %v2267_v59, %v10452_v52  ;;  %v10985_v4 = vpop.f32.mrb[146].mxu1  ;;  %v3879_v59 = vshll.u32 %v7933_v40, 16 }
 0x226   : > { %14838 = vst [vmem:[#allocation20_spill] sm:$0xff] %v10979_v47  ;;  %8577 = vmatmul.mubr.bf16.gmra.mrb[236].mxu0 %v3850_v27  ;;  %v2655_v53 = vpop.f32.mrb[147].mxu1  ;;  %v7934_v47 = vcombine.low %v9036_v14, %v9037_v22  ;;  %v3877_v22 = vor.u32 %v3875_v30, %v3873_v20 }
 0x227   : > { %8580 = vmatprep.mubr.bf16.mxu0 %v3858_v62  ;;  %v3866_v62 = vsel %vm555_vm2, %v3861_v28, %v3865_v45  ;;  %v3881_v50 = vrot.slane %v3879_v59, 1  ;;  %v9038_v45 = vld [vmem:[%s9157_s26 + $0xbc] sm:$0xf]  ;;  %v9039_v28 = vld [vmem:[%s9157_s26 + $0xc0] sm:$0xf] }
 0x228   : > { %v3887_v6 = vshll.u32 %v7934_v47, 16  ;;  %v7935_v14 = vcombine.low %v9038_v45, %v9039_v28 }
 0x229   : > { %v8442_v51 = vpop.f32.mrb[132].mxu0  ;;  %v3882_v45 = vsel %vm555_vm2, %v3877_v22, %v3881_v50 }
 0x22a   : > { %v10992_v46 = vadd.f32 %v8442_v51, %v10511_v48  ;;  %v2280_v52 = vpop.f32.mrb[133].mxu0  ;;  %v3874_v48 = vsel %vm555_vm2, %v3869_v13, %v3873_v20  ;;  %v3883_v51 = vshrl.u32 %v7933_v40, 16  ;;  %v3889_v13 = vrot.slane %v3887_v6, 1  ;;  %v9041_v40 = vld [vmem:[%s9157_s26 + $0xc8] sm:$0xf] }
 0x22b   : > { %v10995_v0 = vadd.f32 %v2280_v52, %v10485_v12  ;;  %v8443_v27 = vpop.f32.mrb[134].mxu0  ;;  %v10998_v39 = vpop.f32.mrb[148].mxu1 }
 0x22c   : > { %v11001_v58 = vadd.f32 %v8443_v27, %v10523_v24  ;;  %v2283_v18 = vpop.f32.mrb[135].mxu0  ;;  %v2660_v1 = vpop.f32.mrb[149].mxu1  ;;  %v3885_v52 = vor.u32 %v3883_v51, %v3881_v50  ;;  %v9040_v27 = vld [vmem:[%s9157_s26 + $0xc4] sm:$0xf] }
 0x22d   : > { %14839 = vst [vmem:[#allocation38_spill] sm:$0xff] %v10995_v0  ;;  %v11005_v12 = vadd.f32 %v2283_v18, %v10497_v55  ;;  %v11007_v53 = vpop.f32.mrb[150].mxu1  ;;  %v3895_v18 = vshll.u32 %v7935_v14, 16 }
 0x22e   : > { %14840 = vst [vmem:[#allocation21_spill] sm:$0xff] %v11001_v58  ;;  %8581 = vmatmul.mubr.bf16.gmra.mrb[240].mxu0 %v3866_v62  ;;  %v2663_v24 = vpop.f32.mrb[151].mxu1  ;;  %v7936_v58 = vcombine.low %v9040_v27, %v9041_v40  ;;  %v3890_v6 = vsel %vm555_vm2, %v3885_v52, %v3889_v13  ;;  %v9042_v27 = vld [vmem:[%s9157_s26 + $0xcc] sm:$0xf] }
 0x22f   : > { %14841 = vst [vmem:[#allocation39_spill] sm:$0xff] %v11005_v12  ;;  %8584 = vmatprep.mubr.bf16.mxu0 %v3874_v48  ;;  %v3891_v48 = vshrl.u32 %v7934_v47, 16  ;;  %v3897_v50 = vrot.slane %v3895_v18, 1  ;;  %v7937_v40 = vcombine.low %v9042_v27, %v9042_v27 }
 0x231   : > { %v8446_v0 = vpop.f32.mrb[136].mxu0  ;;  %v3893_v47 = vor.u32 %v3891_v48, %v3889_v13  ;;  %v3911_v18 = vshll.u32 %v7937_v40, 16  ;;  %v11052_v40 = vpop.permute.xlu1 %3245 }
 0x232   : > { %v11014_v1 = vadd.f32 %v8446_v0, %v10556_v37  ;;  %v2296_v55 = vpop.f32.mrb[137].mxu0  ;;  %v3899_v37 = vshrl.u32 %v7935_v14, 16  ;;  %v3903_v0 = vshll.u32 %v7936_v58, 16 }
 0x233   : > { %v11017_v62 = vadd.f32 %v2296_v55, %v10537_v38  ;;  %v8447_v59 = vpop.f32.mrb[138].mxu0  ;;  %v11020_v20 = vpop.f32.mrb[152].mxu1 }
 0x234   : > { %14842 = vst [vmem:[#allocation24_spill] sm:$0xff] %v11014_v1  ;;  %v11023_v30 = vadd.f32 %v8447_v59, %v10565_v33  ;;  %v2299_v51 = vpop.f32.mrb[139].mxu0  ;;  %v2668_v28 = vpop.f32.mrb[153].mxu1  ;;  %v3901_v33 = vor.u32 %v3899_v37, %v3897_v50  ;;  %v3905_v55 = vrot.slane %v3903_v0, 1 }
 0x235   : > { %14843 = vst [vmem:[#allocation40_spill] sm:$0xff] %v11017_v62  ;;  %v11027_v24 = vadd.f32 %v2299_v51, %v10546_v5  ;;  %v11029_v38 = vpop.f32.mrb[154].mxu1  ;;  %v3898_v51 = vsel %vm555_vm2, %v3893_v47, %v3897_v50  ;;  %v11050_v47 = vpop.permute.xlu0 %3235  ;;  %v14878_v62 = vld [vmem:[#allocation12_spill] sm:$0xff] }
 0x236   : > { %14844 = vst [vmem:[#allocation30_spill] sm:$0xff] %v11023_v30  ;;  %8585 = vmatmul.mubr.bf16.gmra.mrb[244].mxu0 %v3882_v45  ;;  %v2671_v22 = vpop.f32.mrb[155].mxu1  ;;  %v3907_v45 = vshrl.u32 %v7936_v58, 16  ;;  %v3913_v58 = vrot.slane %v3911_v18, 1 }
 0x237   : > { %14845 = vst [vmem:[#allocation25_spill] sm:$0xff] %v11027_v24  ;;  %8588 = vmatprep.mubr.bf16.mxu0 %v3890_v6  ;;  %v3906_v6 = vsel %vm555_vm2, %v3901_v33, %v3905_v55 }
 0x238   : > { %v3909_v50 = vor.u32 %v3907_v45, %v3905_v55 }
 0x239   : > { %v8450_v59 = vpop.f32.mrb[140].mxu0 }
 0x23a   : > { %v11033_v52 = vadd.f32 %v8450_v59, %v10596_v15  ;;  %v2312_v14 = vpop.f32.mrb[141].mxu0 }
 0x23b   : > { %v11036_v28 = vadd.f32 %v2312_v14, %v10576_v25  ;;  %v8451_v5 = vpop.f32.mrb[142].mxu0  ;;  %v11039_v22 = vpop.f32.mrb[156].mxu1  ;;  %v3914_v14 = vsel %vm555_vm2, %v3909_v50, %v3913_v58 }
 0x23c   : > { %14846 = vst [vmem:[#allocation42_spill] sm:$0xff] %v11033_v52  ;;  %v11042_v13 = vadd.f32 %v8451_v5, %v10602_v11  ;;  %v2315_v48 = vpop.f32.mrb[143].mxu0  ;;  %v2676_v37 = vpop.f32.mrb[157].mxu1 }
 0x23d   : > { %14847 = vst [vmem:[#allocation53_spill] sm:$0xff] %v11036_v28  ;;  %v11046_v15 = vadd.f32 %v2315_v48, %v10585_v32  ;;  %v11048_v0 = vpop.f32.mrb[158].mxu1  ;;  %v11073_v37 = vpop.permute.xlu1 %3250  ;;  %v14871_v28 = vld [vmem:[#allocation33_spill] sm:$0xff] }
 0x23e   : > { %14848 = vst [vmem:[#allocation41_spill] sm:$0xff] %v11042_v13  ;;  %8589 = vmatmul.mubr.bf16.gmra.mrb[248].mxu0 %v3898_v51  ;;  %v2679_v25 = vpop.f32.mrb[159].mxu1 }
 0x23f   : > { %14849 = vst [vmem:[#allocation54_spill] sm:$0xff] %v11046_v15  ;;  %8592 = vmatprep.mubr.bf16.mxu0 %v3906_v6  ;;  %v11071_v6 = vpop.permute.xlu0 %3240 }
 0x241   : > { %v8454_v27 = vpop.f32.mrb[144].mxu0 }
 0x242   : > { %v11055_v11 = vadd.f32 %v8454_v27, %v10633_v9  ;;  %v2328_v33 = vpop.f32.mrb[145].mxu0 }
 0x243   : > { %v11058_v59 = vadd.f32 %v2328_v33, %v10612_v56  ;;  %v8455_v32 = vpop.f32.mrb[146].mxu0  ;;  %v11061_v5 = vpop.f32.mrb[160].mxu1 }
 0x244   : > { %14850 = vst [vmem:[#allocation29_spill] sm:$0xff] %v11055_v11  ;;  %v11064_v55 = vadd.f32 %v8455_v32, %v10642_v19  ;;  %v2331_v51 = vpop.f32.mrb[147].mxu0  ;;  %v2684_v45 = vpop.f32.mrb[161].mxu1  ;;  %v14855_v19 = vld [vmem:[#allocation23_spill] sm:$0xff] }
 0x245   : > { %14851 = vst [vmem:[#allocation31_spill] sm:$0xff] %v11058_v59  ;;  %v11067_v18 = vadd.f32 %v2331_v51, %v10621_v23  ;;  %v11069_v48 = vpop.f32.mrb[162].mxu1  ;;  %v14857_v23 = vld [vmem:[#allocation28_spill] sm:$0xff]  ;;  %v14859_v45 = vld [vmem:[#allocation26_spill] sm:$0xff]  ;;  %v14863_v59 = vld [vmem:[#allocation5_spill] sm:$0xff] }
 0x246   : > { %14852 = vst [vmem:[#allocation27_spill] sm:$0xff] %v11064_v55  ;;  %8593 = vmatmul.mubr.bf16.gmra.mrb[252].mxu0 %v3914_v14  ;;  %v2687_v9 = vpop.f32.mrb[163].mxu1 }
 0x247   : > { %14853 = vst [vmem:[#allocation47_spill] sm:$0xff] %v11067_v18 }
 0x249   : > { %v8458_v56 = vpop.f32.mrb[148].mxu0 }
 0x24a   : > { %v11076_v25 = vadd.f32 %v8458_v56, %v10687_v10  ;;  %v2344_v50 = vpop.f32.mrb[149].mxu0  ;;  %v11091_v10 = vpop.permute.xlu0 %3255 }
 0x24b   : > { %v11079_v58 = vadd.f32 %v2344_v50, %v14855_v19  ;;  %v8459_v27 = vpop.f32.mrb[150].mxu0  ;;  %v11081_v33 = vpop.f32.mrb[164].mxu1  ;;  %v14861_v50 = vld [vmem:[#allocation32_spill] sm:$0xff] }
 0x24c   : > { %14854 = vst [vmem:[#allocation45_spill] sm:$0xff] %v11076_v25  ;;  %v11084_v32 = vadd.f32 %v8459_v27, %v14857_v23  ;;  %v2347_v14 = vpop.f32.mrb[151].mxu0  ;;  %v2692_v51 = vpop.f32.mrb[165].mxu1 }
 0x24d   : > { %14856 = vst [vmem:[#allocation48_spill] sm:$0xff] %v11079_v58  ;;  %v11087_v9 = vadd.f32 %v2347_v14, %v14859_v45  ;;  %v11089_v18 = vpop.f32.mrb[166].mxu1  ;;  %v11093_v25 = vpop.permute.xlu1 %3260  ;;  %v14865_v14 = vld [vmem:[#allocation9_spill] sm:$0xff] }
 0x24e   : > { %14858 = vst [vmem:[#allocation46_spill] sm:$0xff] %v11084_v32  ;;  %v2695_v55 = vpop.f32.mrb[167].mxu1  ;;  %v14867_v32 = vld [vmem:[#allocation7_spill] sm:$0xff] }
 0x24f   : > { %14860 = vst [vmem:[#allocation57_spill] sm:$0xff] %v11087_v9 }
 0x251   : > { %v8462_v56 = vpop.f32.mrb[152].mxu0 }
 0x252   : > { %v11096_v19 = vadd.f32 %v8462_v56, %v14861_v50  ;;  %v2360_v58 = vpop.f32.mrb[153].mxu0  ;;  %v11111_v56 = vpop.permute.xlu0 %3265 }
 0x253   : > { %v11099_v27 = vadd.f32 %v2360_v58, %v14863_v59  ;;  %v8463_v23 = vpop.f32.mrb[154].mxu0  ;;  %v11101_v51 = vpop.f32.mrb[168].mxu1  ;;  %v14869_v59 = vld [vmem:[#allocation44_spill] sm:$0xff] }
 0x254   : > { %14862 = vst [vmem:[#allocation61_spill] sm:$0xff] %v11096_v19  ;;  %v11104_v45 = vadd.f32 %v8463_v23, %v14865_v14  ;;  %v2363_v9 = vpop.f32.mrb[155].mxu0  ;;  %v2700_v55 = vpop.f32.mrb[169].mxu1 }
 0x255   : > { %14864 = vst [vmem:[#allocation58_spill] sm:$0xff] %v11099_v27  ;;  %v11107_v11 = vadd.f32 %v2363_v9, %v14867_v32  ;;  %v11109_v15 = vpop.f32.mrb[170].mxu1  ;;  %v11113_v19 = vpop.permute.xlu1 %3270 }
 0x256   : > { %14866 = vst [vmem:[#allocation51_spill] sm:$0xff] %v11104_v45  ;;  %v2703_v13 = vpop.f32.mrb[171].mxu1 }
 0x257   : > { %14868 = vst [vmem:[#allocation49_spill] sm:$0xff] %v11107_v11  ;;  %v14874_v11 = vld [vmem:[#allocation43_spill] sm:$0xff] }
 0x259   : > { %v8466_v50 = vpop.f32.mrb[156].mxu0 }
 0x25a   : > { %v11116_v58 = vadd.f32 %v8466_v50, %v14869_v59  ;;  %v2376_v27 = vpop.f32.mrb[157].mxu0  ;;  %v11131_v50 = vpop.permute.xlu0 %3275 }
 0x25b   : > { %v11119_v23 = vadd.f32 %v2376_v27, %v14871_v28  ;;  %v8467_v14 = vpop.f32.mrb[158].mxu0  ;;  %v11121_v55 = vpop.f32.mrb[172].mxu1 }
 0x25c   : > { %14870 = vst [vmem:[#allocation52_spill] sm:$0xff] %v11116_v58  ;;  %v11124_v32 = vadd.f32 %v8467_v14, %v10851_v7  ;;  %v2379_v9 = vpop.f32.mrb[159].mxu0  ;;  %v2708_v13 = vpop.f32.mrb[173].mxu1  ;;  %v11139_v7 = vld [vmem:[%s14372_s2] ss:$0 sm:$0xff] }
 0x25d   : > { %14872 = vst [vmem:[#allocation65_spill] sm:$0xff] %v11119_v23  ;;  %v11127_v45 = vadd.f32 %v2379_v9, %v14874_v11  ;;  %v11129_v52 = vpop.f32.mrb[174].mxu1  ;;  %v11133_v58 = vpop.permute.xlu1 %3280 }
 0x25e   : > { %14873 = vst [vmem:[#allocation50_spill] sm:$0xff] %v11124_v32  ;;  %v2711_v24 = vpop.f32.mrb[175].mxu1 }
 0x25f   : > { %14875 = vst [vmem:[#allocation63_spill] sm:$0xff] %v11127_v45 }
 0x261   : > { %v8486_v59 = vpop.f32.mrb[160].mxu0 }
 0x262   : > { %v2852_v28 = vadd.f32 %v8486_v59, %v10903_v54  ;;  %v2843_v27 = vpop.f32.mrb[161].mxu0 }
 0x263   : > { %v2844_v14 = vadd.f32 %v2843_v27, %v10876_v2  ;;  %v8487_v11 = vpop.f32.mrb[162].mxu0  ;;  %v11142_v9 = vpop.f32.mrb[176].mxu1 }
 0x264   : > { %14876 = vst [vmem:[#allocation66_spill] sm:$0xff] %v11142_v9  ;;  %v3036_v24 = vadd.f32 %v2852_v28, %v10869_v26  ;;  %v2855_v13 = vadd.f32 %v8487_v11, %v10913_v3  ;;  %v2846_v45 = vpop.f32.mrb[163].mxu0  ;;  %v2716_v32 = vpop.f32.mrb[177].mxu1  ;;  %v11155_v26 = vrot.slane %v14682_v21, 1 }
 0x265   : > { %v3034_v23 = vadd.f32 %v2844_v14, %v10872_v63  ;;  %v2847_v54 = vadd.f32 %v2846_v45, %v10889_v57  ;;  %v11148_v59 = vpop.f32.mrb[178].mxu1  ;;  %v11158_v63 = vpop.permute.xlu0 %3285 }
 0x266   : > { %14877 = vst [vmem:[#allocation64_spill] sm:$0xff] %v11148_v59  ;;  %v3091_v30 = vadd.f32 %v11139_v7, %v3036_v24  ;;  %v3037_v1 = vadd.f32 %v2855_v13, %v14878_v62  ;;  %v2719_v2 = vpop.f32.mrb[179].mxu1  ;;  %14879 = vst [vmem:[#allocation59_spill] sm:$0xff] %v11155_v26  ;;  %v11161_v14 = vpop.permute.xlu1 %3290 }
 0x267   : > { %v3089_v27 = vadd.f32 %v11139_v7, %v3034_v23  ;;  %v3035_v9 = vadd.f32 %v2847_v54, %v10887_v34 }
 0x268   : > { %v3139_v3 = vmax.f32 %v3091_v30, 0.0  ;;  %v3092_v32 = vadd.f32 %v11139_v7, %v3037_v1  ;;  %v4603_v30 = vshrl.u32 %v11155_v26, 16  ;;  %v4606_v1 = vshll.u32 %v11155_v26, 16 }
 0x269   : > { %v3137_v57 = vmax.f32 %v3089_v27, 0.0  ;;  %v3090_v45 = vadd.f32 %v11139_v7, %v3035_v9  ;;  %v8490_v28 = vpop.f32.mrb[164].mxu0 }
 0x26a   : > { %v3140_v62 = vmax.f32 %v3092_v32, 0.0  ;;  %v2868_v11 = vadd.f32 %v8490_v28, %v10954_v44  ;;  %v2859_v23 = vpop.f32.mrb[165].mxu0  ;;  %v3475_v2 = vmul.f32 %v11052_v40, %v3139_v3 }
 0x26b   : > { %v3138_v24 = vmax.f32 %v3090_v45, 0.0  ;;  %v2860_v34 = vadd.f32 %v2859_v23, %v10932_v43  ;;  %v8491_v13 = vpop.f32.mrb[166].mxu0  ;;  %v11167_v54 = vpop.f32.mrb[180].mxu1  ;;  %v3473_v45 = vmul.f32 %v11050_v47, %v3137_v57 }
 0x26c   : > { %14880 = vst [vmem:[#allocation55_spill] sm:$0xff] %v11167_v54  ;;  %v3476_v9 = vmul.f32 %v11073_v37, %v3140_v62  ;;  %v3040_v27 = vadd.f32 %v2868_v11, %v10896_v60  ;;  %v2871_v32 = vadd.f32 %v8491_v13, %v10963_v8  ;;  %v2862_v44 = vpop.f32.mrb[167].mxu0  ;;  %v2724_v28 = vpop.f32.mrb[181].mxu1  ;;  %v4608_v62 = vrot.slane %v4606_v1, 4 }
 0x26d   : > { %v3474_v43 = vmul.f32 %v11071_v6, %v3138_v24  ;;  %v3038_v23 = vadd.f32 %v2860_v34, %v10899_v42  ;;  %v2863_v59 = vadd.f32 %v2862_v44, %v10941_v29  ;;  %v11177_v12 = vpop.f32.mrb[182].mxu1  ;;  %v4605_v42 = vrot.slane %v4603_v30, 3  ;;  %v11186_v29 = vpop.permute.xlu0 %3295 }
 0x26e   : > { %v11179_v54 = vpack.c.bf16 %v3476_v9, %v3475_v2  ;;  %v3095_v40 = vadd.f32 %v11139_v7, %v3040_v27  ;;  %v3041_v60 = vadd.f32 %v2871_v32, %v10906_v49  ;;  %v2727_v37 = vpop.f32.mrb[183].mxu1  ;;  %v11193_v2 = vpop.permute.xlu1 %3300 }
 0x26f   : > { %v3525_v8 = vpack.c.bf16 %v3474_v43, %v3473_v45  ;;  %v3093_v3 = vadd.f32 %v11139_v7, %v3038_v23  ;;  %v3039_v47 = vadd.f32 %v2863_v59, %v10911_v31 }
 0x270   : > { %v14445_v6 = vrot.slane %v11179_v54, 1  ;;  %v3143_v57 = vmax.f32 %v3095_v40, 0.0  ;;  %v3096_v49 = vadd.f32 %v11139_v7, %v3041_v60  ;;  %v14882_v40 = vld [vmem:[#allocation13_spill] sm:$0xff] }
 0x271   : > { %v11188_v11 = vshll.u32 %v3525_v8, 16  ;;  %v11190_v24 = vshrl.u32 %v3525_v8, 16  ;;  %v3141_v34 = vmax.f32 %v3093_v3, 0.0  ;;  %v8494_v13 = vpop.f32.mrb[168].mxu0  ;;  %v3094_v31 = vadd.f32 %v11139_v7, %v3039_v47  ;;  %v14885_v3 = vld [vmem:[#allocation35_spill] sm:$0xff] }
 0x272   : > { %v3479_v9 = vmul.f32 %v11111_v56, %v3143_v57  ;;  %v2884_v59 = vadd.f32 %v8494_v13, %v10998_v39  ;;  %v2875_v30 = vpop.f32.mrb[169].mxu0  ;;  %v4494_v1 = vrot.slane %v3525_v8, 1  ;;  %v3144_v44 = vmax.f32 %v3096_v49, 0.0  ;;  %v14886_v13 = vld [vmem:[#allocation16_spill] sm:$0xff] }
 0x273   : > { %14881 = vst [vmem:[#allocation60_spill] sm:$0xff] %v11190_v24  ;;  %v14444_v27 = vrot.slane %v11190_v24, 7  ;;  %v3477_v32 = vmul.f32 %v11091_v10, %v3141_v34  ;;  %v2876_v28 = vadd.f32 %v2875_v30, %v10976_v35  ;;  %v8495_v45 = vpop.f32.mrb[170].mxu0  ;;  %v11201_v43 = vpop.f32.mrb[184].mxu1  ;;  %v3142_v23 = vmax.f32 %v3094_v31, 0.0 }
 0x274   : > { %v3044_v60 = vadd.f32 %v2884_v59, %v14882_v40  ;;  %v2887_v56 = vadd.f32 %v8495_v45, %v11007_v53  ;;  %v2878_v37 = vpop.f32.mrb[171].mxu0  ;;  %v11207_v39 = vsel %vm803_vm0, %v11155_v26, %v4494_v1  ;;  %v2732_v8 = vpop.f32.mrb[185].mxu1  ;;  %v3480_v35 = vmul.f32 %v11113_v19, %v3144_v44 }
 0x275   : > { %14883 = vst [vmem:[#allocation11_spill] sm:$0xff] %v11207_v39  ;;  %v11212_v10 = vor.u32 %v14444_v27, %v11188_v11  ;;  %v3042_v47 = vadd.f32 %v2876_v28, %v14885_v3  ;;  %v2879_v57 = vadd.f32 %v2878_v37, %v10985_v4  ;;  %v11217_v34 = vpop.f32.mrb[186].mxu1  ;;  %v3478_v53 = vmul.f32 %v11093_v25, %v3142_v23 }
 0x276   : > { %v3099_v49 = vadd.f32 %v11139_v7, %v3044_v60  ;;  %v3045_v31 = vadd.f32 %v2887_v56, %v14886_v13  ;;  %v11225_v59 = vsel %vm803_vm0, %v4494_v1, %v14445_v6  ;;  %v2735_v30 = vpop.f32.mrb[187].mxu1  ;;  %v11227_v45 = vpack.c.bf16 %v3480_v35, %v3479_v9  ;;  %v3306_v60 = vpop.permute.xlu0 %3305 }
 0x277   : > { %14884 = vst [vmem:[#allocation56_spill] sm:$0xff] %v11212_v10  ;;  %14887 = vst [vmem:[#allocation8_spill] sm:$0xff] %v11225_v59  ;;  %v3097_v19 = vadd.f32 %v11139_v7, %v3042_v47  ;;  %v3043_v4 = vadd.f32 %v2879_v57, %v10939_v17  ;;  %v14441_v44 = vshrl.u32 %v11207_v39, 16  ;;  %v11232_v28 = vpack.c.bf16 %v3478_v53, %v3477_v32  ;;  %v3311_v1 = vpop.permute.xlu1 %3310 }
 0x278   : > { %v3147_v25 = vmax.f32 %v3099_v49, 0.0  ;;  %v3100_v23 = vadd.f32 %v11139_v7, %v3045_v31  ;;  %v4631_v40 = vshll.u32 %v11207_v39, 16  ;;  %v11236_v35 = vor.u32 %v4608_v62, %v4605_v42 }
 0x279   : > { %v8498_v56 = vpop.f32.mrb[172].mxu0  ;;  %v3145_v37 = vmax.f32 %v3097_v19, 0.0  ;;  %v3098_v17 = vadd.f32 %v11139_v7, %v3043_v4  ;;  %v4630_v31 = vrot.slane %v14441_v44, 3  ;;  %v14889_v4 = vld [vmem:[#allocation36_spill] sm:$0xff] }
 0x27a   : > { %v3148_v8 = vmax.f32 %v3100_v23, 0.0  ;;  %v2891_v9 = vpop.f32.mrb[173].mxu0  ;;  %14888 = vst [vmem:[#allocation14_spill] sm:$0xff] %v11236_v35  ;;  %v3483_v3 = vmul.f32 %v11158_v63, %v3147_v25  ;;  %v2900_v32 = vadd.f32 %v8498_v56, %v11039_v22  ;;  %v4633_v42 = vrot.slane %v4631_v40, 4 }
 0x27b   : > { %v2892_v47 = vadd.f32 %v2891_v9, %v11020_v20  ;;  %v8499_v57 = vpop.f32.mrb[174].mxu0  ;;  %v11242_v53 = vpop.f32.mrb[188].mxu1  ;;  %v3146_v63 = vmax.f32 %v3098_v17, 0.0  ;;  %v14443_v20 = vshrl.u32 %v11225_v59, 16  ;;  %v3481_v40 = vmul.f32 %v11131_v50, %v3145_v37 }
 0x27c   : > { %v3484_v49 = vmul.f32 %v11161_v14, %v3148_v8  ;;  %v2903_v13 = vadd.f32 %v8499_v57, %v11048_v0  ;;  %v2894_v62 = vpop.f32.mrb[175].mxu0  ;;  %v2740_v30 = vpop.f32.mrb[189].mxu1  ;;  %v3048_v19 = vadd.f32 %v2900_v32, %v10948_v61  ;;  %v14890_v14 = vld [vmem:[#allocation17_spill] sm:$0xff]  ;;  %v4634_v0 = vor.u32 %v4633_v42, %v4630_v31 }
 0x27d   : > { %v3046_v22 = vadd.f32 %v2892_v47, %v14889_v4  ;;  %v11251_v25 = vpop.f32.mrb[190].mxu1  ;;  %v14442_v8 = vshll.u32 %v11225_v59, 16  ;;  %v3482_v17 = vmul.f32 %v11133_v58, %v3146_v63  ;;  %v11264_v57 = vpop.permute.xlu0 %3315  ;;  %v2895_v63 = vadd.f32 %v2894_v62, %v11029_v38 }
 0x27e   : > { %v11253_v23 = vpack.c.bf16 %v3484_v49, %v3483_v3  ;;  %v3049_v56 = vadd.f32 %v2903_v13, %v14890_v14  ;;  %v2743_v9 = vpop.f32.mrb[191].mxu1  ;;  %v3103_v61 = vadd.f32 %v11139_v7, %v3048_v19  ;;  %v4652_v3 = vrot.slane %v14443_v20, 3  ;;  %v11273_v31 = vpop.permute.xlu1 %3320 }
 0x27f   : > { %v3101_v32 = vadd.f32 %v11139_v7, %v3046_v22  ;;  %v11267_v49 = vshll.u32 %v11179_v54, 16  ;;  %v11269_v13 = vpack.c.bf16 %v3482_v17, %v3481_v40  ;;  %v4635_v58 = vsel %vm4594_vm3, %v11236_v35, %v4634_v0 }
 0x280   : > { %v3104_v47 = vadd.f32 %v11139_v7, %v3049_v56  ;;  %v3151_v50 = vmax.f32 %v3103_v61, 0.0  ;;  %v4655_v30 = vrot.slane %v14442_v8, 4  ;;  %8612 = vmatprep.mubr.bf16.mxu0 %v4635_v58  ;;  %v4258_v19 = vrot.slane %v11188_v11, 1 }
 0x281   : > { %14891 = vst [vmem:[#allocation10_spill] sm:$0xff] %v11267_v49  ;;  %v8502_v37 = vpop.f32.mrb[176].mxu0  ;;  %v3149_v14 = vmax.f32 %v3101_v32, 0.0  ;;  %v4595_v56 = vrot.slane %v14682_v21, 3  ;;  %v4596_v9 = vrot.slane %v14682_v21, 4  ;;  %v3047_v44 = vadd.f32 %v2895_v63, %v10961_v41 }
 0x282   : > { %v3152_v42 = vmax.f32 %v3104_v47, 0.0  ;;  %v2907_v4 = vpop.f32.mrb[177].mxu0  ;;  %v3487_v22 = vmul.f32 %v3306_v60, %v3151_v50  ;;  %v11283_v47 = vor.u32 %v4655_v30, %v4652_v3  ;;  %v11288_v38 = vsel %vm555_vm2, %v11155_v26, %v4258_v19  ;;  %v8948_v60 = vld [vmem:[%s14373_s3 + $0xc0] sm:$0xff]  }
 0x283   : > { %v8503_v40 = vpop.f32.mrb[178].mxu0  ;;  %v11281_v17 = vpop.f32.mrb[192].mxu1  ;;  %14892 = vst [vmem:[#allocation4_spill] sm:$0xff] %v11288_v38  ;;  %v14446_v50 = vshrl.u32 %v11288_v38, 16  ;;  %v4614_v58 = vshll.u32 %v11288_v38, 16  ;;  %v14449_v3 = vrot.slane %v11267_v49, 1  ;;  %v3102_v63 = vadd.f32 %v11139_v7, %v3047_v44 }
 0x284   : > { %v3488_v61 = vmul.f32 %v3311_v1, %v3152_v42  ;;  %v11290_v62 = vpop.f32.mrb[179].mxu0  ;;  %v2748_v32 = vpop.f32.mrb[193].mxu1  ;;  %v4262_v1 = vor.u32 %v11190_v24, %v4258_v19  ;;  %v4657_v30 = vsel %vm4594_vm3, %v4634_v0, %v11283_v47  ;;  %v2916_v8 = vadd.f32 %v8502_v37, %v11081_v33 }
 0x285   : > { %v11299_v41 = vpop.f32.mrb[194].mxu1  ;;  %8613 = vmatmul.mubr.bf16.vlgmr.msra.gmra.mrb[0].mxu0 %v4657_v30  ;;  %v4613_v20 = vrot.slane %v14446_v50, 3  ;;  %v4616_v27 = vrot.slane %v4614_v58, 4  ;;  %v3485_v0 = vmul.f32 %v11186_v29, %v3149_v14  ;;  %v3150_v44 = vmax.f32 %v3102_v63, 0.0  ;;  %v3326_v33 = vpop.permute.xlu0 %3325  ;;  %v14895_v14 = vld [vmem:[#allocation37_spill] sm:$0xff] }
 0x286   : > { %v11301_v42 = vpack.c.bf16 %v3488_v61, %v3487_v22  ;;  %v2751_v32 = vpop.f32.mrb[195].mxu1  ;;  %v11312_v19 = vsel %vm555_vm2, %v4262_v1, %v14449_v3  ;;  %v2908_v22 = vadd.f32 %v2907_v4, %v11061_v5  ;;  %v11317_v6 = vor.u32 %v4596_v9, %v4595_v56  ;;  %6352 = vmatpush1.bf16.msra.mxu0 %v8948_v60  ;;  %v8949_v5 = vld [vmem:[%s14373_s3 + $0xc8] sm:$0xff]   ;;  %v3331_v29 = vpop.permute.xlu1 %3330 }
 0x287   : > { %14893 = vst [vmem:[#allocation3_spill] sm:$0xff] %v11312_v19  ;;  %v4617_v37 = vor.u32 %v4616_v27, %v4613_v20  ;;  %v14448_v30 = vshrl.u32 %v11312_v19, 16  ;;  %v14447_v58 = vshll.u32 %v11312_v19, 16  ;;  %v3052_v32 = vadd.f32 %v2916_v8, %v10970_v16  ;;  %6353 = vmatprep.subr.bf16.mxu0 %v14682_v21 }
 0x288   : > { %14894 = vst [vmem:[#allocation6_spill] sm:$0xff] %v11317_v6  ;;  %v3486_v4 = vmul.f32 %v11193_v2, %v3150_v44  ;;  %v3050_v56 = vadd.f32 %v2908_v22, %v14895_v14  ;;  %v2919_v27 = vadd.f32 %v8503_v40, %v11089_v18  ;;  %v4498_v20 = vrot.slane %v11232_v28, 1  ;;  %v8947_v18 = vld [vmem:[%s14373_s3 + $0x148] sm:$0xff]  }
 0x289   : > { %v11322_v1 = vpop.f32.mrb[180].mxu0  ;;  %v4618_v16 = vsel %vm4594_vm3, %v11236_v35, %v4617_v37  ;;  %v4643_v8 = vrot.slane %v14448_v30, 3  ;;  %v4646_v60 = vrot.slane %v14447_v58, 4  ;;  %v3107_v63 = vadd.f32 %v11139_v7, %v3052_v32  ;;  %v14896_v14 = vld [vmem:[#allocation20_spill] sm:$0xff]  ;;  %v11389_v59 = vpop.permute.xlu0 %3335 }
 0x28a   : > { %v11332_v9 = vpop.f32.mrb[181].mxu0  ;;  %v11348_v22 = vpack.c.bf16 %v3486_v4, %v3485_v0  ;;  %5390 = vmatprep.mubr.bf16.mxu1 %v4618_v16  ;;  %v11351_v44 = vadd.f32 %v11139_v7, %v3050_v56  ;;  %v3053_v50 = vadd.f32 %v2919_v27, %v14896_v14  ;;  %v14897_v58 = vrot.slane %v11179_v54, 1  ;;  %6354 = vmatpush1.bf16.msra.mxu0 %v8949_v5 }
 0x28b   : > { %v11341_v2 = vpop.f32.mrb[182].mxu0  ;;  %v11346_v40 = vpop.f32.mrb[196].mxu1  ;;  %5391 = vmatmul.mubr.bf16.vlgmr.msra.gmra.mrb[224].mxu1 %v11317_v6  ;;  %v11360_v61 = vor.u32 %v4646_v60, %v4643_v8  ;;  %v3155_v35 = vmax.f32 %v3107_v63, 0.0  ;;  %v14898_v0 = vrot.slane %v11227_v45, 1  ;;  %v11376_v16 = vshll.u32 %v11232_v28, 16  ;;  %v14902_v8 = vld [vmem:[#allocation34_spill] sm:$0xff]  ;;  %6355 = vmatprep.subr.bf16.mxu0 %v14682_v21 }
 0x28c   : > { %v4499_v32 = vsel %vm803_vm0, %v14897_v58, %v4498_v20  ;;  %v11357_v30 = vpop.f32.mrb[183].mxu0  ;;  %v2756_v3 = vpop.f32.mrb[197].mxu1  ;;  %v8950_v58 = vld [vmem:[%s14373_s3 + $0xd0] sm:$0xff]   ;;  %8661 = vmatpush3.bf16.msra.mxu1 %v14902_v8  ;;  %v3108_v60 = vadd.f32 %v11139_v7, %v3053_v50  ;;  %v3153_v63 = vmax.f32 %v11351_v44, 0.0  ;;  %v2911_v44 = vadd.f32 %v11290_v62, %v11069_v48 }
 0x28d   : > { %v11365_v4 = vsel %vm803_vm0, %v4498_v20, %v14898_v0  ;;  %v4672_v56 = vshrl.u32 %v4499_v32, 16  ;;  %v11367_v27 = vpop.f32.mrb[198].mxu1  ;;  %v11373_v3 = vshrl.u32 %v11179_v54, 16  ;;  %14901 = vst [vmem:[#allocation15_spill] sm:$0xff] %v11376_v16  ;;  %v4648_v5 = vsel %vm4594_vm3, %v4617_v37, %v11360_v61  ;;  %8662 = vmatprep.subr.bf16.mxu1 %v8947_v18  ;;  %v8953_v54 = vld [vmem:[%s14373_s3 + $0x150] sm:$0xff]  }
 0x28e   : > { %14899 = vst [vmem:[#allocation19_spill] sm:$0xff] %v11365_v4  ;;  %v2759_v20 = vpop.f32.mrb[199].mxu1  ;;  %v4675_v0 = vshll.u32 %v4499_v32, 16  ;;  %5398 = vmatprep.mubr.bf16.mxu1 %v4648_v5  ;;  %v3491_v39 = vmul.f32 %v3326_v33, %v3155_v35  ;;  %v3156_v8 = vmax.f32 %v3108_v60, 0.0  ;;  %v14459_v50 = vshrl.u32 %v11365_v4, 16  ;;  %6356 = vmatpush1.bf16.msra.mxu0 %v8950_v58  ;;  %v8951_v35 = vld [vmem:[%s14373_s3 + $0xd8] sm:$0xff]   ;;  %v11401_v33 = vpop.permute.xlu1 %3340 }
 0x28f   : > { %14900 = vst [vmem:[#allocation62_spill] sm:$0xff] %v11373_v3  ;;  %v4674_v14 = vrot.slane %v4672_v56, 3  ;;  %v14460_v20 = vshll.u32 %v11365_v4, 16  ;;  %v11391_v37 = vrot.slane %v4672_v56, 7  ;;  %v4636_v32 = vrot.slane %v11190_v24, 3  ;;  %6357 = vmatprep.subr.bf16.mxu0 %v14682_v21 }
 0x290   : > { %v4677_v26 = vrot.slane %v4675_v0, 4  ;;  %v3492_v60 = vmul.f32 %v3331_v29, %v3156_v8  ;;  %v4696_v5 = vrot.slane %v14459_v50, 3  ;;  %v4637_v48 = vrot.slane %v11188_v11, 4  ;;  %8663 = vmatpush3.bf16.msra.mxu1 %v8947_v18 }
 0x291   : > { %14903 = vst [vmem:[#allocation22_spill] sm:$0xff] %v11391_v37  ;;  %v11396_v10 = vpop.f32.mrb[184].mxu0  ;;  %v4699_v56 = vrot.slane %v14460_v20, 4  ;;  %v11412_v24 = vor.u32 %v11391_v37, %v4675_v0  ;;  %v3051_v38 = vadd.f32 %v2911_v44, %v10983_v36  ;;  %v14905_v29 = vrot.slane %v11267_v49, 1  ;;  %8664 = vmatprep.subr.bf16.mxu1 %v8953_v54  ;;  %v8960_v0 = vld [vmem:[%s14373_s3 + $0x158] sm:$0xff]  }
 0x292   : > { %v11408_v62 = vpop.f32.mrb[185].mxu0  ;;  %v4678_v58 = vor.u32 %v4677_v26, %v4674_v14  ;;  %v11422_v11 = vpack.c.bf16 %v3492_v60, %v3491_v39  ;;  %v11426_v4 = vor.u32 %v4637_v48, %v4636_v32  ;;  %v14465_v26 = vrot.slane %v11376_v16, 1  ;;  %6358 = vmatpush1.bf16.msra.mxu0 %v8951_v35  ;;  %v14909_v35 = vld [vmem:[#allocation38_spill] sm:$0xff] }
 0x293   : > { %14904 = vst [vmem:[#allocation18_spill] sm:$0xff] %v11412_v24  ;;  %v4270_v8 = vor.u32 %v11373_v3, %v14905_v29  ;;  %v11418_v50 = vpop.f32.mrb[186].mxu0  ;;  %v11420_v20 = vpop.f32.mrb[200].mxu1  ;;  %v11424_v18 = vor.u32 %v4699_v56, %v4696_v5  ;;  %v3106_v29 = vadd.f32 %v11139_v7, %v3051_v38  ;;  %v2932_v39 = vadd.f32 %v11322_v1, %v11121_v55  ;;  %v8952_v5 = vld [vmem:[%s14373_s3 + $0xe0] sm:$0xff]  }
 0x294   : > { %v11429_v14 = vpop.f32.mrb[187].mxu0  ;;  %v2764_v36 = vpop.f32.mrb[201].mxu1  ;;  %v4679_v44 = vsel %vm4594_vm3, %v11283_v47, %v4678_v58  ;;  %v2924_v32 = vadd.f32 %v11332_v9, %v11101_v51  ;;  %v14466_v56 = vrot.slane %v11253_v23, 1  ;;  %v3489_v48 = vmul.f32 %v11264_v57, %v3153_v63  ;;  %6359 = vmatprep.subr.bf16.mxu0 %v14682_v21  ;;  %8665 = vmatpush3.bf16.msra.mxu1 %v8953_v54  ;;  %v14916_v24 = vld [vmem:[#allocation39_spill] sm:$0xff] }
 0x295   : > { %v11441_v60 = vpop.f32.mrb[202].mxu1  ;;  %v11450_v47 = vsel %vm4594_vm3, %v4678_v58, %v11424_v18  ;;  %8616 = vmatprep.mubr.bf16.mxu0 %v4679_v44  ;;  %v3154_v51 = vmax.f32 %v3106_v29, 0.0  ;;  %v4639_v38 = vsel %vm4594_vm3, %v11317_v6, %v11426_v4  ;;  %v11460_v1 = vsel %vm555_vm2, %v4270_v8, %v14465_v26  ;;  %8666 = vmatprep.subr.bf16.mxu1 %v8960_v0  ;;  %v3346_v44 = vpop.permute.xlu0 %3345 }
 0x296   : > { %14906 = vst [vmem:[#allocation23_spill] sm:$0xff] %v11441_v60  ;;  %14907 = vst [vmem:[#allocation28_spill] sm:$0xff] %v11450_v47  ;;  %v2767_v55 = vpop.f32.mrb[203].mxu1  ;;  %8617 = vmatmul.mubr.bf16.gmra.mrb[4].mxu0 %v11450_v47  ;;  %v3056_v57 = vadd.f32 %v2932_v39, %v10992_v46  ;;  %5399 = vmatmul.mubr.bf16.gmra.mrb[228].mxu1 %v4639_v38  ;;  %v14463_v9 = vshrl.u32 %v11460_v1, 16  ;;  %v14464_v63 = vshll.u32 %v11460_v1, 16  ;;  %v8954_v39 = vld [vmem:[%s14373_s3 + $0xe8] sm:$0xff]  }
 0x297   : > { %14908 = vst [vmem:[#allocation26_spill] sm:$0xff] %v11460_v1  ;;  %v3054_v58 = vadd.f32 %v2924_v32, %v14909_v35  ;;  %v2935_v36 = vadd.f32 %v11341_v2, %v11129_v52  ;;  %v3490_v29 = vmul.f32 %v11273_v31, %v3154_v51  ;;  %v4502_v55 = vrot.slane %v11269_v13, 1  ;;  %6360 = vmatpush1.bf16.msra.mxu0 %v8952_v5  ;;  %v3351_v32 = vpop.permute.xlu1 %3350  ;;  %v14910_v51 = vld [vmem:[#allocation21_spill] sm:$0xff] }
 0x298   : > { %v3111_v8 = vadd.f32 %v11139_v7, %v3056_v57  ;;  %v2927_v46 = vadd.f32 %v11357_v30, %v11109_v15  ;;  %v4665_v52 = vrot.slane %v14463_v9, 3  ;;  %v4668_v31 = vrot.slane %v14464_v63, 4  ;;  %6361 = vmatprep.subr.bf16.mxu0 %v14682_v21  ;;  %8667 = vmatpush3.bf16.msra.mxu1 %v8960_v0  ;;  %v8955_v0 = vld [vmem:[%s14373_s3 + $0xf0] sm:$0xff]  }
 0x299   : > { %v11473_v54 = vpop.f32.mrb[188].mxu0  ;;  %v3109_v2 = vadd.f32 %v11139_v7, %v3054_v58  ;;  %v3057_v38 = vadd.f32 %v2935_v36, %v14910_v51  ;;  %v11487_v15 = vpack.c.bf16 %v3490_v29, %v3489_v48  ;;  %v14911_v5 = vrot.slane %v11227_v45, 1 }
 0x29a   : > { %v11484_v57 = vpop.f32.mrb[189].mxu0  ;;  %v3159_v30 = vmax.f32 %v3111_v8, 0.0  ;;  %v11495_v9 = vsel %vm803_vm0, %v4502_v55, %v14466_v56  ;;  %v11501_v36 = vor.u32 %v4668_v31, %v4665_v52  ;;  %v11510_v26 = vshrl.u32 %v11232_v28, 16 }
 0x29b   : > { %v4503_v35 = vsel %vm803_vm0, %v14911_v5, %v4502_v55  ;;  %14912 = vst [vmem:[#allocation32_spill] sm:$0xff] %v11495_v9  ;;  %v11497_v63 = vpop.f32.mrb[190].mxu0  ;;  %v11499_v58 = vpop.f32.mrb[204].mxu1  ;;  %v3112_v48 = vadd.f32 %v11139_v7, %v3057_v38  ;;  %v11507_v5 = vshll.u32 %v11227_v45, 16  ;;  %v3157_v55 = vmax.f32 %v3109_v2, 0.0  ;;  %6362 = vmatpush1.bf16.msra.mxu0 %v8954_v39 }
 0x29c   : > { %v4716_v29 = vshrl.u32 %v4503_v35, 16  ;;  %v11504_v8 = vpop.f32.mrb[191].mxu0  ;;  %v2772_v51 = vpop.f32.mrb[205].mxu1  ;;  %14913 = vst [vmem:[#allocation5_spill] sm:$0xff] %v11510_v26  ;;  %v4719_v56 = vshll.u32 %v4503_v35, 16  ;;  %v4670_v52 = vsel %vm4594_vm3, %v11360_v61, %v11501_v36  ;;  %v3495_v31 = vmul.f32 %v3346_v44, %v3159_v30  ;;  %6363 = vmatprep.subr.bf16.mxu0 %v14682_v21 }
 0x29d   : > { %v11512_v6 = vpop.f32.mrb[206].mxu1  ;;  %v3160_v38 = vmax.f32 %v3112_v48, 0.0  ;;  %5406 = vmatprep.mubr.bf16.mxu1 %v4670_v52  ;;  %v14476_v2 = vshrl.u32 %v11495_v9, 16  ;;  %v14475_v39 = vshll.u32 %v11495_v9, 16  ;;  %v3055_v1 = vadd.f32 %v2927_v46, %v14916_v24  ;;  %v11528_v44 = vpop.permute.xlu0 %3355  ;;  %v8956_v24 = vld [vmem:[%s14373_s3 + $0xf8] sm:$0xff]  }
 0x29e   : > { %14914 = vst [vmem:[#allocation9_spill] sm:$0xff] %v11512_v6  ;;  %v4718_v51 = vrot.slane %v4716_v29, 3  ;;  %v2775_v47 = vpop.f32.mrb[207].mxu1  ;;  %v4721_v28 = vrot.slane %v4719_v56, 4  ;;  %v11523_v35 = vrot.slane %v4716_v29, 7  ;;  %v4658_v19 = vrot.slane %v11373_v3, 3  ;;  %v11542_v46 = vpop.permute.xlu1 %3360 }
 0x29f   : > { %v3496_v37 = vmul.f32 %v3351_v32, %v3160_v38  ;;  %v4659_v61 = vrot.slane %v11267_v49, 4  ;;  %v4740_v30 = vrot.slane %v14476_v2, 3  ;;  %v4743_v48 = vrot.slane %v14475_v39, 4  ;;  %6364 = vmatpush1.bf16.msra.mxu0 %v8955_v0 }
 0x2a0   : > { %14915 = vst [vmem:[#allocation7_spill] sm:$0xff] %v11523_v35  ;;  %v4722_v47 = vor.u32 %v4721_v28, %v4718_v51  ;;  %v11535_v52 = vor.u32 %v11523_v35, %v4719_v56  ;;  %v3110_v38 = vadd.f32 %v11139_v7, %v3055_v1  ;;  %v14918_v28 = vrot.slane %v11376_v16, 1  ;;  %6365 = vmatprep.subr.bf16.mxu0 %v14682_v21 }
 0x2a1   : > { %v11537_v29 = vpop.f32.mrb[192].mxu0  ;;  %v11544_v32 = vpack.c.bf16 %v3496_v37, %v3495_v31  ;;  %v11547_v51 = vor.u32 %v4659_v61, %v4658_v19  ;;  %v11559_v2 = vor.u32 %v4743_v48, %v4740_v30  ;;  %v14478_v37 = vrot.slane %v11507_v5, 1  ;;  %v14920_v31 = vld [vmem:[#allocation55_spill] sm:$0xff]  ;;  %v3366_v9 = vpop.permute.xlu0 %3365 }
 0x2a2   : > { %14917 = vst [vmem:[#allocation44_spill] sm:$0xff] %v11535_v52  ;;  %v4278_v56 = vor.u32 %v11510_v26, %v14918_v28  ;;  %v11552_v39 = vpop.f32.mrb[193].mxu0  ;;  %v11557_v0 = vsel %vm4594_vm3, %v11424_v18, %v4722_v47  ;;  %v2948_v19 = vadd.f32 %v11396_v10, %v14920_v31  ;;  %v3493_v35 = vmul.f32 %v11389_v59, %v3157_v55  ;;  %v14924_v59 = vld [vmem:[#allocation24_spill] sm:$0xff] }
 0x2a3   : > { %14919 = vst [vmem:[#allocation33_spill] sm:$0xff] %v11557_v0  ;;  %v11564_v1 = vpop.f32.mrb[194].mxu0  ;;  %v11566_v61 = vpop.f32.mrb[208].mxu1  ;;  %8620 = vmatprep.mubr.bf16.mxu0 %v11557_v0  ;;  %v3158_v52 = vmax.f32 %v3110_v38, 0.0  ;;  %v11575_v48 = vsel %vm4594_vm3, %v4722_v47, %v11559_v2  ;;  %v4661_v10 = vsel %vm4594_vm3, %v11426_v4, %v11547_v51  ;;  %6366 = vmatpush1.bf16.msra.mxu0 %v8956_v24  ;;  %v8957_v38 = vld [vmem:[%s14373_s3 + $0x100] sm:$0xff]   ;;  %v14930_v0 = vld [vmem:[#allocation40_spill] sm:$0xff] }
 0x2a4   : > { %14921 = vst [vmem:[#allocation43_spill] sm:$0xff] %v11566_v61  ;;  %v11571_v18 = vpop.f32.mrb[195].mxu0  ;;  %v2780_v30 = vpop.f32.mrb[209].mxu1  ;;  %14922 = vst [vmem:[#allocation12_spill] sm:$0xff] %v11575_v48  ;;  %v11583_v31 = vsel %vm555_vm2, %v4278_v56, %v14478_v37  ;;  %v3060_v55 = vadd.f32 %v2948_v19, %v14924_v59  ;;  %8621 = vmatmul.mubr.bf16.gmra.mrb[8].mxu0 %v11575_v48  ;;  %5407 = vmatmul.mubr.bf16.gmra.mrb[232].mxu1 %v4661_v10  ;;  %v14926_v56 = vld [vmem:[#allocation66_spill] sm:$0xff]  ;;  %v8966_v24 = vld [vmem:[%s14373_s3 + $0x160] sm:$0xff]  }
 0x2a5   : > { %14923 = vst [vmem:[#allocation13_spill] sm:$0xff] %v11583_v31  ;;  %v11586_v28 = vpop.f32.mrb[210].mxu1  ;;  %v3494_v47 = vmul.f32 %v11401_v33, %v3158_v52  ;;  %v2940_v37 = vadd.f32 %v11408_v62, %v14926_v56  ;;  %v2951_v33 = vadd.f32 %v11418_v50, %v11177_v12  ;;  %v4506_v52 = vrot.slane %v11348_v22, 1  ;;  %v14927_v10 = vld [vmem:[#allocation64_spill] sm:$0xff]  ;;  %6367 = vmatprep.subr.bf16.mxu0 %v14682_v21  ;;  %v14931_v50 = vld [vmem:[#allocation30_spill] sm:$0xff] }
 0x2a6   : > { %14925 = vst [vmem:[#allocation35_spill] sm:$0xff] %v11586_v28  ;;  %v2783_v19 = vpop.f32.mrb[211].mxu1  ;;  %v3115_v59 = vadd.f32 %v11139_v7, %v3060_v55  ;;  %v2943_v4 = vadd.f32 %v11429_v14, %v14927_v10  ;;  %v14928_v62 = vshrl.u32 %v11583_v31, 16  ;;  %8668 = vmatprep.subr.bf16.mxu1 %v8966_v24  ;;  %v14932_v3 = vrot.slane %v11253_v23, 1 }
 0x2a7   : > { %v11607_v30 = vpack.c.bf16 %v3494_v47, %v3493_v35  ;;  %v14929_v19 = vshll.u32 %v11583_v31, 16  ;;  %v3058_v55 = vadd.f32 %v2940_v37, %v14930_v0  ;;  %v3061_v49 = vadd.f32 %v2951_v33, %v14931_v50  ;;  %6368 = vmatpush1.bf16.msra.mxu0 %v8957_v38  ;;  %v8958_v0 = vld [vmem:[%s14373_s3 + $0x108] sm:$0xff]   ;;  %8669 = vmatpush3.bf16.msra.mxu1 %v8966_v24  ;;  %v3371_v37 = vpop.permute.xlu1 %3370 }
 0x2a8   : > { %v4687_v56 = vrot.slane %v14928_v62, 3  ;;  %v3163_v12 = vmax.f32 %v3115_v59, 0.0  ;;  %v4507_v14 = vsel %vm803_vm0, %v14932_v3, %v4506_v52  ;;  %v14933_v35 = vrot.slane %v11301_v42, 1  ;;  %6369 = vmatprep.subr.bf16.mxu0 %v14682_v21 }
 0x2a9   : > { %v4690_v48 = vrot.slane %v14929_v19, 4  ;;  %v11623_v10 = vpop.f32.mrb[196].mxu0  ;;  %v11629_v59 = vshrl.u32 %v11227_v45, 16  ;;  %v3113_v3 = vadd.f32 %v11139_v7, %v3058_v55  ;;  %v3116_v38 = vadd.f32 %v11139_v7, %v3061_v49 }
 0x2aa   : > { %v11621_v47 = vsel %vm803_vm0, %v4506_v52, %v14933_v35  ;;  %v11634_v62 = vpop.f32.mrb[197].mxu0  ;;  %v11638_v52 = vshll.u32 %v11269_v13, 16  ;;  %v4760_v19 = vshrl.u32 %v4507_v14, 16  ;;  %v4763_v50 = vshll.u32 %v4507_v14, 16 }
 0x2ab   : > { %14934 = vst [vmem:[#allocation16_spill] sm:$0xff] %v11621_v47  ;;  %v11631_v33 = vor.u32 %v4690_v48, %v4687_v56  ;;  %v11641_v24 = vpop.f32.mrb[198].mxu0  ;;  %v11643_v35 = vpop.f32.mrb[212].mxu1  ;;  %v3499_v48 = vmul.f32 %v3366_v9, %v3163_v12  ;;  %v14489_v56 = vshrl.u32 %v11621_v47, 16  ;;  %v14490_v55 = vshll.u32 %v11621_v47, 16  ;;  %6370 = vmatpush1.bf16.msra.mxu0 %v8958_v0  ;;  %v8959_v9 = vld [vmem:[%s14373_s3 + $0x110] sm:$0xff]  }
 0x2ac   : > { %14935 = vst [vmem:[#allocation36_spill] sm:$0xff] %v11641_v24  ;;  %14936 = vst [vmem:[#allocation17_spill] sm:$0xff] %v11643_v35  ;;  %v11652_v31 = vpop.f32.mrb[199].mxu0  ;;  %v2788_v28 = vpop.f32.mrb[213].mxu1  ;;  %v3164_v49 = vmax.f32 %v3116_v38, 0.0  ;;  %v4762_v14 = vrot.slane %v4760_v19, 3  ;;  %6371 = vmatprep.subr.bf16.mxu0 %v14682_v21 }
 0x2ad   : > { %v11648_v45 = vsel %vm4594_vm3, %v11501_v36, %v11631_v33  ;;  %14938 = vst [vmem:[#allocation20_spill] sm:$0xff] %v11652_v31  ;;  %v4765_v61 = vrot.slane %v4763_v50, 4  ;;  %v11655_v60 = vrot.slane %v4760_v19, 7  ;;  %v11657_v35 = vpop.f32.mrb[214].mxu1  ;;  %v3161_v36 = vmax.f32 %v3113_v3, 0.0 }
 0x2ae   : > { %14937 = vst [vmem:[#allocation37_spill] sm:$0xff] %v11648_v45  ;;  %5414 = vmatprep.mubr.bf16.mxu1 %v11648_v45  ;;  %14940 = vst [vmem:[#allocation38_spill] sm:$0xff] %v11657_v35  ;;  %v4784_v12 = vrot.slane %v14489_v56, 3  ;;  %v4787_v28 = vrot.slane %v14490_v55, 4  ;;  %v14941_v45 = vld [vmem:[#allocation25_spill] sm:$0xff]  ;;  %v2791_v31 = vpop.f32.mrb[215].mxu1  ;;  %v3500_v19 = vmul.f32 %v3371_v37, %v3164_v49 }
 0x2af   : > { %14939 = vst [vmem:[#allocation34_spill] sm:$0xff] %v11655_v60  ;;  %v3059_v38 = vadd.f32 %v2943_v4, %v14941_v45  ;;  %v4766_v24 = vor.u32 %v4765_v61, %v4762_v14  ;;  %v11669_v0 = vor.u32 %v11655_v60, %v4763_v50  ;;  %v4680_v35 = vrot.slane %v11510_v26, 3  ;;  %v11679_v31 = vpop.permute.xlu0 %3375  ;;  %6372 = vmatpush1.bf16.msra.mxu0 %v8959_v9  ;;  %v11695_v14 = vpop.permute.xlu1 %3380 }
 0x2b0   : > { %v11672_v6 = vor.u32 %v4787_v28, %v4784_v12  ;;  %v4681_v56 = vrot.slane %v11376_v16, 4  ;;  %v14943_v55 = vrot.slane %v11507_v5, 1  ;;  %v11681_v45 = vpack.c.bf16 %v3500_v19, %v3499_v48  ;;  %6373 = vmatprep.subr.bf16.mxu0 %v14682_v21 }
 0x2b1   : > { %14942 = vst [vmem:[#allocation21_spill] sm:$0xff] %v11669_v0  ;;  %v3114_v3 = vadd.f32 %v11139_v7, %v3059_v38  ;;  %v11685_v61 = vsel %vm4594_vm3, %v11559_v2, %v4766_v24  ;;  %v14491_v37 = vrot.slane %v11638_v52, 1  ;;  %v2964_v50 = vadd.f32 %v11473_v54, %v11242_v53  ;;  %v11690_v49 = vpop.f32.mrb[200].mxu0 }
 0x2b2   : > { %v4286_v4 = vor.u32 %v11629_v59, %v14943_v55  ;;  %14944 = vst [vmem:[#allocation39_spill] sm:$0xff] %v11685_v61  ;;  %v8961_v55 = vld [vmem:[%s14373_s3 + $0x118] sm:$0xff]   ;;  %v11699_v48 = vsel %vm4594_vm3, %v4766_v24, %v11672_v6  ;;  %8624 = vmatprep.mubr.bf16.mxu0 %v11685_v61  ;;  %v11702_v12 = vor.u32 %v4681_v56, %v4680_v35  ;;  %v11706_v54 = vpop.f32.mrb[201].mxu0 }
 0x2b3   : > { %14945 = vst [vmem:[#allocation55_spill] sm:$0xff] %v11699_v48  ;;  %v3162_v2 = vmax.f32 %v3114_v3, 0.0  ;;  %v2956_v53 = vadd.f32 %v11484_v57, %v11201_v43  ;;  %v3497_v28 = vmul.f32 %v11528_v44, %v3161_v36  ;;  %8625 = vmatmul.mubr.bf16.gmra.mrb[12].mxu0 %v11699_v48  ;;  %v11717_v35 = vpop.f32.mrb[202].mxu0  ;;  %v11719_v56 = vpop.f32.mrb[216].mxu1  ;;  %v14948_v3 = vld [vmem:[#allocation42_spill] sm:$0xff]  ;;  %v8962_v36 = vld [vmem:[%s14373_s3 + $0x120] sm:$0xff]  }
 0x2b4   : > { %v11715_v24 = vsel %vm555_vm2, %v4286_v4, %v14491_v37  ;;  %v11725_v57 = vsel %vm4594_vm3, %v11547_v51, %v11702_v12  ;;  %v11729_v38 = vpop.f32.mrb[203].mxu0  ;;  %v2796_v19 = vpop.f32.mrb[217].mxu1  ;;  %v3064_v4 = vadd.f32 %v2964_v50, %v14948_v3  ;;  %v14949_v37 = vld [vmem:[#allocation53_spill] sm:$0xff]  ;;  %6374 = vmatpush1.bf16.msra.mxu0 %v8961_v55 }
 0x2b5   : > { %14946 = vst [vmem:[#allocation24_spill] sm:$0xff] %v11715_v24  ;;  %v3498_v43 = vmul.f32 %v11542_v46, %v3162_v2  ;;  %14947 = vst [vmem:[#allocation66_spill] sm:$0xff] %v11725_v57  ;;  %5415 = vmatmul.mubr.bf16.gmra.mrb[236].mxu1 %v11725_v57  ;;  %v3062_v9 = vadd.f32 %v2956_v53, %v14949_v37  ;;  %v2967_v46 = vadd.f32 %v11497_v63, %v11251_v25  ;;  %v11737_v51 = vpop.f32.mrb[218].mxu1  ;;  %v14953_v3 = vld [vmem:[#allocation41_spill] sm:$0xff] }
 0x2b6   : > { %v4510_v2 = vrot.slane %v11487_v15, 1  ;;  %14950 = vst [vmem:[#allocation64_spill] sm:$0xff] %v11737_v51  ;;  %v14951_v19 = vshrl.u32 %v11715_v24, 16  ;;  %v14952_v50 = vshll.u32 %v11715_v24, 16  ;;  %v2959_v25 = vadd.f32 %v11504_v8, %v11217_v34  ;;  %v2799_v63 = vpop.f32.mrb[219].mxu1  ;;  %6375 = vmatprep.subr.bf16.mxu0 %v14682_v21 }
 0x2b7   : > { %v11742_v44 = vpack.c.bf16 %v3498_v43, %v3497_v28  ;;  %v3119_v55 = vadd.f32 %v11139_v7, %v3064_v4  ;;  %v3117_v53 = vadd.f32 %v11139_v7, %v3062_v9  ;;  %v3065_v61 = vadd.f32 %v2967_v46, %v14953_v3  ;;  %v3386_v63 = vpop.permute.xlu0 %3385 }
 0x2b8   : > { %v4709_v48 = vrot.slane %v14951_v19, 3  ;;  %v4712_v37 = vrot.slane %v14952_v50, 4  ;;  %v14954_v28 = vrot.slane %v11301_v42, 1  ;;  %v11758_v19 = vshll.u32 %v11253_v23, 16  ;;  %6376 = vmatpush1.bf16.msra.mxu0 %v8962_v36 }
 0x2b9   : > { %v14956_v34 = vrot.slane %v11422_v11, 1  ;;  %v11768_v4 = vshrl.u32 %v11269_v13, 16  ;;  %v3167_v9 = vmax.f32 %v3119_v55, 0.0  ;;  %v3120_v46 = vadd.f32 %v11139_v7, %v3065_v61  ;;  %v11771_v57 = vpop.f32.mrb[204].mxu0  ;;  %6377 = vmatprep.subr.bf16.mxu0 %v14682_v21 }
 0x2ba   : > { %v4511_v43 = vsel %vm803_vm0, %v14954_v28, %v4510_v2  ;;  %14955 = vst [vmem:[#allocation40_spill] sm:$0xff] %v11758_v19  ;;  %v11760_v50 = vor.u32 %v4712_v37, %v4709_v48  ;;  %v8963_v48 = vld [vmem:[%s14373_s3 + $0x128] sm:$0xff]   ;;  %v3391_v37 = vpop.permute.xlu1 %3390  ;;  %v11783_v7 = vpop.f32.mrb[205].mxu0  ;;  %v3165_v36 = vmax.f32 %v3117_v53, 0.0  ;;  %v14961_v53 = vld [vmem:[#allocation54_spill] sm:$0xff] }
 0x2bb   : > { %v11765_v8 = vsel %vm803_vm0, %v4510_v2, %v14956_v34  ;;  %v4804_v3 = vshrl.u32 %v4511_v43, 16  ;;  %v4807_v28 = vshll.u32 %v4511_v43, 16  ;;  %v3503_v61 = vmul.f32 %v3386_v63, %v3167_v9  ;;  %v11787_v0 = vpop.f32.mrb[220].mxu1  ;;  %v11789_v47 = vpop.f32.mrb[206].mxu0 }
 0x2bc   : > { %14957 = vst [vmem:[#allocation30_spill] sm:$0xff] %v11765_v8  ;;  %v11779_v2 = vsel %vm4594_vm3, %v11631_v33, %v11760_v50  ;;  %v14504_v13 = vshrl.u32 %v11765_v8, 16  ;;  %v14505_v55 = vshll.u32 %v11765_v8, 16  ;;  %v3168_v34 = vmax.f32 %v3120_v46, 0.0  ;;  %14959 = vst [vmem:[#allocation42_spill] sm:$0xff] %v11789_v47  ;;  %v2804_v26 = vpop.f32.mrb[221].mxu1  ;;  %6378 = vmatpush1.bf16.msra.mxu0 %v8963_v48 }
 0x2bd   : > { %14958 = vst [vmem:[#allocation25_spill] sm:$0xff] %v11779_v2  ;;  %5422 = vmatprep.mubr.bf16.mxu1 %v11779_v2  ;;  %v4806_v60 = vrot.slane %v4804_v3, 3  ;;  %v4809_v33 = vrot.slane %v4807_v28, 4  ;;  %v11795_v24 = vrot.slane %v4804_v3, 7  ;;  %v11797_v51 = vpop.f32.mrb[207].mxu0  ;;  %v3063_v9 = vadd.f32 %v2959_v25, %v14961_v53  ;;  %v11802_v47 = vpop.f32.mrb[222].mxu1  ;;  %6379 = vmatprep.subr.bf16.mxu0 %v14682_v21 }
 0x2be   : > { %v4828_v43 = vrot.slane %v14504_v13, 3  ;;  %v4831_v16 = vrot.slane %v14505_v55, 4  ;;  %v3504_v63 = vmul.f32 %v3391_v37, %v3168_v34  ;;  %v4702_v46 = vrot.slane %v11629_v59, 3  ;;  %v8964_v13 = vld [vmem:[%s14373_s3 + $0x130] sm:$0xff]   ;;  %v8967_v48 = vld [vmem:[%s14373_s3 + $0x168] sm:$0xff]   ;;  %v2807_v34 = vpop.f32.mrb[223].mxu1 }
 0x2bf   : > { %14960 = vst [vmem:[#allocation53_spill] sm:$0xff] %v11795_v24  ;;  %v4703_v2 = vrot.slane %v11507_v5, 4  ;;  %v4810_v55 = vor.u32 %v4809_v33, %v4806_v60  ;;  %v11810_v26 = vor.u32 %v11795_v24, %v4807_v28  ;;  %v14963_v37 = vrot.slane %v11638_v52, 1  ;;  %8670 = vmatprep.subr.bf16.mxu1 %v8967_v48 }
 0x2c0   : > { %v11807_v3 = vor.u32 %v4831_v16, %v4828_v43  ;;  %v11819_v53 = vpack.c.bf16 %v3504_v63, %v3503_v61  ;;  %v11824_v16 = vld [vmem:[%s14372_s2] ss:$0 sm:$0xff]  ;;  %v14506_v33 = vrot.slane %v11758_v19, 1  ;;  %v2980_v61 = vadd.f32 %v11537_v29, %v11346_v40  ;;  %6380 = vmatpush1.bf16.msra.mxu0 %v8964_v13  ;;  %8671 = vmatpush3.bf16.msra.mxu1 %v8967_v48 }
 0x2c1   : > { %14962 = vst [vmem:[#allocation41_spill] sm:$0xff] %v11810_v26  ;;  %v4294_v25 = vor.u32 %v11768_v4, %v14963_v37  ;;  %v3118_v60 = vadd.f32 %v11824_v16, %v3063_v9  ;;  %v11827_v28 = vor.u32 %v4703_v2, %v4702_v46  ;;  %v11832_v43 = vsel %vm4594_vm3, %v11672_v6, %v4810_v55  ;;  %v11842_v9 = vpop.permute.xlu0 %3395  ;;  %v3401_v2 = vpop.permute.xlu1 %3400 }
 0x2c2   : > { %14964 = vst [vmem:[#allocation54_spill] sm:$0xff] %v11832_v43  ;;  %v11836_v37 = vsel %vm4594_vm3, %v4810_v55, %v11807_v3  ;;  %v2972_v63 = vadd.f32 %v11552_v39, %v11281_v17  ;;  %v3501_v46 = vmul.f32 %v11679_v31, %v3165_v36  ;;  %8628 = vmatprep.mubr.bf16.mxu0 %v11832_v43  ;;  %v8965_v55 = vld [vmem:[%s14373_s3 + $0x138] sm:$0xff]   ;;  %v14967_v39 = vld [vmem:[#allocation29_spill] sm:$0xff]  ;;  %v14968_v31 = vld [vmem:[#allocation31_spill] sm:$0xff]  ;;  %v11891_v48 = vshrl.u32 %v11253_v23, 16 }
 0x2c3   : > { %14965 = vst [vmem:[#allocation67_spill] sm:$0xff] %v11836_v37  ;;  %v3166_v6 = vmax.f32 %v3118_v60, 0.0  ;;  %8629 = vmatmul.mubr.bf16.gmra.mrb[16].mxu0 %v11836_v37  ;;  %v11854_v17 = vsel %vm4594_vm3, %v11702_v12, %v11827_v28  ;;  %v11859_v40 = vsel %vm555_vm2, %v4294_v25, %v14506_v33  ;;  %v3068_v29 = vadd.f32 %v2980_v61, %v14967_v39 }
 0x2c4   : > { %14966 = vst [vmem:[#allocation68_spill] sm:$0xff] %v11854_v17  ;;  %v3066_v13 = vadd.f32 %v2972_v63, %v14968_v31  ;;  %5423 = vmatmul.mubr.bf16.gmra.mrb[240].mxu1 %v11854_v17  ;;  %v14509_v34 = vshrl.u32 %v11859_v40, 16  ;;  %v14508_v60 = vshll.u32 %v11859_v40, 16  ;;  %v2983_v12 = vadd.f32 %v11564_v1, %v11367_v27  ;;  %6381 = vmatprep.subr.bf16.mxu0 %v14682_v21  ;;  %v14969_v1 = vld [vmem:[#allocation27_spill] sm:$0xff] }
 0x2c5   : > { %v3502_v36 = vmul.f32 %v11695_v14, %v3166_v6  ;;  %v3123_v25 = vadd.f32 %v11824_v16, %v3068_v29  ;;  %v4514_v63 = vrot.slane %v11607_v30, 1  ;;  %v2975_v14 = vadd.f32 %v11571_v18, %v11299_v41  ;;  %6382 = vmatpush1.bf16.msra.mxu0 %v8965_v55  ;;  %v3406_v18 = vpop.permute.xlu0 %3405 }
 0x2c6   : > { %v3121_v61 = vadd.f32 %v11824_v16, %v3066_v13  ;;  %v4731_v39 = vrot.slane %v14509_v34, 3  ;;  %v4734_v27 = vrot.slane %v14508_v60, 4  ;;  %v3069_v31 = vadd.f32 %v2983_v12, %v14969_v1  ;;  %v3411_v34 = vpop.permute.xlu1 %3410 }
 0x2c7   : > { %v11875_v6 = vpack.c.bf16 %v3502_v36, %v3501_v46  ;;  %v3171_v29 = vmax.f32 %v3123_v25, 0.0  ;;  %v14970_v13 = vrot.slane %v11422_v11, 1  ;;  %v14971_v37 = vrot.slane %v11544_v32, 1 }
 0x2c8   : > { %v11894_v46 = vshll.u32 %v11348_v22, 16  ;;  %v11896_v36 = vor.u32 %v4734_v27, %v4731_v39  ;;  %v3124_v55 = vadd.f32 %v11824_v16, %v3069_v31  ;;  %v3169_v25 = vmax.f32 %v3121_v61, 0.0  ;;  %v14975_v61 = vld [vmem:[#allocation47_spill] sm:$0xff] }
 0x2c9   : > { %v4515_v33 = vsel %vm803_vm0, %v14970_v13, %v4514_v63  ;;  %v11888_v41 = vsel %vm803_vm0, %v4514_v63, %v14971_v37  ;;  %v3507_v12 = vmul.f32 %v3406_v18, %v3171_v29  ;;  %v3067_v29 = vadd.f32 %v2975_v14, %v14975_v61 }
 0x2ca   : > { %14972 = vst [vmem:[#allocation29_spill] sm:$0xff] %v11888_v41  ;;  %v4848_v1 = vshrl.u32 %v4515_v33, 16  ;;  %v4851_v13 = vshll.u32 %v4515_v33, 16  ;;  %v11902_v37 = vsel %vm4594_vm3, %v11760_v50, %v11896_v36  ;;  %v3172_v63 = vmax.f32 %v3124_v55, 0.0 }
 0x2cb   : > { %14973 = vst [vmem:[#allocation31_spill] sm:$0xff] %v11902_v37  ;;  %v14515_v23 = vshrl.u32 %v11888_v41, 16  ;;  %v14514_v60 = vshll.u32 %v11888_v41, 16  ;;  %5430 = vmatprep.mubr.bf16.mxu1 %v11902_v37  ;;  %v4724_v55 = vrot.slane %v11768_v4, 3  ;;  %v3122_v37 = vadd.f32 %v11824_v16, %v3067_v29 }
 0x2cc   : > { %v4850_v39 = vrot.slane %v4848_v1, 3  ;;  %v4853_v27 = vrot.slane %v4851_v13, 4  ;;  %v11907_v31 = vrot.slane %v4848_v1, 7  ;;  %v3508_v33 = vmul.f32 %v3411_v34, %v3172_v63 }
 0x2cd   : > { %v4872_v18 = vrot.slane %v14515_v23, 3  ;;  %v4875_v50 = vrot.slane %v14514_v60, 4  ;;  %v4725_v1 = vrot.slane %v11638_v52, 4  ;;  %v14977_v34 = vrot.slane %v11758_v19, 1  ;;  %v14985_v60 = vld [vmem:[#allocation20_spill] sm:$0xff] }
 0x2ce   : > { %14974 = vst [vmem:[#allocation27_spill] sm:$0xff] %v11907_v31  ;;  %v4854_v43 = vor.u32 %v4853_v27, %v4850_v39  ;;  %v11916_v17 = vor.u32 %v11907_v31, %v4851_v13  ;;  %v11920_v24 = vpack.c.bf16 %v3508_v33, %v3507_v12  ;;  %v14516_v61 = vrot.slane %v11894_v46, 1 }
 0x2cf   : > { %v11922_v14 = vor.u32 %v4875_v50, %v4872_v18  ;;  %v4302_v63 = vor.u32 %v11891_v48, %v14977_v34  ;;  %v3170_v13 = vmax.f32 %v3122_v37, 0.0  ;;  %v11932_v27 = vor.u32 %v4725_v1, %v4724_v55  ;;  %v3416_v55 = vpop.permute.xlu0 %3415  ;;  %v14982_v34 = vld [vmem:[#allocation9_spill] sm:$0xff] }
 0x2d0   : > { %14976 = vst [vmem:[#allocation47_spill] sm:$0xff] %v11916_v17  ;;  %v11930_v39 = vsel %vm4594_vm3, %v11807_v3, %v4854_v43  ;;  %v2996_v29 = vadd.f32 %v11623_v10, %v11499_v58  ;;  %v3505_v12 = vmul.f32 %v11842_v9, %v3169_v25  ;;  %v14981_v10 = vld [vmem:[#allocation45_spill] sm:$0xff]  ;;  %v2988_v50 = vadd.f32 %v11634_v62, %v11420_v20  ;;  %v3421_v20 = vpop.permute.xlu1 %3420  ;;  %v14986_v62 = vld [vmem:[#allocation48_spill] sm:$0xff] }
 0x2d1   : > { %14978 = vst [vmem:[#allocation69_spill] sm:$0xff] %v11930_v39  ;;  %v11939_v33 = vsel %vm4594_vm3, %v4854_v43, %v11922_v14  ;;  %8632 = vmatprep.mubr.bf16.mxu0 %v11930_v39  ;;  %v3506_v18 = vmul.f32 %v3401_v2, %v3170_v13  ;;  %v11946_v3 = vsel %vm4594_vm3, %v11827_v28, %v11932_v27  ;;  %v14987_v43 = vld [vmem:[#allocation46_spill] sm:$0xff] }
 0x2d2   : > { %14979 = vst [vmem:[#allocation70_spill] sm:$0xff] %v11939_v33  ;;  %8633 = vmatmul.mubr.bf16.gmra.mrb[20].mxu0 %v11939_v33  ;;  %14980 = vst [vmem:[#allocation71_spill] sm:$0xff] %v11946_v3  ;;  %v11951_v58 = vsel %vm555_vm2, %v4302_v63, %v14516_v61  ;;  %v3072_v9 = vadd.f32 %v2996_v29, %v14981_v10  ;;  %5431 = vmatmul.mubr.bf16.gmra.mrb[244].mxu1 %v11946_v3  ;;  %v14983_v63 = vld [vmem:[#allocation36_spill] sm:$0xff]  ;;  %v4518_v29 = vrot.slane %v11742_v44, 1  ;;  %v14984_v10 = vld [vmem:[#allocation23_spill] sm:$0xff] }
 0x2d3   : > { %v14517_v2 = vshrl.u32 %v11951_v58, 16  ;;  %v11957_v25 = vpack.c.bf16 %v3506_v18, %v3505_v12  ;;  %v14519_v37 = vshll.u32 %v11951_v58, 16  ;;  %v2999_v13 = vadd.f32 %v14983_v63, %v14982_v34 }
 0x2d4   : > { %v3127_v28 = vadd.f32 %v11824_v16, %v3072_v9  ;;  %v2991_v12 = vadd.f32 %v14985_v60, %v14984_v10  ;;  %v14522_v18 = vrot.slane %v11681_v45, 1  ;;  %v3070_v61 = vadd.f32 %v2988_v50, %v14986_v62  ;;  %v3431_v3 = vpop.permute.xlu1 %3430 }
 0x2d5   : > { %v4753_v1 = vrot.slane %v14517_v2, 3  ;;  %v14520_v23 = vrot.slane %v11957_v25, 1  ;;  %v4756_v9 = vrot.slane %v14519_v37, 4  ;;  %v3073_v2 = vadd.f32 %v2999_v13, %v14987_v43  ;;  %v8968_v37 = vld [vmem:[%s14373_s3 + $0x170] sm:$0xff]  }
 0x2d6   : > { %v14988_v33 = vrot.slane %v11544_v32, 1  ;;  %v14989_v63 = vrot.slane %v11920_v24, 1  ;;  %v3175_v10 = vmax.f32 %v3127_v28, 0.0  ;;  %v11990_v50 = vshll.u32 %v11301_v42, 16  ;;  %8672 = vmatprep.subr.bf16.mxu1 %v8968_v37 }
 0x2d7   : > { %v11993_v43 = vshrl.u32 %v11348_v22, 16  ;;  %v11995_v13 = vor.u32 %v4756_v9, %v4753_v1  ;;  %v3128_v62 = vadd.f32 %v11824_v16, %v3073_v2  ;;  %v12002_v28 = vsel %vm803_vm0, %v4518_v29, %v14522_v18  ;;  %8673 = vmatpush3.bf16.msra.mxu1 %v8968_v37 }
 0x2d8   : > { %v4519_v34 = vsel %vm803_vm0, %v14988_v33, %v4518_v29  ;;  %v11984_v60 = vsel %vm803_vm0, %v14520_v23, %v14989_v63  ;;  %v3125_v33 = vadd.f32 %v11824_v16, %v3070_v61  ;;  %14991 = vst [vmem:[#allocation9_spill] sm:$0xff] %v12002_v28  ;;  %v3426_v23 = vpop.permute.xlu0 %3425  ;;  %v14530_v1 = vshrl.u32 %v12002_v28, 16 }
 0x2d9   : > { %14990 = vst [vmem:[#allocation45_spill] sm:$0xff] %v11984_v60  ;;  %v4892_v63 = vshrl.u32 %v4519_v34, 16  ;;  %v12007_v39 = vsel %vm4594_vm3, %v11896_v36, %v11995_v13  ;;  %v4895_v22 = vshll.u32 %v4519_v34, 16  ;;  %v14531_v61 = vshll.u32 %v12002_v28, 16  ;;  %v14994_v34 = vld [vmem:[#allocation57_spill] sm:$0xff] }
 0x2da   : > { %14992 = vst [vmem:[#allocation36_spill] sm:$0xff] %v12007_v39  ;;  %5438 = vmatprep.mubr.bf16.mxu1 %v12007_v39  ;;  %v3511_v2 = vmul.f32 %v3426_v23, %v3175_v10  ;;  %v3176_v9 = vmax.f32 %v3128_v62, 0.0  ;;  %v4916_v17 = vrot.slane %v14530_v1, 3  ;;  %v3071_v41 = vadd.f32 %v2991_v12, %v14994_v34 }
 0x2db   : > { %v4894_v29 = vrot.slane %v4892_v63, 3  ;;  %v12012_v18 = vrot.slane %v4892_v63, 7  ;;  %v4897_v31 = vrot.slane %v4895_v22, 4  ;;  %v4919_v36 = vrot.slane %v14531_v61, 4 }
 0x2dc   : > { %v3173_v26 = vmax.f32 %v3125_v33, 0.0  ;;  %v3512_v8 = vmul.f32 %v3431_v3, %v3176_v9  ;;  %v4746_v23 = vrot.slane %v11891_v48, 3  ;;  %v3126_v63 = vadd.f32 %v11824_v16, %v3071_v41  ;;  %v14997_v33 = vld [vmem:[#allocation17_spill] sm:$0xff] }
 0x2dd   : > { %14993 = vst [vmem:[#allocation23_spill] sm:$0xff] %v12012_v18  ;;  %v12020_v37 = vor.u32 %v12012_v18, %v4895_v22  ;;  %v4898_v10 = vor.u32 %v4897_v31, %v4894_v29  ;;  %v12023_v62 = vor.u32 %v4919_v36, %v4916_v17  ;;  %v4747_v39 = vrot.slane %v11758_v19, 4 }
 0x2de   : > { %v12027_v1 = vpack.c.bf16 %v3512_v8, %v3511_v2  ;;  %v14996_v61 = vrot.slane %v11894_v46, 1  ;;  %v14534_v3 = vrot.slane %v11990_v50, 1  ;;  %v3012_v22 = vadd.f32 %v11690_v49, %v14997_v33 }
 0x2df   : > { %14995 = vst [vmem:[#allocation20_spill] sm:$0xff] %v12020_v37  ;;  %v12037_v31 = vsel %vm4594_vm3, %v11922_v14, %v4898_v10  ;;  %v12041_v17 = vsel %vm4594_vm3, %v4898_v10, %v12023_v62  ;;  %v3174_v41 = vmax.f32 %v3126_v63, 0.0  ;;  %v12043_v8 = vor.u32 %v4747_v39, %v4746_v23  ;;  %v15003_v63 = vld [vmem:[#allocation38_spill] sm:$0xff] }
 0x2e0   : > { %v4310_v12 = vor.u32 %v11993_v43, %v14996_v61  ;;  %14998 = vst [vmem:[#allocation48_spill] sm:$0xff] %v12037_v31  ;;  %14999 = vst [vmem:[#allocation46_spill] sm:$0xff] %v12041_v17  ;;  %v3509_v2 = vmul.f32 %v3416_v55, %v3173_v26  ;;  %8636 = vmatprep.mubr.bf16.mxu0 %v12037_v31  ;;  %v15001_v55 = vld [vmem:[#allocation61_spill] sm:$0xff]  ;;  %v4522_v33 = vrot.slane %v11875_v6, 1  ;;  %v15007_v26 = vrot.slane %v11681_v45, 1 }
 0x2e1   : > { %v3510_v49 = vmul.f32 %v3421_v20, %v3174_v41  ;;  %8637 = vmatmul.mubr.bf16.gmra.mrb[24].mxu0 %v12041_v17  ;;  %v12055_v14 = vsel %vm4594_vm3, %v11932_v27, %v12043_v8  ;;  %v3076_v29 = vadd.f32 %v3012_v22, %v15001_v55  ;;  %v15002_v27 = vld [vmem:[#allocation43_spill] sm:$0xff] }
 0x2e2   : > { %v12049_v61 = vsel %vm555_vm2, %v4310_v12, %v14534_v3  ;;  %15000 = vst [vmem:[#allocation57_spill] sm:$0xff] %v12055_v14  ;;  %5439 = vmatmul.mubr.bf16.gmra.mrb[248].mxu1 %v12055_v14  ;;  %v3004_v23 = vadd.f32 %v11706_v54, %v15002_v27  ;;  %v3015_v12 = vadd.f32 %v11717_v35, %v15003_v63  ;;  %v15004_v41 = vld [vmem:[#allocation35_spill] sm:$0xff]  ;;  %v15005_v3 = vld [vmem:[#allocation58_spill] sm:$0xff]  ;;  %v12085_v63 = vpop.f32.mrb[208].mxu0  ;;  %v15017_v14 = vld [vmem:[#allocation49_spill] sm:$0xff] }
 0x2e3   : > { %v14532_v9 = vshrl.u32 %v12049_v61, 16  ;;  %v14533_v39 = vshll.u32 %v12049_v61, 16  ;;  %v12062_v36 = vpack.c.bf16 %v3510_v49, %v3509_v2  ;;  %v3131_v10 = vadd.f32 %v11824_v16, %v3076_v29  ;;  %v3436_v2 = vpop.permute.xlu0 %3435  ;;  %v15006_v27 = vld [vmem:[#allocation51_spill] sm:$0xff]  ;;  %15008 = vst [vmem:[#allocation17_spill] sm:$0xff] %v12085_v63 }
 0x2e4   : > { %v3007_v22 = vadd.f32 %v11729_v38, %v15004_v41  ;;  %v14543_v49 = vrot.slane %v11819_v53, 1  ;;  %v3074_v54 = vadd.f32 %v3004_v23, %v15005_v3  ;;  %v3077_v29 = vadd.f32 %v3015_v12, %v15006_v27 }
 0x2e5   : > { %v4775_v20 = vrot.slane %v14532_v9, 3  ;;  %v4778_v34 = vrot.slane %v14533_v39, 4  ;;  %v14535_v55 = vrot.slane %v12062_v36, 1  ;;  %v3441_v39 = vpop.permute.xlu1 %3440  ;;  %v4523_v35 = vsel %vm803_vm0, %v15007_v26, %v4522_v33 }
 0x2e6   : > { %v15009_v38 = vrot.slane %v12027_v1, 1  ;;  %v3179_v26 = vmax.f32 %v3131_v10, 0.0  ;;  %v3129_v12 = vadd.f32 %v11824_v16, %v3074_v54  ;;  %v3132_v27 = vadd.f32 %v11824_v16, %v3077_v29 }
 0x2e7   : > { %v12078_v9 = vor.u32 %v4778_v34, %v4775_v20  ;;  %v12094_v20 = vpop.f32.mrb[209].mxu0  ;;  %v12097_v34 = vshll.u32 %v11487_v15, 16  ;;  %v4939_v31 = vshll.u32 %v4523_v35, 16  ;;  %v3075_v18 = vadd.f32 %v3007_v22, %v15017_v14  ;;  %v3446_v54 = vpop.permute.xlu0 %3445 }
 0x2e8   : > { %v12092_v41 = vsel %vm803_vm0, %v14535_v55, %v15009_v38  ;;  %15011 = vst [vmem:[#allocation43_spill] sm:$0xff] %v12094_v20  ;;  %v12104_v23 = vpop.f32.mrb[210].mxu0  ;;  %v12112_v38 = vsel %vm803_vm0, %v4522_v33, %v14543_v49  ;;  %v4936_v55 = vshrl.u32 %v4523_v35, 16  ;;  %v3177_v37 = vmax.f32 %v3129_v12, 0.0 }
 0x2e9   : > { %15010 = vst [vmem:[#allocation61_spill] sm:$0xff] %v12092_v41  ;;  %15012 = vst [vmem:[#allocation38_spill] sm:$0xff] %v12097_v34  ;;  %v12102_v3 = vsel %vm4594_vm3, %v11995_v13, %v12078_v9  ;;  %v12114_v17 = vpop.f32.mrb[211].mxu0  ;;  %v14545_v13 = vshrl.u32 %v12112_v38, 16  ;;  %v14548_v10 = vshll.u32 %v12112_v38, 16  ;;  %v3180_v29 = vmax.f32 %v3132_v27, 0.0  ;;  %v3451_v49 = vpop.permute.xlu1 %3450 }
 0x2ea   : > { %15013 = vst [vmem:[#allocation35_spill] sm:$0xff] %v12102_v3  ;;  %15014 = vst [vmem:[#allocation58_spill] sm:$0xff] %v12104_v23  ;;  %5446 = vmatprep.mubr.bf16.mxu1 %v12102_v3  ;;  %v12119_v3 = vpop.f32.mrb[212].mxu0  ;;  %v4938_v28 = vrot.slane %v4936_v55, 3  ;;  %v12121_v23 = vrot.slane %v4936_v55, 7  ;;  %v4941_v63 = vrot.slane %v4939_v31, 4  ;;  %v3130_v14 = vadd.f32 %v11824_v16, %v3075_v18 }
 0x2eb   : > { %15015 = vst [vmem:[#allocation51_spill] sm:$0xff] %v12112_v38  ;;  %15016 = vst [vmem:[#allocation72_spill] sm:$0xff] %v12114_v17  ;;  %v12123_v33 = vpop.f32.mrb[213].mxu0  ;;  %v4960_v35 = vrot.slane %v14545_v13, 3  ;;  %v4963_v17 = vrot.slane %v14548_v10, 4  ;;  %v3516_v12 = vmul.f32 %v3451_v49, %v3180_v29  ;;  %v4768_v55 = vrot.slane %v11993_v43, 3 }
 0x2ec   : > { %15018 = vst [vmem:[#allocation49_spill] sm:$0xff] %v12119_v3  ;;  %15019 = vst [vmem:[#allocation73_spill] sm:$0xff] %v12121_v23  ;;  %v12130_v22 = vpop.f32.mrb[214].mxu0  ;;  %v3515_v3 = vmul.f32 %v3446_v54, %v3179_v26  ;;  %v12133_v27 = vor.u32 %v12121_v23, %v4939_v31  ;;  %v4942_v20 = vor.u32 %v4941_v63, %v4938_v28  ;;  %v3178_v13 = vmax.f32 %v3130_v14, 0.0  ;;  %v8969_v18 = vld [vmem:[%s14373_s3 + $0x178] sm:$0xff]  }
 0x2ed   : > { %15020 = vst [vmem:[#allocation74_spill] sm:$0xff] %v12123_v33  ;;  %15021 = vst [vmem:[#allocation75_spill] sm:$0xff] %v12130_v22  ;;  %v12136_v33 = vpop.f32.mrb[215].mxu0  ;;  %v12138_v19 = vor.u32 %v4963_v17, %v4960_v35  ;;  %v4769_v38 = vrot.slane %v11894_v46, 4  ;;  %v12147_v49 = vshrl.u32 %v11301_v42, 16  ;;  %v3513_v31 = vmul.f32 %v3436_v2, %v3177_v37  ;;  %8674 = vmatprep.subr.bf16.mxu1 %v8969_v18 }
 0x2ee   : > { %15022 = vst [vmem:[#allocation76_spill] sm:$0xff] %v12133_v27  ;;  %15023 = vst [vmem:[#allocation77_spill] sm:$0xff] %v12136_v33  ;;  %v12144_v10 = vpop.f32.mrb[216].mxu0  ;;  %v12149_v26 = vpack.c.bf16 %v3516_v12, %v3515_v3  ;;  %v12155_v28 = vsel %vm4594_vm3, %v12023_v62, %v4942_v20  ;;  %v3514_v63 = vmul.f32 %v3441_v39, %v3178_v13  ;;  %v15029_v37 = vrot.slane %v11990_v50, 1  ;;  %v15051_v33 = vld [vmem:[#allocation64_spill] sm:$0xff] }
 0x2ef   : > { %15024 = vst [vmem:[#allocation78_spill] sm:$0xff] %v12144_v10  ;;  %v12151_v54 = vpop.f32.mrb[217].mxu0  ;;  %15026 = vst [vmem:[#allocation80_spill] sm:$0xff] %v12155_v28  ;;  %v12159_v17 = vsel %vm4594_vm3, %v4942_v20, %v12138_v19  ;;  %v12161_v29 = vor.u32 %v4769_v38, %v4768_v55  ;;  %8640 = vmatprep.mubr.bf16.mxu0 %v12155_v28  ;;  %8675 = vmatpush3.bf16.msra.mxu1 %v8969_v18  ;;  %v4322_v20 = vrot.slane %v12097_v34, 1  ;;  %v12191_v18 = vpop.permute.xlu0 %3455 }
 0x2f0   : > { %15025 = vst [vmem:[#allocation79_spill] sm:$0xff] %v12151_v54  ;;  %15027 = vst [vmem:[#allocation81_spill] sm:$0xff] %v12159_v17  ;;  %v12163_v35 = vpop.f32.mrb[218].mxu0  ;;  %v4318_v2 = vor.u32 %v12147_v49, %v15029_v37  ;;  %v12172_v3 = vpack.c.bf16 %v3514_v63, %v3513_v31  ;;  %8641 = vmatmul.mubr.bf16.gmra.mrb[28].mxu0 %v12159_v17  ;;  %v3028_v38 = vadd.f32 %v11771_v57, %v11787_v0  ;;  %v15035_v17 = vld [vmem:[#allocation52_spill] sm:$0xff] }
 0x2f1   : > { %15028 = vst [vmem:[#allocation82_spill] sm:$0xff] %v12163_v35  ;;  %v12170_v62 = vpop.f32.mrb[219].mxu0  ;;  %v12178_v39 = vsel %vm4594_vm3, %v12043_v8, %v12161_v29  ;;  %7107 = vmatprep.subr.bf16.mxu1 %v14682_v21  ;;  %v4790_v14 = vrot.slane %v12147_v49, 3  ;;  %v4791_v12 = vrot.slane %v11990_v50, 4  ;;  %v12209_v31 = vshll.u32 %v11422_v11, 16 }
 0x2f2   : > { %15030 = vst [vmem:[#allocation83_spill] sm:$0xff] %v12170_v62  ;;  %15031 = vst [vmem:[#allocation84_spill] sm:$0xff] %v12178_v39  ;;  %v12183_v13 = vpop.f32.mrb[220].mxu0  ;;  %5447 = vmatmul.mubr.bf16.gmra.mrb[252].mxu1 %v12178_v39  ;;  %v12197_v57 = vsel %vm555_vm2, %v4318_v2, %v4322_v20  ;;  %v3080_v28 = vadd.f32 %v3028_v38, %v15035_v17  ;;  %v3020_v39 = vadd.f32 %v11783_v7, %v11719_v56 }
 0x2f3   : > { %15032 = vst [vmem:[#allocation85_spill] sm:$0xff] %v12183_v13  ;;  %v12189_v55 = vpop.f32.mrb[221].mxu0  ;;  %v12212_v8 = vshrl.u32 %v11487_v15, 16  ;;  %v15037_v0 = vrot.slane %v12149_v26, 1  ;;  %v15038_v37 = vrot.slane %v12172_v3, 1  ;;  %v12225_v7 = vor.u32 %v4791_v12, %v4790_v14 }
 0x2f4   : > { %15033 = vst [vmem:[#allocation86_spill] sm:$0xff] %v12189_v55  ;;  %v12199_v63 = vpop.f32.mrb[222].mxu0  ;;  %v15040_v38 = vshrl.u32 %v12197_v57, 16  ;;  %v15041_v15 = vshll.u32 %v12197_v57, 16  ;;  %v3135_v23 = vadd.f32 %v11824_v16, %v3080_v28  ;;  %v15043_v55 = vld [vmem:[#allocation65_spill] sm:$0xff]  ;;  %v15046_v14 = vshrl.u32 %v11984_v60, 16 }
 0x2f5   : > { %15034 = vst [vmem:[#allocation87_spill] sm:$0xff] %v12199_v63  ;;  %v12206_v13 = vpop.f32.mrb[223].mxu0  ;;  %v12220_v42 = vsel %vm803_vm0, %v15038_v37, %v15037_v0  ;;  %v3078_v27 = vadd.f32 %v3020_v39, %v15043_v55  ;;  %v15044_v0 = vrot.slane %v11957_v25, 1  ;;  %v15045_v37 = vrot.slane %v11819_v53, 1  ;;  %v3466_v39 = vpop.permute.xlu0 %3465 }
 0x2f6   : > { %15036 = vst [vmem:[#allocation52_spill] sm:$0xff] %v12206_v13  ;;  %15039 = vst [vmem:[#allocation88_spill] sm:$0xff] %v12220_v42  ;;  %v12222_v17 = vpop.f32.mrb[224].mxu0  ;;  %v4797_v63 = vrot.slane %v15040_v38, 3  ;;  %v4800_v13 = vrot.slane %v15041_v15, 4  ;;  %v5004_v12 = vrot.slane %v15046_v14, 3  ;;  %v3023_v14 = vadd.f32 %v11797_v51, %v15051_v33 }
 0x2f7   : > { %v12231_v2 = vpop.f32.mrb[225].mxu0  ;;  %v4527_v56 = vsel %vm803_vm0, %v15045_v37, %v15044_v0  ;;  %v15048_v62 = vshll.u32 %v11984_v60, 16  ;;  %v3183_v55 = vmax.f32 %v3135_v23, 0.0  ;;  %v3133_v22 = vadd.f32 %v11824_v16, %v3078_v27  ;;  %v15050_v0 = vld [vmem:[#allocation42_spill] sm:$0xff] }
 0x2f8   : > { %15042 = vst [vmem:[#allocation89_spill] sm:$0xff] %v12231_v2  ;;  %v12242_v35 = vpop.f32.mrb[226].mxu0  ;;  %v12244_v38 = vor.u32 %v4800_v13, %v4797_v63  ;;  %v4980_v15 = vshrl.u32 %v4527_v56, 16  ;;  %v4983_v10 = vshll.u32 %v4527_v56, 16  ;;  %v3031_v37 = vadd.f32 %v15050_v0, %v11802_v47  ;;  %v3461_v13 = vpop.permute.xlu1 %3460  ;;  %v15057_v27 = vld [vmem:[#allocation50_spill] sm:$0xff] }
 0x2f9   : > { %15047 = vst [vmem:[#allocation65_spill] sm:$0xff] %v12242_v35  ;;  %v5007_v28 = vrot.slane %v15048_v62, 4  ;;  %v12248_v54 = vpop.f32.mrb[227].mxu0  ;;  %v12269_v47 = vsel %vm4594_vm3, %v12161_v29, %v12225_v7  ;;  %v3519_v51 = vmul.f32 %v3466_v39, %v3183_v55  ;;  %v3181_v2 = vmax.f32 %v3133_v22, 0.0 }
 0x2fa   : > { %15049 = vst [vmem:[#allocation90_spill] sm:$0xff] %v12248_v54  ;;  %v12255_v35 = vpop.f32.mrb[228].mxu0  ;;  %v12260_v63 = vsel %vm4594_vm3, %v12078_v9, %v12244_v38  ;;  %v4982_v62 = vrot.slane %v4980_v15, 3  ;;  %v4985_v56 = vrot.slane %v4983_v10, 4  ;;  %15055 = vst [vmem:[#allocation92_spill] sm:$0xff] %v12269_v47  ;;  %v12272_v33 = vrot.slane %v4980_v15, 7 }
 0x2fb   : > { %15052 = vst [vmem:[#allocation42_spill] sm:$0xff] %v12255_v35  ;;  %15053 = vst [vmem:[#allocation64_spill] sm:$0xff] %v12260_v63  ;;  %v12262_v60 = vor.u32 %v5007_v28, %v5004_v12  ;;  %v12264_v23 = vpop.f32.mrb[229].mxu0  ;;  %5454 = vmatprep.mubr.bf16.mxu1 %v12260_v63  ;;  %v3081_v0 = vadd.f32 %v3031_v37, %v15057_v27  ;;  %v15059_v54 = vld [vmem:[#allocation63_spill] sm:$0xff]  ;;  %v4326_v28 = vor.u32 %v12212_v8, %v4322_v20 }
 0x2fc   : > { %15054 = vst [vmem:[#allocation91_spill] sm:$0xff] %v12264_v23  ;;  %15056 = vst [vmem:[#allocation93_spill] sm:$0xff] %v12272_v33  ;;  %v12275_v9 = vpop.f32.mrb[230].mxu0  ;;  %v4986_v35 = vor.u32 %v4985_v56, %v4982_v62  ;;  %v3079_v12 = vadd.f32 %v3023_v14, %v15059_v54  ;;  %5455 = vmatmul.mubr.bf16.gmra.mrb[0].mxu1 %v12269_v47  ;;  %v14556_v23 = vrot.slane %v12209_v31, 1  ;;  %v15062_v55 = vrot.slane %v12062_v36, 1 }
 0x2fd   : > { %15058 = vst [vmem:[#allocation50_spill] sm:$0xff] %v12275_v9  ;;  %v12281_v29 = vpop.f32.mrb[231].mxu0  ;;  %v12284_v39 = vor.u32 %v12272_v33, %v4983_v10  ;;  %v3136_v15 = vadd.f32 %v11824_v16, %v3081_v0  ;;  %v15063_v37 = vrot.slane %v11920_v24, 1 }
 0x2fe   : > { %15060 = vst [vmem:[#allocation63_spill] sm:$0xff] %v12281_v29  ;;  %v12292_v14 = vpop.f32.mrb[232].mxu0  ;;  %v12296_v20 = vsel %vm4594_vm3, %v12138_v19, %v4986_v35  ;;  %v12300_v22 = vsel %vm4594_vm3, %v4986_v35, %v12262_v60  ;;  %v3134_v10 = vadd.f32 %v11824_v16, %v3079_v12  ;;  %v12306_v62 = vsel %vm555_vm2, %v4326_v28, %v14556_v23  ;;  %v3471_v35 = vpop.permute.xlu1 %3470 }
 0x2ff   : > { %15061 = vst [vmem:[#allocation94_spill] sm:$0xff] %v12284_v39  ;;  %v4531_v54 = vsel %vm803_vm0, %v15063_v37, %v15062_v55  ;;  %15064 = vst [vmem:[#allocation95_spill] sm:$0xff] %v12292_v14  ;;  %v12308_v56 = vpop.f32.mrb[233].mxu0  ;;  %8644 = vmatprep.mubr.bf16.mxu0 %v12296_v20  ;;  %v3184_v27 = vmax.f32 %v3136_v15, 0.0  ;;  %v14563_v0 = vshrl.u32 %v12306_v62, 16  ;;  %v15069_v12 = vshrl.u32 %v12092_v41, 16 }
 0x300   : > { %15065 = vst [vmem:[#allocation96_spill] sm:$0xff] %v12296_v20  ;;  %15066 = vst [vmem:[#allocation97_spill] sm:$0xff] %v12300_v22  ;;  %v5024_v55 = vshrl.u32 %v4531_v54, 16  ;;  %v12313_v37 = vpop.f32.mrb[234].mxu0  ;;  %v3182_v47 = vmax.f32 %v3134_v10, 0.0  ;;  %8645 = vmatmul.mubr.bf16.gmra.mrb[32].mxu0 %v12300_v22  ;;  %v5027_v16 = vshll.u32 %v4531_v54, 16  ;;  %v3517_v54 = vmul.f32 %v12191_v18, %v3181_v2 }
 0x301   : > { %15067 = vst [vmem:[#allocation98_spill] sm:$0xff] %v12308_v56  ;;  %15068 = vst [vmem:[#allocation99_spill] sm:$0xff] %v12313_v37  ;;  %v5048_v28 = vrot.slane %v15069_v12, 3  ;;  %v15070_v23 = vshll.u32 %v12092_v41, 16  ;;  %v12320_v20 = vpop.f32.mrb[235].mxu0  ;;  %v3520_v15 = vmul.f32 %v3471_v35, %v3184_v27  ;;  %v4819_v19 = vrot.slane %v14563_v0, 3 }
 0x302   : > { %15071 = vst [vmem:[#allocation100_spill] sm:$0xff] %v12320_v20  ;;  %v15072_v33 = vshll.u32 %v12306_v62, 16  ;;  %v5026_v37 = vrot.slane %v5024_v55, 3  ;;  %v12326_v10 = vpop.f32.mrb[236].mxu0  ;;  %v3518_v22 = vmul.f32 %v3461_v13, %v3182_v47  ;;  %v5029_v56 = vrot.slane %v5027_v16, 4  ;;  %v12350_v2 = vld [vmem:[%s14373_s3 + $0x200] sm:$0xff]  }
 0x303   : > { %v5051_v63 = vrot.slane %v15070_v23, 4  ;;  %15073 = vst [vmem:[#allocation101_spill] sm:$0xff] %v12326_v10  ;;  %v12329_v12 = vrot.slane %v5024_v55, 7  ;;  %v12331_v41 = vpop.f32.mrb[237].mxu0  ;;  %v12333_v23 = vpack.c.bf16 %v3520_v15, %v3519_v51  ;;  %v12340_v0 = vshll.u32 %v11607_v30, 16  ;;  %8724 = vmatprep.subr.bf16.mxu0 %v12350_v2 }
 0x304   : > { %v4822_v39 = vrot.slane %v15072_v33, 4  ;;  %15075 = vst [vmem:[#allocation103_spill] sm:$0xff] %v12331_v41  ;;  %v12337_v35 = vpop.f32.mrb[238].mxu0  ;;  %v12342_v33 = vpack.c.bf16 %v3518_v22, %v3517_v54  ;;  %v5030_v10 = vor.u32 %v5029_v56, %v5026_v37  ;;  %v4812_v37 = vrot.slane %v12212_v8, 3 }
 0x305   : > { %15074 = vst [vmem:[#allocation102_spill] sm:$0xff] %v12329_v12  ;;  %15076 = vst [vmem:[#allocation104_spill] sm:$0xff] %v12333_v23  ;;  %v12345_v18 = vor.u32 %v12329_v12, %v5027_v16  ;;  %v12352_v13 = vpop.f32.mrb[239].mxu0  ;;  %v14567_v51 = vrot.slane %v12333_v23, 1  ;;  %v5052_v22 = vor.u32 %v5051_v63, %v5048_v28  ;;  %v4813_v16 = vrot.slane %v12097_v34, 4 }
 0x306   : > { %v12335_v27 = vor.u32 %v4822_v39, %v4819_v19  ;;  %15077 = vst [vmem:[#allocation105_spill] sm:$0xff] %v12337_v35  ;;  %15079 = vst [vmem:[#allocation107_spill] sm:$0xff] %v12352_v13  ;;  %v12361_v56 = vpop.f32.mrb[240].mxu0  ;;  %v4538_v19 = vrot.slane %v12342_v33, 1  ;;  %v12367_v55 = vsel %vm4594_vm3, %v12262_v60, %v5030_v10  ;;  %v12382_v60 = vshll.u32 %v11544_v32, 16 }
 0x307   : > { %15078 = vst [vmem:[#allocation106_spill] sm:$0xff] %v12345_v18  ;;  %15081 = vst [vmem:[#allocation109_spill] sm:$0xff] %v12361_v56  ;;  %v12372_v15 = vpop.f32.mrb[241].mxu0  ;;  %8648 = vmatprep.mubr.bf16.mxu0 %v12367_v55  ;;  %v12385_v54 = vshrl.u32 %v11607_v30, 16  ;;  %v12388_v47 = vshll.u32 %v11742_v44, 16  ;;  %v12400_v12 = vsel %vm4594_vm3, %v5030_v10, %v5052_v22  ;;  %v15090_v30 = vrot.slane %v12209_v31, 1 }
 0x308   : > { %v12359_v39 = vsel %vm4594_vm3, %v12244_v38, %v12335_v27  ;;  %15082 = vst [vmem:[#allocation110_spill] sm:$0xff] %v12367_v55  ;;  %15083 = vst [vmem:[#allocation111_spill] sm:$0xff] %v12372_v15  ;;  %v12375_v38 = vshrl.u32 %v11422_v11, 16  ;;  %v12379_v28 = vpop.f32.mrb[242].mxu0  ;;  %v12393_v11 = vsel %vm803_vm0, %v4538_v19, %v14567_v51  ;;  %8649 = vmatmul.mubr.bf16.gmra.mrb[36].mxu0 %v12400_v12  ;;  %v4338_v51 = vrot.slane %v12340_v0, 1 }
 0x309   : > { %15080 = vst [vmem:[#allocation108_spill] sm:$0xff] %v12359_v39  ;;  %5462 = vmatprep.mubr.bf16.mxu1 %v12359_v39  ;;  %15084 = vst [vmem:[#allocation112_spill] sm:$0xff] %v12379_v28  ;;  %v12395_v39 = vpop.f32.mrb[243].mxu0  ;;  %v4814_v15 = vor.u32 %v4813_v16, %v4812_v37  ;;  %v15093_v63 = vrot.slane %v12027_v1, 1  ;;  %v15094_v10 = vshrl.u32 %v12220_v42, 16 }
 0x30a   : > { %15085 = vst [vmem:[#allocation113_spill] sm:$0xff] %v12382_v60  ;;  %15086 = vst [vmem:[#allocation114_spill] sm:$0xff] %v12388_v47  ;;  %v4334_v18 = vor.u32 %v12375_v38, %v15090_v30  ;;  %v12405_v28 = vpop.f32.mrb[244].mxu0  ;;  %v4834_v37 = vrot.slane %v12375_v38, 3 }
 0x30b   : > { %15087 = vst [vmem:[#allocation115_spill] sm:$0xff] %v12393_v11  ;;  %15088 = vst [vmem:[#allocation116_spill] sm:$0xff] %v12395_v39  ;;  %v15092_v39 = vrot.slane %v12172_v3, 1  ;;  %v5092_v56 = vrot.slane %v15094_v10, 3  ;;  %v12416_v13 = vpop.f32.mrb[245].mxu0  ;;  %v4342_v10 = vor.u32 %v12385_v54, %v4338_v51 }
 0x30c   : > { %15089 = vst [vmem:[#allocation117_spill] sm:$0xff] %v12400_v12  ;;  %15091 = vst [vmem:[#allocation118_spill] sm:$0xff] %v12405_v28  ;;  %v15096_v28 = vshll.u32 %v12220_v42, 16  ;;  %v12421_v16 = vpop.f32.mrb[246].mxu0  ;;  %v12425_v12 = vsel %vm4594_vm3, %v12225_v7, %v4814_v15 }
 0x30d   : > { %v4535_v55 = vsel %vm803_vm0, %v15093_v63, %v15092_v39  ;;  %15095 = vst [vmem:[#allocation119_spill] sm:$0xff] %v12416_v13  ;;  %15097 = vst [vmem:[#allocation120_spill] sm:$0xff] %v12421_v16  ;;  %v12428_v39 = vsel %vm555_vm2, %v4334_v18, %v4338_v51  ;;  %v4835_v63 = vrot.slane %v12209_v31, 4  ;;  %v12432_v13 = vpop.f32.mrb[247].mxu0  ;;  %5463 = vmatmul.mubr.bf16.gmra.mrb[4].mxu1 %v12425_v12  ;;  %v4346_v18 = vrot.slane %v12382_v60, 1 }
 0x30e   : > { %v5068_v35 = vshrl.u32 %v4535_v55, 16  ;;  %v5071_v30 = vshll.u32 %v4535_v55, 16  ;;  %v5095_v41 = vrot.slane %v15096_v28, 4  ;;  %15098 = vst [vmem:[#allocation121_spill] sm:$0xff] %v12425_v12  ;;  %15099 = vst [vmem:[#allocation122_spill] sm:$0xff] %v12432_v13  ;;  %v14574_v55 = vshrl.u32 %v12428_v39, 16 }
 0x30f   : > { %v14573_v28 = vshll.u32 %v12428_v39, 16  ;;  %v4836_v14 = vor.u32 %v4835_v63, %v4834_v37  ;;  %v15101_v12 = vrot.slane %v12149_v26, 1 }
 0x310   : > { %v5070_v42 = vrot.slane %v5068_v35, 3  ;;  %v5073_v16 = vrot.slane %v5071_v30, 4  ;;  %v5096_v20 = vor.u32 %v5095_v41, %v5092_v56  ;;  %v12437_v7 = vrot.slane %v5068_v35, 7 }
 0x311   : > { %v4841_v29 = vrot.slane %v14574_v55, 3  ;;  %v4844_v51 = vrot.slane %v14573_v28, 4  ;;  %v4539_v9 = vsel %vm803_vm0, %v15101_v12, %v4538_v19  ;;  %v12451_v41 = vsel %vm4594_vm3, %v4814_v15, %v4836_v14  ;;  %v12456_v37 = vpop.f32.mrb[248].mxu0 }
 0x312   : > { %15100 = vst [vmem:[#allocation123_spill] sm:$0xff] %v12437_v7  ;;  %v5074_v13 = vor.u32 %v5073_v16, %v5070_v42  ;;  %v12448_v34 = vor.u32 %v12437_v7, %v5071_v30  ;;  %15103 = vst [vmem:[#allocation125_spill] sm:$0xff] %v12451_v41  ;;  %v12454_v35 = vsel %vm555_vm2, %v4342_v10, %v4346_v18  ;;  %v5112_v56 = vshrl.u32 %v4539_v9, 16  ;;  %v12465_v19 = vpop.f32.mrb[249].mxu0 }
 0x313   : > { %15104 = vst [vmem:[#allocation126_spill] sm:$0xff] %v12456_v37  ;;  %v4845_v63 = vor.u32 %v4844_v51, %v4841_v29  ;;  %v14578_v12 = vshrl.u32 %v12454_v35, 16  ;;  %15107 = vst [vmem:[#allocation129_spill] sm:$0xff] %v12465_v19  ;;  %v5115_v16 = vshll.u32 %v4539_v9, 16  ;;  %v15108_v10 = vshrl.u32 %v12393_v11, 16  ;;  %v12471_v29 = vpop.f32.mrb[250].mxu0 }
 0x314   : > { %15102 = vst [vmem:[#allocation124_spill] sm:$0xff] %v12448_v34  ;;  %v12459_v28 = vsel %vm4594_vm3, %v5052_v22, %v5074_v13  ;;  %v12462_v42 = vsel %vm4594_vm3, %v5074_v13, %v5096_v20  ;;  %v5114_v30 = vrot.slane %v5112_v56, 3  ;;  %15109 = vst [vmem:[#allocation130_spill] sm:$0xff] %v12471_v29  ;;  %v15111_v51 = vshll.u32 %v12393_v11, 16  ;;  %v12484_v9 = vpop.f32.mrb[251].mxu0 }
 0x315   : > { %15105 = vst [vmem:[#allocation127_spill] sm:$0xff] %v12459_v28  ;;  %15106 = vst [vmem:[#allocation128_spill] sm:$0xff] %v12462_v42  ;;  %8652 = vmatprep.mubr.bf16.mxu0 %v12459_v28  ;;  %v5136_v55 = vrot.slane %v15108_v10, 3  ;;  %v12475_v22 = vsel %vm4594_vm3, %v12335_v27, %v4845_v63  ;;  %v4863_v13 = vrot.slane %v14578_v12, 3  ;;  %v12482_v15 = vrot.slane %v5112_v56, 7  ;;  %v15117_v56 = vld [vmem:[#allocation3_spill] sm:$0xff] }
 0x316   : > { %15110 = vst [vmem:[#allocation131_spill] sm:$0xff] %v12475_v22  ;;  %8653 = vmatmul.mubr.bf16.gmra.mrb[40].mxu0 %v12462_v42  ;;  %v5139_v28 = vrot.slane %v15111_v51, 4  ;;  %15113 = vst [vmem:[#allocation133_spill] sm:$0xff] %v12484_v9  ;;  %v12487_v10 = vshrl.u32 %v11544_v32, 16  ;;  %5470 = vmatprep.mubr.bf16.mxu1 %v12475_v22  ;;  %v15114_v27 = vshll.u32 %v12454_v35, 16  ;;  %v5117_v34 = vrot.slane %v5115_v16, 4 }
 0x317   : > { %15112 = vst [vmem:[#allocation132_spill] sm:$0xff] %v12482_v15  ;;  %5471 = vmatmul.mubr.bf16.gmra.mrb[8].mxu1 %v12451_v41  ;;  %v12496_v12 = vor.u32 %v12482_v15, %v5115_v16  ;;  %v15118_v51 = vshrl.u32 %v15117_v56, 16  ;;  %v4856_v32 = vrot.slane %v12385_v54, 3  ;;  %v12504_v9 = vshll.u32 %v11681_v45, 16 }
 0x318   : > { %v4866_v7 = vrot.slane %v15114_v27, 4  ;;  %v12493_v42 = vor.u32 %v5139_v28, %v5136_v55  ;;  %v5118_v29 = vor.u32 %v5117_v34, %v5114_v30  ;;  %v4857_v27 = vrot.slane %v12340_v0, 4 }
 0x319   : > { %15116 = vst [vmem:[#allocation135_spill] sm:$0xff] %v12496_v12  ;;  %v12500_v11 = vrot.slane %v15118_v51, 7  ;;  %15119 = vst [vmem:[#allocation3_spill] sm:$0xff] %v12504_v9  ;;  %v12508_v41 = vshrl.u32 %v11742_v44, 16  ;;  %v15121_v55 = vshll.u32 %v15117_v56, 16  ;;  %v4350_v16 = vor.u32 %v12487_v10, %v4346_v18  ;;  %v15126_v18 = vld [vmem:[#allocation4_spill] sm:$0xff] }
 0x31a   : > { %15115 = vst [vmem:[#allocation134_spill] sm:$0xff] %v12493_v42  ;;  %v4867_v22 = vor.u32 %v4866_v7, %v4863_v13  ;;  %v4354_v51 = vrot.slane %v12388_v47, 1  ;;  %v12519_v12 = vsel %vm4594_vm3, %v5096_v20, %v5118_v29  ;;  %v12523_v34 = vsel %vm4594_vm3, %v5118_v29, %v12493_v42  ;;  %v12525_v7 = vpop.f32.mrb[252].mxu0 }
 0x31b   : > { %15120 = vst [vmem:[#allocation136_spill] sm:$0xff] %v12508_v41  ;;  %v5912_v28 = vor.u32 %v12500_v11, %v15121_v55  ;;  %15123 = vst [vmem:[#allocation138_spill] sm:$0xff] %v12519_v12  ;;  %v4858_v44 = vor.u32 %v4857_v27, %v4856_v32  ;;  %8656 = vmatprep.mubr.bf16.mxu0 %v12519_v12  ;;  %v15127_v30 = vshrl.u32 %v15126_v18, 16  ;;  %v4878_v20 = vrot.slane %v12487_v10, 3  ;;  %v12535_v56 = vpop.f32.mrb[253].mxu0  ;;  %v15130_v55 = vld [vmem:[#allocation26_spill] sm:$0xff] }
 0x31c   : > { %v12516_v15 = vsel %vm4594_vm3, %v4845_v63, %v4867_v22  ;;  %15124 = vst [vmem:[#allocation139_spill] sm:$0xff] %v12523_v34  ;;  %15125 = vst [vmem:[#allocation140_spill] sm:$0xff] %v12525_v7  ;;  %v12532_v63 = vsel %vm555_vm2, %v4350_v16, %v4354_v51  ;;  %v15131_v42 = vshrl.u32 %v15130_v55, 16  ;;  %v12546_v18 = vpop.f32.mrb[254].mxu0  ;;  %v12556_v27 = vshrl.u32 %v11681_v45, 16 }
 0x31d   : > { %15122 = vst [vmem:[#allocation137_spill] sm:$0xff] %v12516_v15  ;;  %5478 = vmatprep.mubr.bf16.mxu1 %v12516_v15  ;;  %v5910_v13 = vrot.slane %v15127_v30, 7  ;;  %15128 = vst [vmem:[#allocation4_spill] sm:$0xff] %v12535_v56  ;;  %v12538_v29 = vsel %vm4594_vm3, %v4836_v14, %v4858_v44  ;;  %v14588_v32 = vshrl.u32 %v12532_v63, 16  ;;  %v4879_v30 = vrot.slane %v12382_v60, 4  ;;  %v12553_v56 = vpop.f32.mrb[255].mxu0 }
 0x31e   : > { %15129 = vst [vmem:[#allocation141_spill] sm:$0xff] %v12538_v29  ;;  %v12544_v12 = vrot.slane %v15131_v42, 7  ;;  %15132 = vst [vmem:[#allocation26_spill] sm:$0xff] %v12546_v18  ;;  %8657 = vmatmul.mubr.bf16.gmra.mrb[44].mxu0 %v12523_v34  ;;  %v4358_v15 = vor.u32 %v12508_v41, %v4354_v51  ;;  %v4362_v14 = vrot.slane %v12504_v9, 1  ;;  %v15135_v18 = vshll.u32 %v12532_v63, 16 }
 0x31f   : > { %v5913_v16 = vsel %vm5905_vm4, %v5910_v13, %v5912_v28  ;;  %15133 = vst [vmem:[#allocation142_spill] sm:$0xff] %v12553_v56  ;;  %15134 = vst [vmem:[#allocation143_spill] sm:$0xff] %v12556_v27  ;;  %v4885_v42 = vrot.slane %v14588_v32, 3  ;;  %v12563_v28 = vshll.u32 %v11875_v6, 16  ;;  %5479 = vmatmul.mubr.bf16.gmra.mrb[12].mxu1 %v12538_v29  ;;  %v4880_v51 = vor.u32 %v4879_v30, %v4878_v20 }
 0x320   : > { %6383 = vmatprep.mubr.bf16.mxu0 %v5913_v16  ;;  %v4888_v34 = vrot.slane %v15135_v18, 4  ;;  %v12567_v13 = vsel %vm555_vm2, %v4358_v15, %v4362_v14  ;;  %v4900_v56 = vrot.slane %v12508_v41, 3  ;;  %v5906_v16 = vrot.slane %v14682_v21, 7 }
 0x321   : > { %15136 = vst [vmem:[#allocation144_spill] sm:$0xff] %v12563_v28  ;;  %15137 = vst [vmem:[#allocation145_spill] sm:$0xff] %v12567_v13  ;;  %v14593_v7 = vshrl.u32 %v12567_v13, 16  ;;  %v14595_v32 = vshll.u32 %v12567_v13, 16  ;;  %v12574_v18 = vshll.u32 %v11819_v53, 16  ;;  %v15139_v19 = vshll.u32 %v15130_v55, 16 }
 0x322   : > { %v4889_v45 = vor.u32 %v4888_v34, %v4885_v42  ;;  %v12580_v20 = vsel %vm4594_vm3, %v4858_v44, %v4880_v51  ;;  %v4901_v15 = vrot.slane %v12388_v47, 4  ;;  %v12584_v34 = vshrl.u32 %v11875_v6, 16  ;;  %v8975_v6 = vld [vmem:[%s14373_s3 + $0x208] sm:$0xff]  }
 0x323   : > { %15138 = vst [vmem:[#allocation146_spill] sm:$0xff] %v12574_v18  ;;  %v5922_v29 = vor.u32 %v12544_v12, %v15139_v19  ;;  %15140 = vst [vmem:[#allocation147_spill] sm:$0xff] %v12580_v20  ;;  %v4907_v42 = vrot.slane %v14593_v7, 3  ;;  %v4910_v21 = vrot.slane %v14595_v32, 4  ;;  %v15143_v19 = vld [vmem:[#allocation62_spill] sm:$0xff]  ;;  %v4366_v37 = vor.u32 %v12556_v27, %v4362_v14 }
 0x324   : > { %15141 = vst [vmem:[#allocation148_spill] sm:$0xff] %v12584_v34  ;;  %v12587_v30 = vsel %vm4594_vm3, %v4867_v22, %v4889_v45  ;;  %v4902_v44 = vor.u32 %v4901_v15, %v4900_v56  ;;  %v4370_v47 = vrot.slane %v12563_v28, 1  ;;  %v15144_v22 = vld [vmem:[#allocation56_spill] sm:$0xff]  ;;  %v4922_v60 = vrot.slane %v12556_v27, 3  ;;  %v15145_v15 = vld [vmem:[#allocation13_spill] sm:$0xff] }
 0x325   : > { %15142 = vst [vmem:[#allocation149_spill] sm:$0xff] %v12587_v30  ;;  %5486 = vmatprep.mubr.bf16.mxu1 %v12587_v30  ;;  %v5909_v41 = vsel %vm5905_vm4, %v5906_v16, %v15144_v22  ;;  %v4911_v7 = vor.u32 %v4910_v21, %v4907_v42  ;;  %v4923_v32 = vrot.slane %v12504_v9, 4  ;;  %v5923_v56 = vsel %vm5905_vm4, %v12500_v11, %v5922_v29  ;;  %v15150_v29 = vld [vmem:[#allocation10_spill] sm:$0xff] }
 0x326   : > { %6384 = vmatmul.mubr.bf16.vlgmr.msra.gmra.mrb[48].mxu0 %v5909_v41  ;;  %v15146_v14 = vshrl.u32 %v15145_v15, 16  ;;  %v12611_v30 = vsel %vm4594_vm3, %v4880_v51, %v4902_v44  ;;  %v12614_v13 = vsel %vm555_vm2, %v4366_v37, %v4370_v47  ;;  %v12623_v11 = vshll.u32 %v11957_v25, 16 }
 0x327   : > { %15147 = vst [vmem:[#allocation62_spill] sm:$0xff] %v12611_v30  ;;  %6391 = vmatprep.mubr.bf16.mxu0 %v5923_v56  ;;  %v12617_v21 = vsel %vm4594_vm3, %v4889_v45, %v4911_v7  ;;  %v14600_v16 = vshrl.u32 %v12614_v13, 16  ;;  %v14602_v41 = vshll.u32 %v12614_v13, 16  ;;  %v4924_v42 = vor.u32 %v4923_v32, %v4922_v60  ;;  %8725 = vmatpush3.bf16.msra.mxu0 %v12350_v2 }
 0x328   : > { %v12608_v55 = vrot.slane %v15146_v14, 7  ;;  %15148 = vst [vmem:[#allocation56_spill] sm:$0xff] %v12617_v21  ;;  %15149 = vst [vmem:[#allocation13_spill] sm:$0xff] %v12623_v11  ;;  %5487 = vmatmul.mubr.bf16.gmra.mrb[16].mxu1 %v12580_v20  ;;  %v15151_v37 = vrot.slane %v15143_v19, 7  ;;  %v4374_v22 = vor.u32 %v12584_v34, %v4370_v47  ;;  %v4378_v45 = vrot.slane %v12574_v18, 1  ;;  %8726 = vmatprep.subr.bf16.mxu0 %v8975_v6 }
 0x329   : > { %v12632_v56 = vshrl.u32 %v11819_v53, 16  ;;  %5494 = vmatprep.mubr.bf16.mxu1 %v12617_v21  ;;  %v4929_v2 = vrot.slane %v14600_v16, 3  ;;  %v4932_v60 = vrot.slane %v14602_v41, 4  ;;  %v12640_v32 = vsel %vm4594_vm3, %v4902_v44, %v4924_v42  ;;  %v15154_v41 = vld [vmem:[#allocation60_spill] sm:$0xff] }
 0x32a   : > { %v5919_v51 = vor.u32 %v15151_v37, %v15150_v29  ;;  %15152 = vst [vmem:[#allocation10_spill] sm:$0xff] %v12640_v32  ;;  %v15153_v14 = vshll.u32 %v15145_v15, 16  ;;  %v12646_v29 = vsel %vm555_vm2, %v4374_v22, %v4378_v45  ;;  %v4944_v53 = vrot.slane %v12584_v34, 3  ;;  %v15157_v34 = vld [vmem:[#allocation5_spill] sm:$0xff] }
 0x32b   : > { %v4945_v37 = vrot.slane %v12563_v28, 4  ;;  %v4933_v21 = vor.u32 %v4932_v60, %v4929_v2  ;;  %v14608_v16 = vshrl.u32 %v12646_v29, 16  ;;  %v14607_v20 = vshll.u32 %v12646_v29, 16  ;;  %8727 = vmatpush3.bf16.msra.mxu0 %v8975_v6 }
 0x32c   : > { %v5931_v47 = vor.u32 %v12608_v55, %v15153_v14  ;;  %v15155_v44 = vrot.slane %v15154_v41, 7  ;;  %v4382_v14 = vor.u32 %v12632_v56, %v4378_v45  ;;  %v4386_v22 = vrot.slane %v12623_v11, 1 }
 0x32d   : > { %v4946_v15 = vor.u32 %v4945_v37, %v4944_v53  ;;  %v12658_v27 = vsel %vm4594_vm3, %v4911_v7, %v4933_v21  ;;  %v14610_v28 = vrot.slane %v15157_v34, 7  ;;  %v4951_v2 = vrot.slane %v14608_v16, 3 }
 0x32e   : > { %v5920_v9 = vsel %vm5905_vm4, %v15155_v44, %v5919_v51  ;;  %15156 = vst [vmem:[#allocation60_spill] sm:$0xff] %v12658_v27  ;;  %v4954_v6 = vrot.slane %v14607_v20, 4  ;;  %v5932_v41 = vsel %vm5905_vm4, %v12544_v12, %v5931_v47  ;;  %v15158_v51 = vld [vmem:[#allocation24_spill] sm:$0xff]  ;;  %v12675_v7 = vsel %vm555_vm2, %v4382_v14, %v4386_v22  ;;  %v15161_v47 = vld [vmem:[#allocation15_spill] sm:$0xff] }
 0x32f   : > { %6392 = vmatmul.mubr.bf16.gmra.mrb[52].mxu0 %v5920_v9  ;;  %v15159_v60 = vshrl.u32 %v15158_v51, 16  ;;  %v12672_v53 = vsel %vm4594_vm3, %v4924_v42, %v4946_v15  ;;  %v14612_v44 = vshrl.u32 %v12675_v7, 16  ;;  %v14611_v20 = vshll.u32 %v12675_v7, 16 }
 0x330   : > { %15160 = vst [vmem:[#allocation5_spill] sm:$0xff] %v12672_v53  ;;  %6399 = vmatprep.mubr.bf16.mxu0 %v5932_v41  ;;  %v4955_v37 = vor.u32 %v4954_v6, %v4951_v2  ;;  %v4966_v9 = vrot.slane %v12632_v56, 3  ;;  %5495 = vmatmul.mubr.bf16.gmra.mrb[20].mxu1 %v12611_v30  ;;  %v4967_v12 = vrot.slane %v12574_v18, 4  ;;  %v5928_v42 = vor.u32 %v14610_v28, %v15161_v47 }
 0x331   : > { %v12669_v45 = vrot.slane %v15159_v60, 7  ;;  %5502 = vmatprep.mubr.bf16.mxu1 %v12658_v27  ;;  %v4973_v2 = vrot.slane %v14612_v44, 3  ;;  %v4976_v6 = vrot.slane %v14611_v20, 4  ;;  %v15163_v41 = vshll.u32 %v15158_v51, 16 }
 0x332   : > { %v12687_v14 = vsel %vm4594_vm3, %v4933_v21, %v4955_v37  ;;  %v12696_v16 = vor.u32 %v4967_v12, %v4966_v9  ;;  %v12699_v27 = vshll.u32 %v11920_v24, 16  ;;  %v12702_v47 = vshrl.u32 %v11957_v25, 16 }
 0x333   : > { %15162 = vst [vmem:[#allocation24_spill] sm:$0xff] %v12687_v14  ;;  %v5940_v60 = vor.u32 %v12669_v45, %v15163_v41  ;;  %v12704_v21 = vor.u32 %v4976_v6, %v4973_v2  ;;  %v12707_v28 = vshrl.u32 %v11920_v24, 16  ;;  %v15166_v51 = vrot.slane %v15143_v19, 7 }
 0x334   : > { %15164 = vst [vmem:[#allocation15_spill] sm:$0xff] %v12702_v47  ;;  %v12711_v20 = vsel %vm4594_vm3, %v4946_v15, %v12696_v16  ;;  %v14615_v12 = vrot.slane %v11629_v59, 7  ;;  %v4390_v25 = vor.u32 %v12702_v47, %v4386_v22  ;;  %v15168_v2 = vshrl.u32 %v11859_v40, 16  ;;  %v8980_v22 = vld [vmem:[%s14373_s3 + $0x210] sm:$0xff]  }
 0x335   : > { %15165 = vst [vmem:[#allocation150_spill] sm:$0xff] %v12711_v20  ;;  %v5929_v9 = vsel %vm5905_vm4, %v15166_v51, %v5928_v42  ;;  %v12719_v41 = vsel %vm4594_vm3, %v4955_v37, %v12704_v21  ;;  %v5941_v24 = vsel %vm5905_vm4, %v12608_v55, %v5940_v60  ;;  %v12727_v6 = vshrl.u32 %v12027_v1, 16  ;;  %8728 = vmatprep.subr.bf16.mxu0 %v8980_v22 }
 0x336   : > { %15167 = vst [vmem:[#allocation151_spill] sm:$0xff] %v12719_v41  ;;  %v5948_v15 = vrot.slane %v15168_v2, 7  ;;  %v12730_v19 = vshll.u32 %v12062_v36, 16  ;;  %v4394_v42 = vrot.slane %v12699_v27, 1  ;;  %v15169_v37 = vshrl.u32 %v12197_v57, 16  ;;  %8729 = vmatpush3.bf16.msra.mxu0 %v8980_v22 }
 0x337   : > { %6400 = vmatmul.mubr.bf16.gmra.mrb[56].mxu0 %v5929_v9  ;;  %v12740_v60 = vshll.u32 %v12027_v1, 16  ;;  %v12744_v9 = vshrl.u32 %v12062_v36, 16  ;;  %v4988_v55 = vrot.slane %v12702_v47, 3  ;;  %v4989_v36 = vrot.slane %v12623_v11, 4 }
 0x338   : > { %6407 = vmatprep.mubr.bf16.mxu0 %v5941_v24  ;;  %v5975_v51 = vrot.slane %v15169_v37, 7  ;;  %5503 = vmatmul.mubr.bf16.gmra.mrb[24].mxu1 %v12640_v32  ;;  %v5937_v24 = vor.u32 %v14615_v12, %v11507_v5  ;;  %v12751_v2 = vsel %vm555_vm2, %v4390_v25, %v4394_v42  ;;  %v15171_v37 = vshll.u32 %v12197_v57, 16 }
 0x339   : > { %5510 = vmatprep.mubr.bf16.mxu1 %v12687_v14  ;;  %15170 = vst [vmem:[#allocation152_spill] sm:$0xff] %v12751_v2  ;;  %v15172_v14 = vshll.u32 %v11859_v40, 16  ;;  %v15173_v12 = vshrl.u32 %v11951_v58, 16  ;;  %v15174_v40 = vshrl.u32 %v12306_v62, 16  ;;  %v12776_v5 = vshrl.u32 %v12172_v3, 16 }
 0x33a   : > { %v12755_v44 = vor.u32 %v5975_v51, %v15171_v37  ;;  %v4402_v37 = vrot.slane %v12730_v19, 1  ;;  %v15175_v25 = vrot.slane %v15157_v34, 7  ;;  %v4398_v47 = vor.u32 %v12707_v28, %v4394_v42 }
 0x33b   : > { %v5949_v32 = vor.u32 %v5948_v15, %v15172_v14  ;;  %v12766_v57 = vrot.slane %v15173_v12, 7  ;;  %v5984_v14 = vrot.slane %v15174_v40, 7  ;;  %v12784_v30 = vshll.u32 %v12172_v3, 16 }
 0x33c   : > { %v5938_v12 = vsel %vm5905_vm4, %v15175_v25, %v5937_v24  ;;  %v15176_v22 = vshll.u32 %v12306_v62, 16  ;;  %v12791_v18 = vshll.u32 %v12149_v26, 16  ;;  %v15177_v34 = vrot.slane %v11768_v4, 7 }
 0x33d   : > { %v5950_v40 = vsel %vm5905_vm4, %v12669_v45, %v5949_v32  ;;  %v15178_v24 = vshll.u32 %v11951_v58, 16  ;;  %v12800_v25 = vsel %vm555_vm2, %v4398_v47, %v4402_v37  ;;  %v15179_v62 = vshrl.u32 %v12751_v2, 16 }
 0x33e   : > { %v5985_v11 = vor.u32 %v5984_v14, %v15176_v22  ;;  %v5946_v42 = vor.u32 %v15177_v34, %v11638_v52  ;;  %v15180_v45 = vshll.u32 %v12751_v2, 16  ;;  %v12812_v52 = vshrl.u32 %v12149_v26, 16 }
 0x33f   : > { %6408 = vmatmul.mubr.bf16.gmra.mrb[60].mxu0 %v5938_v12  ;;  %v5958_v3 = vor.u32 %v12766_v57, %v15178_v24  ;;  %v4995_v32 = vrot.slane %v15179_v62, 3  ;;  %v4406_v12 = vor.u32 %v12744_v9, %v4402_v37  ;;  %v5954_v47 = vrot.slane %v11891_v48, 7 }
 0x340   : > { %6415 = vmatprep.mubr.bf16.mxu0 %v5950_v40  ;;  %5511 = vmatmul.mubr.bf16.gmra.mrb[28].mxu1 %v12672_v53  ;;  %v4998_v22 = vrot.slane %v15180_v45, 4  ;;  %v12809_v40 = vsel %vm5905_vm4, %v5975_v51, %v5985_v11  ;;  %v15181_v34 = vshrl.u32 %v12428_v39, 16  ;;  %v4410_v11 = vrot.slane %v12740_v60, 1 }
 0x341   : > { %5518 = vmatprep.mubr.bf16.mxu1 %v12719_v41  ;;  %v12824_v26 = vshll.u32 %v12333_v23, 16  ;;  %v15183_v51 = vrot.slane %v11629_v59, 7  ;;  %v15184_v48 = vshrl.u32 %v12049_v61, 16  ;;  %v5959_v62 = vsel %vm5905_vm4, %v5948_v15, %v5958_v3  ;;  %v15186_v23 = vld [vmem:[#allocation40_spill] sm:$0xff] }
 0x342   : > { %v5993_v24 = vrot.slane %v15181_v34, 7  ;;  %v15185_v34 = vshll.u32 %v12428_v39, 16  ;;  %v4999_v45 = vor.u32 %v4998_v22, %v4995_v32  ;;  %v5963_v37 = vrot.slane %v11993_v43, 7 }
 0x343   : > { %15182 = vst [vmem:[#allocation153_spill] sm:$0xff] %v12824_v26  ;;  %v5947_v58 = vsel %vm5905_vm4, %v15183_v51, %v5946_v42  ;;  %v5966_v1 = vrot.slane %v15184_v48, 7  ;;  %v12836_v53 = vsel %vm555_vm2, %v4406_v12, %v4410_v11  ;;  %v5955_v26 = vor.u32 %v5954_v47, %v15186_v23 }
 0x344   : > { %v5994_v41 = vor.u32 %v5993_v24, %v15185_v34  ;;  %v4990_v2 = vor.u32 %v4989_v36, %v4988_v55  ;;  %v14630_v59 = vrot.slane %v12147_v49, 7  ;;  %v15187_v39 = vshrl.u32 %v12800_v25, 16 }
 0x345   : > { %v15188_v15 = vshll.u32 %v12800_v25, 16  ;;  %v5981_v43 = vrot.slane %v12212_v8, 7  ;;  %v5990_v32 = vrot.slane %v12375_v38, 7  ;;  %v15189_v23 = vshll.u32 %v12049_v61, 16 }
 0x346   : > { %v12841_v42 = vsel %vm5905_vm4, %v5984_v14, %v5994_v41  ;;  %v5017_v51 = vrot.slane %v15187_v39, 3  ;;  %v14628_v36 = vshrl.u32 %v12836_v53, 16  ;;  %v14627_v41 = vshll.u32 %v12836_v53, 16 }
 0x347   : > { %6416 = vmatmul.mubr.bf16.gmra.mrb[64].mxu0 %v5947_v58  ;;  %v5020_v3 = vrot.slane %v15188_v15, 4  ;;  %v5967_v55 = vor.u32 %v5966_v1, %v15189_v23  ;;  %v15190_v14 = vshrl.u32 %v12454_v35, 16  ;;  %v12858_v12 = vsel %vm4594_vm3, %v12704_v21, %v4999_v45 }
 0x348   : > { %6423 = vmatprep.mubr.bf16.mxu0 %v5959_v62  ;;  %5519 = vmatmul.mubr.bf16.gmra.mrb[32].mxu1 %v12711_v20  ;;  %15191 = vst [vmem:[#allocation40_spill] sm:$0xff] %v12858_v12  ;;  %v5964_v8 = vor.u32 %v5963_v37, %v11894_v46  ;;  %v15192_v38 = vrot.slane %v12707_v28, 3  ;;  %v15193_v61 = vrot.slane %v12699_v27, 4  ;;  %v5991_v62 = vor.u32 %v5990_v32, %v12209_v31 }
 0x349   : > { %v6002_v22 = vrot.slane %v15190_v14, 7  ;;  %v12867_v48 = vshll.u32 %v12342_v33, 16  ;;  %5526 = vmatprep.mubr.bf16.mxu1 %v12858_v12  ;;  %v12872_v34 = vsel %vm4594_vm3, %v12696_v16, %v4990_v2  ;;  %v4418_v21 = vrot.slane %v12784_v30, 1 }
 0x34a   : > { %v5012_v58 = vor.u32 %v15193_v61, %v15192_v38  ;;  %15194 = vst [vmem:[#allocation154_spill] sm:$0xff] %v12872_v34  ;;  %v15195_v46 = vshll.u32 %v12454_v35, 16  ;;  %v15196_v15 = vrot.slane %v11768_v4, 7  ;;  %v5021_v14 = vor.u32 %v5020_v3, %v5017_v51 }
 0x34b   : > { %v5973_v31 = vor.u32 %v14630_v59, %v11990_v50  ;;  %v12884_v38 = vsel %vm5905_vm4, %v5981_v43, %v5991_v62  ;;  %v5039_v16 = vrot.slane %v14628_v36, 3  ;;  %v5042_v61 = vrot.slane %v14627_v41, 4 }
 0x34c   : > { %v6003_v39 = vor.u32 %v6002_v22, %v15195_v46  ;;  %v5956_v23 = vsel %vm5905_vm4, %v15196_v15, %v5955_v26  ;;  %v4414_v35 = vor.u32 %v12727_v6, %v4410_v11  ;;  %v5968_v26 = vsel %vm5905_vm4, %v12766_v57, %v5967_v55  ;;  %v12908_v11 = vld [vmem:[%s14375_s5] ss:$0 sm:$0xff] }
 0x34d   : > { %v5965_v51 = vsel %vm5905_vm4, %v5954_v47, %v5964_v8  ;;  %v5977_v50 = vsel %vm5905_vm4, %v5966_v1, %v12755_v44  ;;  %v12900_v3 = vsel %vm4594_vm3, %v4990_v2, %v5012_v58  ;;  %v5999_v57 = vrot.slane %v12385_v54, 7 }
 0x34e   : > { %v12892_v4 = vsel %vm5905_vm4, %v5993_v24, %v6003_v39  ;;  %15197 = vst [vmem:[#allocation155_spill] sm:$0xff] %v12900_v3  ;;  %v12903_v62 = vsel %vm555_vm2, %v4414_v35, %v4418_v21  ;;  %v4422_v24 = vor.u32 %v12776_v5, %v4418_v21  ;;  %v15198_v47 = vshrl.u32 %v12532_v63, 16  ;;  %v15204_v35 = vld [vmem:[#allocation89_spill] sm:$0xff] }
 0x34f   : > { %6424 = vmatmul.mubr.bf16.gmra.mrb[68].mxu0 %v5956_v23  ;;  %v12915_v44 = vsel %vm4594_vm3, %v4999_v45, %v5021_v14  ;;  %v12918_v2 = vsel %vm5905_vm4, %v5963_v37, %v5973_v31  ;;  %v15200_v1 = vrot.slane %v12744_v9, 3  ;;  %v15201_v8 = vrot.slane %v12730_v19, 4  ;;  %v8985_v23 = vld [vmem:[%s14373_s3 + $0x218] sm:$0xff]  }
 0x350   : > { %v6011_v55 = vrot.slane %v15198_v47, 7  ;;  %15199 = vst [vmem:[#allocation156_spill] sm:$0xff] %v12915_v44  ;;  %v12926_v21 = vadd.f32 %v12222_v17, %v12908_v11  ;;  %6431 = vmatprep.mubr.bf16.mxu0 %v5968_v26  ;;  %v12928_v54 = vor.u32 %v5042_v61, %v5039_v16  ;;  %v14629_v39 = vrot.slane %v12791_v18, 1  ;;  %5527 = vmatmul.mubr.bf16.gmra.mrb[36].mxu1 %v12872_v34  ;;  %v15206_v61 = vld [vmem:[#allocation65_spill] sm:$0xff] }
 0x351   : > { %v5034_v46 = vor.u32 %v15201_v8, %v15200_v1  ;;  %v6000_v45 = vor.u32 %v5999_v57, %v12340_v0  ;;  %v15203_v15 = vshll.u32 %v12532_v63, 16  ;;  %v14633_v31 = vshrl.u32 %v12903_v62, 16  ;;  %5534 = vmatprep.mubr.bf16.mxu1 %v12915_v44  ;;  %v15208_v1 = vld [vmem:[#allocation90_spill] sm:$0xff]  ;;  %8730 = vmatprep.subr.bf16.mxu0 %v8985_v23 }
 0x352   : > { %15202 = vst [vmem:[#allocation157_spill] sm:$0xff] %v12926_v21  ;;  %v14635_v17 = vshll.u32 %v12903_v62, 16  ;;  %v12942_v16 = vadd.f32 %v12908_v11, %v15204_v35  ;;  %v12946_v0 = vadd.f32 %v15206_v61, %v12908_v11  ;;  %v12952_v63 = vsel %vm555_vm2, %v4422_v24, %v14629_v39  ;;  %v15211_v35 = vld [vmem:[#allocation38_spill] sm:$0xff]  ;;  %8731 = vmatpush3.bf16.msra.mxu0 %v8985_v23 }
 0x353   : > { %v6012_v37 = vor.u32 %v6011_v55, %v15203_v15  ;;  %v12955_v26 = vsel %vm5905_vm4, %v5990_v32, %v6000_v45  ;;  %v12962_v8 = vadd.f32 %v12908_v11, %v15208_v1  ;;  %v12965_v15 = vsel %vm4594_vm3, %v5012_v58, %v5034_v46  ;;  %v15214_v32 = vld [vmem:[#allocation42_spill] sm:$0xff] }
 0x354   : > { %15205 = vst [vmem:[#allocation89_spill] sm:$0xff] %v12942_v16  ;;  %15207 = vst [vmem:[#allocation65_spill] sm:$0xff] %v12946_v0  ;;  %v5982_v61 = vor.u32 %v5981_v43, %v15211_v35  ;;  %v15212_v41 = vrot.slane %v12727_v6, 3  ;;  %v15213_v24 = vrot.slane %v12740_v60, 4  ;;  %v12976_v45 = vadd.f32 %v15214_v32, %v12908_v11  ;;  %v15218_v1 = vld [vmem:[#allocation50_spill] sm:$0xff]  ;;  %v15220_v35 = vld [vmem:[#allocation145_spill] sm:$0xff] }
 0x355   : > { %v12958_v47 = vsel %vm5905_vm4, %v6002_v22, %v6012_v37  ;;  %15209 = vst [vmem:[#allocation90_spill] sm:$0xff] %v12962_v8  ;;  %15210 = vst [vmem:[#allocation158_spill] sm:$0xff] %v12965_v15  ;;  %v15216_v22 = vld [vmem:[#allocation91_spill] sm:$0xff]  ;;  %v6008_v58 = vrot.slane %v12487_v10, 7  ;;  %v12985_v43 = vadd.f32 %v15218_v1, %v12908_v11  ;;  %v15221_v39 = vshrl.u32 %v15220_v35, 16  ;;  %v15225_v1 = vld [vmem:[#allocation113_spill] sm:$0xff] }
 0x356   : > { %v12972_v36 = vor.u32 %v15213_v24, %v15212_v41  ;;  %15215 = vst [vmem:[#allocation38_spill] sm:$0xff] %v12976_v45  ;;  %v12980_v37 = vadd.f32 %v12908_v11, %v15216_v22  ;;  %v5061_v41 = vrot.slane %v14633_v31, 3  ;;  %v5064_v24 = vrot.slane %v14635_v17, 4  ;;  %v15222_v22 = vld [vmem:[#allocation63_spill] sm:$0xff]  ;;  %v15297_v16 = vld [vmem:[#allocation153_spill] sm:$0xff] }
 0x357   : > { %15219 = vst [vmem:[#allocation91_spill] sm:$0xff] %v12985_v43  ;;  %v6020_v59 = vrot.slane %v15221_v39, 7  ;;  %v12996_v44 = vadd.f32 %v12908_v11, %v15222_v22  ;;  %v13000_v10 = vsel %vm4594_vm3, %v5021_v14, %v12928_v54  ;;  %v6009_v34 = vor.u32 %v6008_v58, %v15225_v1  ;;  %v15227_v31 = vld [vmem:[#allocation95_spill] sm:$0xff]  ;;  %6432 = vmatmul.mubr.bf16.gmra.mrb[72].mxu0 %v5965_v51  ;;  %v15231_v1 = vld [vmem:[#allocation98_spill] sm:$0xff] }
 0x358   : > { %15217 = vst [vmem:[#allocation42_spill] sm:$0xff] %v12980_v37  ;;  %15224 = vst [vmem:[#allocation145_spill] sm:$0xff] %v13000_v10  ;;  %v15226_v39 = vshll.u32 %v15220_v35, 16  ;;  %v13007_v12 = vadd.f32 %v15227_v31, %v12908_v11  ;;  %v15229_v17 = vrot.slane %v12147_v49, 7  ;;  %v13016_v22 = vsel %vm4594_vm3, %v5034_v46, %v12972_v36  ;;  %v8987_v31 = vld [vmem:[%s14373_s3 + $0x220] sm:$0xff]   ;;  %6439 = vmatprep.mubr.bf16.mxu0 %v5977_v50  ;;  %v15278_v37 = vld [vmem:[#allocation130_spill] sm:$0xff] }
 0x359   : > { %15223 = vst [vmem:[#allocation50_spill] sm:$0xff] %v12996_v44  ;;  %15230 = vst [vmem:[#allocation113_spill] sm:$0xff] %v13016_v22  ;;  %v13021_v35 = vadd.f32 %v12908_v11, %v15231_v1  ;;  %v13027_v49 = vsel %vm5905_vm4, %v5999_v57, %v6009_v34  ;;  %v15233_v46 = vld [vmem:[#allocation99_spill] sm:$0xff]  ;;  %5535 = vmatmul.mubr.bf16.gmra.mrb[40].mxu1 %v12900_v3  ;;  %v13041_v1 = vor.u32 %v5064_v24, %v5061_v41  ;;  %v15243_v3 = vld [vmem:[#allocation136_spill] sm:$0xff] }
 0x35a   : > { %v6021_v23 = vor.u32 %v6020_v59, %v15226_v39  ;;  %15228 = vst [vmem:[#allocation63_spill] sm:$0xff] %v13007_v12  ;;  %v13012_v32 = vsel %vm5905_vm4, %v15229_v17, %v5982_v61  ;;  %v13034_v17 = vadd.f32 %v15233_v46, %v12908_v11  ;;  %v15235_v61 = vld [vmem:[#allocation100_spill] sm:$0xff]  ;;  %v15237_v50 = vshrl.u32 %v12952_v63, 16  ;;  %v15238_v34 = vld [vmem:[#allocation43_spill] sm:$0xff]  ;;  %5542 = vmatprep.mubr.bf16.mxu1 %v13000_v10  ;;  %v15244_v24 = vld [vmem:[#allocation105_spill] sm:$0xff] }
 0x35b   : > { %15232 = vst [vmem:[#allocation95_spill] sm:$0xff] %v13021_v35  ;;  %v13038_v39 = vadd.f32 %v12908_v11, %v15235_v61  ;;  %v13047_v57 = vadd.f32 %v12908_v11, %v15238_v34  ;;  %v15241_v46 = vld [vmem:[#allocation103_spill] sm:$0xff]  ;;  %v6017_v41 = vrot.slane %v15243_v3, 7  ;;  %v13061_v20 = vadd.f32 %v15244_v24, %v12908_v11  ;;  %8732 = vmatprep.subr.bf16.mxu0 %v8987_v31  ;;  %v15250_v24 = vld [vmem:[#allocation109_spill] sm:$0xff] }
 0x35c   : > { %v13030_v51 = vsel %vm5905_vm4, %v6011_v55, %v6021_v23  ;;  %15234 = vst [vmem:[#allocation98_spill] sm:$0xff] %v13034_v17  ;;  %v5083_v14 = vrot.slane %v15237_v50, 3  ;;  %v15239_v55 = vld [vmem:[#allocation101_spill] sm:$0xff]  ;;  %v13056_v61 = vadd.f32 %v12908_v11, %v15241_v46  ;;  %v15246_v50 = vshrl.u32 %v12614_v13, 16  ;;  %8733 = vmatpush3.bf16.msra.mxu0 %v8987_v31  ;;  %v15254_v35 = vld [vmem:[#allocation111_spill] sm:$0xff] }
 0x35d   : > { %15236 = vst [vmem:[#allocation99_spill] sm:$0xff] %v13038_v39  ;;  %v13051_v23 = vadd.f32 %v15239_v55, %v12908_v11  ;;  %15245 = vst [vmem:[#allocation101_spill] sm:$0xff] %v13061_v20  ;;  %v8989_v55 = vld [vmem:[%s14373_s3 + $0x228] sm:$0xff]   ;;  %v15247_v10 = vshll.u32 %v12952_v63, 16  ;;  %v4434_v46 = vrot.slane %v12867_v48, 1  ;;  %v13077_v20 = vadd.f32 %v15250_v24, %v12908_v11 }
 0x35e   : > { %15242 = vst [vmem:[#allocation43_spill] sm:$0xff] %v13056_v61  ;;  %v6029_v34 = vrot.slane %v15246_v50, 7  ;;  %v15248_v61 = vld [vmem:[#allocation107_spill] sm:$0xff]  ;;  %v15252_v50 = vld [vmem:[#allocation114_spill] sm:$0xff]  ;;  %v15253_v12 = vshll.u32 %v12614_v13, 16  ;;  %v13084_v43 = vadd.f32 %v12908_v11, %v15254_v35  ;;  %8734 = vmatprep.subr.bf16.mxu0 %v8989_v55  ;;  %v15277_v44 = vshll.u32 %v12646_v29, 16 }
 0x35f   : > { %15240 = vst [vmem:[#allocation100_spill] sm:$0xff] %v13051_v23  ;;  %v5086_v23 = vrot.slane %v15247_v10, 4  ;;  %v13073_v3 = vadd.f32 %v12908_v11, %v15248_v61  ;;  %15251 = vst [vmem:[#allocation136_spill] sm:$0xff] %v13077_v20  ;;  %v6018_v17 = vor.u32 %v6017_v41, %v15252_v50  ;;  %v15256_v10 = vld [vmem:[#allocation112_spill] sm:$0xff]  ;;  %v15258_v61 = vrot.slane %v12791_v18, 1  ;;  %v15261_v13 = vld [vmem:[#allocation118_spill] sm:$0xff]  ;;  %6440 = vmatmul.mubr.bf16.gmra.mrb[76].mxu0 %v12918_v2 }
 0x360   : > { %v6030_v39 = vor.u32 %v6029_v34, %v15253_v12  ;;  %15255 = vst [vmem:[#allocation105_spill] sm:$0xff] %v13084_v43  ;;  %v13088_v45 = vadd.f32 %v15256_v10, %v12908_v11  ;;  %v15259_v20 = vld [vmem:[#allocation116_spill] sm:$0xff]  ;;  %v13099_v12 = vadd.f32 %v15261_v13, %v12908_v11  ;;  %v15263_v50 = vld [vmem:[#allocation119_spill] sm:$0xff]  ;;  %v13105_v43 = vpop.f32.mrb[0].mxu0  ;;  %v8991_v2 = vld [vmem:[%s14373_s3 + $0x230] sm:$0xff]   ;;  %6447 = vmatprep.mubr.bf16.mxu0 %v12809_v40  ;;  %v14641_v21 = vrot.slane %v12632_v56, 7 }
 0x361   : > { %15249 = vst [vmem:[#allocation103_spill] sm:$0xff] %v13073_v3  ;;  %v4430_v24 = vor.u32 %v12812_v52, %v15258_v61  ;;  %v13095_v31 = vadd.f32 %v12908_v11, %v15259_v20  ;;  %v13103_v35 = vadd.f32 %v12908_v11, %v15263_v50  ;;  %v13108_v10 = vsel %vm5905_vm4, %v6008_v58, %v6018_v17  ;;  %v15265_v61 = vld [vmem:[#allocation143_spill] sm:$0xff]  ;;  %v15266_v20 = vld [vmem:[#allocation120_spill] sm:$0xff]  ;;  %v5617_v13 = vpop.f32.mrb[1].mxu0 }
 0x362   : > { %15257 = vst [vmem:[#allocation107_spill] sm:$0xff] %v13088_v45  ;;  %15262 = vst [vmem:[#allocation114_spill] sm:$0xff] %v13099_v12  ;;  %v13111_v45 = vsel %vm5905_vm4, %v6020_v59, %v6030_v39  ;;  %v6026_v3 = vrot.slane %v15265_v61, 7  ;;  %v13122_v50 = vsel %vm4594_vm3, %v12928_v54, %v13041_v1  ;;  %v15269_v59 = vshrl.u32 %v12646_v29, 16  ;;  %v15270_v39 = vld [vmem:[#allocation122_spill] sm:$0xff]  ;;  %v15272_v54 = vld [vmem:[#allocation3_spill] sm:$0xff]  ;;  %8735 = vmatpush3.bf16.msra.mxu0 %v8989_v55 }
 0x363   : > { %15260 = vst [vmem:[#allocation109_spill] sm:$0xff] %v13095_v31  ;;  %15264 = vst [vmem:[#allocation111_spill] sm:$0xff] %v13103_v35  ;;  %v13116_v31 = vadd.f32 %v15266_v20, %v12908_v11  ;;  %v13125_v58 = vsel %vm555_vm2, %v4430_v24, %v4434_v46  ;;  %v13131_v61 = vadd.f32 %v12908_v11, %v15270_v39  ;;  %v13133_v20 = vpop.f32.mrb[2].mxu0  ;;  %v15273_v12 = vld [vmem:[#allocation126_spill] sm:$0xff]  ;;  %v15275_v35 = vld [vmem:[#allocation129_spill] sm:$0xff]  ;;  %5543 = vmatmul.mubr.bf16.gmra.mrb[44].mxu1 %v12965_v15 }
 0x364   : > { %15268 = vst [vmem:[#allocation116_spill] sm:$0xff] %v13122_v50  ;;  %v6038_v17 = vrot.slane %v15269_v59, 7  ;;  %v6027_v24 = vor.u32 %v6026_v3, %v15272_v54  ;;  %v13145_v59 = vadd.f32 %v15273_v12, %v12908_v11  ;;  %v13149_v39 = vadd.f32 %v12908_v11, %v15275_v35  ;;  %v15280_v54 = vld [vmem:[#allocation133_spill] sm:$0xff]  ;;  %v15282_v12 = vld [vmem:[#allocation140_spill] sm:$0xff]  ;;  %5550 = vmatprep.mubr.bf16.mxu1 %v13122_v50  ;;  %v15290_v50 = vld [vmem:[#allocation142_spill] sm:$0xff] }
 0x365   : > { %15267 = vst [vmem:[#allocation112_spill] sm:$0xff] %v13116_v31  ;;  %15271 = vst [vmem:[#allocation118_spill] sm:$0xff] %v13131_v61  ;;  %v13139_v31 = vshrl.u32 %v12342_v33, 16  ;;  %v5620_v61 = vpop.f32.mrb[3].mxu0  ;;  %v13156_v40 = vadd.f32 %v15278_v37, %v12908_v11  ;;  %v13160_v0 = vadd.f32 %v12908_v11, %v15280_v54  ;;  %v13167_v55 = vor.u32 %v5086_v23, %v5083_v14  ;;  %v15284_v29 = vld [vmem:[#allocation4_spill] sm:$0xff]  ;;  %v8992_v54 = vld [vmem:[%s14373_s3 + $0x238] sm:$0xff]  }
 0x366   : > { %15274 = vst [vmem:[#allocation119_spill] sm:$0xff] %v13145_v59  ;;  %15276 = vst [vmem:[#allocation143_spill] sm:$0xff] %v13149_v39  ;;  %v6039_v33 = vor.u32 %v6038_v17, %v15277_v44  ;;  %v13164_v59 = vadd.f32 %v15282_v12, %v12908_v11  ;;  %v13170_v35 = vsel %vm5905_vm4, %v6017_v41, %v6027_v24  ;;  %v15286_v37 = vld [vmem:[#allocation148_spill] sm:$0xff]  ;;  %8736 = vmatprep.subr.bf16.mxu0 %v8991_v2  ;;  %v15287_v14 = vld [vmem:[#allocation26_spill] sm:$0xff] }
 0x367   : > { %15279 = vst [vmem:[#allocation120_spill] sm:$0xff] %v13156_v40  ;;  %15281 = vst [vmem:[#allocation122_spill] sm:$0xff] %v13160_v0  ;;  %v13174_v44 = vadd.f32 %v12908_v11, %v15284_v29  ;;  %v6035_v15 = vrot.slane %v15286_v37, 7  ;;  %v13185_v23 = vadd.f32 %v15287_v14, %v12908_v11  ;;  %v15289_v41 = vshrl.u32 %v12675_v7, 16  ;;  %v5392_v37 = vpop.f32.mrb[224].mxu1  ;;  %8737 = vmatpush3.bf16.msra.mxu0 %v8991_v2 }
 0x368   : > { %15283 = vst [vmem:[#allocation3_spill] sm:$0xff] %v13164_v59  ;;  %v13181_v12 = vsel %vm5905_vm4, %v6029_v34, %v6039_v33  ;;  %v13191_v29 = vadd.f32 %v12908_v11, %v15290_v50  ;;  %v4438_v40 = vor.u32 %v13139_v31, %v4434_v46  ;;  %v15292_v34 = vld [vmem:[#allocation144_spill] sm:$0xff]  ;;  %v5394_v0 = vpop.f32.mrb[225].mxu1  ;;  %v15293_v14 = vshll.u32 %v12675_v7, 16  ;;  %8738 = vmatprep.subr.bf16.mxu0 %v8992_v54 }
 0x369   : > { %15285 = vst [vmem:[#allocation126_spill] sm:$0xff] %v13174_v44  ;;  %15288 = vst [vmem:[#allocation129_spill] sm:$0xff] %v13185_v23  ;;  %v6047_v24 = vrot.slane %v15289_v41, 7  ;;  %v6036_v33 = vor.u32 %v6035_v15, %v15292_v34  ;;  %v5618_v39 = vadd.f32 %v5617_v13, %v5392_v37  ;;  %v5395_v41 = vpop.f32.mrb[226].mxu1  ;;  %v15294_v50 = vld [vmem:[#allocation152_spill] sm:$0xff]  ;;  %v14642_v46 = vrot.slane %v15297_v16, 1  ;;  %6448 = vmatmul.mubr.bf16.gmra.mrb[80].mxu0 %v13012_v32 }
 0x36a   : > { %15291 = vst [vmem:[#allocation130_spill] sm:$0xff] %v13191_v29  ;;  %v15295_v29 = vshrl.u32 %v15294_v50, 16  ;;  %v15296_v59 = vld [vmem:[#allocation72_spill] sm:$0xff]  ;;  %v5621_v0 = vadd.f32 %v5620_v61, %v5395_v41  ;;  %v5397_v2 = vpop.f32.mrb[227].mxu1  ;;  %6455 = vmatprep.mubr.bf16.mxu0 %v12841_v42  ;;  %v15302_v32 = vshrl.u32 %v13125_v58, 16 }
 0x36b   : > { %v6048_v23 = vor.u32 %v6047_v24, %v15293_v14  ;;  %v4025_v44 = vadd.f32 %v12908_v11, %v15296_v59  ;;  %v13206_v34 = vsel %vm5905_vm4, %v6026_v3, %v6036_v33  ;;  %v13213_v13 = vadd.f32 %v5618_v39, %v13047_v57  ;;  %8739 = vmatpush3.bf16.msra.mxu0 %v8992_v54 }
 0x36c   : > { %v6056_v8 = vrot.slane %v15295_v29, 7  ;;  %v15299_v29 = vld [vmem:[#allocation146_spill] sm:$0xff]  ;;  %v15300_v59 = vshll.u32 %v15294_v50, 16  ;;  %v13224_v3 = vsel %vm4594_vm3, %v13041_v1, %v13167_v55  ;;  %v15303_v57 = vshll.u32 %v13125_v58, 16  ;;  %5551 = vmatmul.mubr.bf16.gmra.mrb[48].mxu1 %v13016_v22 }
 0x36d   : > { %v13210_v7 = vsel %vm5905_vm4, %v6038_v17, %v6048_v23  ;;  %15298 = vst [vmem:[#allocation133_spill] sm:$0xff] %v13213_v13  ;;  %v6045_v37 = vor.u32 %v14641_v21, %v15299_v29  ;;  %15301 = vst [vmem:[#allocation140_spill] sm:$0xff] %v13224_v3  ;;  %v5105_v17 = vrot.slane %v15302_v32, 3  ;;  %v13230_v39 = vadd.f32 %v5621_v0, %v4025_v44  ;;  %v15323_v13 = vld [vmem:[#allocation104_spill] sm:$0xff] }
 0x36e   : > { %v6057_v14 = vor.u32 %v6056_v8, %v15300_v59  ;;  %v5108_v61 = vrot.slane %v15303_v57, 4  ;;  %v4443_v42 = vsel %vm555_vm2, %v4438_v40, %v14642_v46  ;;  %v15305_v33 = vshrl.u32 %v12800_v25, 16  ;;  %5558 = vmatprep.mubr.bf16.mxu1 %v13224_v3  ;;  %v13253_v59 = vpop.f32.mrb[4].mxu0 }
 0x36f   : > { %15304 = vst [vmem:[#allocation4_spill] sm:$0xff] %v13230_v39  ;;  %v13237_v23 = vsel %vm5905_vm4, %v6035_v15, %v6045_v37  ;;  %v15306_v44 = vshll.u32 %v12800_v25, 16  ;;  %v15307_v50 = vshrl.u32 %v12836_v53, 16  ;;  %v15308_v2 = vrot.slane %v12776_v5, 3 }
 0x370   : > { %v13240_v1 = vsel %vm5905_vm4, %v6047_v24, %v6057_v14  ;;  %v6065_v41 = vrot.slane %v15305_v33, 7  ;;  %v15309_v40 = vrot.slane %v12784_v30, 4  ;;  %v5109_v29 = vor.u32 %v5108_v61, %v5105_v17  ;;  %v5633_v61 = vpop.f32.mrb[5].mxu0 }
 0x371   : > { %v6074_v0 = vrot.slane %v15307_v50, 7  ;;  %v5125_v37 = vshrl.u32 %v4443_v42, 16  ;;  %v5128_v24 = vshll.u32 %v4443_v42, 16  ;;  %v15310_v32 = vshll.u32 %v12836_v53, 16  ;;  %v5400_v42 = vpop.f32.mrb[228].mxu1  ;;  %6456 = vmatmul.mubr.bf16.gmra.mrb[84].mxu0 %v12884_v38 }
 0x372   : > { %v6066_v54 = vor.u32 %v6065_v41, %v15306_v44  ;;  %v5078_v15 = vor.u32 %v15309_v40, %v15308_v2  ;;  %v15311_v57 = vshrl.u32 %v12903_v62, 16  ;;  %v5098_v44 = vrot.slane %v12812_v52, 3  ;;  %v15312_v2 = vld [vmem:[#allocation17_spill] sm:$0xff]  ;;  %v15313_v40 = vld [vmem:[#allocation58_spill] sm:$0xff]  ;;  %6463 = vmatprep.mubr.bf16.mxu0 %v12892_v4 }
 0x373   : > { %v6075_v25 = vor.u32 %v6074_v0, %v15310_v32  ;;  %v5099_v50 = vrot.slane %v12791_v18, 4  ;;  %v4030_v17 = vadd.f32 %v15312_v2, %v12908_v11  ;;  %v4033_v21 = vadd.f32 %v15313_v40, %v12908_v11 }
 0x374   : > { %v13256_v14 = vsel %vm5905_vm4, %v6056_v8, %v6066_v54  ;;  %v6083_v33 = vrot.slane %v15311_v57, 7  ;;  %v5626_v53 = vadd.f32 %v13105_v43, %v5400_v42  ;;  %v13270_v8 = vpop.f32.mrb[6].mxu0  ;;  %v5402_v54 = vpop.f32.mrb[229].mxu1  ;;  %v15314_v57 = vshll.u32 %v12903_v62, 16 }
 0x375   : > { %v13273_v32 = vsel %vm5905_vm4, %v6065_v41, %v6075_v25  ;;  %v13280_v2 = vsel %vm4594_vm3, %v12972_v36, %v5078_v15  ;;  %v13284_v38 = vsel %vm4594_vm3, %v13167_v55, %v5109_v29  ;;  %v5127_v43 = vrot.slane %v5125_v37, 3  ;;  %v5636_v42 = vpop.f32.mrb[7].mxu0  ;;  %v5403_v40 = vpop.f32.mrb[230].mxu1 }
 0x376   : > { %v6084_v46 = vor.u32 %v6083_v33, %v15314_v57  ;;  %15315 = vst [vmem:[#allocation148_spill] sm:$0xff] %v13280_v2  ;;  %15316 = vst [vmem:[#allocation26_spill] sm:$0xff] %v13284_v38  ;;  %v15317_v54 = vshrl.u32 %v12952_v63, 16  ;;  %5559 = vmatmul.mubr.bf16.gmra.mrb[52].mxu1 %v13280_v2  ;;  %v5130_v62 = vrot.slane %v5128_v24, 4  ;;  %v13289_v25 = vadd.f32 %v5626_v53, %v4030_v17  ;;  %v5405_v57 = vpop.f32.mrb[231].mxu1  ;;  %v15322_v2 = vld [vmem:[#allocation59_spill] sm:$0xff] }
 0x377   : > { %v5629_v4 = vadd.f32 %v13133_v20, %v5403_v40  ;;  %5566 = vmatprep.mubr.bf16.mxu1 %v13284_v38  ;;  %v15319_v55 = vshll.u32 %v12952_v63, 16  ;;  %v15324_v17 = vrot.slane %v15323_v13, 1  ;;  %v5100_v20 = vor.u32 %v5099_v50, %v5098_v44 }
 0x378   : > { %v6092_v41 = vrot.slane %v15317_v54, 7  ;;  %15318 = vst [vmem:[#allocation142_spill] sm:$0xff] %v13289_v25  ;;  %v13293_v36 = vsel %vm5905_vm4, %v6074_v0, %v6084_v46  ;;  %v15321_v54 = vshrl.u32 %v13125_v58, 16  ;;  %v13312_v0 = vshrl.u32 %v15323_v13, 16 }
 0x379   : > { %v13298_v22 = vadd.f32 %v5629_v4, %v4033_v21  ;;  %v13306_v53 = vsel %vm803_vm0, %v15324_v17, %v15322_v2  ;;  %v5131_v63 = vor.u32 %v5130_v62, %v5127_v43  ;;  %v15326_v21 = vshll.u32 %v13125_v58, 16  ;;  %6464 = vmatmul.mubr.bf16.gmra.mrb[88].mxu0 %v12955_v26 }
 0x37a   : > { %v6093_v3 = vor.u32 %v6092_v41, %v15319_v55  ;;  %v6101_v39 = vrot.slane %v15321_v54, 7  ;;  %15325 = vst [vmem:[#allocation152_spill] sm:$0xff] %v13312_v0  ;;  %v6110_v4 = vrot.slane %v5125_v37, 7  ;;  %v14648_v57 = vshrl.u32 %v13306_v53, 16  ;;  %6471 = vmatprep.mubr.bf16.mxu0 %v12958_v47  ;;  %v15330_v37 = vld [vmem:[#allocation8_spill] sm:$0xff] }
 0x37b   : > { %15320 = vst [vmem:[#allocation144_spill] sm:$0xff] %v13298_v22  ;;  %v15327_v44 = vrot.slane %v15297_v16, 1  ;;  %v5120_v13 = vrot.slane %v13139_v31, 3  ;;  %v13328_v58 = vsel %vm4594_vm3, %v5078_v15, %v5100_v20  ;;  %v13332_v26 = vsel %vm4594_vm3, %v5109_v29, %v5131_v63 }
 0x37c   : > { %v13309_v46 = vsel %vm5905_vm4, %v6083_v33, %v6093_v3  ;;  %v6102_v40 = vor.u32 %v6101_v39, %v15326_v21  ;;  %v6111_v54 = vor.u32 %v6110_v4, %v5128_v24  ;;  %v5121_v33 = vrot.slane %v12867_v48, 4  ;;  %15328 = vst [vmem:[#allocation72_spill] sm:$0xff] %v13328_v58  ;;  %15329 = vst [vmem:[#allocation146_spill] sm:$0xff] %v13332_v26  ;;  %v13347_v21 = vpop.f32.mrb[8].mxu0 }
 0x37d   : > { %v4446_v3 = vor.u32 %v13312_v0, %v15327_v44  ;;  %v15331_v24 = vshrl.u32 %v15330_v37, 16  ;;  %v6906_v17 = vrot.slane %v14648_v57, 3  ;;  %v15335_v57 = vshll.u32 %v13306_v53, 16 }
 0x37e   : > { %v13319_v55 = vsel %vm5905_vm4, %v6092_v41, %v6102_v40  ;;  %5567 = vmatmul.mubr.bf16.gmra.mrb[56].mxu1 %v13328_v58  ;;  %v13337_v43 = vsel %vm5905_vm4, %v6101_v39, %v6111_v54  ;;  %v13345_v29 = vor.u32 %v5121_v33, %v5120_v13  ;;  %v5408_v40 = vpop.f32.mrb[232].mxu1  ;;  %v15336_v33 = vld [vmem:[#allocation77_spill] sm:$0xff] }
 0x37f   : > { %v5915_v50 = vrot.slane %v15331_v24, 7  ;;  %v4451_v41 = vsel %vm555_vm2, %v4446_v3, %v15322_v2  ;;  %5574 = vmatprep.mubr.bf16.mxu1 %v13332_v26  ;;  %v15333_v24 = vld [vmem:[#allocation74_spill] sm:$0xff]  ;;  %v15334_v3 = vshll.u32 %v15330_v37, 16  ;;  %v5634_v15 = vadd.f32 %v5633_v61, %v5408_v40  ;;  %v5410_v58 = vpop.f32.mrb[233].mxu1  ;;  %v15338_v37 = vld [vmem:[#allocation11_spill] sm:$0xff] }
 0x380   : > { %v6120_v47 = vshrl.u32 %v4451_v41, 16  ;;  %v6123_v62 = vshll.u32 %v4451_v41, 16  ;;  %15332 = vst [vmem:[#allocation17_spill] sm:$0xff] %v13345_v29  ;;  %v4038_v2 = vadd.f32 %v12908_v11, %v15333_v24  ;;  %v13353_v41 = vpop.f32.mrb[9].mxu0  ;;  %v6907_v13 = vrot.slane %v15335_v57, 4 }
 0x381   : > { %v5916_v26 = vor.u32 %v5915_v50, %v15334_v3  ;;  %v4041_v38 = vadd.f32 %v12908_v11, %v15336_v33  ;;  %v13359_v22 = vpop.f32.mrb[10].mxu0  ;;  %6472 = vmatmul.mubr.bf16.gmra.mrb[92].mxu0 %v13027_v49  ;;  %v15339_v24 = vshrl.u32 %v15338_v37, 16 }
 0x382   : > { %v6122_v44 = vrot.slane %v6120_v47, 7  ;;  %v6902_v39 = vrot.slane %v6120_v47, 3  ;;  %v6903_v54 = vrot.slane %v6123_v62, 4  ;;  %v5411_v47 = vpop.f32.mrb[234].mxu1  ;;  %v13366_v0 = vadd.f32 %v5634_v15, %v4038_v2  ;;  %v13368_v61 = vpop.f32.mrb[11].mxu0  ;;  %6479 = vmatprep.mubr.bf16.mxu0 %v13030_v51  ;;  %v15341_v15 = vld [vmem:[#allocation19_spill] sm:$0xff] }
 0x383   : > { %v5914_v3 = vrot.slane %v15339_v24, 7  ;;  %v5637_v58 = vadd.f32 %v5636_v42, %v5411_v47  ;;  %v5413_v57 = vpop.f32.mrb[235].mxu1  ;;  %v13370_v40 = vor.u32 %v6907_v13, %v6906_v17  ;;  %v15342_v17 = vshrl.u32 %v15341_v15, 16  ;;  %v15346_v2 = vld [vmem:[#allocation32_spill] sm:$0xff] }
 0x384   : > { %v6125_v25 = vor.u32 %v6123_v62, %v6122_v44  ;;  %v13361_v16 = vor.u32 %v6903_v54, %v6902_v39  ;;  %v13375_v62 = vsel %vm4594_vm3, %v5100_v20, %v13345_v29  ;;  %v15343_v51 = vshll.u32 %v15341_v15, 16  ;;  %v15440_v29 = vld [vmem:[#allocation70_spill] sm:$0xff] }
 0x385   : > { %v5917_v42 = vsel %vm5905_vm4, %v5914_v3, %v5916_v26  ;;  %v5933_v39 = vrot.slane %v15342_v17, 7  ;;  %v13388_v54 = vadd.f32 %v5637_v58, %v4041_v38  ;;  %v15345_v26 = vld [vmem:[#allocation22_spill] sm:$0xff]  ;;  %v15347_v13 = vshrl.u32 %v15346_v2, 16  ;;  %v15349_v3 = vld [vmem:[#allocation49_spill] sm:$0xff] }
 0x386   : > { %15337 = vst [vmem:[#allocation58_spill] sm:$0xff] %v13361_v16  ;;  %v13378_v44 = vsel %vm5905_vm4, %v6110_v4, %v6125_v25  ;;  %v13382_v49 = vsel %vm4594_vm3, %v5131_v63, %v13361_v16  ;;  %5575 = vmatmul.mubr.bf16.gmra.mrb[60].mxu1 %v13375_v62  ;;  %v8971_v25 = vld [vmem:[%s14373_s3 + $0x180] sm:$0xff]   ;;  %v15344_v63 = vld [vmem:[#allocation18_spill] sm:$0xff]  ;;  %v13403_v47 = vpop.f32.mrb[12].mxu0  ;;  %v4046_v58 = vadd.f32 %v15349_v3, %v12908_v11  ;;  %v15350_v17 = vshll.u32 %v15346_v2, 16  ;;  %v15352_v2 = vld [vmem:[#allocation44_spill] sm:$0xff] }
 0x387   : > { %15340 = vst [vmem:[#allocation59_spill] sm:$0xff] %v13382_v49  ;;  %8676 = vmatprep.mubr.bf16.mxu1 %v5917_v42  ;;  %v5934_v20 = vor.u32 %v5933_v39, %v15343_v51  ;;  %v5926_v4 = vsel %vm5905_vm4, %v5915_v50, %v15344_v63  ;;  %v5951_v33 = vrot.slane %v15347_v13, 7  ;;  %v13408_v37 = vpop.f32.mrb[13].mxu0  ;;  %v15348_v50 = vmov 0   ;;  %v15443_v49 = vld [vmem:[#allocation57_spill] sm:$0xff] }
 0x388   : > { %v13411_v24 = vpop.f32.mrb[14].mxu0  ;;  %v5944_v13 = vsel %vm5905_vm4, %v5933_v39, %v15352_v2  ;;  %v8976_v39 = vld [vmem:[%s14373_s3 + $0x1a0] sm:$0xff]  }
 0x389   : > { %6480 = vmatmul.mubr.bf16.gmra.mrb[96].mxu0 %v13108_v10  ;;  %v5935_v38 = vsel %vm5905_vm4, %v15345_v26, %v5934_v20  ;;  %v8972_v10 = vld [vmem:[%s14373_s3 + $0x188] sm:$0xff]   ;;  %v13416_v15 = vpop.f32.mrb[15].mxu0  ;;  %v5952_v51 = vor.u32 %v5951_v33, %v15350_v17  ;;  %v15357_v17 = vld [vmem:[#allocation21_spill] sm:$0xff] }
 0x38a   : > { %6487 = vmatprep.mubr.bf16.mxu0 %v13111_v45  ;;  %v5416_v45 = vpop.f32.mrb[236].mxu1 }
 0x38b   : > { %v5642_v57 = vadd.f32 %v13253_v59, %v5416_v45  ;;  %v5418_v42 = vpop.f32.mrb[237].mxu1 }
 0x38c   : > { %v5419_v20 = vpop.f32.mrb[238].mxu1 }
 0x38d   : > { %v13425_v26 = vadd.f32 %v5642_v57, %v4046_v58  ;;  %v5421_v59 = vpop.f32.mrb[239].mxu1  ;;  %v15354_v58 = vld [vmem:[#allocation16_spill] sm:$0xff] }
 0x38e   : > { %8677 = vmatmul.mubr.bf16.vlgmr.msra.gmra.mrb[64].mxu1 %v5926_v4  ;;  %v8973_v4 = vld [vmem:[%s14373_s3 + $0x190] sm:$0xff]   ;;  %v15355_v57 = vshrl.u32 %v15354_v58, 16 }
 0x38f   : > { %8680 = vmatprep.mubr.bf16.mxu1 %v5935_v38  ;;  %7108 = vmatpush1.bf16.msra.mxu1 %v8971_v25  ;;  %v15351_v25 = vld [vmem:[#allocation75_spill] sm:$0xff]  ;;  %v5645_v38 = vadd.f32 %v13270_v8, %v5419_v20 }
 0x390   : > { %7109 = vmatprep.subr.bf16.mxu1 %v15348_v50  ;;  %v4049_v63 = vadd.f32 %v15351_v25, %v12908_v11  ;;  %v5969_v42 = vrot.slane %v15355_v57, 7  ;;  %v15358_v25 = vld [vmem:[#allocation34_spill] sm:$0xff] }
 0x391   : > { %6488 = vmatmul.mubr.bf16.gmra.mrb[100].mxu0 %v13170_v35  ;;  %v8974_v35 = vld [vmem:[%s14373_s3 + $0x198] sm:$0xff]  }
 0x392   : > { %6495 = vmatprep.mubr.bf16.mxu0 %v13181_v12  ;;  %v13433_v45 = vadd.f32 %v5645_v38, %v4049_v63  ;;  %v15356_v12 = vshll.u32 %v15354_v58, 16 }
 0x393   : > { %7110 = vmatpush1.bf16.msra.mxu1 %v8972_v10  ;;  %v15353_v10 = vld [vmem:[#allocation7_spill] sm:$0xff] }
 0x394   : > { %7111 = vmatprep.subr.bf16.mxu1 %v15348_v50  ;;  %v5953_v3 = vsel %vm5905_vm4, %v15353_v10, %v5952_v51  ;;  %v5970_v8 = vor.u32 %v5969_v42, %v15356_v12  ;;  %v5962_v51 = vsel %vm5905_vm4, %v5951_v33, %v15357_v17  ;;  %v15362_v12 = vld [vmem:[#allocation83_spill] sm:$0xff] }
 0x396   : > { %8681 = vmatmul.mubr.bf16.gmra.mrb[68].mxu1 %v5944_v13  ;;  %v13453_v20 = vpop.f32.mrb[16].mxu0  ;;  %v5971_v63 = vsel %vm5905_vm4, %v15358_v25, %v5970_v8  ;;  %v4057_v8 = vadd.f32 %v12908_v11, %v15362_v12  ;;  %v15369_v12 = vld [vmem:[#allocation13_spill] sm:$0xff] }
 0x397   : > { %8684 = vmatprep.mubr.bf16.mxu1 %v5953_v3  ;;  %7112 = vmatpush1.bf16.msra.mxu1 %v8973_v4  ;;  %v15359_v4 = vld [vmem:[#allocation30_spill] sm:$0xff]  ;;  %v13459_v2 = vpop.f32.mrb[17].mxu0  ;;  %v5424_v13 = vpop.f32.mrb[240].mxu1 }
 0x398   : > { %7113 = vmatprep.subr.bf16.mxu1 %v15348_v50  ;;  %v15360_v38 = vshrl.u32 %v15359_v4, 16  ;;  %v5650_v33 = vadd.f32 %v13353_v41, %v5424_v13  ;;  %v13467_v3 = vpop.f32.mrb[18].mxu0  ;;  %v5426_v58 = vpop.f32.mrb[241].mxu1  ;;  %v15363_v25 = vshll.u32 %v15359_v4, 16  ;;  %v15364_v41 = vld [vmem:[#allocation15_spill] sm:$0xff]  ;;  %v8978_v13 = vld [vmem:[%s14373_s3 + $0x1b0] sm:$0xff]  }
 0x399   : > { %6496 = vmatmul.mubr.bf16.gmra.mrb[104].mxu0 %v13206_v34  ;;  %v15361_v34 = vld [vmem:[#allocation79_spill] sm:$0xff]  ;;  %v13470_v57 = vpop.f32.mrb[19].mxu0  ;;  %v15366_v4 = vld [vmem:[#allocation53_spill] sm:$0xff] }
 0x39a   : > { %6503 = vmatprep.mubr.bf16.mxu0 %v13210_v7  ;;  %v5987_v59 = vrot.slane %v15360_v38, 7  ;;  %v4054_v10 = vadd.f32 %v12908_v11, %v15361_v34  ;;  %v8977_v7 = vld [vmem:[%s14373_s3 + $0x1a8] sm:$0xff]   ;;  %v6053_v38 = vrot.slane %v15364_v41, 7 }
 0x39b   : > { %7114 = vmatpush1.bf16.msra.mxu1 %v8974_v35  ;;  %v5427_v35 = vpop.f32.mrb[242].mxu1 }
 0x39c   : > { %7115 = vmatprep.subr.bf16.mxu1 %v15348_v50  ;;  %v13474_v17 = vadd.f32 %v5650_v33, %v4054_v10 }
 0x39e   : > { %8685 = vmatmul.mubr.bf16.gmra.mrb[72].mxu1 %v5962_v51  ;;  %v5429_v51 = vpop.f32.mrb[243].mxu1 }
 0x39f   : > { %8688 = vmatprep.mubr.bf16.mxu1 %v5971_v63  ;;  %7116 = vmatpush1.bf16.msra.mxu1 %v8976_v39  ;;  %v5653_v39 = vadd.f32 %v13368_v61, %v5427_v35  ;;  %v5988_v63 = vor.u32 %v5987_v59, %v15363_v25  ;;  %v15365_v61 = vld [vmem:[#allocation41_spill] sm:$0xff]  ;;  %v15371_v51 = vrot.slane %v12632_v56, 7  ;;  %v15373_v56 = vld [vmem:[#allocation47_spill] sm:$0xff] }
 0x3a0   : > { %7117 = vmatprep.subr.bf16.mxu1 %v15348_v50  ;;  %v5980_v10 = vsel %vm5905_vm4, %v5969_v42, %v15365_v61 }
 0x3a1   : > { %v13483_v34 = vadd.f32 %v5653_v39, %v4057_v8  ;;  %6504 = vmatmul.mubr.bf16.gmra.mrb[108].mxu0 %v13237_v23  ;;  %v5989_v33 = vsel %vm5905_vm4, %v15366_v4, %v5988_v63  ;;  %v6054_v8 = vor.u32 %v6053_v38, %v15369_v12  ;;  %v8979_v23 = vld [vmem:[%s14373_s3 + $0x1b8] sm:$0xff]   ;;  %v6062_v39 = vrot.slane %v12707_v28, 7  ;;  %v8981_v63 = vld [vmem:[%s14373_s3 + $0x1c0] sm:$0xff]  }
 0x3a2   : > { %6511 = vmatprep.mubr.bf16.mxu0 %v13240_v1  ;;  %v5998_v4 = vsel %vm5905_vm4, %v5987_v59, %v15373_v56  ;;  %v15374_v12 = vld [vmem:[#allocation82_spill] sm:$0xff] }
 0x3a3   : > { %7118 = vmatpush1.bf16.msra.mxu1 %v8977_v7  ;;  %v15367_v7 = vld [vmem:[#allocation29_spill] sm:$0xff]  ;;  %v6055_v25 = vsel %vm5905_vm4, %v15371_v51, %v6054_v8  ;;  %v4065_v8 = vadd.f32 %v15374_v12, %v12908_v11  ;;  %v6063_v59 = vor.u32 %v6062_v39, %v12699_v27 }
 0x3a4   : > { %7119 = vmatprep.subr.bf16.mxu1 %v15348_v50  ;;  %v15368_v58 = vshrl.u32 %v15367_v7, 16  ;;  %v15370_v1 = vshll.u32 %v15367_v7, 16  ;;  %v15376_v51 = vld [vmem:[#allocation9_spill] sm:$0xff] }
 0x3a5   : > { %v13508_v41 = vpop.f32.mrb[20].mxu0  ;;  %v5432_v61 = vpop.f32.mrb[244].mxu1  ;;  %v6064_v27 = vsel %vm5905_vm4, %v6053_v38, %v6063_v59 }
 0x3a6   : > { %8689 = vmatmul.mubr.bf16.gmra.mrb[76].mxu1 %v5980_v10  ;;  %v6005_v35 = vrot.slane %v15368_v58, 7  ;;  %v15372_v10 = vld [vmem:[#allocation78_spill] sm:$0xff]  ;;  %v5434_v58 = vpop.f32.mrb[245].mxu1 }
 0x3a7   : > { %8692 = vmatprep.mubr.bf16.mxu1 %v5989_v33  ;;  %7120 = vmatpush1.bf16.msra.mxu1 %v8978_v13  ;;  %v13511_v13 = vpop.f32.mrb[21].mxu0  ;;  %v4062_v28 = vadd.f32 %v15372_v10, %v12908_v11  ;;  %v5658_v33 = vadd.f32 %v13347_v21, %v5432_v61  ;;  %v8982_v21 = vld [vmem:[%s14373_s3 + $0x1c8] sm:$0xff]   ;;  %v15378_v58 = vshll.u32 %v15376_v51, 16 }
 0x3a8   : > { %7121 = vmatprep.subr.bf16.mxu1 %v15348_v50  ;;  %v6006_v42 = vor.u32 %v6005_v35, %v15370_v1  ;;  %v13519_v7 = vpop.f32.mrb[22].mxu0 }
 0x3a9   : > { %6512 = vmatmul.mubr.bf16.gmra.mrb[112].mxu0 %v6055_v25  ;;  %v15377_v25 = vshrl.u32 %v15376_v51, 16  ;;  %v13527_v16 = vpop.f32.mrb[23].mxu0  ;;  %v13533_v61 = vadd.f32 %v5658_v33, %v4062_v28  ;;  %v15380_v33 = vld [vmem:[#allocation23_spill] sm:$0xff] }
 0x3aa   : > { %6519 = vmatprep.mubr.bf16.mxu0 %v13256_v14  ;;  %v5435_v14 = vpop.f32.mrb[246].mxu1 }
 0x3ab   : > { %7122 = vmatpush1.bf16.msra.mxu1 %v8979_v23  ;;  %v15375_v23 = vld [vmem:[#allocation27_spill] sm:$0xff]  ;;  %v6023_v10 = vrot.slane %v15377_v25, 7  ;;  %v5661_v56 = vadd.f32 %v13359_v22, %v5435_v14  ;;  %v15379_v22 = vld [vmem:[#allocation20_spill] sm:$0xff]  ;;  %v8984_v25 = vld [vmem:[%s14373_s3 + $0x1d8] sm:$0xff]   ;;  %v6080_v14 = vrot.slane %v12727_v6, 7 }
 0x3ac   : > { %7123 = vmatprep.subr.bf16.mxu1 %v15348_v50  ;;  %v6007_v1 = vsel %vm5905_vm4, %v15375_v23, %v6006_v42  ;;  %v6071_v23 = vrot.slane %v12744_v9, 7  ;;  %v6016_v28 = vsel %vm5905_vm4, %v6005_v35, %v15379_v22  ;;  %v15381_v9 = vld [vmem:[#allocation51_spill] sm:$0xff]  ;;  %v15387_v22 = vld [vmem:[#allocation45_spill] sm:$0xff] }
 0x3ad   : > { %v13537_v42 = vadd.f32 %v5661_v56, %v4065_v8  ;;  %v6024_v12 = vor.u32 %v6023_v10, %v15378_v58  ;;  %v15384_v56 = vld [vmem:[#allocation76_spill] sm:$0xff] }
 0x3ae   : > { %8693 = vmatmul.mubr.bf16.gmra.mrb[80].mxu1 %v5998_v4  ;;  %v5437_v4 = vpop.f32.mrb[247].mxu1  ;;  %v6072_v51 = vor.u32 %v6071_v23, %v12730_v19 }
 0x3af   : > { %8696 = vmatprep.mubr.bf16.mxu1 %v6007_v1  ;;  %7124 = vmatpush1.bf16.msra.mxu1 %v8981_v63  ;;  %v8983_v63 = vld [vmem:[%s14373_s3 + $0x1d0] sm:$0xff]   ;;  %v6025_v8 = vsel %vm5905_vm4, %v15380_v33, %v6024_v12  ;;  %v15382_v1 = vshrl.u32 %v15381_v9, 16  ;;  %v6034_v4 = vsel %vm5905_vm4, %v6023_v10, %v15384_v56  ;;  %v15385_v12 = vld [vmem:[#allocation86_spill] sm:$0xff]  ;;  %v6081_v10 = vor.u32 %v6080_v14, %v12740_v60 }
 0x3b0   : > { %7125 = vmatprep.subr.bf16.mxu1 %v15348_v50  ;;  %v6073_v59 = vsel %vm5905_vm4, %v6062_v39, %v6072_v51  ;;  %v4070_v39 = vadd.f32 %v12908_v11, %v15385_v12  ;;  %v15390_v60 = vshll.u32 %v15387_v22, 16 }
 0x3b1   : > { %6520 = vmatmul.mubr.bf16.gmra.mrb[116].mxu0 %v6064_v27  ;;  %v6041_v38 = vrot.slane %v15382_v1, 7  ;;  %v15386_v27 = vld [vmem:[#allocation73_spill] sm:$0xff]  ;;  %v6082_v12 = vsel %vm5905_vm4, %v6071_v23, %v6081_v10  ;;  %v6098_v10 = vrot.slane %v12812_v52, 7 }
 0x3b2   : > { %6527 = vmatprep.mubr.bf16.mxu0 %v13273_v32  ;;  %v15383_v32 = vshll.u32 %v15381_v9, 16 }
 0x3b3   : > { %7126 = vmatpush1.bf16.msra.mxu1 %v8982_v21  ;;  %v8986_v21 = vld [vmem:[%s14373_s3 + $0x1e0] sm:$0xff]  }
 0x3b4   : > { %7127 = vmatprep.subr.bf16.mxu1 %v15348_v50  ;;  %v6042_v35 = vor.u32 %v6041_v38, %v15383_v32  ;;  %v13566_v19 = vpop.f32.mrb[24].mxu0  ;;  %v15389_v32 = vld [vmem:[#allocation52_spill] sm:$0xff] }
 0x3b5   : > { %v13572_v58 = vpop.f32.mrb[25].mxu0  ;;  %v5440_v6 = vpop.f32.mrb[248].mxu1 }
 0x3b6   : > { %8697 = vmatmul.mubr.bf16.gmra.mrb[84].mxu1 %v6016_v28  ;;  %v15388_v28 = vshrl.u32 %v15387_v22, 16  ;;  %v13581_v9 = vpop.f32.mrb[26].mxu0 }
 0x3b7   : > { %8700 = vmatprep.mubr.bf16.mxu1 %v6025_v8  ;;  %7128 = vmatpush1.bf16.msra.mxu1 %v8983_v63  ;;  %v6043_v63 = vsel %vm5905_vm4, %v15386_v27, %v6042_v35  ;;  %v5666_v8 = vadd.f32 %v13408_v37, %v5440_v6  ;;  %v13584_v1 = vpop.f32.mrb[27].mxu0  ;;  %v4073_v35 = vadd.f32 %v12908_v11, %v15389_v32 }
 0x3b8   : > { %7129 = vmatprep.subr.bf16.mxu1 %v15348_v50  ;;  %v6059_v33 = vrot.slane %v15388_v28, 7 }
 0x3b9   : > { %6528 = vmatmul.mubr.bf16.gmra.mrb[120].mxu0 %v6073_v59  ;;  %v13591_v59 = vadd.f32 %v5666_v8, %v4070_v39  ;;  %v8990_v39 = vld [vmem:[%s14373_s3 + $0x1f0] sm:$0xff]  }
 0x3ba   : > { %6535 = vmatprep.mubr.bf16.mxu0 %v13293_v36  ;;  %v5442_v36 = vpop.f32.mrb[249].mxu1 }
 0x3bb   : > { %7130 = vmatpush1.bf16.msra.mxu1 %v8984_v25  ;;  %v5443_v51 = vpop.f32.mrb[250].mxu1  ;;  %v8988_v25 = vld [vmem:[%s14373_s3 + $0x1e8] sm:$0xff]   ;;  %v8993_v36 = vld [vmem:[%s14373_s3 + $0x1f8] sm:$0xff]  }
 0x3bc   : > { %7131 = vmatprep.subr.bf16.mxu1 %v15348_v50  ;;  %v5669_v37 = vadd.f32 %v13416_v15, %v5443_v51  ;;  %v5445_v56 = vpop.f32.mrb[251].mxu1  ;;  %v15391_v15 = vld [vmem:[#allocation94_spill] sm:$0xff] }
 0x3bd   : > { %v6052_v27 = vsel %vm5905_vm4, %v6041_v38, %v15391_v15 }
 0x3be   : > { %8701 = vmatmul.mubr.bf16.gmra.mrb[88].mxu1 %v6034_v4  ;;  %v6060_v4 = vor.u32 %v6059_v33, %v15390_v60  ;;  %v13597_v6 = vadd.f32 %v5669_v37, %v4073_v35  ;;  %v15397_v35 = vld [vmem:[#allocation102_spill] sm:$0xff]  ;;  %v15398_v37 = vld [vmem:[#allocation88_spill] sm:$0xff] }
 0x3bf   : > { %8704 = vmatprep.mubr.bf16.mxu1 %v6043_v63  ;;  %7132 = vmatpush1.bf16.msra.mxu1 %v8986_v21  ;;  %v6089_v21 = vrot.slane %v12776_v5, 7  ;;  %v15392_v63 = vld [vmem:[#allocation93_spill] sm:$0xff]  ;;  %v15399_v56 = vshrl.u32 %v15398_v37, 16 }
 0x3c0   : > { %7133 = vmatprep.subr.bf16.mxu1 %v15348_v50  ;;  %v6061_v22 = vsel %vm5905_vm4, %v15392_v63, %v6060_v4  ;;  %v15393_v5 = vld [vmem:[#allocation61_spill] sm:$0xff] }
 0x3c1   : > { %6536 = vmatmul.mubr.bf16.gmra.mrb[124].mxu0 %v6082_v12  ;;  %v15394_v28 = vshrl.u32 %v15393_v5, 16  ;;  %v6090_v8 = vor.u32 %v6089_v21, %v12784_v30  ;;  %v6095_v60 = vrot.slane %v15399_v56, 7 }
 0x3c2   : > { %6543 = vmatprep.mubr.bf16.mxu0 %v13309_v46  ;;  %v15395_v46 = vshll.u32 %v15393_v5, 16 }
 0x3c3   : > { %7134 = vmatpush1.bf16.msra.mxu1 %v8988_v25  ;;  %v6077_v23 = vrot.slane %v15394_v28, 7  ;;  %v6091_v51 = vsel %vm5905_vm4, %v6080_v14, %v6090_v8  ;;  %v15396_v25 = vld [vmem:[#allocation106_spill] sm:$0xff]  ;;  %v13624_v32 = vpop.f32.mrb[28].mxu0  ;;  %v15400_v14 = vld [vmem:[#allocation85_spill] sm:$0xff] }
 0x3c4   : > { %7135 = vmatprep.subr.bf16.mxu1 %v15348_v50  ;;  %v6070_v30 = vsel %vm5905_vm4, %v6059_v33, %v15396_v25  ;;  %v13630_v4 = vpop.f32.mrb[29].mxu0  ;;  %v4078_v12 = vadd.f32 %v15400_v14, %v12908_v11  ;;  %v15403_v25 = vld [vmem:[#allocation124_spill] sm:$0xff] }
 0x3c5   : > { %v6078_v38 = vor.u32 %v6077_v23, %v15395_v46  ;;  %v5448_v52 = vpop.f32.mrb[252].mxu1  ;;  %v15402_v46 = vshll.u32 %v15398_v37, 16 }
 0x3c6   : > { %8705 = vmatmul.mubr.bf16.gmra.mrb[92].mxu1 %v6052_v27  ;;  %v5674_v33 = vadd.f32 %v13403_v47, %v5448_v52  ;;  %v5450_v15 = vpop.f32.mrb[253].mxu1 }
 0x3c7   : > { %8708 = vmatprep.mubr.bf16.mxu1 %v6061_v22  ;;  %7136 = vmatpush1.bf16.msra.mxu1 %v8990_v39  ;;  %v13636_v39 = vpop.f32.mrb[30].mxu0  ;;  %v5451_v63 = vpop.f32.mrb[254].mxu1  ;;  %v15401_v22 = vld [vmem:[#allocation87_spill] sm:$0xff]  ;;  %v15409_v15 = vld [vmem:[#allocation89_spill] sm:$0xff] }
 0x3c8   : > { %7137 = vmatprep.subr.bf16.mxu1 %v15348_v50  ;;  %v6079_v50 = vsel %vm5905_vm4, %v15397_v35, %v6078_v38  ;;  %v13638_v27 = vpop.f32.mrb[31].mxu0  ;;  %v4081_v5 = vadd.f32 %v15401_v22, %v12908_v11  ;;  %v13642_v28 = vadd.f32 %v5674_v33, %v4078_v12  ;;  %v5677_v8 = vadd.f32 %v13411_v24, %v5451_v63  ;;  %v15405_v35 = vld [vmem:[#allocation115_spill] sm:$0xff] }
 0x3c9   : > { %6544 = vmatmul.mubr.bf16.gmra.mrb[128].mxu0 %v6091_v51  ;;  %v6096_v38 = vor.u32 %v6095_v60, %v15402_v46  ;;  %v6088_v11 = vsel %vm5905_vm4, %v6077_v23, %v15403_v25  ;;  %v15407_v14 = vshll.u32 %v15405_v35, 16  ;;  %v15411_v46 = vld [vmem:[#allocation90_spill] sm:$0xff]  ;;  %v15413_v25 = vld [vmem:[#allocation132_spill] sm:$0xff] }
 0x3ca   : > { %6551 = vmatprep.mubr.bf16.mxu0 %v13319_v55  ;;  %v6099_v55 = vor.u32 %v6098_v10, %v12791_v18  ;;  %v6107_v18 = vrot.slane %v13139_v31, 7  ;;  %v13649_v51 = vadd.f32 %v5677_v8, %v4081_v5 }
 0x3cb   : > { %7138 = vmatpush1.bf16.msra.mxu1 %v8993_v36  ;;  %v5453_v36 = vpop.f32.mrb[255].mxu1 }
 0x3cc   : > { %v6100_v47 = vsel %vm5905_vm4, %v6089_v21, %v6099_v55  ;;  %v6108_v31 = vor.u32 %v6107_v18, %v12867_v48  ;;  %v15408_v55 = vld [vmem:[#allocation152_spill] sm:$0xff] }
 0x3cd   : > { %v6116_v23 = vrot.slane %v15408_v55, 7 }
 0x3ce   : > { %8709 = vmatmul.mubr.bf16.gmra.mrb[96].mxu1 %v6070_v30  ;;  %v15404_v30 = vld [vmem:[#allocation123_spill] sm:$0xff]  ;;  %v6109_v33 = vsel %vm5905_vm4, %v6098_v10, %v6108_v31  ;;  %v15412_v10 = vshrl.u32 %v13306_v53, 16  ;;  %v15416_v31 = vld [vmem:[#allocation28_spill] sm:$0xff] }
 0x3cf   : > { %8712 = vmatprep.mubr.bf16.mxu1 %v6079_v50  ;;  %v6097_v24 = vsel %vm5905_vm4, %v15404_v30, %v6096_v38  ;;  %v15406_v50 = vshrl.u32 %v15405_v35, 16  ;;  %v5456_v56 = vpop.f32.mrb[0].mxu1 }
 0x3d0   : > { %v5682_v21 = vadd.f32 %v13459_v2, %v5456_v56  ;;  %v5458_v52 = vpop.f32.mrb[1].mxu1  ;;  %v15410_v2 = vld [vmem:[#allocation135_spill] sm:$0xff] }
 0x3d1   : > { %6552 = vmatmul.mubr.bf16.gmra.mrb[132].mxu0 %v6100_v47  ;;  %v6113_v37 = vrot.slane %v15406_v50, 7  ;;  %v5459_v12 = vpop.f32.mrb[2].mxu1  ;;  %v6106_v8 = vsel %vm5905_vm4, %v6095_v60, %v15410_v2  ;;  %v6130_v47 = vrot.slane %v15412_v10, 7  ;;  %v15415_v60 = vshll.u32 %v13306_v53, 16  ;;  %v15417_v52 = vld [vmem:[#allocation37_spill] sm:$0xff] }
 0x3d2   : > { %6559 = vmatprep.mubr.bf16.mxu0 %v13337_v43  ;;  %v13665_v63 = vadd.f32 %v5682_v21, %v15409_v15  ;;  %v5685_v22 = vadd.f32 %v13470_v57, %v5459_v12  ;;  %v5461_v5 = vpop.f32.mrb[3].mxu1  ;;  %v15418_v15 = vld [vmem:[#allocation157_spill] sm:$0xff] }
 0x3d3   : > { %v6114_v43 = vor.u32 %v6113_v37, %v15407_v14  ;;  %v13668_v48 = vpop.f32.mrb[32].mxu0  ;;  %v6133_v35 = vor.u32 %v15415_v60, %v6130_v47  ;;  %v15419_v2 = vld [vmem:[#allocation33_spill] sm:$0xff]  ;;  %v15422_v47 = vld [vmem:[#allocation66_spill] sm:$0xff] }
 0x3d4   : > { %v13673_v36 = vpop.f32.mrb[33].mxu0  ;;  %v13676_v38 = vadd.f32 %v5685_v22, %v15411_v46  ;;  %v15421_v46 = vld [vmem:[#allocation65_spill] sm:$0xff] }
 0x3d5   : > { %v6115_v57 = vsel %vm5905_vm4, %v15413_v25, %v6114_v43  ;;  %v6134_v56 = vsel %vm5905_vm4, %v6113_v37, %v6133_v35 }
 0x3d6   : > { %8713 = vmatmul.mubr.bf16.gmra.mrb[100].mxu1 %v6088_v11  ;;  %v13682_v11 = vpop.f32.mrb[34].mxu0 }
 0x3d7   : > { %8716 = vmatprep.mubr.bf16.mxu1 %v6097_v24  ;;  %v13684_v30 = vpop.f32.mrb[35].mxu0 }
 0x3d9   : > { %6560 = vmatmul.mubr.bf16.gmra.mrb[136].mxu0 %v6109_v33 }
 0x3da   : > { %6567 = vmatprep.mubr.bf16.mxu0 %v13378_v44  ;;  %v15414_v44 = vld [vmem:[#allocation153_spill] sm:$0xff] }
 0x3db   : > { %v6117_v24 = vor.u32 %v6116_v23, %v15414_v44  ;;  %v13692_v21 = vpop.f32.mrb[36].mxu0 }
 0x3dc   : > { %v13695_v14 = vpop.f32.mrb[37].mxu0 }
 0x3dd   : > { %v6118_v50 = vsel %vm5905_vm4, %v6107_v18, %v6117_v24  ;;  %v13697_v43 = vpop.f32.mrb[38].mxu0 }
 0x3de   : > { %8717 = vmatmul.mubr.bf16.gmra.mrb[104].mxu1 %v6106_v8  ;;  %v13699_v23 = vpop.f32.mrb[39].mxu0  ;;  %v15420_v8 = vld [vmem:[#allocation12_spill] sm:$0xff] }
 0x3df   : > { %8720 = vmatprep.mubr.bf16.mxu1 %v6115_v57 }
 0x3e0   : > { %v5464_v12 = vpop.f32.mrb[4].mxu1 }
 0x3e1   : > { %6568 = vmatmul.mubr.bf16.gmra.mrb[140].mxu0 %v6118_v50  ;;  %v5690_v53 = vadd.f32 %v13453_v20, %v5464_v12  ;;  %v5466_v18 = vpop.f32.mrb[5].mxu1  ;;  %v15423_v20 = vld [vmem:[#allocation25_spill] sm:$0xff] }
 0x3e2   : > { %8740 = vmatprep.mubr.bf16.mxu0 %v15416_v31  ;;  %v5467_v33 = vpop.f32.mrb[6].mxu1  ;;  %v15425_v18 = vld [vmem:[#allocation39_spill] sm:$0xff] }
 0x3e3   : > { %v13703_v22 = vadd.f32 %v5690_v53, %v15418_v15  ;;  %v5693_v37 = vadd.f32 %v13467_v3, %v5467_v33  ;;  %v5469_v5 = vpop.f32.mrb[7].mxu1  ;;  %v15426_v33 = vld [vmem:[#allocation55_spill] sm:$0xff]  ;;  %v15427_v15 = vld [vmem:[#allocation50_spill] sm:$0xff] }
 0x3e4   : > { %v15429_v5 = vld [vmem:[#allocation68_spill] sm:$0xff] }
 0x3e5   : > { %v13709_v10 = vadd.f32 %v5693_v37, %v15421_v46 }
 0x3e6   : > { %8721 = vmatmul.mubr.bf16.gmra.mrb[108].mxu1 %v6134_v56  ;;  %v15424_v56 = vld [vmem:[#allocation42_spill] sm:$0xff] }
 0x3e7   : > { %7139 = vmatprep.mubr.bf16.mxu1 %v15417_v52 }
 0x3e9   : > { %8741 = vmatmul.mubr.bf16.vlgmr.msra.gmra.mrb[144].mxu0 %v15419_v2  ;;  %v13712_v25 = vpop.f32.mrb[40].mxu0  ;;  %v15430_v2 = vld [vmem:[#allocation31_spill] sm:$0xff] }
 0x3ea   : > { %8744 = vmatprep.mubr.bf16.mxu0 %v15420_v8  ;;  %v13715_v57 = vpop.f32.mrb[41].mxu0  ;;  %v5472_v24 = vpop.f32.mrb[8].mxu1 }
 0x3eb   : > { %v13717_v60 = vpop.f32.mrb[42].mxu0  ;;  %v5698_v3 = vadd.f32 %v13511_v13, %v5472_v24  ;;  %v5474_v35 = vpop.f32.mrb[9].mxu1 }
 0x3ec   : > { %v13720_v50 = vpop.f32.mrb[43].mxu0  ;;  %v5475_v31 = vpop.f32.mrb[10].mxu1  ;;  %v15431_v35 = vld [vmem:[#allocation38_spill] sm:$0xff] }
 0x3ed   : > { %v13723_v52 = vadd.f32 %v5698_v3, %v15424_v56  ;;  %v5701_v12 = vadd.f32 %v13527_v16, %v5475_v31  ;;  %v5477_v53 = vpop.f32.mrb[11].mxu1 }
 0x3ee   : > { %7140 = vmatmul.mubr.bf16.vlgmr.msra.gmra.mrb[112].mxu1 %v15422_v47  ;;  %v15432_v53 = vld [vmem:[#allocation54_spill] sm:$0xff] }
 0x3ef   : > { %7147 = vmatprep.mubr.bf16.mxu1 %v15423_v20  ;;  %v13729_v37 = vadd.f32 %v5701_v12, %v15427_v15 }
 0x3f1   : > { %8745 = vmatmul.mubr.bf16.gmra.mrb[148].mxu0 %v15425_v18  ;;  %15428 = vst [vmem:[#allocation104_spill] sm:$0xff] %v13729_v37  ;;  %v13732_v13 = vpop.f32.mrb[44].mxu0  ;;  %v15433_v18 = vld [vmem:[#allocation67_spill] sm:$0xff] }
 0x3f2   : > { %8748 = vmatprep.mubr.bf16.mxu0 %v15426_v33  ;;  %v13735_v8 = vpop.f32.mrb[45].mxu0  ;;  %v5480_v46 = vpop.f32.mrb[12].mxu1  ;;  %v15434_v33 = vld [vmem:[#allocation91_spill] sm:$0xff] }
 0x3f3   : > { %v13737_v47 = vpop.f32.mrb[46].mxu0  ;;  %v5706_v16 = vadd.f32 %v13508_v41, %v5480_v46  ;;  %v5482_v20 = vpop.f32.mrb[13].mxu1 }
 0x3f4   : > { %v13740_v24 = vpop.f32.mrb[47].mxu0  ;;  %v5483_v3 = vpop.f32.mrb[14].mxu1 }
 0x3f5   : > { %v13743_v31 = vadd.f32 %v5706_v16, %v15431_v35  ;;  %v5709_v56 = vadd.f32 %v13519_v7, %v5483_v3  ;;  %v5485_v12 = vpop.f32.mrb[15].mxu1 }
 0x3f6   : > { %7148 = vmatmul.mubr.bf16.gmra.mrb[116].mxu1 %v15429_v5  ;;  %v15435_v5 = vld [vmem:[#allocation71_spill] sm:$0xff] }
 0x3f7   : > { %7155 = vmatprep.mubr.bf16.mxu1 %v15430_v2  ;;  %v13749_v15 = vadd.f32 %v5709_v56, %v15434_v33  ;;  %v15436_v2 = vld [vmem:[#allocation36_spill] sm:$0xff] }
 0x3f9   : > { %8749 = vmatmul.mubr.bf16.gmra.mrb[152].mxu0 %v15432_v53  ;;  %v13752_v41 = vpop.f32.mrb[48].mxu0  ;;  %v15437_v53 = vld [vmem:[#allocation95_spill] sm:$0xff] }
 0x3fa   : > { %8752 = vmatprep.mubr.bf16.mxu0 %v15433_v18  ;;  %v6387_v46 = vpop.f32.mrb[49].mxu0 }
 0x3fb   : > { %v5488_v20 = vpop.f32.mrb[16].mxu1  ;;  %v13755_v16 = vpop.f32.mrb[50].mxu0 }
 0x3fc   : > { %v5714_v7 = vadd.f32 %v13572_v58, %v5488_v20  ;;  %v5490_v3 = vpop.f32.mrb[17].mxu1  ;;  %v6390_v35 = vpop.f32.mrb[51].mxu0  ;;  %v15444_v58 = vld [vmem:[#allocation35_spill] sm:$0xff] }
 0x3fd   : > { %v5491_v12 = vpop.f32.mrb[18].mxu1 }
 0x3fe   : > { %7156 = vmatmul.mubr.bf16.gmra.mrb[120].mxu1 %v15435_v5  ;;  %v13759_v18 = vadd.f32 %v5714_v7, %v15437_v53  ;;  %v5717_v56 = vadd.f32 %v13584_v1, %v5491_v12  ;;  %v5493_v33 = vpop.f32.mrb[19].mxu1  ;;  %v15439_v5 = vld [vmem:[#allocation69_spill] sm:$0xff] }
 0x3ff   : > { %7163 = vmatprep.mubr.bf16.mxu1 %v15436_v2  ;;  %v15441_v2 = vld [vmem:[#allocation99_spill] sm:$0xff] }
 0x400   : > { %15438 = vst [vmem:[#allocation8_spill] sm:$0xff] %v13759_v18  ;;  %v13765_v46 = vadd.f32 %v5717_v56, %v15441_v2  ;;  %v15445_v33 = vld [vmem:[#allocation63_spill] sm:$0xff]  ;;  %v15448_v2 = vld [vmem:[#allocation46_spill] sm:$0xff] }
 0x401   : > { %8753 = vmatmul.mubr.bf16.gmra.mrb[156].mxu0 %v15439_v5 }
 0x402   : > { %8756 = vmatprep.mubr.bf16.mxu0 %v15440_v29  ;;  %15442 = vst [vmem:[#allocation74_spill] sm:$0xff] %v13765_v46  ;;  %v13768_v37 = vpop.f32.mrb[52].mxu0  ;;  %v15451_v46 = vld [vmem:[#allocation84_spill] sm:$0xff] }
 0x403   : > { %v6395_v20 = vpop.f32.mrb[53].mxu0  ;;  %v5496_v3 = vpop.f32.mrb[20].mxu1 }
 0x404   : > { %v13771_v7 = vpop.f32.mrb[54].mxu0  ;;  %v5722_v1 = vadd.f32 %v13566_v19, %v5496_v3  ;;  %v5498_v35 = vpop.f32.mrb[21].mxu1  ;;  %v15452_v19 = vld [vmem:[#allocation64_spill] sm:$0xff] }
 0x405   : > { %v6398_v12 = vpop.f32.mrb[55].mxu0  ;;  %v5499_v53 = vpop.f32.mrb[22].mxu1 }
 0x406   : > { %7164 = vmatmul.mubr.bf16.gmra.mrb[124].mxu1 %v15443_v49  ;;  %v13775_v29 = vadd.f32 %v5722_v1, %v15445_v33  ;;  %v5725_v56 = vadd.f32 %v13581_v9, %v5499_v53  ;;  %v5501_v5 = vpop.f32.mrb[23].mxu1  ;;  %v15447_v49 = vld [vmem:[#allocation48_spill] sm:$0xff] }
 0x407   : > { %7171 = vmatprep.mubr.bf16.mxu1 %v15444_v58  ;;  %v15449_v58 = vld [vmem:[#allocation98_spill] sm:$0xff]  ;;  %v15453_v5 = vld [vmem:[#allocation43_spill] sm:$0xff] }
 0x408   : > { %15446 = vst [vmem:[#allocation77_spill] sm:$0xff] %v13775_v29  ;;  %v13781_v20 = vadd.f32 %v5725_v56, %v15449_v58  ;;  %v15456_v58 = vld [vmem:[#allocation81_spill] sm:$0xff] }
 0x409   : > { %8757 = vmatmul.mubr.bf16.gmra.mrb[160].mxu0 %v15447_v49 }
 0x40a   : > { %8760 = vmatprep.mubr.bf16.mxu0 %v15448_v2  ;;  %15450 = vst [vmem:[#allocation11_spill] sm:$0xff] %v13781_v20  ;;  %v13784_v18 = vpop.f32.mrb[56].mxu0  ;;  %v15459_v20 = vld [vmem:[#allocation92_spill] sm:$0xff] }
 0x40b   : > { %v6403_v3 = vpop.f32.mrb[57].mxu0  ;;  %v5504_v35 = vpop.f32.mrb[24].mxu1 }
 0x40c   : > { %v13787_v1 = vpop.f32.mrb[58].mxu0  ;;  %v5730_v9 = vadd.f32 %v13630_v4, %v5504_v35  ;;  %v5506_v12 = vpop.f32.mrb[25].mxu1  ;;  %v15460_v4 = vld [vmem:[#allocation108_spill] sm:$0xff] }
 0x40d   : > { %v6406_v53 = vpop.f32.mrb[59].mxu0  ;;  %v5507_v33 = vpop.f32.mrb[26].mxu1 }
 0x40e   : > { %7172 = vmatmul.mubr.bf16.gmra.mrb[128].mxu1 %v15451_v46  ;;  %v13791_v49 = vadd.f32 %v5730_v9, %v15453_v5  ;;  %v5733_v56 = vadd.f32 %v13638_v27, %v5507_v33  ;;  %v5509_v2 = vpop.f32.mrb[27].mxu1  ;;  %v15455_v46 = vld [vmem:[#allocation80_spill] sm:$0xff] }
 0x40f   : > { %7179 = vmatprep.mubr.bf16.mxu1 %v15452_v19  ;;  %v15457_v19 = vld [vmem:[#allocation103_spill] sm:$0xff]  ;;  %v15461_v2 = vld [vmem:[#allocation100_spill] sm:$0xff] }
 0x410   : > { %15454 = vst [vmem:[#allocation19_spill] sm:$0xff] %v13791_v49  ;;  %v13797_v3 = vadd.f32 %v5733_v56, %v15457_v19  ;;  %v15464_v19 = vld [vmem:[#allocation97_spill] sm:$0xff] }
 0x411   : > { %8761 = vmatmul.mubr.bf16.gmra.mrb[164].mxu0 %v15455_v46 }
 0x412   : > { %8764 = vmatprep.mubr.bf16.mxu0 %v15456_v58  ;;  %15458 = vst [vmem:[#allocation18_spill] sm:$0xff] %v13797_v3  ;;  %v13800_v29 = vpop.f32.mrb[60].mxu0  ;;  %v15467_v3 = vld [vmem:[#allocation121_spill] sm:$0xff] }
 0x413   : > { %v6411_v35 = vpop.f32.mrb[61].mxu0  ;;  %v5512_v12 = vpop.f32.mrb[28].mxu1 }
 0x414   : > { %v13803_v9 = vpop.f32.mrb[62].mxu0  ;;  %v5738_v27 = vadd.f32 %v13624_v32, %v5512_v12  ;;  %v5514_v53 = vpop.f32.mrb[29].mxu1  ;;  %v15468_v32 = vld [vmem:[#allocation131_spill] sm:$0xff] }
 0x415   : > { %v6414_v33 = vpop.f32.mrb[63].mxu0  ;;  %v5515_v5 = vpop.f32.mrb[30].mxu1 }
 0x416   : > { %7180 = vmatmul.mubr.bf16.gmra.mrb[132].mxu1 %v15459_v20  ;;  %v13807_v46 = vadd.f32 %v5738_v27, %v15461_v2  ;;  %v5741_v56 = vadd.f32 %v13636_v39, %v5515_v5  ;;  %v5517_v58 = vpop.f32.mrb[31].mxu1  ;;  %v15463_v20 = vld [vmem:[#allocation96_spill] sm:$0xff] }
 0x417   : > { %7187 = vmatprep.mubr.bf16.mxu1 %v15460_v4  ;;  %v15465_v4 = vld [vmem:[#allocation101_spill] sm:$0xff] }
 0x418   : > { %15462 = vst [vmem:[#allocation22_spill] sm:$0xff] %v13807_v46  ;;  %v13813_v35 = vadd.f32 %v5741_v56, %v15465_v4  ;;  %v15469_v58 = vld [vmem:[#allocation105_spill] sm:$0xff] }
 0x419   : > { %8765 = vmatmul.mubr.bf16.gmra.mrb[168].mxu0 %v15463_v20  ;;  %v15472_v4 = vld [vmem:[#allocation117_spill] sm:$0xff] }
 0x41a   : > { %8768 = vmatprep.mubr.bf16.mxu0 %v15464_v19  ;;  %15466 = vst [vmem:[#allocation32_spill] sm:$0xff] %v13813_v35  ;;  %v13816_v49 = vpop.f32.mrb[64].mxu0  ;;  %v15475_v35 = vld [vmem:[#allocation125_spill] sm:$0xff] }
 0x41b   : > { %v6419_v12 = vpop.f32.mrb[65].mxu0  ;;  %v5520_v53 = vpop.f32.mrb[32].mxu1 }
 0x41c   : > { %v13819_v27 = vpop.f32.mrb[66].mxu0  ;;  %v5746_v39 = vadd.f32 %v13673_v36, %v5520_v53  ;;  %v5522_v33 = vpop.f32.mrb[33].mxu1  ;;  %v15476_v36 = vld [vmem:[#allocation137_spill] sm:$0xff] }
 0x41d   : > { %v6422_v5 = vpop.f32.mrb[67].mxu0  ;;  %v5523_v2 = vpop.f32.mrb[34].mxu1 }
 0x41e   : > { %7188 = vmatmul.mubr.bf16.gmra.mrb[136].mxu1 %v15467_v3  ;;  %v13823_v20 = vadd.f32 %v5746_v39, %v15469_v58  ;;  %v5749_v56 = vadd.f32 %v13684_v30, %v5523_v2  ;;  %v5525_v19 = vpop.f32.mrb[35].mxu1  ;;  %v15471_v3 = vld [vmem:[#allocation110_spill] sm:$0xff] }
 0x41f   : > { %7195 = vmatprep.mubr.bf16.mxu1 %v15468_v32  ;;  %v15473_v32 = vld [vmem:[#allocation109_spill] sm:$0xff]  ;;  %v15477_v19 = vld [vmem:[#allocation136_spill] sm:$0xff] }
 0x420   : > { %15470 = vst [vmem:[#allocation49_spill] sm:$0xff] %v13823_v20  ;;  %v13829_v12 = vadd.f32 %v5749_v56, %v15473_v32  ;;  %v15480_v32 = vld [vmem:[#allocation128_spill] sm:$0xff] }
 0x421   : > { %8769 = vmatmul.mubr.bf16.gmra.mrb[172].mxu0 %v15471_v3 }
 0x422   : > { %8772 = vmatprep.mubr.bf16.mxu0 %v15472_v4  ;;  %15474 = vst [vmem:[#allocation75_spill] sm:$0xff] %v13829_v12  ;;  %v13832_v46 = vpop.f32.mrb[68].mxu0  ;;  %v15483_v12 = vld [vmem:[#allocation141_spill] sm:$0xff] }
 0x423   : > { %v6427_v53 = vpop.f32.mrb[69].mxu0  ;;  %v5528_v33 = vpop.f32.mrb[36].mxu1 }
 0x424   : > { %v13835_v39 = vpop.f32.mrb[70].mxu0  ;;  %v5754_v30 = vadd.f32 %v13668_v48, %v5528_v33  ;;  %v5530_v5 = vpop.f32.mrb[37].mxu1  ;;  %v15484_v48 = vld [vmem:[#allocation149_spill] sm:$0xff] }
 0x425   : > { %v6430_v2 = vpop.f32.mrb[71].mxu0  ;;  %v5531_v58 = vpop.f32.mrb[38].mxu1 }
 0x426   : > { %7196 = vmatmul.mubr.bf16.gmra.mrb[140].mxu1 %v15475_v35  ;;  %v13839_v3 = vadd.f32 %v5754_v30, %v15477_v19  ;;  %v5757_v56 = vadd.f32 %v13682_v11, %v5531_v58  ;;  %v5533_v4 = vpop.f32.mrb[39].mxu1  ;;  %v15479_v35 = vld [vmem:[#allocation127_spill] sm:$0xff] }
 0x427   : > { %7203 = vmatprep.mubr.bf16.mxu1 %v15476_v36  ;;  %v15481_v36 = vld [vmem:[#allocation107_spill] sm:$0xff] }
 0x428   : > { %15478 = vst [vmem:[#allocation44_spill] sm:$0xff] %v13839_v3  ;;  %v13845_v53 = vadd.f32 %v5757_v56, %v15481_v36  ;;  %v15485_v4 = vld [vmem:[#allocation111_spill] sm:$0xff] }
 0x429   : > { %8773 = vmatmul.mubr.bf16.gmra.mrb[176].mxu0 %v15479_v35  ;;  %v15488_v36 = vld [vmem:[#allocation139_spill] sm:$0xff] }
 0x42a   : > { %8776 = vmatprep.mubr.bf16.mxu0 %v15480_v32  ;;  %15482 = vst [vmem:[#allocation7_spill] sm:$0xff] %v13845_v53  ;;  %v13848_v20 = vpop.f32.mrb[72].mxu0  ;;  %v15491_v53 = vld [vmem:[#allocation147_spill] sm:$0xff] }
 0x42b   : > { %v6435_v33 = vpop.f32.mrb[73].mxu0 }
 0x42c   : > { %v5536_v5 = vpop.f32.mrb[40].mxu1  ;;  %v13851_v30 = vpop.f32.mrb[74].mxu0 }
 0x42d   : > { %v5762_v11 = vadd.f32 %v13695_v14, %v5536_v5  ;;  %v5538_v2 = vpop.f32.mrb[41].mxu1  ;;  %v6438_v58 = vpop.f32.mrb[75].mxu0  ;;  %v15492_v14 = vld [vmem:[#allocation56_spill] sm:$0xff] }
 0x42e   : > { %7204 = vmatmul.mubr.bf16.gmra.mrb[144].mxu1 %v15483_v12  ;;  %v5539_v19 = vpop.f32.mrb[42].mxu1  ;;  %v15487_v12 = vld [vmem:[#allocation138_spill] sm:$0xff] }
 0x42f   : > { %7211 = vmatprep.mubr.bf16.mxu1 %v15484_v48  ;;  %v13855_v35 = vadd.f32 %v5762_v11, %v15485_v4  ;;  %v5765_v56 = vadd.f32 %v13699_v23, %v5539_v19  ;;  %v5541_v32 = vpop.f32.mrb[43].mxu1  ;;  %v15489_v48 = vld [vmem:[#allocation118_spill] sm:$0xff] }
 0x430   : > { %v15493_v32 = vld [vmem:[#allocation134_spill] sm:$0xff] }
 0x431   : > { %15486 = vst [vmem:[#allocation16_spill] sm:$0xff] %v13855_v35  ;;  %8777 = vmatmul.mubr.bf16.gmra.mrb[180].mxu0 %v15487_v12  ;;  %v13861_v33 = vadd.f32 %v5765_v56, %v15489_v48  ;;  %v6909_v56 = vsel %vm4594_vm3, %v15493_v32, %v13370_v40  ;;  %v15494_v12 = vld [vmem:[#allocation114_spill] sm:$0xff]  ;;  %v15500_v32 = vld [vmem:[#allocation60_spill] sm:$0xff] }
 0x432   : > { %8780 = vmatprep.mubr.bf16.mxu0 %v15488_v36  ;;  %v13864_v3 = vpop.f32.mrb[76].mxu0  ;;  %v15506_v35 = vld [vmem:[#allocation24_spill] sm:$0xff] }
 0x433   : > { %15490 = vst [vmem:[#allocation21_spill] sm:$0xff] %v13861_v33  ;;  %v6443_v5 = vpop.f32.mrb[77].mxu0 }
 0x434   : > { %v13867_v11 = vpop.f32.mrb[78].mxu0 }
 0x435   : > { %v6446_v19 = vpop.f32.mrb[79].mxu0 }
 0x436   : > { %7212 = vmatmul.mubr.bf16.gmra.mrb[148].mxu1 %v15491_v53  ;;  %v5544_v2 = vpop.f32.mrb[44].mxu1 }
 0x437   : > { %7219 = vmatprep.mubr.bf16.mxu1 %v15492_v14  ;;  %v5770_v23 = vadd.f32 %v13692_v21, %v5544_v2  ;;  %v5546_v58 = vpop.f32.mrb[45].mxu1  ;;  %v15496_v14 = vld [vmem:[#allocation14_spill] sm:$0xff]  ;;  %v15497_v21 = vld [vmem:[#allocation112_spill] sm:$0xff] }
 0x438   : > { %v5547_v4 = vpop.f32.mrb[46].mxu1  ;;  %v6931_v5 = vsel %vm4594_vm3, %v13370_v40, %v15496_v14  ;;  %v15499_v58 = vld [vmem:[#allocation62_spill] sm:$0xff]  ;;  %v15501_v40 = vld [vmem:[#allocation143_spill] sm:$0xff] }
 0x439   : > { %v13874_v36 = vadd.f32 %v5770_v23, %v15494_v12  ;;  %v5773_v53 = vadd.f32 %v13697_v43, %v5547_v4  ;;  %v5549_v48 = vpop.f32.mrb[47].mxu1  ;;  %8781 = vmatmul.mubr.bf16.gmra.mrb[184].mxu0 %v6909_v56 }
 0x43a   : > { %8784 = vmatprep.mubr.bf16.mxu0 %v6931_v5 }
 0x43b   : > { %15495 = vst [vmem:[#allocation34_spill] sm:$0xff] %v13874_v36  ;;  %v13881_v2 = vadd.f32 %v5773_v53, %v15497_v21 }
 0x43c   : > { %v13884_v19 = vpop.f32.mrb[80].mxu0 }
 0x43d   : > { %15498 = vst [vmem:[#allocation30_spill] sm:$0xff] %v13881_v2  ;;  %v6451_v23 = vpop.f32.mrb[81].mxu0 }
 0x43e   : > { %7220 = vmatmul.mubr.bf16.gmra.mrb[152].mxu1 %v15499_v58  ;;  %v13887_v33 = vpop.f32.mrb[82].mxu0  ;;  %v15503_v58 = vld [vmem:[#allocation122_spill] sm:$0xff] }
 0x43f   : > { %7227 = vmatprep.mubr.bf16.mxu1 %v15500_v32  ;;  %v5552_v12 = vpop.f32.mrb[48].mxu1  ;;  %v6454_v56 = vpop.f32.mrb[83].mxu0  ;;  %v15505_v32 = vld [vmem:[#allocation10_spill] sm:$0xff] }
 0x440   : > { %v5778_v43 = vadd.f32 %v13715_v57, %v5552_v12  ;;  %v5554_v4 = vpop.f32.mrb[49].mxu1 }
 0x441   : > { %v5555_v48 = vpop.f32.mrb[50].mxu1  ;;  %8785 = vmatmul.mubr.bf16.gmra.mrb[188].mxu0 %v15496_v14 }
 0x442   : > { %v13891_v5 = vadd.f32 %v5778_v43, %v15501_v40  ;;  %v5781_v53 = vadd.f32 %v13720_v50, %v5555_v48  ;;  %v5557_v21 = vpop.f32.mrb[51].mxu1  ;;  %v15507_v40 = vld [vmem:[#allocation119_spill] sm:$0xff] }
 0x444   : > { %15502 = vst [vmem:[#allocation79_spill] sm:$0xff] %v13891_v5  ;;  %v13896_v2 = vadd.f32 %v5781_v53, %v15503_v58  ;;  %v13899_v23 = vpop.f32.mrb[84].mxu0  ;;  %v15511_v5 = vld [vmem:[#allocation5_spill] sm:$0xff] }
 0x445   : > { %v6459_v57 = vpop.f32.mrb[85].mxu0 }
 0x446   : > { %15504 = vst [vmem:[#allocation83_spill] sm:$0xff] %v13896_v2  ;;  %7228 = vmatmul.mubr.bf16.gmra.mrb[156].mxu1 %v15505_v32  ;;  %v13902_v4 = vpop.f32.mrb[86].mxu0  ;;  %v15509_v32 = vld [vmem:[#allocation120_spill] sm:$0xff]  ;;  %v15512_v57 = vld [vmem:[#allocation151_spill] sm:$0xff] }
 0x447   : > { %7235 = vmatprep.mubr.bf16.mxu1 %v15506_v35  ;;  %v6462_v50 = vpop.f32.mrb[87].mxu0 }
 0x449   : > { %v5560_v12 = vpop.f32.mrb[52].mxu1 }
 0x44a   : > { %v5786_v43 = vadd.f32 %v13712_v25, %v5560_v12  ;;  %v5562_v56 = vpop.f32.mrb[53].mxu1 }
 0x44b   : > { %v5563_v48 = vpop.f32.mrb[54].mxu1 }
 0x44c   : > { %v13906_v21 = vadd.f32 %v5786_v43, %v15507_v40  ;;  %v5789_v53 = vadd.f32 %v13717_v60, %v5563_v48  ;;  %v5565_v58 = vpop.f32.mrb[55].mxu1  ;;  %v13913_v35 = vpop.f32.mrb[88].mxu0  ;;  %v15513_v60 = vld [vmem:[#allocation126_spill] sm:$0xff] }
 0x44d   : > { %v6467_v36 = vpop.f32.mrb[89].mxu0 }
 0x44e   : > { %15508 = vst [vmem:[#allocation15_spill] sm:$0xff] %v13906_v21  ;;  %v13910_v2 = vadd.f32 %v5789_v53, %v15509_v32  ;;  %7236 = vmatmul.mubr.bf16.gmra.mrb[160].mxu1 %v15511_v5  ;;  %v13916_v12 = vpop.f32.mrb[90].mxu0  ;;  %v15515_v5 = vld [vmem:[#allocation130_spill] sm:$0xff] }
 0x44f   : > { %7243 = vmatprep.mubr.bf16.mxu1 %v15512_v57  ;;  %v6470_v50 = vpop.f32.mrb[91].mxu0  ;;  %v15518_v57 = vld [vmem:[#allocation40_spill] sm:$0xff] }
 0x450   : > { %15510 = vst [vmem:[#allocation41_spill] sm:$0xff] %v13910_v2  ;;  %v15517_v2 = vld [vmem:[#allocation150_spill] sm:$0xff] }
 0x451   : > { %v5568_v25 = vpop.f32.mrb[56].mxu1 }
 0x452   : > { %v5794_v56 = vadd.f32 %v13735_v8, %v5568_v25  ;;  %v5570_v43 = vpop.f32.mrb[57].mxu1 }
 0x453   : > { %v5571_v40 = vpop.f32.mrb[58].mxu1 }
 0x454   : > { %v13920_v48 = vadd.f32 %v5794_v56, %v15513_v60  ;;  %v5797_v53 = vadd.f32 %v13740_v24, %v5571_v40  ;;  %v5573_v58 = vpop.f32.mrb[59].mxu1  ;;  %v13927_v36 = vpop.f32.mrb[92].mxu0  ;;  %v15519_v24 = vld [vmem:[#allocation3_spill] sm:$0xff] }
 0x455   : > { %v6475_v21 = vpop.f32.mrb[93].mxu0 }
 0x456   : > { %15514 = vst [vmem:[#allocation53_spill] sm:$0xff] %v13920_v48  ;;  %v13924_v32 = vadd.f32 %v5797_v53, %v15515_v5  ;;  %7244 = vmatmul.mubr.bf16.gmra.mrb[164].mxu1 %v15517_v2  ;;  %v13930_v25 = vpop.f32.mrb[94].mxu0  ;;  %v15521_v2 = vld [vmem:[#allocation129_spill] sm:$0xff] }
 0x457   : > { %7251 = vmatprep.mubr.bf16.mxu1 %v15518_v57  ;;  %v6478_v50 = vpop.f32.mrb[95].mxu0  ;;  %v15524_v57 = vld [vmem:[#allocation156_spill] sm:$0xff] }
 0x458   : > { %15516 = vst [vmem:[#allocation29_spill] sm:$0xff] %v13924_v32  ;;  %v15523_v32 = vld [vmem:[#allocation154_spill] sm:$0xff] }
 0x459   : > { %v5576_v8 = vpop.f32.mrb[60].mxu1 }
 0x45a   : > { %v5802_v43 = vadd.f32 %v13732_v13, %v5576_v8  ;;  %v5578_v56 = vpop.f32.mrb[61].mxu1 }
 0x45b   : > { %v5579_v60 = vpop.f32.mrb[62].mxu1 }
 0x45c   : > { %v13934_v40 = vadd.f32 %v5802_v43, %v15519_v24  ;;  %v5805_v53 = vadd.f32 %v13737_v47, %v5579_v60  ;;  %v5581_v58 = vpop.f32.mrb[63].mxu1  ;;  %v13941_v21 = vpop.f32.mrb[96].mxu0  ;;  %v15525_v24 = vld [vmem:[#allocation142_spill] sm:$0xff] }
 0x45d   : > { %v6483_v48 = vpop.f32.mrb[97].mxu0 }
 0x45e   : > { %15520 = vst [vmem:[#allocation13_spill] sm:$0xff] %v13934_v40  ;;  %v13938_v5 = vadd.f32 %v5805_v53, %v15521_v2  ;;  %7252 = vmatmul.mubr.bf16.gmra.mrb[168].mxu1 %v15523_v32  ;;  %v13944_v13 = vpop.f32.mrb[98].mxu0  ;;  %v15526_v2 = vld [vmem:[#allocation133_spill] sm:$0xff] }
 0x45f   : > { %7259 = vmatprep.mubr.bf16.mxu1 %v15524_v57  ;;  %v6486_v43 = vpop.f32.mrb[99].mxu0  ;;  %v15527_v57 = vld [vmem:[#allocation144_spill] sm:$0xff] }
 0x460   : > { %15522 = vst [vmem:[#allocation78_spill] sm:$0xff] %v13938_v5 }
 0x461   : > { %v8678_v8 = vpop.f32.mrb[64].mxu1 }
 0x462   : > { %v6619_v56 = vadd.f32 %v8678_v8, %v13768_v37  ;;  %v6610_v50 = vpop.f32.mrb[65].mxu1  ;;  %v15528_v37 = vld [vmem:[#allocation155_spill] sm:$0xff]  ;;  %v15529_v8 = vld [vmem:[#allocation4_spill] sm:$0xff] }
 0x463   : > { %v6611_v47 = vadd.f32 %v6610_v50, %v13752_v41  ;;  %v8679_v60 = vpop.f32.mrb[66].mxu1 }
 0x464   : > { %v13949_v53 = vadd.f32 %v6619_v56, %v15525_v24  ;;  %v6622_v32 = vadd.f32 %v8679_v60, %v13771_v7  ;;  %v6613_v58 = vpop.f32.mrb[67].mxu1  ;;  %v13963_v41 = vpop.f32.mrb[100].mxu0  ;;  %v15530_v56 = vld [vmem:[#allocation145_spill] sm:$0xff] }
 0x465   : > { %v13953_v5 = vadd.f32 %v6611_v47, %v15526_v2  ;;  %v6614_v48 = vadd.f32 %v6613_v58, %v13755_v16  ;;  %v6491_v50 = vpop.f32.mrb[101].mxu0 }
 0x466   : > { %v13957_v40 = vadd.f32 %v6622_v32, %v15527_v57  ;;  %7260 = vmatmul.mubr.bf16.gmra.mrb[172].mxu1 %v15528_v37  ;;  %v13966_v7 = vpop.f32.mrb[102].mxu0 }
 0x467   : > { %v13961_v43 = vadd.f32 %v6614_v48, %v15529_v8  ;;  %7267 = vmatprep.mubr.bf16.mxu1 %v15530_v56  ;;  %v6494_v24 = vpop.f32.mrb[103].mxu0 }
 0x469   : > { %v8682_v60 = vpop.f32.mrb[68].mxu1 }
 0x46a   : > { %v6635_v47 = vadd.f32 %v8682_v60, %v13800_v29  ;;  %v6626_v16 = vpop.f32.mrb[69].mxu1  ;;  %v15531_v29 = vld [vmem:[#allocation158_spill] sm:$0xff] }
 0x46b   : > { %v6627_v32 = vadd.f32 %v6626_v16, %v13784_v18  ;;  %v8683_v58 = vpop.f32.mrb[70].mxu1 }
 0x46c   : > { %v13971_v2 = vadd.f32 %v6635_v47, %v13425_v26  ;;  %v6638_v48 = vadd.f32 %v8683_v58, %v13803_v9  ;;  %v6629_v57 = vpop.f32.mrb[71].mxu1  ;;  %v13985_v18 = vpop.f32.mrb[104].mxu0  ;;  %v15532_v26 = vld [vmem:[#allocation116_spill] sm:$0xff] }
 0x46d   : > { %v13975_v37 = vadd.f32 %v6627_v32, %v13366_v0  ;;  %v6630_v8 = vadd.f32 %v6629_v57, %v13787_v1  ;;  %v6499_v60 = vpop.f32.mrb[105].mxu0 }
 0x46e   : > { %v13979_v56 = vadd.f32 %v6638_v48, %v13433_v45  ;;  %7268 = vmatmul.mubr.bf16.gmra.mrb[176].mxu1 %v15531_v29  ;;  %v13988_v9 = vpop.f32.mrb[106].mxu0 }
 0x46f   : > { %v13983_v50 = vadd.f32 %v6630_v8, %v13388_v54  ;;  %7275 = vmatprep.mubr.bf16.mxu1 %v15532_v26  ;;  %v6502_v24 = vpop.f32.mrb[107].mxu0 }
 0x471   : > { %v8686_v47 = vpop.f32.mrb[72].mxu1 }
 0x472   : > { %v6651_v0 = vadd.f32 %v8686_v47, %v13832_v46  ;;  %v6642_v1 = vpop.f32.mrb[73].mxu1  ;;  %v15533_v46 = vld [vmem:[#allocation113_spill] sm:$0xff] }
 0x473   : > { %v6643_v45 = vadd.f32 %v6642_v1, %v13816_v49  ;;  %v8687_v16 = vpop.f32.mrb[74].mxu1 }
 0x474   : > { %v13993_v32 = vadd.f32 %v6651_v0, %v13533_v61  ;;  %v6654_v54 = vadd.f32 %v8687_v16, %v13835_v39  ;;  %v6645_v58 = vpop.f32.mrb[75].mxu1  ;;  %v14007_v49 = vpop.f32.mrb[108].mxu0  ;;  %v15534_v61 = vld [vmem:[#allocation140_spill] sm:$0xff] }
 0x475   : > { %v13997_v48 = vadd.f32 %v6643_v45, %v13474_v17  ;;  %v6646_v57 = vadd.f32 %v6645_v58, %v13819_v27  ;;  %v6507_v26 = vpop.f32.mrb[109].mxu0 }
 0x476   : > { %v14001_v8 = vadd.f32 %v6654_v54, %v13537_v42  ;;  %7276 = vmatmul.mubr.bf16.gmra.mrb[180].mxu1 %v15533_v46  ;;  %v14010_v39 = vpop.f32.mrb[110].mxu0 }
 0x477   : > { %v14005_v29 = vadd.f32 %v6646_v57, %v13483_v34  ;;  %7283 = vmatprep.mubr.bf16.mxu1 %v15534_v61  ;;  %v6510_v47 = vpop.f32.mrb[111].mxu0 }
 0x479   : > { %v8690_v60 = vpop.f32.mrb[76].mxu1 }
 0x47a   : > { %v6667_v17 = vadd.f32 %v8690_v60, %v13864_v3  ;;  %v6658_v27 = vpop.f32.mrb[77].mxu1  ;;  %v15535_v3 = vld [vmem:[#allocation148_spill] sm:$0xff] }
 0x47b   : > { %v6659_v42 = vadd.f32 %v6658_v27, %v13848_v20  ;;  %v8691_v0 = vpop.f32.mrb[78].mxu1 }
 0x47c   : > { %v14015_v24 = vadd.f32 %v6667_v17, %v13642_v28  ;;  %v6670_v34 = vadd.f32 %v8691_v0, %v13867_v11  ;;  %v6661_v1 = vpop.f32.mrb[79].mxu1  ;;  %v14029_v20 = vpop.f32.mrb[112].mxu0  ;;  %v15536_v28 = vld [vmem:[#allocation26_spill] sm:$0xff] }
 0x47d   : > { %v14019_v45 = vadd.f32 %v6659_v42, %v13591_v59  ;;  %v6662_v16 = vadd.f32 %v6661_v1, %v13851_v30  ;;  %v6515_v57 = vpop.f32.mrb[113].mxu0 }
 0x47e   : > { %v14023_v54 = vadd.f32 %v6670_v34, %v13649_v51  ;;  %7284 = vmatmul.mubr.bf16.gmra.mrb[184].mxu1 %v15535_v3  ;;  %v14032_v11 = vpop.f32.mrb[114].mxu0 }
 0x47f   : > { %v14027_v58 = vadd.f32 %v6662_v16, %v13597_v6  ;;  %7291 = vmatprep.mubr.bf16.mxu1 %v15536_v28  ;;  %v6518_v61 = vpop.f32.mrb[115].mxu0 }
 0x481   : > { %v8694_v46 = vpop.f32.mrb[80].mxu1 }
 0x482   : > { %v6683_v59 = vadd.f32 %v8694_v46, %v13899_v23  ;;  %v6674_v30 = vpop.f32.mrb[81].mxu1  ;;  %v15537_v23 = vld [vmem:[#allocation72_spill] sm:$0xff]  ;;  %v6898_v46 = vrot.slane %v15408_v55, 3 }
 0x483   : > { %v6675_v51 = vadd.f32 %v6674_v30, %v13884_v19  ;;  %v8695_v26 = vpop.f32.mrb[82].mxu1 }
 0x484   : > { %v14037_v60 = vadd.f32 %v6683_v59, %v13703_v22  ;;  %v6686_v6 = vadd.f32 %v8695_v26, %v13902_v4  ;;  %v6677_v17 = vpop.f32.mrb[83].mxu1  ;;  %v14051_v19 = vpop.f32.mrb[116].mxu0  ;;  %v15538_v22 = vld [vmem:[#allocation146_spill] sm:$0xff]  ;;  %v6899_v59 = vrot.slane %v15414_v44, 4 }
 0x485   : > { %v14041_v47 = vadd.f32 %v6675_v51, %v13665_v63  ;;  %v6678_v27 = vadd.f32 %v6677_v17, %v13887_v33  ;;  %v6523_v34 = vpop.f32.mrb[117].mxu0 }
 0x486   : > { %v14045_v42 = vadd.f32 %v6686_v6, %v13709_v10  ;;  %7292 = vmatmul.mubr.bf16.gmra.mrb[188].mxu1 %v15537_v23  ;;  %v14054_v4 = vpop.f32.mrb[118].mxu0 }
 0x487   : > { %v14049_v0 = vadd.f32 %v6678_v27, %v13676_v38  ;;  %7299 = vmatprep.mubr.bf16.mxu1 %v15538_v22  ;;  %v6526_v16 = vpop.f32.mrb[119].mxu0 }
 0x489   : > { %v8698_v1 = vpop.f32.mrb[84].mxu1 }
 0x48a   : > { %v6699_v63 = vadd.f32 %v8698_v1, %v13927_v36  ;;  %v6690_v33 = vpop.f32.mrb[85].mxu1  ;;  %v15542_v1 = vld [vmem:[#allocation8_spill] sm:$0xff] }
 0x48b   : > { %v6691_v10 = vadd.f32 %v6690_v33, %v13913_v35  ;;  %v8699_v3 = vpop.f32.mrb[86].mxu1  ;;  %v15539_v35 = vld [vmem:[#allocation104_spill] sm:$0xff]  ;;  %v15543_v33 = vld [vmem:[#allocation17_spill] sm:$0xff] }
 0x48c   : > { %v14059_v28 = vadd.f32 %v6699_v63, %v13743_v31  ;;  %v6702_v38 = vadd.f32 %v8699_v3, %v13930_v25  ;;  %v6693_v57 = vpop.f32.mrb[87].mxu1  ;;  %v14075_v51 = vpop.f32.mrb[120].mxu0  ;;  %v15540_v25 = vld [vmem:[#allocation59_spill] sm:$0xff] }
 0x48d   : > { %v14065_v61 = vadd.f32 %v6691_v10, %v13723_v52  ;;  %v6694_v36 = vadd.f32 %v6693_v57, %v13916_v12  ;;  %v6531_v55 = vpop.f32.mrb[121].mxu0  ;;  %v6900_v52 = vor.u32 %v6899_v59, %v6898_v46  ;;  %v15546_v57 = vld [vmem:[#allocation74_spill] sm:$0xff] }
 0x48e   : > { %v14069_v30 = vadd.f32 %v6702_v38, %v13749_v15  ;;  %7300 = vmatmul.mubr.bf16.gmra.mrb[192].mxu1 %v13375_v62  ;;  %v14078_v26 = vpop.f32.mrb[122].mxu0  ;;  %v15541_v62 = vld [vmem:[#allocation77_spill] sm:$0xff] }
 0x48f   : > { %v14073_v31 = vadd.f32 %v6694_v36, %v15539_v35  ;;  %7307 = vmatprep.mubr.bf16.mxu1 %v15540_v25  ;;  %v6534_v12 = vpop.f32.mrb[123].mxu0  ;;  %v6901_v10 = vsel %vm4594_vm3, %v15543_v33, %v6900_v52 }
 0x490   : > { %v15547_v12 = vld [vmem:[#allocation22_spill] sm:$0xff] }
 0x491   : > { %v8702_v44 = vpop.f32.mrb[88].mxu1 }
 0x492   : > { %v6715_v6 = vadd.f32 %v8702_v44, %v13963_v41  ;;  %v6706_v17 = vpop.f32.mrb[89].mxu1  ;;  %v15544_v41 = vld [vmem:[#allocation11_spill] sm:$0xff] }
 0x493   : > { %v6707_v15 = vadd.f32 %v6706_v17, %v13941_v21  ;;  %v8703_v27 = vpop.f32.mrb[90].mxu1  ;;  %v15545_v21 = vld [vmem:[#allocation58_spill] sm:$0xff] }
 0x494   : > { %v14083_v23 = vadd.f32 %v6715_v6, %v15541_v62  ;;  %v6718_v22 = vadd.f32 %v8703_v27, %v13966_v7  ;;  %v6709_v34 = vpop.f32.mrb[91].mxu1  ;;  %v6922_v38 = vsel %vm4594_vm3, %v15545_v21, %v15496_v14  ;;  %v6537_v7 = vpop.f32.mrb[124].mxu0  ;;  %v15548_v62 = vld [vmem:[#allocation19_spill] sm:$0xff] }
 0x495   : > { %v14087_v63 = vadd.f32 %v6707_v15, %v15542_v1  ;;  %v6710_v16 = vadd.f32 %v6709_v34, %v13944_v13  ;;  %v6539_v59 = vpop.f32.mrb[125].mxu0  ;;  %v15549_v1 = vld [vmem:[#allocation6_spill] sm:$0xff] }
 0x496   : > { %v14093_v3 = vadd.f32 %v6718_v22, %v15544_v41  ;;  %7308 = vmatmul.mubr.bf16.gmra.mrb[196].mxu1 %v6901_v10  ;;  %v6540_v36 = vpop.f32.mrb[126].mxu0 }
 0x497   : > { %v14099_v46 = vadd.f32 %v6710_v16, %v15546_v57  ;;  %7315 = vmatprep.mubr.bf16.mxu1 %v6922_v38  ;;  %v6542_v25 = vpop.f32.mrb[127].mxu0  ;;  %v6913_v16 = vsel %vm4594_vm3, %v6900_v52, %v15549_v1 }
 0x499   : > { %v8706_v35 = vpop.f32.mrb[92].mxu1 }
 0x49a   : > { %v6731_v13 = vadd.f32 %v8706_v35, %v14007_v49  ;;  %v6722_v55 = vpop.f32.mrb[93].mxu1  ;;  %v15550_v49 = vld [vmem:[#allocation32_spill] sm:$0xff] }
 0x49b   : > { %v6723_v44 = vadd.f32 %v6722_v55, %v13985_v18  ;;  %v8707_v6 = vpop.f32.mrb[94].mxu1  ;;  %v15551_v18 = vld [vmem:[#allocation18_spill] sm:$0xff] }
 0x49c   : > { %v14104_v17 = vadd.f32 %v6731_v13, %v15547_v12  ;;  %v6734_v15 = vadd.f32 %v8707_v6, %v14010_v39  ;;  %v6725_v27 = vpop.f32.mrb[95].mxu1  ;;  %v6545_v41 = vpop.f32.mrb[128].mxu0  ;;  %v15552_v13 = vld [vmem:[#allocation44_spill] sm:$0xff]  ;;  %v15553_v6 = vld [vmem:[#allocation49_spill] sm:$0xff] }
 0x49d   : > { %v14108_v22 = vadd.f32 %v6723_v44, %v15548_v62  ;;  %v6726_v34 = vadd.f32 %v6725_v27, %v13988_v9  ;;  %v6547_v39 = vpop.f32.mrb[129].mxu0 }
 0x49e   : > { %v14114_v33 = vadd.f32 %v6734_v15, %v15550_v49  ;;  %7316 = vmatmul.mubr.bf16.gmra.mrb[200].mxu1 %v6913_v16  ;;  %v6548_v21 = vpop.f32.mrb[130].mxu0  ;;  %v15554_v15 = vld [vmem:[#allocation7_spill] sm:$0xff] }
 0x49f   : > { %v14117_v10 = vadd.f32 %v6726_v34, %v15551_v18  ;;  %7323 = vmatprep.mubr.bf16.mxu1 %v15496_v14  ;;  %v6550_v59 = vpop.f32.mrb[131].mxu0 }
 0x4a0   : > { %v15556_v59 = vld [vmem:[#allocation34_spill] sm:$0xff] }
 0x4a1   : > { %v8710_v38 = vpop.f32.mrb[96].mxu1 }
 0x4a2   : > { %v6747_v57 = vadd.f32 %v8710_v38, %v14051_v19  ;;  %v6738_v9 = vpop.f32.mrb[97].mxu1  ;;  %v15555_v19 = vld [vmem:[#allocation75_spill] sm:$0xff] }
 0x4a3   : > { %v6739_v35 = vadd.f32 %v6738_v9, %v14029_v20  ;;  %v8711_v52 = vpop.f32.mrb[98].mxu1 }
 0x4a4   : > { %v14123_v25 = vadd.f32 %v6747_v57, %v15552_v13  ;;  %v6750_v55 = vadd.f32 %v8711_v52, %v14054_v4  ;;  %v6741_v44 = vpop.f32.mrb[99].mxu1  ;;  %v6553_v20 = vpop.f32.mrb[132].mxu0  ;;  %v15557_v52 = vld [vmem:[#allocation16_spill] sm:$0xff] }
 0x4a5   : > { %v14127_v12 = vadd.f32 %v6739_v35, %v15553_v6  ;;  %v6742_v14 = vadd.f32 %v6741_v44, %v14032_v11  ;;  %v6555_v34 = vpop.f32.mrb[133].mxu0  ;;  %v15559_v6 = vld [vmem:[#allocation21_spill] sm:$0xff] }
 0x4a6   : > { %v14131_v27 = vadd.f32 %v6750_v55, %v15554_v15  ;;  %7324 = vmatmul.mubr.bf16.gmra.mrb[204].mxu1 %v15549_v1  ;;  %v6556_v16 = vpop.f32.mrb[134].mxu0  ;;  %v15558_v55 = vld [vmem:[#allocation30_spill] sm:$0xff] }
 0x4a7   : > { %v14135_v62 = vadd.f32 %v6742_v14, %v15555_v19  ;;  %v6558_v4 = vpop.f32.mrb[135].mxu0 }
 0x4a9   : > { %v8714_v49 = vpop.f32.mrb[100].mxu1 }
 0x4aa   : > { %v6763_v18 = vadd.f32 %v8714_v49, %v6537_v7  ;;  %v6754_v39 = vpop.f32.mrb[101].mxu1 }
 0x4ab   : > { %v6755_v38 = vadd.f32 %v6754_v39, %v14075_v51  ;;  %v8715_v57 = vpop.f32.mrb[102].mxu1  ;;  %v15560_v39 = vld [vmem:[#allocation15_spill] sm:$0xff] }
 0x4ac   : > { %v14139_v11 = vadd.f32 %v6763_v18, %v15556_v59  ;;  %v6766_v9 = vadd.f32 %v8715_v57, %v6540_v36  ;;  %v6757_v35 = vpop.f32.mrb[103].mxu1  ;;  %v6561_v14 = vpop.f32.mrb[136].mxu0  ;;  %v15561_v59 = vld [vmem:[#allocation79_spill] sm:$0xff] }
 0x4ad   : > { %v14142_v1 = vadd.f32 %v6755_v38, %v15557_v52  ;;  %v6758_v13 = vadd.f32 %v6757_v35, %v14078_v26  ;;  %v6563_v15 = vpop.f32.mrb[137].mxu0  ;;  %v15562_v52 = vld [vmem:[#allocation41_spill] sm:$0xff] }
 0x4ae   : > { %v14146_v44 = vadd.f32 %v6766_v9, %v15558_v55  ;;  %v6564_v51 = vpop.f32.mrb[138].mxu0  ;;  %v15564_v55 = vld [vmem:[#allocation83_spill] sm:$0xff] }
 0x4af   : > { %v14149_v7 = vadd.f32 %v6758_v13, %v15559_v6  ;;  %v6566_v49 = vpop.f32.mrb[139].mxu0 }
 0x4b1   : > { %v8718_v19 = vpop.f32.mrb[104].mxu1 }
 0x4b2   : > { %v6779_v34 = vadd.f32 %v8718_v19, %v6553_v20  ;;  %v6770_v18 = vpop.f32.mrb[105].mxu1 }
 0x4b3   : > { %v6771_v36 = vadd.f32 %v6770_v18, %v6545_v41  ;;  %v8719_v4 = vpop.f32.mrb[106].mxu1 }
 0x4b4   : > { %v14152_v38 = vadd.f32 %v6779_v34, %v15560_v39  ;;  %v6782_v57 = vadd.f32 %v8719_v4, %v6556_v16  ;;  %v6773_v26 = vpop.f32.mrb[107].mxu1  ;;  %v6569_v20 = vpop.f32.mrb[140].mxu0  ;;  %v15565_v39 = vld [vmem:[#allocation13_spill] sm:$0xff] }
 0x4b5   : > { %v14155_v9 = vadd.f32 %v6771_v36, %v15561_v59  ;;  %v6774_v35 = vadd.f32 %v6773_v26, %v6548_v21  ;;  %v6571_v15 = vpop.f32.mrb[141].mxu0 }
 0x4b6   : > { %v14158_v13 = vadd.f32 %v6782_v57, %v15562_v52  ;;  %v6572_v41 = vpop.f32.mrb[142].mxu0  ;;  %v15567_v57 = vld [vmem:[#allocation53_spill] sm:$0xff]  ;;  %v15568_v52 = vld [vmem:[#allocation78_spill] sm:$0xff] }
 0x4b7   : > { %v14161_v6 = vadd.f32 %v6774_v35, %v15564_v55  ;;  %v6574_v34 = vpop.f32.mrb[143].mxu0  ;;  %v15570_v15 = vld [vmem:[#allocation29_spill] sm:$0xff] }
 0x4b8   : > { %15563 = vst [vmem:[#allocation47_spill] sm:$0xff] %v14158_v13 }
 0x4b9   : > { %v8722_v19 = vpop.f32.mrb[108].mxu1 }
 0x4ba   : > { %v6795_v49 = vadd.f32 %v8722_v19, %v6569_v20  ;;  %v6786_v18 = vpop.f32.mrb[109].mxu1 }
 0x4bb   : > { %v6787_v16 = vadd.f32 %v6786_v18, %v6561_v14  ;;  %v8723_v4 = vpop.f32.mrb[110].mxu1 }
 0x4bc   : > { %v14164_v36 = vadd.f32 %v6795_v49, %v15565_v39  ;;  %v6798_v21 = vadd.f32 %v8723_v4, %v6572_v41  ;;  %v6789_v26 = vpop.f32.mrb[111].mxu1  ;;  %v8742_v20 = vpop.f32.mrb[144].mxu0 }
 0x4bd   : > { %v14167_v59 = vadd.f32 %v6787_v16, %v15567_v57  ;;  %v6790_v35 = vadd.f32 %v6789_v26, %v6564_v51  ;;  %v7366_v19 = vpop.f32.mrb[145].mxu0 }
 0x4be   : > { %15566 = vst [vmem:[#allocation82_spill] sm:$0xff] %v14164_v36  ;;  %v14170_v55 = vadd.f32 %v6798_v21, %v15568_v52  ;;  %v8743_v34 = vpop.f32.mrb[146].mxu0 }
 0x4bf   : > { %v14173_v13 = vadd.f32 %v6790_v35, %v15570_v15  ;;  %v7369_v39 = vpop.f32.mrb[147].mxu0 }
 0x4c0   : > { %15569 = vst [vmem:[#allocation27_spill] sm:$0xff] %v14170_v55 }
 0x4c1   : > { %v7141_v14 = vpop.f32.mrb[112].mxu1 }
 0x4c2   : > { %v7367_v18 = vadd.f32 %v7366_v19, %v7141_v14  ;;  %v7143_v49 = vpop.f32.mrb[113].mxu1 }
 0x4c3   : > { %v7144_v51 = vpop.f32.mrb[114].mxu1 }
 0x4c4   : > { %v7557_v41 = vadd.f32 %v7367_v18, %v13953_v5  ;;  %v7370_v16 = vadd.f32 %v7369_v39, %v7144_v51  ;;  %v7146_v4 = vpop.f32.mrb[115].mxu1  ;;  %v8746_v26 = vpop.f32.mrb[148].mxu0 }
 0x4c5   : > { %v7382_v57 = vpop.f32.mrb[149].mxu0 }
 0x4c6   : > { %7605 = vst [vmem:[%s14179_s10] sm:$0xff] %v7557_v41  ;;  %v7558_v21 = vadd.f32 %v7370_v16, %v13961_v43  ;;  %v8747_v52 = vpop.f32.mrb[150].mxu0 }
 0x4c7   : > { %v7385_v14 = vpop.f32.mrb[151].mxu0 }
 0x4c8   : > { %7606 = vst [vmem:[%s14179_s10 + $0x8] sm:$0xff] %v7558_v21 }
 0x4c9   : > { %v7149_v35 = vpop.f32.mrb[116].mxu1 }
 0x4ca   : > { %v7375_v15 = vadd.f32 %v8742_v20, %v7149_v35  ;;  %v7151_v19 = vpop.f32.mrb[117].mxu1 }
 0x4cb   : > { %v7152_v49 = vpop.f32.mrb[118].mxu1 }
 0x4cc   : > { %v7559_v55 = vadd.f32 %v7375_v15, %v13949_v53  ;;  %v7378_v36 = vadd.f32 %v8743_v34, %v7152_v49  ;;  %v7154_v5 = vpop.f32.mrb[119].mxu1  ;;  %v8750_v43 = vpop.f32.mrb[152].mxu0 }
 0x4cd   : > { %v7398_v39 = vpop.f32.mrb[153].mxu0 }
 0x4ce   : > { %7607 = vst [vmem:[%s14179_s10 + $0x10] sm:$0xff] %v7559_v55  ;;  %v7560_v18 = vadd.f32 %v7378_v36, %v13957_v40  ;;  %v8751_v41 = vpop.f32.mrb[154].mxu0 }
 0x4cf   : > { %v7401_v20 = vpop.f32.mrb[155].mxu0 }
 0x4d0   : > { %7608 = vst [vmem:[%s14179_s10 + $0x18] sm:$0xff] %v7560_v18 }
 0x4d1   : > { %v7157_v51 = vpop.f32.mrb[120].mxu1 }
 0x4d2   : > { %v7383_v16 = vadd.f32 %v7382_v57, %v7157_v51  ;;  %v7159_v4 = vpop.f32.mrb[121].mxu1 }
 0x4d3   : > { %v7160_v21 = vpop.f32.mrb[122].mxu1 }
 0x4d4   : > { %v7561_v35 = vadd.f32 %v7383_v16, %v13975_v37  ;;  %v7386_v19 = vadd.f32 %v7385_v14, %v7160_v21  ;;  %v7162_v53 = vpop.f32.mrb[123].mxu1  ;;  %v8754_v40 = vpop.f32.mrb[156].mxu0 }
 0x4d5   : > { %v7414_v36 = vpop.f32.mrb[157].mxu0 }
 0x4d6   : > { %7609 = vst [vmem:[%s14179_s10 + $0x20] sm:$0xff] %v7561_v35  ;;  %v7562_v55 = vadd.f32 %v7386_v19, %v13983_v50  ;;  %v8755_v15 = vpop.f32.mrb[158].mxu0 }
 0x4d7   : > { %v7417_v57 = vpop.f32.mrb[159].mxu0 }
 0x4d8   : > { %7610 = vst [vmem:[%s14179_s10 + $0x28] sm:$0xff] %v7562_v55 }
 0x4d9   : > { %v7165_v34 = vpop.f32.mrb[124].mxu1 }
 0x4da   : > { %v7391_v49 = vadd.f32 %v8746_v26, %v7165_v34  ;;  %v7167_v5 = vpop.f32.mrb[125].mxu1 }
 0x4db   : > { %v7168_v18 = vpop.f32.mrb[126].mxu1 }
 0x4dc   : > { %v7563_v51 = vadd.f32 %v7391_v49, %v13971_v2  ;;  %v7394_v4 = vadd.f32 %v8747_v52, %v7168_v18  ;;  %v7170_v37 = vpop.f32.mrb[127].mxu1  ;;  %v14196_v50 = vpop.f32.mrb[160].mxu0 }
 0x4dd   : > { %v7430_v16 = vpop.f32.mrb[161].mxu0 }
 0x4de   : > { %7611 = vst [vmem:[%s14179_s10 + $0x30] sm:$0xff] %v7563_v51  ;;  %v7564_v14 = vadd.f32 %v7394_v4, %v13979_v56  ;;  %v14199_v35 = vpop.f32.mrb[162].mxu0 }
 0x4df   : > { %v7433_v53 = vpop.f32.mrb[163].mxu0 }
 0x4e0   : > { %7612 = vst [vmem:[%s14179_s10 + $0x38] sm:$0xff] %v7564_v14 }
 0x4e1   : > { %v7173_v21 = vpop.f32.mrb[128].mxu1 }
 0x4e2   : > { %v7399_v26 = vadd.f32 %v7398_v39, %v7173_v21  ;;  %v7175_v19 = vpop.f32.mrb[129].mxu1 }
 0x4e3   : > { %v7176_v55 = vpop.f32.mrb[130].mxu1 }
 0x4e4   : > { %v7565_v2 = vadd.f32 %v7399_v26, %v13997_v48  ;;  %v7402_v52 = vadd.f32 %v7401_v20, %v7176_v55  ;;  %v7178_v34 = vpop.f32.mrb[131].mxu1  ;;  %v14204_v49 = vpop.f32.mrb[164].mxu0 }
 0x4e5   : > { %v14207_v5 = vpop.f32.mrb[165].mxu0 }
 0x4e6   : > { %7613 = vst [vmem:[%s14179_s10 + $0x40] sm:$0xff] %v7565_v2  ;;  %v7566_v56 = vadd.f32 %v7402_v52, %v14005_v29  ;;  %v14209_v51 = vpop.f32.mrb[166].mxu0 }
 0x4e7   : > { %v14211_v37 = vpop.f32.mrb[167].mxu0 }
 0x4e8   : > { %7614 = vst [vmem:[%s14179_s10 + $0x48] sm:$0xff] %v7566_v56 }
 0x4e9   : > { %v7181_v18 = vpop.f32.mrb[132].mxu1 }
 0x4ea   : > { %v7407_v39 = vadd.f32 %v8750_v43, %v7181_v18  ;;  %v7183_v4 = vpop.f32.mrb[133].mxu1 }
 0x4eb   : > { %v7184_v48 = vpop.f32.mrb[134].mxu1 }
 0x4ec   : > { %v7567_v20 = vadd.f32 %v7407_v39, %v13993_v32  ;;  %v7410_v14 = vadd.f32 %v8751_v41, %v7184_v48  ;;  %v7186_v21 = vpop.f32.mrb[135].mxu1  ;;  %v14216_v26 = vpop.f32.mrb[168].mxu0 }
 0x4ed   : > { %v14219_v19 = vpop.f32.mrb[169].mxu0 }
 0x4ee   : > { %7615 = vst [vmem:[%s14179_s10 + $0x50] sm:$0xff] %v7567_v20  ;;  %v7568_v29 = vadd.f32 %v7410_v14, %v14001_v8  ;;  %v14221_v43 = vpop.f32.mrb[170].mxu0 }
 0x4ef   : > { %v14223_v34 = vpop.f32.mrb[171].mxu0 }
 0x4f0   : > { %7616 = vst [vmem:[%s14179_s10 + $0x58] sm:$0xff] %v7568_v29 }
 0x4f1   : > { %v7189_v55 = vpop.f32.mrb[136].mxu1 }
 0x4f2   : > { %v7415_v2 = vadd.f32 %v7414_v36, %v7189_v55  ;;  %v7191_v52 = vpop.f32.mrb[137].mxu1 }
 0x4f3   : > { %v7192_v32 = vpop.f32.mrb[138].mxu1 }
 0x4f4   : > { %v7569_v41 = vadd.f32 %v7415_v2, %v14019_v45  ;;  %v7418_v56 = vadd.f32 %v7417_v57, %v7192_v32  ;;  %v7194_v18 = vpop.f32.mrb[139].mxu1  ;;  %v14228_v39 = vpop.f32.mrb[172].mxu0 }
 0x4f5   : > { %v14231_v4 = vpop.f32.mrb[173].mxu0 }
 0x4f6   : > { %7617 = vst [vmem:[%s14179_s10 + $0x60] sm:$0xff] %v7569_v41  ;;  %v7570_v8 = vadd.f32 %v7418_v56, %v14027_v58  ;;  %v14233_v36 = vpop.f32.mrb[174].mxu0 }
 0x4f7   : > { %v14235_v21 = vpop.f32.mrb[175].mxu0 }
 0x4f8   : > { %7618 = vst [vmem:[%s14179_s10 + $0x68] sm:$0xff] %v7570_v8 }
 0x4f9   : > { %v7197_v48 = vpop.f32.mrb[140].mxu1 }
 0x4fa   : > { %v7423_v20 = vadd.f32 %v8754_v40, %v7197_v48  ;;  %v7199_v14 = vpop.f32.mrb[141].mxu1 }
 0x4fb   : > { %v7200_v45 = vpop.f32.mrb[142].mxu1 }
 0x4fc   : > { %v7571_v57 = vadd.f32 %v7423_v20, %v14015_v24  ;;  %v7426_v29 = vadd.f32 %v8755_v15, %v7200_v45  ;;  %v7202_v55 = vpop.f32.mrb[143].mxu1  ;;  %v14240_v2 = vpop.f32.mrb[176].mxu0 }
 0x4fd   : > { %v14243_v52 = vpop.f32.mrb[177].mxu0 }
 0x4fe   : > { %7619 = vst [vmem:[%s14179_s10 + $0x70] sm:$0xff] %v7571_v57  ;;  %v7572_v58 = vadd.f32 %v7426_v29, %v14023_v54  ;;  %v14245_v40 = vpop.f32.mrb[178].mxu0 }
 0x4ff   : > { %v14247_v18 = vpop.f32.mrb[179].mxu0 }
 0x500   : > { %7620 = vst [vmem:[%s14179_s10 + $0x78] sm:$0xff] %v7572_v58 }
 0x501   : > { %v7205_v32 = vpop.f32.mrb[144].mxu1 }
 0x502   : > { %v7431_v41 = vadd.f32 %v7430_v16, %v7205_v32  ;;  %v7207_v56 = vpop.f32.mrb[145].mxu1 }
 0x503   : > { %v7208_v24 = vpop.f32.mrb[146].mxu1 }
 0x504   : > { %v7573_v15 = vadd.f32 %v7431_v41, %v14041_v47  ;;  %v7434_v8 = vadd.f32 %v7433_v53, %v7208_v24  ;;  %v7210_v48 = vpop.f32.mrb[147].mxu1  ;;  %v14252_v20 = vpop.f32.mrb[180].mxu0 }
 0x505   : > { %v14255_v14 = vpop.f32.mrb[181].mxu0 }
 0x506   : > { %7621 = vst [vmem:[%s14179_s10 + $0x80] sm:$0xff] %v7573_v15  ;;  %v7574_v54 = vadd.f32 %v7434_v8, %v14049_v0  ;;  %v14257_v16 = vpop.f32.mrb[182].mxu0 }
 0x507   : > { %v14260_v55 = vpop.f32.mrb[183].mxu0 }
 0x508   : > { %7622 = vst [vmem:[%s14179_s10 + $0x88] sm:$0xff] %v7574_v54 }
 0x509   : > { %v7213_v45 = vpop.f32.mrb[148].mxu1 }
 0x50a   : > { %v7439_v57 = vadd.f32 %v14196_v50, %v7213_v45  ;;  %v7215_v29 = vpop.f32.mrb[149].mxu1 }
 0x50b   : > { %v7216_v47 = vpop.f32.mrb[150].mxu1 }
 0x50c   : > { %v7575_v53 = vadd.f32 %v7439_v57, %v14037_v60  ;;  %v7442_v58 = vadd.f32 %v14199_v35, %v7216_v47  ;;  %v7218_v0 = vpop.f32.mrb[151].mxu1  ;;  %v14266_v41 = vpop.f32.mrb[184].mxu0 }
 0x50d   : > { %v14269_v56 = vpop.f32.mrb[185].mxu0 }
 0x50e   : > { %7623 = vst [vmem:[%s14179_s10 + $0x90] sm:$0xff] %v7575_v53  ;;  %v7576_v32 = vadd.f32 %v7442_v58, %v14045_v42  ;;  %v14271_v24 = vpop.f32.mrb[186].mxu0 }
 0x50f   : > { %v14274_v60 = vpop.f32.mrb[187].mxu0 }
 0x510   : > { %7624 = vst [vmem:[%s14179_s10 + $0x98] sm:$0xff] %v7576_v32 }
 0x511   : > { %v7221_v50 = vpop.f32.mrb[152].mxu1 }
 0x512   : > { %v7447_v15 = vadd.f32 %v14207_v5, %v7221_v50  ;;  %v7223_v8 = vpop.f32.mrb[153].mxu1 }
 0x513   : > { %v7224_v35 = vpop.f32.mrb[154].mxu1 }
 0x514   : > { %v7577_v48 = vadd.f32 %v7447_v15, %v14065_v61  ;;  %v7450_v54 = vadd.f32 %v14211_v37, %v7224_v35  ;;  %v7226_v42 = vpop.f32.mrb[155].mxu1  ;;  %v14280_v57 = vpop.f32.mrb[188].mxu0 }
 0x515   : > { %v14283_v29 = vpop.f32.mrb[189].mxu0 }
 0x516   : > { %7625 = vst [vmem:[%s14179_s10 + $0xa0] sm:$0xff] %v7577_v48  ;;  %v7578_v45 = vadd.f32 %v7450_v54, %v14073_v31  ;;  %v14285_v47 = vpop.f32.mrb[190].mxu0 }
 0x517   : > { %v14288_v61 = vpop.f32.mrb[191].mxu0 }
 0x518   : > { %7626 = vst [vmem:[%s14179_s10 + $0xa8] sm:$0xff] %v7578_v45 }
 0x519   : > { %v7229_v5 = vpop.f32.mrb[156].mxu1 }
 0x51a   : > { %v7455_v53 = vadd.f32 %v14204_v49, %v7229_v5  ;;  %v7231_v58 = vpop.f32.mrb[157].mxu1 }
 0x51b   : > { %v7232_v37 = vpop.f32.mrb[158].mxu1 }
 0x51c   : > { %v7579_v0 = vadd.f32 %v7455_v53, %v14059_v28  ;;  %v7458_v31 = vadd.f32 %v14209_v51, %v7232_v37  ;;  %v7234_v32 = vpop.f32.mrb[159].mxu1 }
 0x51e   : > { %7627 = vst [vmem:[%s14179_s10 + $0xb0] sm:$0xff] %v7579_v0  ;;  %v7580_v50 = vadd.f32 %v7458_v31, %v14069_v30 }
 0x520   : > { %7628 = vst [vmem:[%s14179_s10 + $0xb8] sm:$0xff] %v7580_v50 }
 0x521   : > { %v7237_v15 = vpop.f32.mrb[160].mxu1 }
 0x522   : > { %v7463_v8 = vadd.f32 %v14219_v19, %v7237_v15  ;;  %v7239_v49 = vpop.f32.mrb[161].mxu1 }
 0x523   : > { %v7240_v35 = vpop.f32.mrb[162].mxu1 }
 0x524   : > { %v7581_v48 = vadd.f32 %v7463_v8, %v14087_v63  ;;  %v7466_v54 = vadd.f32 %v14223_v34, %v7240_v35  ;;  %v7242_v42 = vpop.f32.mrb[163].mxu1 }
 0x526   : > { %7629 = vst [vmem:[%s14179_s10 + $0xc0] sm:$0xff] %v7581_v48  ;;  %v7582_v28 = vadd.f32 %v7466_v54, %v14099_v46 }
 0x528   : > { %7630 = vst [vmem:[%s14179_s10 + $0xc8] sm:$0xff] %v7582_v28 }
 0x529   : > { %v7245_v51 = vpop.f32.mrb[164].mxu1 }
 0x52a   : > { %v7471_v30 = vadd.f32 %v14216_v26, %v7245_v51  ;;  %v7247_v45 = vpop.f32.mrb[165].mxu1 }
 0x52b   : > { %v7248_v5 = vpop.f32.mrb[166].mxu1 }
 0x52c   : > { %v7583_v19 = vadd.f32 %v7471_v30, %v14083_v23  ;;  %v7474_v53 = vadd.f32 %v14221_v43, %v7248_v5  ;;  %v7250_v58 = vpop.f32.mrb[167].mxu1 }
 0x52e   : > { %7631 = vst [vmem:[%s14179_s10 + $0xd0] sm:$0xff] %v7583_v19  ;;  %v7584_v63 = vadd.f32 %v7474_v53, %v14093_v3 }
 0x530   : > { %7632 = vst [vmem:[%s14179_s10 + $0xd8] sm:$0xff] %v7584_v63 }
 0x531   : > { %v7253_v34 = vpop.f32.mrb[168].mxu1 }
 0x532   : > { %v7479_v46 = vadd.f32 %v14231_v4, %v7253_v34  ;;  %v7255_v37 = vpop.f32.mrb[169].mxu1 }
 0x533   : > { %v7256_v0 = vpop.f32.mrb[170].mxu1 }
 0x534   : > { %v7585_v26 = vadd.f32 %v7479_v46, %v14108_v22  ;;  %v7482_v31 = vadd.f32 %v14235_v21, %v7256_v0  ;;  %v7258_v32 = vpop.f32.mrb[171].mxu1 }
 0x536   : > { %7633 = vst [vmem:[%s14179_s10 + $0xe0] sm:$0xff] %v7585_v26  ;;  %v7586_v23 = vadd.f32 %v7482_v31, %v14117_v10 }
 0x538   : > { %7634 = vst [vmem:[%s14179_s10 + $0xe8] sm:$0xff] %v7586_v23 }
 0x539   : > { %v7261_v43 = vpop.f32.mrb[172].mxu1 }
 0x53a   : > { %v7487_v3 = vadd.f32 %v14228_v39, %v7261_v43  ;;  %v7263_v50 = vpop.f32.mrb[173].mxu1 }
 0x53b   : > { %v7264_v15 = vpop.f32.mrb[174].mxu1 }
 0x53c   : > { %v7587_v4 = vadd.f32 %v7487_v3, %v14104_v17  ;;  %v7490_v8 = vadd.f32 %v14233_v36, %v7264_v15  ;;  %v7266_v49 = vpop.f32.mrb[175].mxu1 }
 0x53e   : > { %7635 = vst [vmem:[%s14179_s10 + $0xf0] sm:$0xff] %v7587_v4  ;;  %v7588_v22 = vadd.f32 %v7490_v8, %v14114_v33 }
 0x540   : > { %7636 = vst [vmem:[%s14179_s10 + $0xf8] sm:$0xff] %v7588_v22 }
 0x541   : > { %v7269_v21 = vpop.f32.mrb[176].mxu1 }
 0x542   : > { %v7495_v10 = vadd.f32 %v14243_v52, %v7269_v21  ;;  %v7271_v35 = vpop.f32.mrb[177].mxu1 }
 0x543   : > { %v7272_v48 = vpop.f32.mrb[178].mxu1 }
 0x544   : > { %v7589_v39 = vadd.f32 %v7495_v10, %v14127_v12  ;;  %v7498_v54 = vadd.f32 %v14247_v18, %v7272_v48  ;;  %v7274_v42 = vpop.f32.mrb[179].mxu1  ;;  %v15572_v48 = vld [vmem:[#allocation82_spill] sm:$0xff] }
 0x545   : > { %v15573_v42 = vld [vmem:[#allocation27_spill] sm:$0xff] }
 0x546   : > { %7637 = vst [vmem:[%s14179_s10 + $0x100] sm:$0xff] %v7589_v39  ;;  %v7590_v17 = vadd.f32 %v7498_v54, %v14135_v62 }
 0x548   : > { %7638 = vst [vmem:[%s14179_s10 + $0x108] sm:$0xff] %v7590_v17 }
 0x549   : > { %v7277_v36 = vpop.f32.mrb[180].mxu1 }
 0x54a   : > { %v7503_v33 = vadd.f32 %v14240_v2, %v7277_v36  ;;  %v7279_v28 = vpop.f32.mrb[181].mxu1 }
 0x54b   : > { %v7280_v51 = vpop.f32.mrb[182].mxu1 }
 0x54c   : > { %v7591_v52 = vadd.f32 %v7503_v33, %v14123_v25  ;;  %v7506_v30 = vadd.f32 %v14245_v40, %v7280_v51  ;;  %v7282_v45 = vpop.f32.mrb[183].mxu1 }
 0x54e   : > { %7639 = vst [vmem:[%s14179_s10 + $0x110] sm:$0xff] %v7591_v52  ;;  %v7592_v12 = vadd.f32 %v7506_v30, %v14131_v27 }
 0x550   : > { %7640 = vst [vmem:[%s14179_s10 + $0x118] sm:$0xff] %v7592_v12 }
 0x551   : > { %v7285_v18 = vpop.f32.mrb[184].mxu1 }
 0x552   : > { %v7511_v62 = vadd.f32 %v14255_v14, %v7285_v18  ;;  %v7287_v5 = vpop.f32.mrb[185].mxu1 }
 0x553   : > { %v7288_v19 = vpop.f32.mrb[186].mxu1 }
 0x554   : > { %v7593_v2 = vadd.f32 %v7511_v62, %v14142_v1  ;;  %v7514_v53 = vadd.f32 %v14260_v55, %v7288_v19  ;;  %v7290_v58 = vpop.f32.mrb[187].mxu1 }
 0x556   : > { %7641 = vst [vmem:[%s14179_s10 + $0x120] sm:$0xff] %v7593_v2  ;;  %v7594_v25 = vadd.f32 %v7514_v53, %v14149_v7 }
 0x558   : > { %7642 = vst [vmem:[%s14179_s10 + $0x128] sm:$0xff] %v7594_v25 }
 0x559   : > { %v7293_v40 = vpop.f32.mrb[188].mxu1 }
 0x55a   : > { %v7519_v27 = vadd.f32 %v14252_v20, %v7293_v40  ;;  %v7295_v63 = vpop.f32.mrb[189].mxu1 }
 0x55b   : > { %v7296_v34 = vpop.f32.mrb[190].mxu1 }
 0x55c   : > { %v7595_v14 = vadd.f32 %v7519_v27, %v14139_v11  ;;  %v7522_v46 = vadd.f32 %v14257_v16, %v7296_v34  ;;  %v7298_v37 = vpop.f32.mrb[191].mxu1 }
 0x55e   : > { %7643 = vst [vmem:[%s14179_s10 + $0x130] sm:$0xff] %v7595_v14  ;;  %v7596_v1 = vadd.f32 %v7522_v46, %v14146_v44 }
 0x560   : > { %7644 = vst [vmem:[%s14179_s10 + $0x138] sm:$0xff] %v7596_v1 }
 0x561   : > { %v7301_v55 = vpop.f32.mrb[192].mxu1 }
 0x562   : > { %v7527_v7 = vadd.f32 %v14269_v56, %v7301_v55  ;;  %v7303_v0 = vpop.f32.mrb[193].mxu1 }
 0x563   : > { %v7304_v26 = vpop.f32.mrb[194].mxu1 }
 0x564   : > { %v7597_v20 = vadd.f32 %v7527_v7, %v14155_v9  ;;  %v7530_v31 = vadd.f32 %v14274_v60, %v7304_v26  ;;  %v7306_v32 = vpop.f32.mrb[195].mxu1  ;;  %v15571_v9 = vld [vmem:[#allocation47_spill] sm:$0xff] }
 0x566   : > { %7645 = vst [vmem:[%s14179_s10 + $0x140] sm:$0xff] %v7597_v20  ;;  %v7598_v11 = vadd.f32 %v7530_v31, %v14161_v6 }
 0x568   : > { %7646 = vst [vmem:[%s14179_s10 + $0x148] sm:$0xff] %v7598_v11 }
 0x569   : > { %v7309_v16 = vpop.f32.mrb[196].mxu1 }
 0x56a   : > { %v7535_v44 = vadd.f32 %v14266_v41, %v7309_v16  ;;  %v7311_v23 = vpop.f32.mrb[197].mxu1 }
 0x56b   : > { %v7312_v43 = vpop.f32.mrb[198].mxu1 }
 0x56c   : > { %v7599_v56 = vadd.f32 %v7535_v44, %v14152_v38  ;;  %v7538_v3 = vadd.f32 %v14271_v24, %v7312_v43  ;;  %v7314_v50 = vpop.f32.mrb[199].mxu1 }
 0x56e   : > { %7647 = vst [vmem:[%s14179_s10 + $0x150] sm:$0xff] %v7599_v56  ;;  %v7600_v60 = vadd.f32 %v7538_v3, %v15571_v9 }
 0x570   : > { %7648 = vst [vmem:[%s14179_s10 + $0x158] sm:$0xff] %v7600_v60 }
 0x571   : > { %v7317_v15 = vpop.f32.mrb[200].mxu1 }
 0x572   : > { %v7543_v6 = vadd.f32 %v14283_v29, %v7317_v15  ;;  %v7319_v4 = vpop.f32.mrb[201].mxu1 }
 0x573   : > { %v7320_v8 = vpop.f32.mrb[202].mxu1 }
 0x574   : > { %v7601_v41 = vadd.f32 %v7543_v6, %v14167_v59  ;;  %v7546_v49 = vadd.f32 %v14288_v61, %v7320_v8  ;;  %v7322_v22 = vpop.f32.mrb[203].mxu1 }
 0x576   : > { %7649 = vst [vmem:[%s14179_s10 + $0x160] sm:$0xff] %v7601_v41  ;;  %v7602_v38 = vadd.f32 %v7546_v49, %v14173_v13 }
 0x578   : > { %7650 = vst [vmem:[%s14179_s10 + $0x168] sm:$0xff] %v7602_v38 }
 0x579   : > { %v7325_v24 = vpop.f32.mrb[204].mxu1 }
 0x57a   : > { %v7551_v21 = vadd.f32 %v14280_v57, %v7325_v24  ;;  %v7327_v10 = vpop.f32.mrb[205].mxu1 }
 0x57b   : > { %v7328_v35 = vpop.f32.mrb[206].mxu1 }
 0x57c   : > { %v7603_v29 = vadd.f32 %v7551_v21, %v15572_v48  ;;  %v7554_v39 = vadd.f32 %v14285_v47, %v7328_v35  ;;  %v7330_v54 = vpop.f32.mrb[207].mxu1 }
 0x57e   : > { %7651 = vst [vmem:[%s14179_s10 + $0x170] sm:$0xff] %v7603_v29  ;;  %v7604_v59 = vadd.f32 %v7554_v39, %v15573_v42 }
 0x580   : > { %7652 = vst [vmem:[%s14179_s10 + $0x178] sm:$0xff] %v7604_v59 }
 0x581 PF: > { %s17_s24 = sadd.s32 1, %s9050_s24  }
 0x582   : > { %p14_p4 = scmp.ge.s32.totalorder %s17_s24, 4  }
 0x584   :  { %16 = sbr.rel (!%p14_p4) target bundleno = 1 (0x1), region = 82 }

</bundles_post_ra>
